<compile_context>
chip_gen: v7x
topology: tpu7x:2x2x1
jax: 0.10.0
libtpu: 0.0.40
codegen_flags: <defaults>
</compile_context>

<pallas_src>
import functools

import jax
import jax.numpy as jnp
from jax.experimental import pallas as pl
from jax.experimental.pallas import tpu as pltpu

EPS = 1e-5


def _fused_kernel(x_ref, w_ref, r_ref, gb_ref, o_ref):
    # x_ref:  (Cin, M)  full activation, channel-leading (grid-invariant)
    # w_ref:  (TN, Cin) tile of conv weight rows (output channels)
    # r_ref:  (TN, M)   residual tile
    # gb_ref: (TN, 2)   packed BN affine params: [:, 0]=gamma, [:, 1]=beta
    # o_ref:  (TN, M)   output tile
    y = jnp.dot(w_ref[...], x_ref[...], preferred_element_type=jnp.float32)  # (TN, M)

    m = y.shape[1]
    inv_m = 1.0 / m
    # Fused batch-stat pass: per-channel mean and E[y^2] (reduce over lanes).
    mean = jnp.sum(y, axis=1, keepdims=True) * inv_m            # (TN, 1)
    mean_sq = jnp.sum(y * y, axis=1, keepdims=True) * inv_m     # (TN, 1)
    # Clamp: E[y^2] - mean^2 can go slightly negative in f32 for low-variance
    # channels; without the clamp rsqrt could produce NaN.  Costs nothing.
    var = jnp.maximum(mean_sq - mean * mean, 0.0)

    gamma = gb_ref[:, 0:1]                                      # (TN, 1)
    beta = gb_ref[:, 1:2]                                       # (TN, 1)

    # BN + affine collapsed to one per-channel scale/shift: out = y*a + b
    a = gamma * jax.lax.rsqrt(var + EPS)                        # (TN, 1)
    b = beta - mean * a                                         # (TN, 1)

    out = y * a + b + r_ref[...]
    o_ref[...] = jnp.maximum(out, 0.0).astype(o_ref.dtype)


@functools.partial(jax.jit, static_argnames=("tn", "matmul_dtype"))
def conv_bn_add_relu(x118, x112, weight, gamma, beta, *, tn=256, matmul_dtype=None):
    """x118: (N, Cin, H, W), x112: (N, Cout, H, W), weight: (Cout, Cin, 1, 1).

    tn=256 -> grid=(4,): even, >=4 (2 steps/TensorCore on v7x), and only 4
    pipeline steps of ~0.35 us overhead each.  Set matmul_dtype=jnp.bfloat16
    on v5e (MXU-f32-bound there); f32 accumulation is kept either way.
    """
    N, Cin, H, W = x118.shape
    Cout = weight.shape[0]
    M = N * H * W

    # Channel-leading (C, M) glue.  For N == 1 these are plain reshapes.
    if N == 1:
        x2d = x118.reshape(Cin, M)
        r2d = x112.reshape(Cout, M)
    else:
        x2d = jnp.transpose(x118, (1, 0, 2, 3)).reshape(Cin, M)
        r2d = jnp.transpose(x112, (1, 0, 2, 3)).reshape(Cout, M)
    w2d = weight.reshape(Cout, Cin)                    # (Cout, Cin) -- no transpose
    if matmul_dtype is not None:
        x2d = x2d.astype(matmul_dtype)
        w2d = w2d.astype(matmul_dtype)
    # Pack gamma/beta into one (Cout, 2) array -> single tiny DMA per step.
    gb2d = jnp.stack([gamma, beta], axis=1)            # (Cout, 2)

    grid = (Cout // tn,)                               # tn=256 -> 4 steps

    out2d = pl.pallas_call(
        _fused_kernel,
        out_shape=jax.ShapeDtypeStruct((Cout, M), x118.dtype),
        grid_spec=pltpu.PrefetchScalarGridSpec(
            num_scalar_prefetch=0,
            grid=grid,
            in_specs=[
                pl.BlockSpec((Cin, M), lambda j: (0, 0)),    # x (grid-invariant)
                pl.BlockSpec((tn, Cin), lambda j: (j, 0)),   # weight tile
                pl.BlockSpec((tn, M), lambda j: (j, 0)),     # residual tile
                pl.BlockSpec((tn, 2), lambda j: (j, 0)),     # packed gamma/beta tile
            ],
            out_specs=pl.BlockSpec((tn, M), lambda j: (j, 0)),
        ),
        compiler_params=pltpu.CompilerParams(
            dimension_semantics=("parallel",),
            vmem_limit_bytes=32 * 1024 * 1024,   # ~5 MiB used at tn=256; room for tn=512
        ),
    )(x2d, w2d, r2d, gb2d)

    # (Cout, M) -> NCHW
    if N == 1:
        return out2d.reshape(1, Cout, H, W)
    return jnp.transpose(out2d.reshape(Cout, N, H, W), (1, 0, 2, 3))


def _reference(x118, x112, weight, gamma, beta):
    N, Cin, H, W = x118.shape
    Cout = weight.shape[0]
    x2d = jnp.transpose(x118, (0, 2, 3, 1)).reshape(-1, Cin)
    y = x2d @ jnp.transpose(weight.reshape(Cout, Cin), (1, 0))
    mean = jnp.mean(y, axis=0, keepdims=True)
    var = jnp.mean((y - mean) ** 2, axis=0, keepdims=True)
    y = (y - mean) / jnp.sqrt(var + EPS) * gamma.reshape(1, -1) + beta.reshape(1, -1)
    y = y + jnp.transpose(x112, (0, 2, 3, 1)).reshape(-1, Cout)
    y = jnp.maximum(y, 0.0)
    return jnp.transpose(y.reshape(N, H, W, Cout), (0, 3, 1, 2))


if __name__ == "__main__":
    # Module-consistent shapes: N=1, 28x28 spatial, 256 -> 1024 channels.
    N, Cin, Cout, H, W = 1, 256, 1024, 28, 28

    key = jax.random.PRNGKey(0)
    k1, k2, k3, k4, k5 = jax.random.split(key, 5)

    x118 = jax.random.normal(k1, (N, Cin, H, W), dtype=jnp.float32)
    x112 = jax.random.normal(k2, (N, Cout, H, W), dtype=jnp.float32)
    weight = jax.random.normal(k3, (Cout, Cin, 1, 1), dtype=jnp.float32) * 0.05
    gamma = 1.0 + 0.1 * jax.random.normal(k4, (Cout,), dtype=jnp.float32)
    beta = 0.1 * jax.random.normal(k5, (Cout,), dtype=jnp.float32)

    # TODO(synk): PyTorch BatchNorm2d train mode also updates running_mean/var
    # (momentum=0.1); the forward output does not depend on them, so they are
    # not computed here.

    out = conv_bn_add_relu(x118, x112, weight, gamma, beta)
    out = jax.block_until_ready(out)

    ref = _reference(x118, x112, weight, gamma, beta)
    assert out.shape == (N, Cout, H, W)
    assert jnp.allclose(out, ref, atol=1e-3, rtol=1e-3)

    print("KERNEL_OK")
</pallas_src>

<mosaic_0001>
module attributes {stable_mosaic.version = 11 : i64} {
  func.func @_fused_kernel(%arg0: i32, %arg1: memref<256x784xf32, #tpu.memory_space<vmem>>, %arg2: memref<256x256xf32, #tpu.memory_space<vmem>>, %arg3: memref<256x784xf32, #tpu.memory_space<vmem>>, %arg4: memref<256x2xf32, #tpu.memory_space<vmem>>, %arg5: memref<256x784xf32, #tpu.memory_space<vmem>>) attributes {dimension_semantics = [#tpu.dimension_semantics<parallel>], iteration_bounds = array<i64: 4>, scalar_prefetch = 0 : i64, scratch_operands = 0 : i64, tpu.core_type = #tpu.core_type<tc>, window_params = [{pipeline_mode = #tpu.pipeline_mode<synchronous>, transform_indices = @transform_0, window_bounds = array<i64: 256, 784>}, {transform_indices = @transform_1, window_bounds = array<i64: 256, 256>}, {transform_indices = @transform_2, window_bounds = array<i64: 256, 784>}, {transform_indices = @transform_3, window_bounds = array<i64: 256, 2>}, {transform_indices = @transform_4, window_bounds = array<i64: 256, 784>}]} {
    %c0 = arith.constant 0 : index
    %c0_0 = arith.constant 0 : index
    %0 = vector.load %arg2[%c0, %c0_0] : memref<256x256xf32, #tpu.memory_space<vmem>>, vector<256x256xf32>
    %c0_1 = arith.constant 0 : index
    %c0_2 = arith.constant 0 : index
    %1 = vector.load %arg1[%c0_1, %c0_2] : memref<256x784xf32, #tpu.memory_space<vmem>>, vector<256x784xf32>
    %cst = arith.constant dense<0.000000e+00> : vector<256x784xf32>
    %2 = tpu.matmul %0, %1, %cst {dimension_numbers = #tpu.dot_dimension_numbers<[1], [0], [0], [1], [0, 0, 1, 1], [], []>} : vector<256x256xf32>, vector<256x784xf32>, vector<256x784xf32> -> vector<256x784xf32>
    %cst_3 = arith.constant dense<0.000000e+00> : vector<256xf32>
    %3 = vector.multi_reduction <add>, %2, %cst_3 [1] : vector<256x784xf32> to vector<256xf32>
    %4 = vector.shape_cast %3 : vector<256xf32> to vector<256x1xf32>
    %cst_4 = arith.constant 0.00127551018 : f32
    %5 = vector.broadcast %cst_4 : f32 to vector<256x1xf32>
    %6 = arith.mulf %4, %5 : vector<256x1xf32>
    %7 = arith.mulf %2, %2 : vector<256x784xf32>
    %cst_5 = arith.constant dense<0.000000e+00> : vector<256xf32>
    %8 = vector.multi_reduction <add>, %7, %cst_5 [1] : vector<256x784xf32> to vector<256xf32>
    %9 = vector.shape_cast %8 : vector<256xf32> to vector<256x1xf32>
    %cst_6 = arith.constant 0.00127551018 : f32
    %10 = vector.broadcast %cst_6 : f32 to vector<256x1xf32>
    %11 = arith.mulf %9, %10 : vector<256x1xf32>
    %12 = arith.mulf %6, %6 : vector<256x1xf32>
    %13 = arith.subf %11, %12 : vector<256x1xf32>
    %cst_7 = arith.constant 0.000000e+00 : f32
    %14 = vector.broadcast %cst_7 : f32 to vector<256x1xf32>
    %15 = arith.maximumf %13, %14 : vector<256x1xf32>
    %c0_8 = arith.constant 0 : index
    %c0_9 = arith.constant 0 : index
    %16 = vector.load %arg4[%c0_8, %c0_9] : memref<256x2xf32, #tpu.memory_space<vmem>>, vector<256x1xf32>
    %c0_10 = arith.constant 0 : index
    %c1 = arith.constant 1 : index
    %17 = vector.load %arg4[%c0_10, %c1] : memref<256x2xf32, #tpu.memory_space<vmem>>, vector<256x1xf32>
    %cst_11 = arith.constant 9.99999974E-6 : f32
    %18 = vector.broadcast %cst_11 : f32 to vector<256x1xf32>
    %19 = arith.addf %15, %18 : vector<256x1xf32>
    %20 = math.rsqrt %19 : vector<256x1xf32>
    %21 = arith.mulf %16, %20 : vector<256x1xf32>
    %22 = arith.mulf %6, %21 : vector<256x1xf32>
    %23 = arith.subf %17, %22 : vector<256x1xf32>
    %24 = vector.broadcast %21 : vector<256x1xf32> to vector<256x784xf32>
    %25 = arith.mulf %2, %24 : vector<256x784xf32>
    %26 = vector.broadcast %23 : vector<256x1xf32> to vector<256x784xf32>
    %27 = arith.addf %25, %26 : vector<256x784xf32>
    %c0_12 = arith.constant 0 : index
    %c0_13 = arith.constant 0 : index
    %28 = vector.load %arg3[%c0_12, %c0_13] : memref<256x784xf32, #tpu.memory_space<vmem>>, vector<256x784xf32>
    %29 = arith.addf %27, %28 : vector<256x784xf32>
    %cst_14 = arith.constant 0.000000e+00 : f32
    %30 = vector.broadcast %cst_14 : f32 to vector<256x784xf32>
    %31 = arith.maximumf %29, %30 : vector<256x784xf32>
    %c0_15 = arith.constant 0 : index
    %c0_16 = arith.constant 0 : index
    %32 = vector.load %arg5[%c0_15, %c0_16] : memref<256x784xf32, #tpu.memory_space<vmem>>, vector<256x784xf32>
    tpu.vector_store %arg5[%c0_15, %c0_16], %31 {strides = array<i32>} : memref<256x784xf32, #tpu.memory_space<vmem>>, vector<256x784xf32>,
    return
  }
  func.func @transform_0(%arg0: i32) -> (i32, i32) {
    %c0_i32 = arith.constant 0 : i32
    %c0_i32_0 = arith.constant 0 : i32
    %c0_i32_1 = arith.constant 0 : i32
    return %c0_i32, %c0_i32_0 : i32, i32
  }
  func.func @transform_1(%arg0: i32) -> (i32, i32) {
    %c0_i32 = arith.constant 0 : i32
    %c0_i32_0 = arith.constant 0 : i32
    return %arg0, %c0_i32 : i32, i32
  }
  func.func @transform_2(%arg0: i32) -> (i32, i32) {
    %c0_i32 = arith.constant 0 : i32
    %c0_i32_0 = arith.constant 0 : i32
    return %arg0, %c0_i32 : i32, i32
  }
  func.func @transform_3(%arg0: i32) -> (i32, i32) {
    %c0_i32 = arith.constant 0 : i32
    %c0_i32_0 = arith.constant 0 : i32
    return %arg0, %c0_i32 : i32, i32
  }
  func.func @transform_4(%arg0: i32) -> (i32, i32) {
    %c0_i32 = arith.constant 0 : i32
    %c0_i32_0 = arith.constant 0 : i32
    return %arg0, %c0_i32 : i32, i32
  }
}

</mosaic_0001>

<bundles_post_ra>
// kernel: conv_bn_add_relu.1
= control target key start
LH: loop header
LB: loop body
LE: loop exit
PB: predicated region body
PF: predicated region fallthrough
CT: control target
= control target key end

     0   :  { %s4943_s15 = smov 0   ;;  %s9211_s0 = inlined_call_operand.vmem [shape: f32[256,784], index: 0, kind: input, shape index: {}]   ;;  %s9212_s1 = inlined_call_operand.vmem [shape: f32[1024,256], index: 1, kind: input, shape index: {}]   ;;  %s9213_s2 = inlined_call_operand.vmem [shape: f32[1024,784], index: 2, kind: input, shape index: {}]   ;;  %s9214_s3 = inlined_call_operand.vmem [shape: f32[1024,2], index: 3, kind: input, shape index: {}]   ;;  %s9215_s4 = inlined_call_operand.vmem [shape: f32[1024,784], index: 4, kind: output, shape index: {}]  }
   0x1 LB: > { %s4564_s16 = sadd.s32 4294967295, %s4912_s15   ;;  %p4568_p0 = scmp.ge.s32.totalorder %s4912_s15, 1  ;;  %s4912_s15 = sphi %s4943_s15, %s14_s15  }
   0x2   : > { %p187_p1 = scmp.lt.s32.totalorder %s4912_s15, 5 }
   0x4   : > { %p188_p2 = pnand %p4568_p0, %p187_p1 }
   0x6   : > { %191 = sbr.rel (%p188_p2) target bundleno = 1055 (0x41f), region = 36 }
   0xd   : > { %v318_v0 = vld [vmem:[%s9211_s0 + $0x8] sm:$0xff]  ;;  %v325_v1 = vld [vmem:[%s9211_s0 + $0x40] sm:$0xff]  ;;  %v324_v4 = vld [vmem:[%s9211_s0 + $0x38] sm:$0xff]  ;;  %s5133_s17 = sshll.u32 %s4564_s16, 5  ;;  %vm1542_vm0 = vcmask 130048   ;;  %s4916_s27 = smov 1  }
   0xe   : > { %v317_v2 = vld [vmem:[%s9211_s0] sm:$0xff]  ;;  %v4581_v3 = vpack.c.bf16 %v325_v1, %v318_v0  ;;  %v320_v5 = vld [vmem:[%s9211_s0 + $0x18] sm:$0xff]  ;;  %v327_v6 = vld [vmem:[%s9211_s0 + $0x50] sm:$0xff]  ;;  %p227_p3 = scmp.lt.s32.totalorder %s5133_s17, 127 }
   0xf   : > { %v4583_v7 = vpack.c.bf16 %v324_v4, %v317_v2  ;;  %v4645_v8 = vpack.c.bf16 %v327_v6, %v320_v5  ;;  %v332_v9 = vld [vmem:[%s9211_s0 + $0x78] sm:$0xff]  ;;  %v339_v10 = vld [vmem:[%s9211_s0 + $0xb0] sm:$0xff]  ;;  %v326_v13 = vld [vmem:[%s9211_s0 + $0x48] sm:$0xff] }
  0x10   : > { %v319_v11 = vld [vmem:[%s9211_s0 + $0x10] sm:$0xff]  ;;  %4582 = vmatprep.subr.bf16.mxu0 %v4581_v3  ;;  %v4585_v12 = vpack.c.bf16 %v339_v10, %v332_v9  ;;  %v338_v15 = vld [vmem:[%s9211_s0 + $0xa8] sm:$0xff]  ;;  %v341_v19 = vld [vmem:[%s9211_s0 + $0xc0] sm:$0xff]  ;;  %s10233_s17 = smov (!%p227_p3, %s5133_s17), 127 }
  0x11   : > { %v331_v14 = vld [vmem:[%s9211_s0 + $0x70] sm:$0xff]  ;;  %4584 = vmatpush1.bf16.msra.mxu0 %v4583_v7  ;;  %4646 = vmatprep.subr.bf16.mxu1 %v4645_v8  ;;  %v4647_v16 = vpack.c.bf16 %v326_v13, %v319_v11  ;;  %v334_v18 = vld [vmem:[%s9211_s0 + $0x88] sm:$0xff]  ;;  %v353_v22 = vld [vmem:[%s9211_s0 + $0x120] sm:$0xff]  ;;  %s4580_s11 = sshll.u32 %s10233_s17, 4  ;;  %s4821_s29 = smul.u32 56, %s10233_s17 }
  0x12   : > { %v4587_v17 = vpack.c.bf16 %v338_v15, %v331_v14  ;;  %v346_v20 = vld [vmem:[%s9211_s0 + $0xe8] sm:$0xff]  ;;  %4586 = vmatprep.subr.bf16.mxu0 %v4585_v12  ;;  %v4649_v21 = vpack.c.bf16 %v341_v19, %v334_v18  ;;  %v333_v23 = vld [vmem:[%s9211_s0 + $0x80] sm:$0xff]  ;;  %v340_v24 = vld [vmem:[%s9211_s0 + $0xb8] sm:$0xff]  ;;  %s5229_s28 = scalar_lea.vmem %s9212_s1, %s4580_s11 }
  0x13   : > { %4648 = vmatpush1.bf16.msra.mxu1 %v4647_v16  ;;  %v4589_v25 = vpack.c.bf16 %v353_v22, %v346_v20  ;;  %v4651_v26 = vpack.c.bf16 %v340_v24, %v333_v23  ;;  %v345_v27 = vld [vmem:[%s9211_s0 + $0xe0] sm:$0xff]  ;;  %v352_v28 = vld [vmem:[%s9211_s0 + $0x118] sm:$0xff]  ;;  %v355_v30 = vld [vmem:[%s9211_s0 + $0x130] sm:$0xff]  ;;  %s8442_s6 = scalar_lea.vmem %s9213_s2, %s4821_s29  ;;  %s8475_s9 = scalar_lea.vmem %s9215_s4, %s4821_s29 }
  0x14   : > { %v348_v29 = vld [vmem:[%s9211_s0 + $0xf8] sm:$0xff]  ;;  %4650 = vmatprep.subr.bf16.mxu1 %v4649_v21  ;;  %v367_v32 = vld [vmem:[%s9211_s0 + $0x190] sm:$0xff]  ;;  %v4591_v33 = vpack.c.bf16 %v352_v28, %v345_v27  ;;  %v354_v36 = vld [vmem:[%s9211_s0 + $0x128] sm:$0xff] }
  0x15   : > { %v360_v31 = vld [vmem:[%s9211_s0 + $0x158] sm:$0xff]  ;;  %4588 = vmatpush1.bf16.msra.mxu0 %v4587_v17  ;;  %v4653_v34 = vpack.c.bf16 %v355_v30, %v348_v29  ;;  %v347_v35 = vld [vmem:[%s9211_s0 + $0xf0] sm:$0xff]  ;;  %v366_v39 = vld [vmem:[%s9211_s0 + $0x188] sm:$0xff] }
  0x16   : > { %v359_v37 = vld [vmem:[%s9211_s0 + $0x150] sm:$0xff]  ;;  %4590 = vmatprep.subr.bf16.mxu0 %v4589_v25  ;;  %v4593_v38 = vpack.c.bf16 %v367_v32, %v360_v31  ;;  %v362_v40 = vld [vmem:[%s9211_s0 + $0x168] sm:$0xff]  ;;  %v369_v41 = vld [vmem:[%s9211_s0 + $0x1a0] sm:$0xff]  ;;  %v4655_v42 = vpack.c.bf16 %v354_v36, %v347_v35 }
  0x17   : > { %4652 = vmatpush1.bf16.msra.mxu1 %v4651_v26  ;;  %v374_v43 = vld [vmem:[%s9211_s0 + $0x1c8] sm:$0xff]  ;;  %v381_v44 = vld [vmem:[%s9211_s0 + $0x200] sm:$0xff]  ;;  %v4657_v45 = vpack.c.bf16 %v369_v41, %v362_v40  ;;  %v368_v47 = vld [vmem:[%s9211_s0 + $0x198] sm:$0xff]  ;;  %v4595_v48 = vpack.c.bf16 %v366_v39, %v359_v37 }
  0x18   : > { %4654 = vmatprep.subr.bf16.mxu1 %v4653_v34  ;;  %v361_v46 = vld [vmem:[%s9211_s0 + $0x160] sm:$0xff]  ;;  %v376_v49 = vld [vmem:[%s9211_s0 + $0x1d8] sm:$0xff]  ;;  %v383_v50 = vld [vmem:[%s9211_s0 + $0x210] sm:$0xff]  ;;  %v4597_v51 = vpack.c.bf16 %v381_v44, %v374_v43 }
  0x19   : > { %4592 = vmatpush1.bf16.msra.mxu0 %v4591_v33  ;;  %v373_v52 = vld [vmem:[%s9211_s0 + $0x1c0] sm:$0xff]  ;;  %v380_v53 = vld [vmem:[%s9211_s0 + $0x1f8] sm:$0xff]  ;;  %v4659_v54 = vpack.c.bf16 %v368_v47, %v361_v46  ;;  %v395_v56 = vld [vmem:[%s9211_s0 + $0x270] sm:$0xff]  ;;  %v4661_v57 = vpack.c.bf16 %v383_v50, %v376_v49 }
  0x1a   : > { %4594 = vmatprep.subr.bf16.mxu0 %v4593_v38  ;;  %v388_v55 = vld [vmem:[%s9211_s0 + $0x238] sm:$0xff]  ;;  %v375_v58 = vld [vmem:[%s9211_s0 + $0x1d0] sm:$0xff]  ;;  %v382_v59 = vld [vmem:[%s9211_s0 + $0x208] sm:$0xff]  ;;  %v4599_v60 = vpack.c.bf16 %v380_v53, %v373_v52 }
  0x1b   : > { %4656 = vmatpush1.bf16.msra.mxu1 %v4655_v42  ;;  %v390_v61 = vld [vmem:[%s9211_s0 + $0x248] sm:$0xff]  ;;  %v397_v62 = vld [vmem:[%s9211_s0 + $0x280] sm:$0xff]  ;;  %v4601_v63 = vpack.c.bf16 %v395_v56, %v388_v55  ;;  %v387_v0 = vld [vmem:[%s9211_s0 + $0x230] sm:$0xff]  ;;  %v4663_v2 = vpack.c.bf16 %v382_v59, %v375_v58 }
  0x1c   : > { %4658 = vmatprep.subr.bf16.mxu1 %v4657_v45  ;;  %v394_v1 = vld [vmem:[%s9211_s0 + $0x268] sm:$0xff]  ;;  %v409_v4 = vld [vmem:[%s9211_s0 + $0x2e0] sm:$0xff]  ;;  %v4665_v5 = vpack.c.bf16 %v397_v62, %v390_v61  ;;  %v396_v7 = vld [vmem:[%s9211_s0 + $0x278] sm:$0xff] }
  0x1d   : > { %4596 = vmatpush1.bf16.msra.mxu0 %v4595_v48  ;;  %v402_v3 = vld [vmem:[%s9211_s0 + $0x2a8] sm:$0xff]  ;;  %v389_v6 = vld [vmem:[%s9211_s0 + $0x240] sm:$0xff]  ;;  %v4603_v8 = vpack.c.bf16 %v394_v1, %v387_v0  ;;  %v404_v9 = vld [vmem:[%s9211_s0 + $0x2b8] sm:$0xff] }
  0x1e   : > { %4598 = vmatprep.subr.bf16.mxu0 %v4597_v51  ;;  %v411_v10 = vld [vmem:[%s9211_s0 + $0x2f0] sm:$0xff]  ;;  %v4605_v11 = vpack.c.bf16 %v409_v4, %v402_v3  ;;  %v401_v12 = vld [vmem:[%s9211_s0 + $0x2a0] sm:$0xff]  ;;  %v408_v13 = vld [vmem:[%s9211_s0 + $0x2d8] sm:$0xff]  ;;  %v4667_v14 = vpack.c.bf16 %v396_v7, %v389_v6 }
  0x1f   : > { %4660 = vmatpush1.bf16.msra.mxu1 %v4659_v54  ;;  %v416_v15 = vld [vmem:[%s9211_s0 + $0x318] sm:$0xff]  ;;  %v423_v16 = vld [vmem:[%s9211_s0 + $0x350] sm:$0xff]  ;;  %v4669_v17 = vpack.c.bf16 %v411_v10, %v404_v9  ;;  %v410_v19 = vld [vmem:[%s9211_s0 + $0x2e8] sm:$0xff]  ;;  %v4607_v20 = vpack.c.bf16 %v408_v13, %v401_v12 }
  0x20   : > { %4662 = vmatprep.subr.bf16.mxu1 %v4661_v57  ;;  %v403_v18 = vld [vmem:[%s9211_s0 + $0x2b0] sm:$0xff]  ;;  %v418_v21 = vld [vmem:[%s9211_s0 + $0x328] sm:$0xff]  ;;  %v425_v22 = vld [vmem:[%s9211_s0 + $0x360] sm:$0xff]  ;;  %v4609_v23 = vpack.c.bf16 %v423_v16, %v416_v15 }
  0x21   : > { %4600 = vmatpush1.bf16.msra.mxu0 %v4599_v60  ;;  %v415_v24 = vld [vmem:[%s9211_s0 + $0x310] sm:$0xff]  ;;  %v422_v25 = vld [vmem:[%s9211_s0 + $0x348] sm:$0xff]  ;;  %v4671_v26 = vpack.c.bf16 %v410_v19, %v403_v18  ;;  %v437_v28 = vld [vmem:[%s9211_s0 + $0x3c0] sm:$0xff]  ;;  %v4673_v29 = vpack.c.bf16 %v425_v22, %v418_v21 }
  0x22   : > { %4602 = vmatprep.subr.bf16.mxu0 %v4601_v63  ;;  %v430_v27 = vld [vmem:[%s9211_s0 + $0x388] sm:$0xff]  ;;  %v417_v30 = vld [vmem:[%s9211_s0 + $0x320] sm:$0xff]  ;;  %v424_v31 = vld [vmem:[%s9211_s0 + $0x358] sm:$0xff]  ;;  %v4611_v32 = vpack.c.bf16 %v422_v25, %v415_v24 }
  0x23   : > { %4664 = vmatpush1.bf16.msra.mxu1 %v4663_v2  ;;  %v432_v33 = vld [vmem:[%s9211_s0 + $0x398] sm:$0xff]  ;;  %v439_v34 = vld [vmem:[%s9211_s0 + $0x3d0] sm:$0xff]  ;;  %v4613_v35 = vpack.c.bf16 %v437_v28, %v430_v27  ;;  %v429_v36 = vld [vmem:[%s9211_s0 + $0x380] sm:$0xff]  ;;  %v4675_v38 = vpack.c.bf16 %v424_v31, %v417_v30 }
  0x24   : > { %4666 = vmatprep.subr.bf16.mxu1 %v4665_v5  ;;  %v436_v37 = vld [vmem:[%s9211_s0 + $0x3b8] sm:$0xff]  ;;  %v451_v40 = vld [vmem:[%s9211_s0 + $0x430] sm:$0xff]  ;;  %v4677_v41 = vpack.c.bf16 %v439_v34, %v432_v33  ;;  %v438_v43 = vld [vmem:[%s9211_s0 + $0x3c8] sm:$0xff] }
  0x25   : > { %4604 = vmatpush1.bf16.msra.mxu0 %v4603_v8  ;;  %v444_v39 = vld [vmem:[%s9211_s0 + $0x3f8] sm:$0xff]  ;;  %v431_v42 = vld [vmem:[%s9211_s0 + $0x390] sm:$0xff]  ;;  %v4615_v44 = vpack.c.bf16 %v436_v37, %v429_v36  ;;  %v446_v45 = vld [vmem:[%s9211_s0 + $0x408] sm:$0xff] }
  0x26   : > { %4606 = vmatprep.subr.bf16.mxu0 %v4605_v11  ;;  %v453_v46 = vld [vmem:[%s9211_s0 + $0x440] sm:$0xff]  ;;  %v4617_v47 = vpack.c.bf16 %v451_v40, %v444_v39  ;;  %v443_v48 = vld [vmem:[%s9211_s0 + $0x3f0] sm:$0xff]  ;;  %v450_v49 = vld [vmem:[%s9211_s0 + $0x428] sm:$0xff]  ;;  %v4679_v50 = vpack.c.bf16 %v438_v43, %v431_v42 }
  0x27   : > { %4668 = vmatpush1.bf16.msra.mxu1 %v4667_v14  ;;  %v458_v51 = vld [vmem:[%s9211_s0 + $0x468] sm:$0xff]  ;;  %v465_v52 = vld [vmem:[%s9211_s0 + $0x4a0] sm:$0xff]  ;;  %v4681_v53 = vpack.c.bf16 %v453_v46, %v446_v45  ;;  %v452_v55 = vld [vmem:[%s9211_s0 + $0x438] sm:$0xff]  ;;  %v4619_v56 = vpack.c.bf16 %v450_v49, %v443_v48 }
  0x28   : > { %4670 = vmatprep.subr.bf16.mxu1 %v4669_v17  ;;  %v445_v54 = vld [vmem:[%s9211_s0 + $0x400] sm:$0xff]  ;;  %v460_v57 = vld [vmem:[%s9211_s0 + $0x478] sm:$0xff]  ;;  %v467_v58 = vld [vmem:[%s9211_s0 + $0x4b0] sm:$0xff]  ;;  %v4621_v59 = vpack.c.bf16 %v465_v52, %v458_v51 }
  0x29   : > { %4608 = vmatpush1.bf16.msra.mxu0 %v4607_v20  ;;  %v457_v60 = vld [vmem:[%s9211_s0 + $0x460] sm:$0xff]  ;;  %v464_v61 = vld [vmem:[%s9211_s0 + $0x498] sm:$0xff]  ;;  %v4683_v62 = vpack.c.bf16 %v452_v55, %v445_v54  ;;  %v479_v0 = vld [vmem:[%s9211_s0 + $0x510] sm:$0xff]  ;;  %v4685_v1 = vpack.c.bf16 %v467_v58, %v460_v57 }
  0x2a   : > { %4610 = vmatprep.subr.bf16.mxu0 %v4609_v23  ;;  %v472_v63 = vld [vmem:[%s9211_s0 + $0x4d8] sm:$0xff]  ;;  %v459_v2 = vld [vmem:[%s9211_s0 + $0x470] sm:$0xff]  ;;  %v466_v3 = vld [vmem:[%s9211_s0 + $0x4a8] sm:$0xff]  ;;  %v4623_v4 = vpack.c.bf16 %v464_v61, %v457_v60 }
  0x2b   : > { %4672 = vmatpush1.bf16.msra.mxu1 %v4671_v26  ;;  %v474_v5 = vld [vmem:[%s9211_s0 + $0x4e8] sm:$0xff]  ;;  %v481_v6 = vld [vmem:[%s9211_s0 + $0x520] sm:$0xff]  ;;  %v4625_v7 = vpack.c.bf16 %v479_v0, %v472_v63  ;;  %v471_v8 = vld [vmem:[%s9211_s0 + $0x4d0] sm:$0xff]  ;;  %v4687_v11 = vpack.c.bf16 %v466_v3, %v459_v2 }
  0x2c   : > { %4674 = vmatprep.subr.bf16.mxu1 %v4673_v29  ;;  %v478_v9 = vld [vmem:[%s9211_s0 + $0x508] sm:$0xff]  ;;  %v493_v13 = vld [vmem:[%s9211_s0 + $0x580] sm:$0xff]  ;;  %v4689_v14 = vpack.c.bf16 %v481_v6, %v474_v5  ;;  %v480_v16 = vld [vmem:[%s9211_s0 + $0x518] sm:$0xff] }
  0x2d   : > { %4612 = vmatpush1.bf16.msra.mxu0 %v4611_v32  ;;  %v5250_v10 = vld [vmem:[%s5229_s28 + $0x8] sm:$0xff]  ;;  %v473_v15 = vld [vmem:[%s9211_s0 + $0x4e0] sm:$0xff]  ;;  %v4627_v17 = vpack.c.bf16 %v478_v9, %v471_v8  ;;  %v488_v18 = vld [vmem:[%s9211_s0 + $0x558] sm:$0xff] }
  0x2e   : > { %4614 = vmatprep.subr.bf16.mxu0 %v4613_v35  ;;  %v486_v12 = vld [vmem:[%s9211_s0 + $0x548] sm:$0xff]  ;;  %605 = vmatprep.mubr.f32.mxu0 %v5250_v10  ;;  %v495_v19 = vld [vmem:[%s9211_s0 + $0x590] sm:$0xff]  ;;  %v485_v21 = vld [vmem:[%s9211_s0 + $0x540] sm:$0xff]  ;;  %v4691_v23 = vpack.c.bf16 %v480_v16, %v473_v15 }
  0x2f   : > { %4676 = vmatpush1.bf16.msra.mxu1 %v4675_v38  ;;  %862 = vmatprep.mubr.f32.mxu1 %v5250_v10  ;;  %v4629_v20 = vpack.c.bf16 %v493_v13, %v486_v12  ;;  %v492_v22 = vld [vmem:[%s9211_s0 + $0x578] sm:$0xff]  ;;  %v507_v25 = vld [vmem:[%s9211_s0 + $0x5f0] sm:$0xff]  ;;  %v4693_v26 = vpack.c.bf16 %v495_v19, %v488_v18  ;;  %v494_v28 = vld [vmem:[%s9211_s0 + $0x588] sm:$0xff] }
  0x30   : > { %4678 = vmatprep.subr.bf16.mxu1 %v4677_v41  ;;  %v500_v24 = vld [vmem:[%s9211_s0 + $0x5b8] sm:$0xff]  ;;  %v487_v27 = vld [vmem:[%s9211_s0 + $0x550] sm:$0xff]  ;;  %v4631_v29 = vpack.c.bf16 %v492_v22, %v485_v21  ;;  %v502_v30 = vld [vmem:[%s9211_s0 + $0x5c8] sm:$0xff] }
  0x31   : > { %4616 = vmatpush1.bf16.msra.mxu0 %v4615_v44  ;;  %v509_v31 = vld [vmem:[%s9211_s0 + $0x600] sm:$0xff]  ;;  %v4633_v32 = vpack.c.bf16 %v507_v25, %v500_v24  ;;  %v499_v33 = vld [vmem:[%s9211_s0 + $0x5b0] sm:$0xff]  ;;  %v506_v34 = vld [vmem:[%s9211_s0 + $0x5e8] sm:$0xff]  ;;  %v4695_v35 = vpack.c.bf16 %v494_v28, %v487_v27 }
  0x32   : > { %4618 = vmatprep.subr.bf16.mxu0 %v4617_v47  ;;  %v514_v36 = vld [vmem:[%s9211_s0 + $0x628] sm:$0xff]  ;;  %v521_v37 = vld [vmem:[%s9211_s0 + $0x660] sm:$0xff]  ;;  %v4697_v38 = vpack.c.bf16 %v509_v31, %v502_v30  ;;  %v508_v40 = vld [vmem:[%s9211_s0 + $0x5f8] sm:$0xff]  ;;  %v4635_v41 = vpack.c.bf16 %v506_v34, %v499_v33 }
  0x33   : > { %4680 = vmatpush1.bf16.msra.mxu1 %v4679_v50  ;;  %v501_v39 = vld [vmem:[%s9211_s0 + $0x5c0] sm:$0xff]  ;;  %v516_v42 = vld [vmem:[%s9211_s0 + $0x638] sm:$0xff]  ;;  %v523_v43 = vld [vmem:[%s9211_s0 + $0x670] sm:$0xff]  ;;  %v4637_v44 = vpack.c.bf16 %v521_v37, %v514_v36 }
  0x34   : > { %4682 = vmatprep.subr.bf16.mxu1 %v4681_v53  ;;  %v513_v45 = vld [vmem:[%s9211_s0 + $0x620] sm:$0xff]  ;;  %v520_v46 = vld [vmem:[%s9211_s0 + $0x658] sm:$0xff]  ;;  %v4699_v47 = vpack.c.bf16 %v508_v40, %v501_v39  ;;  %v535_v49 = vld [vmem:[%s9211_s0 + $0x6d0] sm:$0xff]  ;;  %v4701_v50 = vpack.c.bf16 %v523_v43, %v516_v42 }
  0x35   : > { %4620 = vmatpush1.bf16.msra.mxu0 %v4619_v56  ;;  %v528_v48 = vld [vmem:[%s9211_s0 + $0x698] sm:$0xff]  ;;  %v515_v51 = vld [vmem:[%s9211_s0 + $0x630] sm:$0xff]  ;;  %v522_v52 = vld [vmem:[%s9211_s0 + $0x668] sm:$0xff]  ;;  %v4639_v53 = vpack.c.bf16 %v520_v46, %v513_v45 }
  0x36   : > { %4622 = vmatprep.subr.bf16.mxu0 %v4621_v59  ;;  %v530_v54 = vld [vmem:[%s9211_s0 + $0x6a8] sm:$0xff]  ;;  %v537_v55 = vld [vmem:[%s9211_s0 + $0x6e0] sm:$0xff]  ;;  %v4641_v56 = vpack.c.bf16 %v535_v49, %v528_v48  ;;  %v527_v57 = vld [vmem:[%s9211_s0 + $0x690] sm:$0xff]  ;;  %v4703_v59 = vpack.c.bf16 %v522_v52, %v515_v51 }
  0x37   : > { %4684 = vmatpush1.bf16.msra.mxu1 %v4683_v62  ;;  %v534_v58 = vld [vmem:[%s9211_s0 + $0x6c8] sm:$0xff]  ;;  %v329_v61 = vld [vmem:[%s9211_s0 + $0x60] sm:$0xff]  ;;  %v4705_v62 = vpack.c.bf16 %v537_v55, %v530_v54  ;;  %v536_v0 = vld [vmem:[%s9211_s0 + $0x6d8] sm:$0xff] }
  0x38   : > { %4686 = vmatprep.subr.bf16.mxu1 %v4685_v1  ;;  %v322_v60 = vld [vmem:[%s9211_s0 + $0x28] sm:$0xff]  ;;  %v529_v63 = vld [vmem:[%s9211_s0 + $0x6a0] sm:$0xff]  ;;  %v4643_v1 = vpack.c.bf16 %v534_v58, %v527_v57  ;;  %v336_v6 = vld [vmem:[%s9211_s0 + $0x98] sm:$0xff] }
  0x39   : > { %4624 = vmatpush1.bf16.msra.mxu0 %v4623_v4  ;;  %v4709_v2 = vpack.c.bf16 %v329_v61, %v322_v60  ;;  %v321_v3 = vld [vmem:[%s9211_s0 + $0x20] sm:$0xff]  ;;  %v328_v4 = vld [vmem:[%s9211_s0 + $0x58] sm:$0xff]  ;;  %v4707_v5 = vpack.c.bf16 %v536_v0, %v529_v63  ;;  %v323_v8 = vld [vmem:[%s9211_s0 + $0x30] sm:$0xff] }
  0x3a   : > { %4626 = vmatprep.subr.bf16.mxu0 %v4625_v7  ;;  %v343_v7 = vld [vmem:[%s9211_s0 + $0xd0] sm:$0xff]  ;;  %v330_v9 = vld [vmem:[%s9211_s0 + $0x68] sm:$0xff]  ;;  %v4711_v12 = vpack.c.bf16 %v328_v4, %v321_v3  ;;  %v5384_v13 = vld [vmem:[%s5229_s28 + $0x18] sm:$0xff] }
  0x3b   : > { %4688 = vmatpush1.bf16.msra.mxu1 %v4687_v11  ;;  %v5381_v11 = vld [vmem:[%s5229_s28] sm:$0xff]  ;;  %v335_v15 = vld [vmem:[%s9211_s0 + $0x90] sm:$0xff]  ;;  %v342_v16 = vld [vmem:[%s9211_s0 + $0xc8] sm:$0xff] }
  0x3c   : > { %4690 = vmatprep.subr.bf16.mxu1 %v4689_v14  ;;  %v4713_v14 = vpack.c.bf16 %v343_v7, %v336_v6  ;;  %v350_v18 = vld [vmem:[%s9211_s0 + $0x108] sm:$0xff]  ;;  %v357_v19 = vld [vmem:[%s9211_s0 + $0x140] sm:$0xff]  ;;  %v344_v22 = vld [vmem:[%s9211_s0 + $0xd8] sm:$0xff]  ;;  %v4715_v24 = vpack.c.bf16 %v342_v16, %v335_v15 }
  0x3d   : > { %4628 = vmatpush1.bf16.msra.mxu0 %v4627_v17  ;;  %v4774_v17 = vpack.c.bf16 %v330_v9, %v323_v8  ;;  %v337_v21 = vld [vmem:[%s9211_s0 + $0xa0] sm:$0xff]  ;;  %v5412_v25 = vld [vmem:[%s5229_s28 + $0x28] sm:$0xff]  ;;  %v356_v28 = vld [vmem:[%s9211_s0 + $0x138] sm:$0xff] }
  0x3e   : > { %4630 = vmatprep.subr.bf16.mxu0 %v4629_v20  ;;  %v4914_v20 = vmov 0.0|0.0   ;;  %v349_v27 = vld [vmem:[%s9211_s0 + $0x100] sm:$0xff]  ;;  %v364_v30 = vld [vmem:[%s9211_s0 + $0x178] sm:$0xff]  ;;  %v371_v31 = vld [vmem:[%s9211_s0 + $0x1b0] sm:$0xff] }
  0x3f   : > { %4692 = vmatpush1.bf16.msra.mxu1 %v4691_v23  ;;  %v5408_v23 = vld [vmem:[%s5229_s28 + $0x10] sm:$0xff]  ;;  %v358_v33 = vld [vmem:[%s9211_s0 + $0x148] sm:$0xff]  ;;  %v5437_v34 = vld [vmem:[%s5229_s28 + $0x20] sm:$0xff]  ;;  %v4721_v37 = vpack.c.bf16 %v371_v31, %v364_v30 }
  0x40   : > { %4694 = vmatprep.subr.bf16.mxu1 %v4693_v26  ;;  %v4717_v26 = vpack.c.bf16 %v357_v19, %v350_v18  ;;  %v5441_v36 = vld [vmem:[%s5229_s28 + $0x38] sm:$0xff]  ;;  %v370_v39 = vld [vmem:[%s9211_s0 + $0x1a8] sm:$0xff]  ;;  %v385_v42 = vld [vmem:[%s9211_s0 + $0x220] sm:$0xff] }
  0x41   : > { %4632 = vmatpush1.bf16.msra.mxu0 %v4631_v29  ;;  %v4777_v29 = vpack.c.bf16 %v344_v22, %v337_v21  ;;  %v365_v43 = vld [vmem:[%s9211_s0 + $0x180] sm:$0xff]  ;;  %v5466_v45 = vld [vmem:[%s5229_s28 + $0x30] sm:$0xff]  ;;  %v392_v52 = vld [vmem:[%s9211_s0 + $0x258] sm:$0xff] }
  0x42   : > { %4634 = vmatprep.subr.bf16.mxu0 %v4633_v32  ;;  %v351_v32 = vld [vmem:[%s9211_s0 + $0x110] sm:$0xff]  ;;  %v377_v49 = vld [vmem:[%s9211_s0 + $0x1e0] sm:$0xff]  ;;  %v386_v55 = vld [vmem:[%s9211_s0 + $0x228] sm:$0xff] }
  0x43   : > { %4696 = vmatpush1.bf16.msra.mxu1 %v4695_v35  ;;  %v4719_v35 = vpack.c.bf16 %v356_v28, %v349_v27  ;;  %v4780_v40 = vpack.c.bf16 %v358_v33, %v351_v32  ;;  %v379_v54 = vld [vmem:[%s9211_s0 + $0x1f0] sm:$0xff]  ;;  %v5499_v58 = vld [vmem:[%s5229_s28 + $0x58] sm:$0xff]  ;;  %v398_v61 = vld [vmem:[%s9211_s0 + $0x288] sm:$0xff] }
  0x44   : > { %4698 = vmatprep.subr.bf16.mxu1 %v4697_v38  ;;  %v363_v38 = vld [vmem:[%s9211_s0 + $0x170] sm:$0xff]  ;;  %v406_v63 = vld [vmem:[%s9211_s0 + $0x2c8] sm:$0xff]  ;;  %v413_v0 = vld [vmem:[%s9211_s0 + $0x300] sm:$0xff] }
  0x45   : > { %4636 = vmatpush1.bf16.msra.mxu0 %v4635_v41  ;;  %v378_v41 = vld [vmem:[%s9211_s0 + $0x1e8] sm:$0xff]  ;;  %v4723_v46 = vpack.c.bf16 %v370_v39, %v363_v38  ;;  %v391_v60 = vld [vmem:[%s9211_s0 + $0x250] sm:$0xff]  ;;  %v4733_v6 = vpack.c.bf16 %v413_v0, %v406_v63  ;;  %v405_v7 = vld [vmem:[%s9211_s0 + $0x2c0] sm:$0xff] }
  0x46   : > { %4638 = vmatprep.subr.bf16.mxu0 %v4637_v44  ;;  %v372_v44 = vld [vmem:[%s9211_s0 + $0x1b8] sm:$0xff]  ;;  %v4725_v48 = vpack.c.bf16 %v385_v42, %v378_v41  ;;  %v5524_v3 = vld [vmem:[%s5229_s28 + $0x50] sm:$0xff]  ;;  %v4731_v4 = vpack.c.bf16 %v398_v61, %v391_v60  ;;  %v414_v16 = vld [vmem:[%s9211_s0 + $0x308] sm:$0xff] }
  0x47   : > { %4700 = vmatpush1.bf16.msra.mxu1 %v4699_v47  ;;  %v5470_v47 = vld [vmem:[%s5229_s28 + $0x48] sm:$0xff]  ;;  %v4783_v51 = vpack.c.bf16 %v372_v44, %v365_v43  ;;  %v412_v8 = vld [vmem:[%s9211_s0 + $0x2f8] sm:$0xff]  ;;  %v407_v15 = vld [vmem:[%s9211_s0 + $0x2d0] sm:$0xff] }
  0x48   : > { %4702 = vmatprep.subr.bf16.mxu1 %v4701_v50  ;;  %v384_v50 = vld [vmem:[%s9211_s0 + $0x218] sm:$0xff]  ;;  %v4735_v18 = vpack.c.bf16 %v412_v8, %v405_v7  ;;  %v419_v22 = vld [vmem:[%s9211_s0 + $0x330] sm:$0xff]  ;;  %v434_v27 = vld [vmem:[%s9211_s0 + $0x3a8] sm:$0xff] }
  0x49   : > { %4640 = vmatpush1.bf16.msra.mxu0 %v4639_v53  ;;  %v399_v53 = vld [vmem:[%s9211_s0 + $0x290] sm:$0xff]  ;;  %v4727_v57 = vpack.c.bf16 %v384_v50, %v377_v49  ;;  %v5557_v19 = vld [vmem:[%s5229_s28 + $0x78] sm:$0xff]  ;;  %v441_v28 = vld [vmem:[%s9211_s0 + $0x3e0] sm:$0xff] }
  0x4a   : > { %4642 = vmatprep.subr.bf16.mxu0 %v4641_v56  ;;  %v5495_v56 = vld [vmem:[%s5229_s28 + $0x40] sm:$0xff]  ;;  %v428_v30 = vld [vmem:[%s9211_s0 + $0x378] sm:$0xff]  ;;  %v5582_v31 = vld [vmem:[%s5229_s28 + $0x70] sm:$0xff] }
  0x4b   : > { %4704 = vmatpush1.bf16.msra.mxu1 %v4703_v59  ;;  %v4729_v59 = vpack.c.bf16 %v399_v53, %v392_v52  ;;  %v5586_v33 = vld [vmem:[%s5229_s28 + $0x88] sm:$0xff]  ;;  %v440_v38 = vld [vmem:[%s9211_s0 + $0x3d8] sm:$0xff]  ;;  %v455_v41 = vld [vmem:[%s9211_s0 + $0x450] sm:$0xff] }
  0x4c   : > { %4706 = vmatprep.subr.bf16.mxu1 %v4705_v62  ;;  %v4786_v62 = vpack.c.bf16 %v386_v55, %v379_v54  ;;  %v435_v42 = vld [vmem:[%s9211_s0 + $0x3b0] sm:$0xff]  ;;  %v442_v43 = vld [vmem:[%s9211_s0 + $0x3e8] sm:$0xff]  ;;  %v5611_v44 = vld [vmem:[%s5229_s28 + $0x80] sm:$0xff] }
  0x4d   : > { %4644 = vmatpush1.bf16.msra.mxu0 %v4643_v1  ;;  %v393_v1 = vld [vmem:[%s9211_s0 + $0x260] sm:$0xff]  ;;  %v447_v50 = vld [vmem:[%s9211_s0 + $0x410] sm:$0xff]  ;;  %v4798_v52 = vpack.c.bf16 %v442_v43, %v435_v42  ;;  %v462_v53 = vld [vmem:[%s9211_s0 + $0x488] sm:$0xff] }
  0x4e   : > { %4710 = vmatprep.subr.bf16.mxu0 %v4709_v2  ;;  %v400_v2 = vld [vmem:[%s9211_s0 + $0x298] sm:$0xff]  ;;  %v469_v54 = vld [vmem:[%s9211_s0 + $0x4c0] sm:$0xff]  ;;  %v5644_v61 = vld [vmem:[%s5229_s28 + $0xa8] sm:$0xff] }
  0x4f   : > { %4708 = vmatpush1.bf16.msra.mxu1 %v4707_v5  ;;  %v5528_v5 = vld [vmem:[%s5229_s28 + $0x68] sm:$0xff]  ;;  %v4789_v9 = vpack.c.bf16 %v400_v2, %v393_v1  ;;  %v449_v55 = vld [vmem:[%s9211_s0 + $0x420] sm:$0xff]  ;;  %v468_v0 = vld [vmem:[%s9211_s0 + $0x4b8] sm:$0xff] }
  0x50   : > { %606 = vmatmul.mubr.f32.vlgmr.msra.gmra.mrb[0].mxu0 %v5381_v11  ;;  %4773 = vmatprep.subr.bf16.mxu1 %v4914_v20  ;;  %v461_v63 = vld [vmem:[%s9211_s0 + $0x480] sm:$0xff]  ;;  %v476_v2 = vld [vmem:[%s9211_s0 + $0x4f8] sm:$0xff]  ;;  %v470_v7 = vld [vmem:[%s9211_s0 + $0x4c8] sm:$0xff] }
  0x51   : > { %4712 = vmatpush1.bf16.msra.mxu0 %v4711_v12  ;;  %611 = vmatprep.mubr.f32.mxu0 %v5384_v13  ;;  %v420_v12 = vld [vmem:[%s9211_s0 + $0x338] sm:$0xff]  ;;  %v5669_v8 = vld [vmem:[%s5229_s28 + $0xa0] sm:$0xff] }
  0x52   : > { %863 = vmatmul.mubr.f32.vlgmr.msra.gmra.mrb[0].mxu1 %v5381_v11  ;;  %4714 = vmatprep.subr.bf16.mxu0 %v4713_v14  ;;  %v427_v14 = vld [vmem:[%s9211_s0 + $0x370] sm:$0xff]  ;;  %v5727_v42 = vld [vmem:[%s5229_s28 + $0xc0] sm:$0xff] }
  0x53   : > { %4775 = vmatpush1.bf16.msra.mxu1 %v4774_v17  ;;  %868 = vmatprep.mubr.f32.mxu1 %v5384_v13  ;;  %v5553_v17 = vld [vmem:[%s5229_s28 + $0x60] sm:$0xff]  ;;  %v4737_v21 = vpack.c.bf16 %v427_v14, %v420_v12  ;;  %v5673_v12 = vld [vmem:[%s5229_s28 + $0xb8] sm:$0xff] }
  0x54   : > { %612 = vmatmul.mubr.f32.gmra.mrb[2].mxu0 %v5408_v23  ;;  %4776 = vmatprep.subr.bf16.mxu1 %v4914_v20 }
  0x55   : > { %617 = vmatprep.mubr.f32.mxu0 %v5412_v25  ;;  %4716 = vmatpush1.bf16.msra.mxu0 %v4715_v24  ;;  %v426_v24 = vld [vmem:[%s9211_s0 + $0x368] sm:$0xff] }
  0x56   : > { %869 = vmatmul.mubr.f32.gmra.mrb[2].mxu1 %v5408_v23  ;;  %4718 = vmatprep.subr.bf16.mxu0 %v4717_v26  ;;  %v4792_v26 = vpack.c.bf16 %v414_v16, %v407_v15  ;;  %v4739_v32 = vpack.c.bf16 %v426_v24, %v419_v22  ;;  %v475_v15 = vld [vmem:[%s9211_s0 + $0x4f0] sm:$0xff]  ;;  %v482_v16 = vld [vmem:[%s9211_s0 + $0x528] sm:$0xff]  ;;  %v497_v22 = vld [vmem:[%s9211_s0 + $0x5a0] sm:$0xff] }
  0x57   : > { %874 = vmatprep.mubr.f32.mxu1 %v5412_v25  ;;  %4778 = vmatpush1.bf16.msra.mxu1 %v4777_v29  ;;  %v421_v29 = vld [vmem:[%s9211_s0 + $0x340] sm:$0xff] }
  0x58   : > { %618 = vmatmul.mubr.f32.gmra.mrb[4].mxu0 %v5437_v34  ;;  %4779 = vmatprep.subr.bf16.mxu1 %v4914_v20  ;;  %v4795_v39 = vpack.c.bf16 %v428_v30, %v421_v29  ;;  %v477_v24 = vld [vmem:[%s9211_s0 + $0x500] sm:$0xff]  ;;  %v5702_v29 = vld [vmem:[%s5229_s28 + $0xc8] sm:$0xff] }
  0x59   : > { %623 = vmatprep.mubr.f32.mxu0 %v5441_v36  ;;  %4720 = vmatpush1.bf16.msra.mxu0 %v4719_v35  ;;  %v4741_v35 = vpack.c.bf16 %v441_v28, %v434_v27  ;;  %v5698_v27 = vld [vmem:[%s5229_s28 + $0xb0] sm:$0xff]  ;;  %v4755_v28 = vpack.c.bf16 %v482_v16, %v475_v15  ;;  %v5785_v15 = vld [vmem:[%s5229_s28 + $0xe0] sm:$0xff] }
  0x5a   : > { %875 = vmatmul.mubr.f32.gmra.mrb[4].mxu1 %v5437_v34  ;;  %4722 = vmatprep.subr.bf16.mxu0 %v4721_v37  ;;  %v433_v37 = vld [vmem:[%s9211_s0 + $0x3a0] sm:$0xff] }
  0x5b   : > { %880 = vmatprep.mubr.f32.mxu1 %v5441_v36  ;;  %4781 = vmatpush1.bf16.msra.mxu1 %v4780_v40  ;;  %v448_v40 = vld [vmem:[%s9211_s0 + $0x418] sm:$0xff] }
  0x5c   : > { %624 = vmatmul.mubr.f32.gmra.mrb[6].mxu0 %v5466_v45  ;;  %4782 = vmatprep.subr.bf16.mxu1 %v4914_v20  ;;  %v4745_v49 = vpack.c.bf16 %v455_v41, %v448_v40  ;;  %v491_v40 = vld [vmem:[%s9211_s0 + $0x570] sm:$0xff]  ;;  %v498_v41 = vld [vmem:[%s9211_s0 + $0x5a8] sm:$0xff] }
  0x5d   : > { %629 = vmatprep.mubr.f32.mxu0 %v5470_v47  ;;  %4724 = vmatpush1.bf16.msra.mxu0 %v4723_v46  ;;  %v4743_v46 = vpack.c.bf16 %v440_v38, %v433_v37  ;;  %v504_v38 = vld [vmem:[%s9211_s0 + $0x5d8] sm:$0xff] }
  0x5e   : > { %881 = vmatmul.mubr.f32.gmra.mrb[6].mxu1 %v5466_v45  ;;  %4726 = vmatprep.subr.bf16.mxu0 %v4725_v48  ;;  %v5615_v48 = vld [vmem:[%s5229_s28 + $0x98] sm:$0xff] }
  0x5f   : > { %886 = vmatprep.mubr.f32.mxu1 %v5470_v47  ;;  %4784 = vmatpush1.bf16.msra.mxu1 %v4783_v51  ;;  %v454_v51 = vld [vmem:[%s9211_s0 + $0x448] sm:$0xff] }
  0x60   : > { %630 = vmatmul.mubr.f32.gmra.mrb[8].mxu0 %v5495_v56  ;;  %4785 = vmatprep.subr.bf16.mxu1 %v4914_v20  ;;  %v4747_v60 = vpack.c.bf16 %v454_v51, %v447_v50  ;;  %v503_v50 = vld [vmem:[%s9211_s0 + $0x5d0] sm:$0xff]  ;;  %v510_v51 = vld [vmem:[%s9211_s0 + $0x608] sm:$0xff] }
  0x61   : > { %635 = vmatprep.mubr.f32.mxu0 %v5499_v58  ;;  %4728 = vmatpush1.bf16.msra.mxu0 %v4727_v57  ;;  %v456_v57 = vld [vmem:[%s9211_s0 + $0x458] sm:$0xff] }
  0x62   : > { %887 = vmatmul.mubr.f32.gmra.mrb[8].mxu1 %v5495_v56  ;;  %4730 = vmatprep.subr.bf16.mxu0 %v4729_v59  ;;  %v5640_v59 = vld [vmem:[%s5229_s28 + $0x90] sm:$0xff]  ;;  %v4801_v1 = vpack.c.bf16 %v456_v57, %v449_v55  ;;  %v505_v55 = vld [vmem:[%s9211_s0 + $0x5e0] sm:$0xff]  ;;  %v512_v57 = vld [vmem:[%s9211_s0 + $0x618] sm:$0xff] }
  0x63   : > { %892 = vmatprep.mubr.f32.mxu1 %v5499_v58  ;;  %4787 = vmatpush1.bf16.msra.mxu1 %v4786_v62  ;;  %v4749_v62 = vpack.c.bf16 %v469_v54, %v462_v53  ;;  %v518_v53 = vld [vmem:[%s9211_s0 + $0x648] sm:$0xff]  ;;  %v525_v54 = vld [vmem:[%s9211_s0 + $0x680] sm:$0xff] }
  0x64   : > { %636 = vmatmul.mubr.f32.gmra.mrb[10].mxu0 %v5524_v3  ;;  %4788 = vmatprep.subr.bf16.mxu1 %v4914_v20 }
  0x65   : > { %641 = vmatprep.mubr.f32.mxu0 %v5528_v5  ;;  %4732 = vmatpush1.bf16.msra.mxu0 %v4731_v4  ;;  %v483_v4 = vld [vmem:[%s9211_s0 + $0x530] sm:$0xff] }
  0x66   : > { %893 = vmatmul.mubr.f32.gmra.mrb[10].mxu1 %v5524_v3  ;;  %4734 = vmatprep.subr.bf16.mxu0 %v4733_v6  ;;  %v463_v6 = vld [vmem:[%s9211_s0 + $0x490] sm:$0xff]  ;;  %v4753_v14 = vpack.c.bf16 %v483_v4, %v476_v2  ;;  %v524_v2 = vld [vmem:[%s9211_s0 + $0x678] sm:$0xff]  ;;  %v4813_v4 = vpack.c.bf16 %v512_v57, %v505_v55  ;;  %v5873_v55 = vld [vmem:[%s5229_s28 + $0x168] sm:$0xff] }
  0x67   : > { %898 = vmatprep.mubr.f32.mxu1 %v5528_v5  ;;  %4790 = vmatpush1.bf16.msra.mxu1 %v4789_v9  ;;  %v4751_v9 = vpack.c.bf16 %v468_v0, %v461_v63  ;;  %v5760_v63 = vld [vmem:[%s5229_s28 + $0xe8] sm:$0xff]  ;;  %v4765_v0 = vpack.c.bf16 %v525_v54, %v518_v53  ;;  %v5863_v53 = vld [vmem:[%s5229_s28 + $0x158] sm:$0xff]  ;;  %v5869_v54 = vld [vmem:[%s5229_s28 + $0x150] sm:$0xff] }
  0x68   : > { %642 = vmatmul.mubr.f32.gmra.mrb[12].mxu0 %v5553_v17  ;;  %4791 = vmatprep.subr.bf16.mxu1 %v4914_v20  ;;  %v5879_v57 = vld [vmem:[%s5229_s28 + $0x160] sm:$0xff] }
  0x69   : > { %647 = vmatprep.mubr.f32.mxu0 %v5557_v19  ;;  %4736 = vmatpush1.bf16.msra.mxu0 %v4735_v18  ;;  %v4804_v18 = vpack.c.bf16 %v470_v7, %v463_v6  ;;  %v532_v6 = vld [vmem:[%s9211_s0 + $0x6b8] sm:$0xff]  ;;  %v539_v7 = vld [vmem:[%s9211_s0 + $0x6f0] sm:$0xff] }
  0x6a   : > { %899 = vmatmul.mubr.f32.gmra.mrb[12].mxu1 %v5553_v17  ;;  %4738 = vmatprep.subr.bf16.mxu0 %v4737_v21  ;;  %v490_v21 = vld [vmem:[%s9211_s0 + $0x568] sm:$0xff] }
  0x6b   : > { %904 = vmatprep.mubr.f32.mxu1 %v5557_v19  ;;  %4793 = vmatpush1.bf16.msra.mxu1 %v4792_v26  ;;  %v484_v26 = vld [vmem:[%s9211_s0 + $0x538] sm:$0xff]  ;;  %v4757_v30 = vpack.c.bf16 %v497_v22, %v490_v21  ;;  %v4769_v21 = vpack.c.bf16 %v539_v7, %v532_v6  ;;  %v531_v22 = vld [vmem:[%s9211_s0 + $0x6b0] sm:$0xff]  ;;  %v5913_v7 = vld [vmem:[%s5229_s28 + $0x1a8] sm:$0xff] }
  0x6c   : > { %648 = vmatmul.mubr.f32.gmra.mrb[14].mxu0 %v5582_v31  ;;  %4794 = vmatprep.subr.bf16.mxu1 %v4914_v20  ;;  %v4807_v37 = vpack.c.bf16 %v484_v26, %v477_v24  ;;  %v538_v24 = vld [vmem:[%s9211_s0 + $0x6e8] sm:$0xff]  ;;  %v5909_v6 = vld [vmem:[%s5229_s28 + $0x190] sm:$0xff] }
  0x6d   : > { %653 = vmatprep.mubr.f32.mxu0 %v5586_v33  ;;  %4740 = vmatpush1.bf16.msra.mxu0 %v4739_v32  ;;  %v489_v32 = vld [vmem:[%s9211_s0 + $0x560] sm:$0xff] }
  0x6e   : > { %905 = vmatmul.mubr.f32.gmra.mrb[14].mxu1 %v5582_v31  ;;  %4742 = vmatprep.subr.bf16.mxu0 %v4741_v35  ;;  %v496_v35 = vld [vmem:[%s9211_s0 + $0x598] sm:$0xff] }
  0x6f   : > { %910 = vmatprep.mubr.f32.mxu1 %v5586_v33  ;;  %4796 = vmatpush1.bf16.msra.mxu1 %v4795_v39  ;;  %v511_v39 = vld [vmem:[%s9211_s0 + $0x610] sm:$0xff]  ;;  %v4759_v43 = vpack.c.bf16 %v496_v35, %v489_v32  ;;  %v4771_v35 = vpack.c.bf16 %v538_v24, %v531_v22  ;;  %v5939_v22 = vld [vmem:[%s5229_s28 + $0x1c0] sm:$0xff]  ;;  %v5943_v24 = vld [vmem:[%s5229_s28 + $0x1d8] sm:$0xff] }
  0x70   : > { %654 = vmatmul.mubr.f32.gmra.mrb[16].mxu0 %v5611_v44  ;;  %4797 = vmatprep.subr.bf16.mxu1 %v4914_v20  ;;  %v5808_v32 = vld [vmem:[%s5229_s28 + $0xf0] sm:$0xff] }
  0x71   : > { %659 = vmatprep.mubr.f32.mxu0 %v5615_v48  ;;  %4744 = vmatpush1.bf16.msra.mxu0 %v4743_v46  ;;  %v5731_v46 = vld [vmem:[%s5229_s28 + $0xd8] sm:$0xff] }
  0x72   : > { %911 = vmatmul.mubr.f32.gmra.mrb[16].mxu1 %v5611_v44  ;;  %4746 = vmatprep.subr.bf16.mxu0 %v4745_v49  ;;  %v4761_v49 = vpack.c.bf16 %v511_v39, %v504_v38  ;;  %v5819_v39 = vld [vmem:[%s5229_s28 + $0x100] sm:$0xff] }
  0x73   : > { %916 = vmatprep.mubr.f32.mxu1 %v5615_v48  ;;  %4799 = vmatpush1.bf16.msra.mxu1 %v4798_v52  ;;  %v4810_v52 = vpack.c.bf16 %v498_v41, %v491_v40  ;;  %v5823_v40 = vld [vmem:[%s5229_s28 + $0x118] sm:$0xff]  ;;  %v5833_v41 = vld [vmem:[%s5229_s28 + $0x128] sm:$0xff] }
  0x74   : > { %660 = vmatmul.mubr.f32.gmra.mrb[18].mxu0 %v5640_v59  ;;  %4800 = vmatprep.subr.bf16.mxu1 %v4914_v20 }
  0x75   : > { %665 = vmatprep.mubr.f32.mxu0 %v5644_v61  ;;  %4748 = vmatpush1.bf16.msra.mxu0 %v4747_v60  ;;  %v5756_v60 = vld [vmem:[%s5229_s28 + $0xd0] sm:$0xff] }
  0x76   : > { %917 = vmatmul.mubr.f32.gmra.mrb[18].mxu1 %v5640_v59  ;;  %4750 = vmatprep.subr.bf16.mxu0 %v4749_v62  ;;  %v4763_v62 = vpack.c.bf16 %v510_v51, %v503_v50  ;;  %v5849_v50 = vld [vmem:[%s5229_s28 + $0x130] sm:$0xff]  ;;  %v5853_v51 = vld [vmem:[%s5229_s28 + $0x148] sm:$0xff] }
  0x77   : > { %922 = vmatprep.mubr.f32.mxu1 %v5644_v61  ;;  %4802 = vmatpush1.bf16.msra.mxu1 %v4801_v1  ;;  %v517_v1 = vld [vmem:[%s9211_s0 + $0x640] sm:$0xff] }
  0x78   : > { %666 = vmatmul.mubr.f32.gmra.mrb[20].mxu0 %v5669_v8  ;;  %4803 = vmatprep.subr.bf16.mxu1 %v4914_v20  ;;  %v4767_v16 = vpack.c.bf16 %v524_v2, %v517_v1  ;;  %v5893_v1 = vld [vmem:[%s5229_s28 + $0x188] sm:$0xff]  ;;  %v5899_v2 = vld [vmem:[%s5229_s28 + $0x180] sm:$0xff] }
  0x79   : > { %671 = vmatprep.mubr.f32.mxu0 %v5673_v12  ;;  %4752 = vmatpush1.bf16.msra.mxu0 %v4751_v9  ;;  %v519_v9 = vld [vmem:[%s9211_s0 + $0x650] sm:$0xff] }
  0x7a   : > { %923 = vmatmul.mubr.f32.gmra.mrb[20].mxu1 %v5669_v8  ;;  %4754 = vmatprep.subr.bf16.mxu0 %v4753_v14  ;;  %v526_v14 = vld [vmem:[%s9211_s0 + $0x688] sm:$0xff] }
  0x7b   : > { %928 = vmatprep.mubr.f32.mxu1 %v5673_v12  ;;  %4805 = vmatpush1.bf16.msra.mxu1 %v4804_v18  ;;  %v5789_v18 = vld [vmem:[%s5229_s28 + $0xf8] sm:$0xff]  ;;  %v4816_v26 = vpack.c.bf16 %v526_v14, %v519_v9  ;;  %v5919_v9 = vld [vmem:[%s5229_s28 + $0x1a0] sm:$0xff] }
  0x7c   : > { %672 = vmatmul.mubr.f32.gmra.mrb[22].mxu0 %v5698_v27  ;;  %4806 = vmatprep.subr.bf16.mxu1 %v4914_v20  ;;  %v5923_v14 = vld [vmem:[%s5229_s28 + $0x1b8] sm:$0xff] }
  0x7d   : > { %677 = vmatprep.mubr.f32.mxu0 %v5702_v29  ;;  %4756 = vmatpush1.bf16.msra.mxu0 %v4755_v28  ;;  %v533_v28 = vld [vmem:[%s9211_s0 + $0x6c0] sm:$0xff] }
  0x7e   : > { %929 = vmatmul.mubr.f32.gmra.mrb[22].mxu1 %v5698_v27  ;;  %4758 = vmatprep.subr.bf16.mxu0 %v4757_v30  ;;  %v540_v30 = vld [vmem:[%s9211_s0 + $0x6f8] sm:$0xff] }
  0x7f   : > { %934 = vmatprep.mubr.f32.mxu1 %v5702_v29  ;;  %4808 = vmatpush1.bf16.msra.mxu1 %v4807_v37  ;;  %v5812_v37 = vld [vmem:[%s5229_s28 + $0x108] sm:$0xff]  ;;  %v4819_v38 = vpack.c.bf16 %v540_v30, %v533_v28  ;;  %v5959_v30 = vld [vmem:[%s5229_s28 + $0x1e0] sm:$0xff] }
  0x80   : > { %678 = vmatmul.mubr.f32.gmra.mrb[24].mxu0 %v5727_v42  ;;  %4809 = vmatprep.subr.bf16.mxu1 %v4914_v20  ;;  %v5953_v28 = vld [vmem:[%s5229_s28 + $0x1e8] sm:$0xff] }
  0x81   : > { %683 = vmatprep.mubr.f32.mxu0 %v5731_v46  ;;  %4760 = vmatpush1.bf16.msra.mxu0 %v4759_v43  ;;  %v5839_v43 = vld [vmem:[%s5229_s28 + $0x120] sm:$0xff] }
  0x82   : > { %935 = vmatmul.mubr.f32.gmra.mrb[24].mxu1 %v5727_v42  ;;  %4762 = vmatprep.subr.bf16.mxu0 %v4761_v49  ;;  %v5843_v49 = vld [vmem:[%s5229_s28 + $0x138] sm:$0xff] }
  0x83   : > { %940 = vmatprep.mubr.f32.mxu1 %v5731_v46  ;;  %4811 = vmatpush1.bf16.msra.mxu1 %v4810_v52  ;;  %v5859_v52 = vld [vmem:[%s5229_s28 + $0x140] sm:$0xff] }
  0x84   : > { %684 = vmatmul.mubr.f32.gmra.mrb[26].mxu0 %v5756_v60  ;;  %4812 = vmatprep.subr.bf16.mxu1 %v4914_v20 }
  0x85   : > { %689 = vmatprep.mubr.f32.mxu0 %v5760_v63  ;;  %4764 = vmatpush1.bf16.msra.mxu0 %v4763_v62  ;;  %v5883_v62 = vld [vmem:[%s5229_s28 + $0x178] sm:$0xff] }
  0x86   : > { %941 = vmatmul.mubr.f32.gmra.mrb[26].mxu1 %v5756_v60  ;;  %4766 = vmatprep.subr.bf16.mxu0 %v4765_v0  ;;  %v5889_v0 = vld [vmem:[%s5229_s28 + $0x170] sm:$0xff] }
  0x87   : > { %946 = vmatprep.mubr.f32.mxu1 %v5760_v63  ;;  %4814 = vmatpush1.bf16.msra.mxu1 %v4813_v4  ;;  %v5903_v4 = vld [vmem:[%s5229_s28 + $0x198] sm:$0xff] }
  0x88   : > { %690 = vmatmul.mubr.f32.gmra.mrb[28].mxu0 %v5785_v15  ;;  %4815 = vmatprep.subr.bf16.mxu1 %v4914_v20 }
  0x89   : > { %695 = vmatprep.mubr.f32.mxu0 %v5789_v18  ;;  %4768 = vmatpush1.bf16.msra.mxu0 %v4767_v16  ;;  %v5929_v16 = vld [vmem:[%s5229_s28 + $0x1b0] sm:$0xff] }
  0x8a   : > { %947 = vmatmul.mubr.f32.gmra.mrb[28].mxu1 %v5785_v15  ;;  %4770 = vmatprep.subr.bf16.mxu0 %v4769_v21  ;;  %v5933_v21 = vld [vmem:[%s5229_s28 + $0x1c8] sm:$0xff] }
  0x8b   : > { %952 = vmatprep.mubr.f32.mxu1 %v5789_v18  ;;  %4817 = vmatpush1.bf16.msra.mxu1 %v4816_v26  ;;  %v5949_v26 = vld [vmem:[%s5229_s28 + $0x1d0] sm:$0xff] }
  0x8c   : > { %696 = vmatmul.mubr.f32.gmra.mrb[30].mxu0 %v5808_v32  ;;  %4818 = vmatprep.subr.bf16.mxu1 %v4914_v20  ;;  %v5829_v20 = vld [vmem:[%s5229_s28 + $0x110] sm:$0xff] }
  0x8d   : > { %701 = vmatprep.mubr.f32.mxu0 %v5812_v37  ;;  %4772 = vmatpush1.bf16.msra.mxu0 %v4771_v35  ;;  %v5963_v35 = vld [vmem:[%s5229_s28 + $0x1f8] sm:$0xff] }
  0x8e   : > { %953 = vmatmul.mubr.f32.gmra.mrb[30].mxu1 %v5808_v32 }
  0x8f   : > { %958 = vmatprep.mubr.f32.mxu1 %v5812_v37  ;;  %4820 = vmatpush1.bf16.msra.mxu1 %v4819_v38  ;;  %v5969_v38 = vld [vmem:[%s5229_s28 + $0x1f0] sm:$0xff]  ;;  %s4575_s28 = sshll.u32 %s10233_s17, 3 }
  0x90   : > { %702 = vmatmul.mubr.f32.gmra.mrb[32].mxu0 %v5819_v39  ;;  %s7497_s26 = scalar_lea.vmem %s9214_s3, %s4575_s28 }
  0x91   : > { %707 = vmatprep.mubr.f32.mxu0 %v5823_v40 }
  0x92   : > { %959 = vmatmul.mubr.f32.gmra.mrb[32].mxu1 %v5819_v39 }
  0x93   : > { %964 = vmatprep.mubr.f32.mxu1 %v5823_v40 }
  0x94   : > { %708 = vmatmul.mubr.f32.gmra.mrb[34].mxu0 %v5829_v20 }
  0x95   : > { %713 = vmatprep.mubr.f32.mxu0 %v5833_v41 }
  0x96   : > { %965 = vmatmul.mubr.f32.gmra.mrb[34].mxu1 %v5829_v20 }
  0x97   : > { %970 = vmatprep.mubr.f32.mxu1 %v5833_v41 }
  0x98   : > { %714 = vmatmul.mubr.f32.gmra.mrb[36].mxu0 %v5839_v43 }
  0x99   : > { %719 = vmatprep.mubr.f32.mxu0 %v5843_v49 }
  0x9a   : > { %971 = vmatmul.mubr.f32.gmra.mrb[36].mxu1 %v5839_v43 }
  0x9b   : > { %976 = vmatprep.mubr.f32.mxu1 %v5843_v49 }
  0x9c   : > { %720 = vmatmul.mubr.f32.gmra.mrb[38].mxu0 %v5849_v50 }
  0x9d   : > { %725 = vmatprep.mubr.f32.mxu0 %v5853_v51 }
  0x9e   : > { %977 = vmatmul.mubr.f32.gmra.mrb[38].mxu1 %v5849_v50 }
  0x9f   : > { %982 = vmatprep.mubr.f32.mxu1 %v5853_v51 }
  0xa0   : > { %726 = vmatmul.mubr.f32.gmra.mrb[40].mxu0 %v5859_v52 }
  0xa1   : > { %731 = vmatprep.mubr.f32.mxu0 %v5863_v53 }
  0xa2   : > { %983 = vmatmul.mubr.f32.gmra.mrb[40].mxu1 %v5859_v52 }
  0xa3   : > { %988 = vmatprep.mubr.f32.mxu1 %v5863_v53 }
  0xa4   : > { %732 = vmatmul.mubr.f32.gmra.mrb[42].mxu0 %v5869_v54 }
  0xa5   : > { %737 = vmatprep.mubr.f32.mxu0 %v5873_v55 }
  0xa6   : > { %989 = vmatmul.mubr.f32.gmra.mrb[42].mxu1 %v5869_v54 }
  0xa7   : > { %994 = vmatprep.mubr.f32.mxu1 %v5873_v55 }
  0xa8   : > { %738 = vmatmul.mubr.f32.gmra.mrb[44].mxu0 %v5879_v57 }
  0xa9   : > { %743 = vmatprep.mubr.f32.mxu0 %v5883_v62 }
  0xaa   : > { %995 = vmatmul.mubr.f32.gmra.mrb[44].mxu1 %v5879_v57 }
  0xab   : > { %1000 = vmatprep.mubr.f32.mxu1 %v5883_v62 }
  0xac   : > { %744 = vmatmul.mubr.f32.gmra.mrb[46].mxu0 %v5889_v0 }
  0xad   : > { %749 = vmatprep.mubr.f32.mxu0 %v5893_v1 }
  0xae   : > { %1001 = vmatmul.mubr.f32.gmra.mrb[46].mxu1 %v5889_v0 }
  0xaf   : > { %1006 = vmatprep.mubr.f32.mxu1 %v5893_v1 }
  0xb0   : > { %750 = vmatmul.mubr.f32.gmra.mrb[48].mxu0 %v5899_v2 }
  0xb1   : > { %755 = vmatprep.mubr.f32.mxu0 %v5903_v4 }
  0xb2   : > { %1007 = vmatmul.mubr.f32.gmra.mrb[48].mxu1 %v5899_v2 }
  0xb3   : > { %1012 = vmatprep.mubr.f32.mxu1 %v5903_v4 }
  0xb4   : > { %756 = vmatmul.mubr.f32.gmra.mrb[50].mxu0 %v5909_v6 }
  0xb5   : > { %761 = vmatprep.mubr.f32.mxu0 %v5913_v7 }
  0xb6   : > { %1013 = vmatmul.mubr.f32.gmra.mrb[50].mxu1 %v5909_v6 }
  0xb7   : > { %1018 = vmatprep.mubr.f32.mxu1 %v5913_v7 }
  0xb8   : > { %762 = vmatmul.mubr.f32.gmra.mrb[52].mxu0 %v5919_v9 }
  0xb9   : > { %767 = vmatprep.mubr.f32.mxu0 %v5923_v14 }
  0xba   : > { %1019 = vmatmul.mubr.f32.gmra.mrb[52].mxu1 %v5919_v9 }
  0xbb   : > { %1024 = vmatprep.mubr.f32.mxu1 %v5923_v14 }
  0xbc   : > { %768 = vmatmul.mubr.f32.gmra.mrb[54].mxu0 %v5929_v16 }
  0xbd   : > { %773 = vmatprep.mubr.f32.mxu0 %v5933_v21 }
  0xbe   : > { %1025 = vmatmul.mubr.f32.gmra.mrb[54].mxu1 %v5929_v16 }
  0xbf   : > { %1030 = vmatprep.mubr.f32.mxu1 %v5933_v21 }
  0xc0   : > { %774 = vmatmul.mubr.f32.gmra.mrb[56].mxu0 %v5939_v22 }
  0xc1   : > { %779 = vmatprep.mubr.f32.mxu0 %v5943_v24 }
  0xc2   : > { %1031 = vmatmul.mubr.f32.gmra.mrb[56].mxu1 %v5939_v22 }
  0xc3   : > { %1036 = vmatprep.mubr.f32.mxu1 %v5943_v24 }
  0xc4   : > { %780 = vmatmul.mubr.f32.gmra.mrb[58].mxu0 %v5949_v26 }
  0xc5   : > { %785 = vmatprep.mubr.f32.mxu0 %v5953_v28 }
  0xc6   : > { %1037 = vmatmul.mubr.f32.gmra.mrb[58].mxu1 %v5949_v26 }
  0xc7   : > { %1042 = vmatprep.mubr.f32.mxu1 %v5953_v28 }
  0xc8   : > { %786 = vmatmul.mubr.f32.gmra.mrb[60].mxu0 %v5959_v30 }
  0xc9   : > { %791 = vmatprep.mubr.f32.mxu0 %v5963_v35 }
  0xca   : > { %1043 = vmatmul.mubr.f32.gmra.mrb[60].mxu1 %v5959_v30 }
  0xcb   : > { %1048 = vmatprep.mubr.f32.mxu1 %v5963_v35 }
  0xcc   : > { %792 = vmatmul.mubr.f32.gmra.mrb[62].mxu0 %v5969_v38 }
  0xcd   : > { %1119 = vmatprep.mubr.f32.mxu0 %v5250_v10 }
  0xce   : > { %1049 = vmatmul.mubr.f32.gmra.mrb[62].mxu1 %v5969_v38 }
  0xcf   : > { %1376 = vmatprep.mubr.f32.mxu1 %v5250_v10 }
  0xd0   : > { %1120 = vmatmul.mubr.f32.vlgmr.msra.gmra.mrb[64].mxu0 %v5381_v11 }
  0xd1   : > { %1125 = vmatprep.mubr.f32.mxu0 %v5384_v13 }
  0xd2   : > { %1377 = vmatmul.mubr.f32.vlgmr.msra.gmra.mrb[64].mxu1 %v5381_v11 }
  0xd3   : > { %1381 = vmatprep.mubr.f32.mxu1 %v5384_v13 }
  0xd4   : > { %1126 = vmatmul.mubr.f32.gmra.mrb[66].mxu0 %v5408_v23 }
  0xd5   : > { %1131 = vmatprep.mubr.f32.mxu0 %v5412_v25 }
  0xd6   : > { %1382 = vmatmul.mubr.f32.gmra.mrb[66].mxu1 %v5408_v23 }
  0xd7   : > { %1386 = vmatprep.mubr.f32.mxu1 %v5412_v25 }
  0xd8   : > { %1132 = vmatmul.mubr.f32.gmra.mrb[68].mxu0 %v5437_v34 }
  0xd9   : > { %1137 = vmatprep.mubr.f32.mxu0 %v5441_v36 }
  0xda   : > { %1387 = vmatmul.mubr.f32.gmra.mrb[68].mxu1 %v5437_v34 }
  0xdb   : > { %1391 = vmatprep.mubr.f32.mxu1 %v5441_v36 }
  0xdc   : > { %1138 = vmatmul.mubr.f32.gmra.mrb[70].mxu0 %v5466_v45 }
  0xdd   : > { %1143 = vmatprep.mubr.f32.mxu0 %v5470_v47 }
  0xde   : > { %1392 = vmatmul.mubr.f32.gmra.mrb[70].mxu1 %v5466_v45 }
  0xdf   : > { %1396 = vmatprep.mubr.f32.mxu1 %v5470_v47 }
  0xe0   : > { %1144 = vmatmul.mubr.f32.gmra.mrb[72].mxu0 %v5495_v56 }
  0xe1   : > { %1149 = vmatprep.mubr.f32.mxu0 %v5499_v58 }
  0xe2   : > { %1397 = vmatmul.mubr.f32.gmra.mrb[72].mxu1 %v5495_v56 }
  0xe3   : > { %1401 = vmatprep.mubr.f32.mxu1 %v5499_v58 }
  0xe4   : > { %1150 = vmatmul.mubr.f32.gmra.mrb[74].mxu0 %v5524_v3 }
  0xe5   : > { %1155 = vmatprep.mubr.f32.mxu0 %v5528_v5 }
  0xe6   : > { %1402 = vmatmul.mubr.f32.gmra.mrb[74].mxu1 %v5524_v3 }
  0xe7   : > { %1406 = vmatprep.mubr.f32.mxu1 %v5528_v5 }
  0xe8   : > { %1156 = vmatmul.mubr.f32.gmra.mrb[76].mxu0 %v5553_v17 }
  0xe9   : > { %1161 = vmatprep.mubr.f32.mxu0 %v5557_v19 }
  0xea   : > { %1407 = vmatmul.mubr.f32.gmra.mrb[76].mxu1 %v5553_v17 }
  0xeb   : > { %1411 = vmatprep.mubr.f32.mxu1 %v5557_v19 }
  0xec   : > { %1162 = vmatmul.mubr.f32.gmra.mrb[78].mxu0 %v5582_v31 }
  0xed   : > { %1167 = vmatprep.mubr.f32.mxu0 %v5586_v33 }
  0xee   : > { %1412 = vmatmul.mubr.f32.gmra.mrb[78].mxu1 %v5582_v31 }
  0xef   : > { %1416 = vmatprep.mubr.f32.mxu1 %v5586_v33 }
  0xf0   : > { %1168 = vmatmul.mubr.f32.gmra.mrb[80].mxu0 %v5611_v44 }
  0xf1   : > { %1173 = vmatprep.mubr.f32.mxu0 %v5615_v48 }
  0xf2   : > { %1417 = vmatmul.mubr.f32.gmra.mrb[80].mxu1 %v5611_v44 }
  0xf3   : > { %1421 = vmatprep.mubr.f32.mxu1 %v5615_v48 }
  0xf4   : > { %1174 = vmatmul.mubr.f32.gmra.mrb[82].mxu0 %v5640_v59 }
  0xf5   : > { %1179 = vmatprep.mubr.f32.mxu0 %v5644_v61 }
  0xf6   : > { %1422 = vmatmul.mubr.f32.gmra.mrb[82].mxu1 %v5640_v59 }
  0xf7   : > { %1426 = vmatprep.mubr.f32.mxu1 %v5644_v61 }
  0xf8   : > { %1180 = vmatmul.mubr.f32.gmra.mrb[84].mxu0 %v5669_v8 }
  0xf9   : > { %1185 = vmatprep.mubr.f32.mxu0 %v5673_v12 }
  0xfa   : > { %1427 = vmatmul.mubr.f32.gmra.mrb[84].mxu1 %v5669_v8 }
  0xfb   : > { %1431 = vmatprep.mubr.f32.mxu1 %v5673_v12 }
  0xfc   : > { %1186 = vmatmul.mubr.f32.gmra.mrb[86].mxu0 %v5698_v27 }
  0xfd   : > { %1191 = vmatprep.mubr.f32.mxu0 %v5702_v29 }
  0xfe   : > { %1432 = vmatmul.mubr.f32.gmra.mrb[86].mxu1 %v5698_v27 }
  0xff   : > { %1436 = vmatprep.mubr.f32.mxu1 %v5702_v29 }
 0x100   : > { %1192 = vmatmul.mubr.f32.gmra.mrb[88].mxu0 %v5727_v42 }
 0x101   : > { %1197 = vmatprep.mubr.f32.mxu0 %v5731_v46 }
 0x102   : > { %1437 = vmatmul.mubr.f32.gmra.mrb[88].mxu1 %v5727_v42 }
 0x103   : > { %1441 = vmatprep.mubr.f32.mxu1 %v5731_v46 }
 0x104   : > { %1198 = vmatmul.mubr.f32.gmra.mrb[90].mxu0 %v5756_v60 }
 0x105   : > { %1203 = vmatprep.mubr.f32.mxu0 %v5760_v63 }
 0x106   : > { %1442 = vmatmul.mubr.f32.gmra.mrb[90].mxu1 %v5756_v60 }
 0x107   : > { %1446 = vmatprep.mubr.f32.mxu1 %v5760_v63 }
 0x108   : > { %1204 = vmatmul.mubr.f32.gmra.mrb[92].mxu0 %v5785_v15 }
 0x109   : > { %1209 = vmatprep.mubr.f32.mxu0 %v5789_v18 }
 0x10a   : > { %1447 = vmatmul.mubr.f32.gmra.mrb[92].mxu1 %v5785_v15 }
 0x10b   : > { %1451 = vmatprep.mubr.f32.mxu1 %v5789_v18 }
 0x10c   : > { %1210 = vmatmul.mubr.f32.gmra.mrb[94].mxu0 %v5808_v32 }
 0x10d   : > { %1215 = vmatprep.mubr.f32.mxu0 %v5812_v37 }
 0x10e   : > { %1452 = vmatmul.mubr.f32.gmra.mrb[94].mxu1 %v5808_v32 }
 0x10f   : > { %1456 = vmatprep.mubr.f32.mxu1 %v5812_v37 }
 0x110   : > { %1216 = vmatmul.mubr.f32.gmra.mrb[96].mxu0 %v5819_v39 }
 0x111   : > { %1221 = vmatprep.mubr.f32.mxu0 %v5823_v40 }
 0x112   : > { %1457 = vmatmul.mubr.f32.gmra.mrb[96].mxu1 %v5819_v39 }
 0x113   : > { %1461 = vmatprep.mubr.f32.mxu1 %v5823_v40 }
 0x114   : > { %1222 = vmatmul.mubr.f32.gmra.mrb[98].mxu0 %v5829_v20 }
 0x115   : > { %1227 = vmatprep.mubr.f32.mxu0 %v5833_v41 }
 0x116   : > { %1462 = vmatmul.mubr.f32.gmra.mrb[98].mxu1 %v5829_v20 }
 0x117   : > { %1466 = vmatprep.mubr.f32.mxu1 %v5833_v41 }
 0x118   : > { %1228 = vmatmul.mubr.f32.gmra.mrb[100].mxu0 %v5839_v43 }
 0x119   : > { %1233 = vmatprep.mubr.f32.mxu0 %v5843_v49 }
 0x11a   : > { %1467 = vmatmul.mubr.f32.gmra.mrb[100].mxu1 %v5839_v43 }
 0x11b   : > { %1471 = vmatprep.mubr.f32.mxu1 %v5843_v49 }
 0x11c   : > { %1234 = vmatmul.mubr.f32.gmra.mrb[102].mxu0 %v5849_v50 }
 0x11d   : > { %1239 = vmatprep.mubr.f32.mxu0 %v5853_v51 }
 0x11e   : > { %1472 = vmatmul.mubr.f32.gmra.mrb[102].mxu1 %v5849_v50 }
 0x11f   : > { %1476 = vmatprep.mubr.f32.mxu1 %v5853_v51 }
 0x120   : > { %1240 = vmatmul.mubr.f32.gmra.mrb[104].mxu0 %v5859_v52 }
 0x121   : > { %1245 = vmatprep.mubr.f32.mxu0 %v5863_v53 }
 0x122   : > { %1477 = vmatmul.mubr.f32.gmra.mrb[104].mxu1 %v5859_v52 }
 0x123   : > { %v6060_v10 = vpop.f32.mrb[0].mxu0  ;;  %1481 = vmatprep.mubr.f32.mxu1 %v5863_v53 }
 0x124   : > { %9431 = vst [vmem:[#allocation2_spill] sm:$0xff] %v6060_v10  ;;  %v1858_v11 = vmul.f32 %v6060_v10, %v6060_v10  ;;  %v6065_v13 = vpop.f32.mrb[1].mxu0  ;;  %1246 = vmatmul.mubr.f32.gmra.mrb[106].mxu0 %v5869_v54 }
 0x125   : > { %9432 = vst [vmem:[#allocation3_spill] sm:$0xff] %v6065_v13  ;;  %v1537_v23 = vadd.f32 %v6065_v13, %v6060_v10  ;;  %v1859_v25 = vmul.f32 %v6065_v13, %v6065_v13  ;;  %v6072_v34 = vpop.f32.mrb[0].mxu1  ;;  %1251 = vmatprep.mubr.f32.mxu0 %v5873_v55 }
 0x126   : > { %9433 = vst [vmem:[#allocation4_spill] sm:$0xff] %v6072_v34  ;;  %v1860_v36 = vmul.f32 %v6072_v34, %v6072_v34  ;;  %v6077_v45 = vpop.f32.mrb[1].mxu1  ;;  %1482 = vmatmul.mubr.f32.gmra.mrb[106].mxu1 %v5869_v54 }
 0x127   : > { %9434 = vst [vmem:[#allocation5_spill] sm:$0xff] %v6077_v45  ;;  %v2082_v47 = vadd.f32 %v1859_v25, %v1858_v11  ;;  %v1538_v56 = vadd.f32 %v1537_v23, %v6072_v34  ;;  %v6081_v58 = vpop.f32.mrb[2].mxu0  ;;  %1486 = vmatprep.mubr.f32.mxu1 %v5873_v55  ;;  %v1861_v5 = vmul.f32 %v6077_v45, %v6077_v45 }
 0x128   : > { %9435 = vst [vmem:[#allocation6_spill] sm:$0xff] %v6081_v58  ;;  %v1865_v3 = vmul.f32 %v6081_v58, %v6081_v58  ;;  %v6088_v17 = vpop.f32.mrb[3].mxu0  ;;  %1252 = vmatmul.mubr.f32.gmra.mrb[108].mxu0 %v5879_v57 }
 0x129   : > { %9436 = vst [vmem:[#allocation7_spill] sm:$0xff] %v6088_v17  ;;  %v2083_v19 = vadd.f32 %v2082_v47, %v1860_v36  ;;  %v6092_v31 = vadd.f32 %v1538_v56, %v6077_v45  ;;  %v1547_v33 = vadd.f32 %v6088_v17, %v6081_v58  ;;  %v1866_v44 = vmul.f32 %v6088_v17, %v6088_v17  ;;  %v6098_v48 = vpop.f32.mrb[2].mxu1 }
 0x12a   : > { %9437 = vst [vmem:[#allocation8_spill] sm:$0xff] %v6098_v48  ;;  %1257 = vmatprep.mubr.f32.mxu0 %v5883_v62  ;;  %v1867_v59 = vmul.f32 %v6098_v48, %v6098_v48  ;;  %v6103_v61 = vpop.f32.mrb[3].mxu1  ;;  %1487 = vmatmul.mubr.f32.gmra.mrb[108].mxu1 %v5879_v57 }
 0x12b   : > { %9438 = vst [vmem:[#allocation9_spill] sm:$0xff] %v6103_v61  ;;  %v6106_v8 = vadd.f32 %v2083_v19, %v1861_v5  ;;  %v2091_v12 = vadd.f32 %v1866_v44, %v1865_v3  ;;  %v1548_v27 = vadd.f32 %v1547_v33, %v6098_v48  ;;  %v6109_v29 = vpop.f32.mrb[4].mxu0  ;;  %1491 = vmatprep.mubr.f32.mxu1 %v5883_v62 }
 0x12c   : > { %9439 = vst [vmem:[#allocation10_spill] sm:$0xff] %v6109_v29  ;;  %v1872_v42 = vmul.f32 %v6109_v29, %v6109_v29  ;;  %v1868_v46 = vmul.f32 %v6103_v61, %v6103_v61  ;;  %v6116_v60 = vpop.f32.mrb[5].mxu0  ;;  %1258 = vmatmul.mubr.f32.gmra.mrb[110].mxu0 %v5889_v0 }
 0x12d   : > { %9440 = vst [vmem:[#allocation11_spill] sm:$0xff] %v6116_v60  ;;  %v2092_v63 = vadd.f32 %v2091_v12, %v1867_v59  ;;  %v6120_v15 = vadd.f32 %v1548_v27, %v6103_v61  ;;  %v1556_v18 = vadd.f32 %v6116_v60, %v6109_v29  ;;  %v1873_v32 = vmul.f32 %v6116_v60, %v6116_v60  ;;  %v6126_v37 = vpop.f32.mrb[4].mxu1 }
 0x12e   : > { %9441 = vst [vmem:[#allocation12_spill] sm:$0xff] %v6126_v37  ;;  %1263 = vmatprep.mubr.f32.mxu0 %v5893_v1  ;;  %v1874_v39 = vmul.f32 %v6126_v37, %v6126_v37  ;;  %v6131_v40 = vpop.f32.mrb[5].mxu1  ;;  %1492 = vmatmul.mubr.f32.gmra.mrb[110].mxu1 %v5889_v0 }
 0x12f   : > { %9442 = vst [vmem:[#allocation13_spill] sm:$0xff] %v6131_v40  ;;  %v6134_v20 = vadd.f32 %v2092_v63, %v1868_v46  ;;  %v2100_v41 = vadd.f32 %v1873_v32, %v1872_v42  ;;  %v1557_v43 = vadd.f32 %v1556_v18, %v6126_v37  ;;  %v6137_v49 = vpop.f32.mrb[6].mxu0  ;;  %1496 = vmatprep.mubr.f32.mxu1 %v5893_v1 }
 0x130   : > { %9443 = vst [vmem:[#allocation14_spill] sm:$0xff] %v6137_v49  ;;  %v1879_v50 = vmul.f32 %v6137_v49, %v6137_v49  ;;  %v1875_v51 = vmul.f32 %v6131_v40, %v6131_v40  ;;  %v6144_v52 = vpop.f32.mrb[7].mxu0  ;;  %1264 = vmatmul.mubr.f32.gmra.mrb[112].mxu0 %v5899_v2 }
 0x131   : > { %9444 = vst [vmem:[#allocation15_spill] sm:$0xff] %v6144_v52  ;;  %v2101_v53 = vadd.f32 %v2100_v41, %v1874_v39  ;;  %v6148_v54 = vadd.f32 %v1557_v43, %v6131_v40  ;;  %v1565_v55 = vadd.f32 %v6144_v52, %v6137_v49  ;;  %v1880_v57 = vmul.f32 %v6144_v52, %v6144_v52  ;;  %v6154_v62 = vpop.f32.mrb[6].mxu1 }
 0x132   : > { %9445 = vst [vmem:[#allocation16_spill] sm:$0xff] %v6154_v62  ;;  %1269 = vmatprep.mubr.f32.mxu0 %v5903_v4  ;;  %v1881_v0 = vmul.f32 %v6154_v62, %v6154_v62  ;;  %v6159_v1 = vpop.f32.mrb[7].mxu1  ;;  %1497 = vmatmul.mubr.f32.gmra.mrb[112].mxu1 %v5899_v2 }
 0x133   : > { %9446 = vst [vmem:[#allocation17_spill] sm:$0xff] %v6159_v1  ;;  %v6162_v11 = vadd.f32 %v2101_v53, %v1875_v51  ;;  %v2109_v23 = vadd.f32 %v1880_v57, %v1879_v50  ;;  %v1566_v25 = vadd.f32 %v1565_v55, %v6154_v62  ;;  %v6165_v36 = vpop.f32.mrb[8].mxu0  ;;  %1501 = vmatprep.mubr.f32.mxu1 %v5903_v4 }
 0x134   : > { %9447 = vst [vmem:[#allocation18_spill] sm:$0xff] %v6165_v36  ;;  %v1886_v47 = vmul.f32 %v6165_v36, %v6165_v36  ;;  %v1882_v56 = vmul.f32 %v6159_v1, %v6159_v1  ;;  %v6172_v3 = vpop.f32.mrb[9].mxu0  ;;  %1270 = vmatmul.mubr.f32.gmra.mrb[114].mxu0 %v5909_v6 }
 0x135   : > { %9448 = vst [vmem:[#allocation19_spill] sm:$0xff] %v6172_v3  ;;  %v2110_v2 = vadd.f32 %v2109_v23, %v1881_v0  ;;  %v6176_v5 = vadd.f32 %v1566_v25, %v6159_v1  ;;  %v1574_v19 = vadd.f32 %v6172_v3, %v6165_v36  ;;  %v1887_v4 = vmul.f32 %v6172_v3, %v6172_v3  ;;  %v6182_v33 = vpop.f32.mrb[8].mxu1 }
 0x136   : > { %9449 = vst [vmem:[#allocation20_spill] sm:$0xff] %v6182_v33  ;;  %1275 = vmatprep.mubr.f32.mxu0 %v5913_v7  ;;  %v1888_v44 = vmul.f32 %v6182_v33, %v6182_v33  ;;  %v6187_v59 = vpop.f32.mrb[9].mxu1  ;;  %1502 = vmatmul.mubr.f32.gmra.mrb[114].mxu1 %v5909_v6 }
 0x137   : > { %9450 = vst [vmem:[#allocation21_spill] sm:$0xff] %v6187_v59  ;;  %v6190_v12 = vadd.f32 %v2110_v2, %v1882_v56  ;;  %v2118_v27 = vadd.f32 %v1887_v4, %v1886_v47  ;;  %v1575_v42 = vadd.f32 %v1574_v19, %v6182_v33  ;;  %v6193_v46 = vpop.f32.mrb[10].mxu0  ;;  %1506 = vmatprep.mubr.f32.mxu1 %v5913_v7 }
 0x138   : > { %9451 = vst [vmem:[#allocation22_spill] sm:$0xff] %v6193_v46  ;;  %v1893_v63 = vmul.f32 %v6193_v46, %v6193_v46  ;;  %v1889_v18 = vmul.f32 %v6187_v59, %v6187_v59  ;;  %v6200_v32 = vpop.f32.mrb[11].mxu0  ;;  %1276 = vmatmul.mubr.f32.gmra.mrb[116].mxu0 %v5919_v9 }
 0x139   : > { %9452 = vst [vmem:[#allocation23_spill] sm:$0xff] %v6200_v32  ;;  %v2119_v6 = vadd.f32 %v2118_v27, %v1888_v44  ;;  %v6204_v39 = vadd.f32 %v1575_v42, %v6187_v59  ;;  %v1583_v41 = vadd.f32 %v6200_v32, %v6193_v46  ;;  %v1894_v7 = vmul.f32 %v6200_v32, %v6200_v32  ;;  %v6210_v43 = vpop.f32.mrb[10].mxu1 }
 0x13a   : > { %9453 = vst [vmem:[#allocation24_spill] sm:$0xff] %v6210_v43  ;;  %1281 = vmatprep.mubr.f32.mxu0 %v5923_v14  ;;  %v1895_v50 = vmul.f32 %v6210_v43, %v6210_v43  ;;  %v6215_v51 = vpop.f32.mrb[11].mxu1  ;;  %1507 = vmatmul.mubr.f32.gmra.mrb[116].mxu1 %v5919_v9 }
 0x13b   : > { %9454 = vst [vmem:[#allocation25_spill] sm:$0xff] %v6215_v51  ;;  %v6218_v53 = vadd.f32 %v2119_v6, %v1889_v18  ;;  %v2127_v55 = vadd.f32 %v1894_v7, %v1893_v63  ;;  %v1584_v57 = vadd.f32 %v1583_v41, %v6210_v43  ;;  %v6221_v0 = vpop.f32.mrb[12].mxu0  ;;  %1511 = vmatprep.mubr.f32.mxu1 %v5923_v14 }
 0x13c   : > { %9455 = vst [vmem:[#allocation26_spill] sm:$0xff] %v6221_v0  ;;  %v1900_v23 = vmul.f32 %v6221_v0, %v6221_v0  ;;  %v1896_v25 = vmul.f32 %v6215_v51, %v6215_v51  ;;  %v6228_v47 = vpop.f32.mrb[13].mxu0  ;;  %1282 = vmatmul.mubr.f32.gmra.mrb[118].mxu0 %v5929_v16 }
 0x13d   : > { %9456 = vst [vmem:[#allocation27_spill] sm:$0xff] %v6228_v47  ;;  %v2128_v9 = vadd.f32 %v2127_v55, %v1895_v50  ;;  %v6232_v56 = vadd.f32 %v1584_v57, %v6215_v51  ;;  %v1592_v2 = vadd.f32 %v6228_v47, %v6221_v0  ;;  %v1901_v14 = vmul.f32 %v6228_v47, %v6228_v47  ;;  %v6238_v19 = vpop.f32.mrb[12].mxu1 }
 0x13e   : > { %9457 = vst [vmem:[#allocation28_spill] sm:$0xff] %v6238_v19  ;;  %1287 = vmatprep.mubr.f32.mxu0 %v5933_v21  ;;  %v1902_v4 = vmul.f32 %v6238_v19, %v6238_v19  ;;  %v6243_v44 = vpop.f32.mrb[13].mxu1  ;;  %1512 = vmatmul.mubr.f32.gmra.mrb[118].mxu1 %v5929_v16 }
 0x13f   : > { %9458 = vst [vmem:[#allocation29_spill] sm:$0xff] %v6243_v44  ;;  %v6246_v27 = vadd.f32 %v2128_v9, %v1896_v25  ;;  %v2136_v42 = vadd.f32 %v1901_v14, %v1900_v23  ;;  %v1593_v63 = vadd.f32 %v1592_v2, %v6238_v19  ;;  %v6249_v18 = vpop.f32.mrb[14].mxu0  ;;  %1516 = vmatprep.mubr.f32.mxu1 %v5933_v21 }
 0x140   : > { %9459 = vst [vmem:[#allocation30_spill] sm:$0xff] %v6249_v18  ;;  %v1907_v6 = vmul.f32 %v6249_v18, %v6249_v18  ;;  %v1903_v41 = vmul.f32 %v6243_v44, %v6243_v44  ;;  %v6256_v7 = vpop.f32.mrb[15].mxu0  ;;  %1288 = vmatmul.mubr.f32.gmra.mrb[120].mxu0 %v5939_v22 }
 0x141   : > { %9460 = vst [vmem:[#allocation31_spill] sm:$0xff] %v6256_v7  ;;  %v2137_v16 = vadd.f32 %v2136_v42, %v1902_v4  ;;  %v6260_v50 = vadd.f32 %v1593_v63, %v6243_v44  ;;  %v1601_v55 = vadd.f32 %v6256_v7, %v6249_v18  ;;  %v1908_v21 = vmul.f32 %v6256_v7, %v6256_v7  ;;  %v6266_v57 = vpop.f32.mrb[14].mxu1 }
 0x142   : > { %9461 = vst [vmem:[#allocation32_spill] sm:$0xff] %v6266_v57  ;;  %1293 = vmatprep.mubr.f32.mxu0 %v5943_v24  ;;  %v1909_v23 = vmul.f32 %v6266_v57, %v6266_v57  ;;  %v6271_v25 = vpop.f32.mrb[15].mxu1  ;;  %1517 = vmatmul.mubr.f32.gmra.mrb[120].mxu1 %v5939_v22 }
 0x143   : > { %9462 = vst [vmem:[#allocation33_spill] sm:$0xff] %v6271_v25  ;;  %v6274_v9 = vadd.f32 %v2137_v16, %v1903_v41  ;;  %v2145_v2 = vadd.f32 %v1908_v21, %v1907_v6  ;;  %v1602_v14 = vadd.f32 %v1601_v55, %v6266_v57  ;;  %v6277_v4 = vpop.f32.mrb[16].mxu0  ;;  %1521 = vmatprep.mubr.f32.mxu1 %v5943_v24 }
 0x144   : > { %9463 = vst [vmem:[#allocation34_spill] sm:$0xff] %v6277_v4  ;;  %v1914_v42 = vmul.f32 %v6277_v4, %v6277_v4  ;;  %v1910_v63 = vmul.f32 %v6271_v25, %v6271_v25  ;;  %v6284_v61 = vpop.f32.mrb[17].mxu0  ;;  %1294 = vmatmul.mubr.f32.gmra.mrb[122].mxu0 %v5949_v26 }
 0x145   : > { %9464 = vst [vmem:[#allocation35_spill] sm:$0xff] %v6284_v61  ;;  %v2146_v22 = vadd.f32 %v2145_v2, %v1909_v23  ;;  %v6288_v41 = vadd.f32 %v1602_v14, %v6271_v25  ;;  %v1610_v6 = vadd.f32 %v6284_v61, %v6277_v4  ;;  %v1915_v24 = vmul.f32 %v6284_v61, %v6284_v61  ;;  %v6294_v16 = vpop.f32.mrb[16].mxu1 }
 0x146   : > { %9465 = vst [vmem:[#allocation36_spill] sm:$0xff] %v6294_v16  ;;  %1299 = vmatprep.mubr.f32.mxu0 %v5953_v28  ;;  %v1916_v55 = vmul.f32 %v6294_v16, %v6294_v16  ;;  %v6299_v21 = vpop.f32.mrb[17].mxu1  ;;  %1522 = vmatmul.mubr.f32.gmra.mrb[122].mxu1 %v5949_v26 }
 0x147   : > { %9466 = vst [vmem:[#allocation37_spill] sm:$0xff] %v6299_v21  ;;  %v6302_v23 = vadd.f32 %v2146_v22, %v1910_v63  ;;  %v2154_v2 = vadd.f32 %v1915_v24, %v1914_v42  ;;  %v1611_v14 = vadd.f32 %v1610_v6, %v6294_v16  ;;  %v6305_v48 = vpop.f32.mrb[18].mxu0  ;;  %1526 = vmatprep.mubr.f32.mxu1 %v5953_v28 }
 0x148   : > { %9467 = vst [vmem:[#allocation38_spill] sm:$0xff] %v6305_v48  ;;  %v1921_v17 = vmul.f32 %v6305_v48, %v6305_v48  ;;  %v1917_v58 = vmul.f32 %v6299_v21, %v6299_v21  ;;  %v6312_v61 = vpop.f32.mrb[19].mxu0  ;;  %1300 = vmatmul.mubr.f32.gmra.mrb[124].mxu0 %v5959_v30 }
 0x149   : > { %9468 = vst [vmem:[#allocation39_spill] sm:$0xff] %v6312_v61  ;;  %v2155_v26 = vadd.f32 %v2154_v2, %v1916_v55  ;;  %v6316_v63 = vadd.f32 %v1611_v14, %v6299_v21  ;;  %v1619_v42 = vadd.f32 %v6312_v61, %v6305_v48  ;;  %v1922_v28 = vmul.f32 %v6312_v61, %v6312_v61  ;;  %v6322_v22 = vpop.f32.mrb[18].mxu1 }
 0x14a   : > { %9469 = vst [vmem:[#allocation40_spill] sm:$0xff] %v6322_v22  ;;  %1305 = vmatprep.mubr.f32.mxu0 %v5963_v35  ;;  %v1923_v6 = vmul.f32 %v6322_v22, %v6322_v22  ;;  %v6327_v24 = vpop.f32.mrb[19].mxu1  ;;  %1527 = vmatmul.mubr.f32.gmra.mrb[124].mxu1 %v5959_v30 }
 0x14b   : > { %9470 = vst [vmem:[#allocation41_spill] sm:$0xff] %v6327_v24  ;;  %v6330_v55 = vadd.f32 %v2155_v26, %v1917_v58  ;;  %v2163_v2 = vadd.f32 %v1922_v28, %v1921_v17  ;;  %v1620_v14 = vadd.f32 %v1619_v42, %v6322_v22  ;;  %v6333_v21 = vpop.f32.mrb[20].mxu0  ;;  %1531 = vmatprep.mubr.f32.mxu1 %v5963_v35 }
 0x14c   : > { %9471 = vst [vmem:[#allocation42_spill] sm:$0xff] %v6333_v21  ;;  %v1928_v16 = vmul.f32 %v6333_v21, %v6333_v21  ;;  %v1924_v4 = vmul.f32 %v6327_v24, %v6327_v24  ;;  %v6340_v61 = vpop.f32.mrb[21].mxu0  ;;  %1306 = vmatmul.mubr.f32.gmra.mrb[126].mxu0 %v5969_v38 }
 0x14d   : > { %9472 = vst [vmem:[#allocation43_spill] sm:$0xff] %v6340_v61  ;;  %v2164_v30 = vadd.f32 %v2163_v2, %v1923_v6  ;;  %v6344_v58 = vadd.f32 %v1620_v14, %v6327_v24  ;;  %v1628_v17 = vadd.f32 %v6340_v61, %v6333_v21  ;;  %v1929_v35 = vmul.f32 %v6340_v61, %v6340_v61  ;;  %v6350_v26 = vpop.f32.mrb[20].mxu1 }
 0x14e   : > { %9473 = vst [vmem:[#allocation44_spill] sm:$0xff] %v6350_v26  ;;  %v1930_v42 = vmul.f32 %v6350_v26, %v6350_v26  ;;  %v6354_v28 = vpop.f32.mrb[21].mxu1  ;;  %1532 = vmatmul.mubr.f32.gmra.mrb[126].mxu1 %v5969_v38 }
 0x14f   : > { %9474 = vst [vmem:[#allocation45_spill] sm:$0xff] %v6354_v28  ;;  %v6357_v22 = vadd.f32 %v2164_v30, %v1924_v4  ;;  %v2172_v6 = vadd.f32 %v1929_v35, %v1928_v16  ;;  %v1629_v2 = vadd.f32 %v1628_v17, %v6350_v26  ;;  %v6360_v14 = vpop.f32.mrb[22].mxu0  ;;  %v1931_v61 = vmul.f32 %v6354_v28, %v6354_v28 }
 0x150   : > { %9475 = vst [vmem:[#allocation46_spill] sm:$0xff] %v6360_v14  ;;  %v1935_v21 = vmul.f32 %v6360_v14, %v6360_v14  ;;  %v6366_v24 = vpop.f32.mrb[23].mxu0 }
 0x151   : > { %9476 = vst [vmem:[#allocation47_spill] sm:$0xff] %v6366_v24  ;;  %v2173_v48 = vadd.f32 %v2172_v6, %v1930_v42  ;;  %v6369_v44 = vadd.f32 %v1629_v2, %v6354_v28  ;;  %v1637_v38 = vadd.f32 %v6366_v24, %v6360_v14  ;;  %v1936_v4 = vmul.f32 %v6366_v24, %v6366_v24  ;;  %v6375_v16 = vpop.f32.mrb[22].mxu1 }
 0x152   : > { %9477 = vst [vmem:[#allocation48_spill] sm:$0xff] %v6375_v16  ;;  %v1937_v30 = vmul.f32 %v6375_v16, %v6375_v16  ;;  %v6379_v17 = vpop.f32.mrb[23].mxu1 }
 0x153   : > { %9478 = vst [vmem:[#allocation49_spill] sm:$0xff] %v6379_v17  ;;  %v6381_v35 = vadd.f32 %v2173_v48, %v1931_v61  ;;  %v2181_v26 = vadd.f32 %v1936_v4, %v1935_v21  ;;  %v1638_v42 = vadd.f32 %v1637_v38, %v6375_v16  ;;  %v6384_v6 = vpop.f32.mrb[24].mxu0  ;;  %v1938_v28 = vmul.f32 %v6379_v17, %v6379_v17 }
 0x154   : > { %9479 = vst [vmem:[#allocation50_spill] sm:$0xff] %v6384_v6  ;;  %v1942_v2 = vmul.f32 %v6384_v6, %v6384_v6  ;;  %v6390_v24 = vpop.f32.mrb[25].mxu0 }
 0x155   : > { %9480 = vst [vmem:[#allocation51_spill] sm:$0xff] %v6390_v24  ;;  %v2182_v14 = vadd.f32 %v2181_v26, %v1937_v30  ;;  %v6393_v19 = vadd.f32 %v1638_v42, %v6379_v17  ;;  %v1646_v48 = vadd.f32 %v6390_v24, %v6384_v6  ;;  %v1943_v61 = vmul.f32 %v6390_v24, %v6390_v24  ;;  %v6399_v21 = vpop.f32.mrb[24].mxu1 }
 0x156   : > { %9481 = vst [vmem:[#allocation52_spill] sm:$0xff] %v6399_v21  ;;  %v1944_v38 = vmul.f32 %v6399_v21, %v6399_v21  ;;  %v6403_v4 = vpop.f32.mrb[25].mxu1 }
 0x157   : > { %9482 = vst [vmem:[#allocation53_spill] sm:$0xff] %v6403_v4  ;;  %v6405_v16 = vadd.f32 %v2182_v14, %v1938_v28  ;;  %v2190_v47 = vadd.f32 %v1943_v61, %v1942_v2  ;;  %v1647_v26 = vadd.f32 %v1646_v48, %v6399_v21  ;;  %v6408_v30 = vpop.f32.mrb[26].mxu0  ;;  %v1945_v24 = vmul.f32 %v6403_v4, %v6403_v4 }
 0x158   : > { %9483 = vst [vmem:[#allocation54_spill] sm:$0xff] %v6408_v30  ;;  %v1949_v42 = vmul.f32 %v6408_v30, %v6408_v30  ;;  %v6414_v6 = vpop.f32.mrb[27].mxu0 }
 0x159   : > { %9484 = vst [vmem:[#allocation55_spill] sm:$0xff] %v6414_v6  ;;  %v2191_v17 = vadd.f32 %v2190_v47, %v1944_v38  ;;  %v6417_v0 = vadd.f32 %v1647_v26, %v6403_v4  ;;  %v1655_v28 = vadd.f32 %v6414_v6, %v6408_v30  ;;  %v1950_v14 = vmul.f32 %v6414_v6, %v6414_v6  ;;  %v6423_v2 = vpop.f32.mrb[26].mxu1 }
 0x15a   : > { %9485 = vst [vmem:[#allocation56_spill] sm:$0xff] %v6423_v2  ;;  %v1951_v48 = vmul.f32 %v6423_v2, %v6423_v2  ;;  %v6427_v61 = vpop.f32.mrb[27].mxu1 }
 0x15b   : > { %9486 = vst [vmem:[#allocation57_spill] sm:$0xff] %v6427_v61  ;;  %v6429_v21 = vadd.f32 %v2191_v17, %v1945_v24  ;;  %v2199_v25 = vadd.f32 %v1950_v14, %v1949_v42  ;;  %v1656_v47 = vadd.f32 %v1655_v28, %v6423_v2  ;;  %v6432_v38 = vpop.f32.mrb[28].mxu0  ;;  %v1952_v4 = vmul.f32 %v6427_v61, %v6427_v61 }
 0x15c   : > { %9487 = vst [vmem:[#allocation58_spill] sm:$0xff] %v6432_v38  ;;  %v1956_v26 = vmul.f32 %v6432_v38, %v6432_v38  ;;  %v6438_v6 = vpop.f32.mrb[29].mxu0 }
 0x15d   : > { %9488 = vst [vmem:[#allocation59_spill] sm:$0xff] %v6438_v6  ;;  %v2200_v30 = vadd.f32 %v2199_v25, %v1951_v48  ;;  %v6441_v57 = vadd.f32 %v1656_v47, %v6427_v61  ;;  %v1664_v24 = vadd.f32 %v6438_v6, %v6432_v38  ;;  %v1957_v17 = vmul.f32 %v6438_v6, %v6438_v6  ;;  %v6447_v42 = vpop.f32.mrb[28].mxu1 }
 0x15e   : > { %9489 = vst [vmem:[#allocation60_spill] sm:$0xff] %v6447_v42  ;;  %v1958_v28 = vmul.f32 %v6447_v42, %v6447_v42  ;;  %v6451_v14 = vpop.f32.mrb[29].mxu1 }
 0x15f   : > { %9490 = vst [vmem:[#allocation61_spill] sm:$0xff] %v6451_v14  ;;  %v6453_v2 = vadd.f32 %v2200_v30, %v1952_v4  ;;  %v2208_v7 = vadd.f32 %v1957_v17, %v1956_v26  ;;  %v1665_v25 = vadd.f32 %v1664_v24, %v6447_v42  ;;  %v6456_v48 = vpop.f32.mrb[30].mxu0  ;;  %v1959_v6 = vmul.f32 %v6451_v14, %v6451_v14 }
 0x160   : > { %9491 = vst [vmem:[#allocation62_spill] sm:$0xff] %v6456_v48  ;;  %v1963_v47 = vmul.f32 %v6456_v48, %v6456_v48  ;;  %v6462_v38 = vpop.f32.mrb[31].mxu0 }
 0x161   : > { %9492 = vst [vmem:[#allocation63_spill] sm:$0xff] %v6462_v38  ;;  %v2209_v61 = vadd.f32 %v2208_v7, %v1958_v28  ;;  %v6465_v18 = vadd.f32 %v1665_v25, %v6451_v14  ;;  %v1673_v4 = vadd.f32 %v6462_v38, %v6456_v48  ;;  %v1964_v30 = vmul.f32 %v6462_v38, %v6462_v38  ;;  %v6471_v26 = vpop.f32.mrb[30].mxu1 }
 0x162   : > { %9493 = vst [vmem:[#allocation64_spill] sm:$0xff] %v6471_v26  ;;  %v1965_v24 = vmul.f32 %v6471_v26, %v6471_v26  ;;  %v6475_v17 = vpop.f32.mrb[31].mxu1 }
 0x163   : > { %9494 = vst [vmem:[#allocation65_spill] sm:$0xff] %v6475_v17  ;;  %v6477_v42 = vadd.f32 %v2209_v61, %v1959_v6  ;;  %v2217_v59 = vadd.f32 %v1964_v30, %v1963_v47  ;;  %v1674_v7 = vadd.f32 %v1673_v4, %v6471_v26  ;;  %v6480_v28 = vpop.f32.mrb[32].mxu0  ;;  %v1966_v14 = vmul.f32 %v6475_v17, %v6475_v17 }
 0x164   : > { %9495 = vst [vmem:[#allocation66_spill] sm:$0xff] %v6480_v28  ;;  %v1970_v25 = vmul.f32 %v6480_v28, %v6480_v28  ;;  %v6486_v38 = vpop.f32.mrb[33].mxu0 }
 0x165   : > { %9496 = vst [vmem:[#allocation67_spill] sm:$0xff] %v6486_v38  ;;  %v2218_v48 = vadd.f32 %v2217_v59, %v1965_v24  ;;  %v6489_v33 = vadd.f32 %v1674_v7, %v6475_v17  ;;  %v1682_v6 = vadd.f32 %v6486_v38, %v6480_v28  ;;  %v1971_v61 = vmul.f32 %v6486_v38, %v6486_v38  ;;  %v6495_v47 = vpop.f32.mrb[32].mxu1 }
 0x166   : > { %9497 = vst [vmem:[#allocation68_spill] sm:$0xff] %v6495_v47  ;;  %v1972_v4 = vmul.f32 %v6495_v47, %v6495_v47  ;;  %v6499_v30 = vpop.f32.mrb[33].mxu1 }
 0x167   : > { %9498 = vst [vmem:[#allocation69_spill] sm:$0xff] %v6499_v30  ;;  %v6501_v26 = vadd.f32 %v2218_v48, %v1966_v14  ;;  %v2226_v3 = vadd.f32 %v1971_v61, %v1970_v25  ;;  %v1683_v59 = vadd.f32 %v1682_v6, %v6495_v47  ;;  %v6504_v24 = vpop.f32.mrb[34].mxu0  ;;  %v1973_v38 = vmul.f32 %v6499_v30, %v6499_v30 }
 0x168   : > { %9499 = vst [vmem:[#allocation70_spill] sm:$0xff] %v6504_v24  ;;  %v1977_v7 = vmul.f32 %v6504_v24, %v6504_v24  ;;  %v6510_v28 = vpop.f32.mrb[35].mxu0 }
 0x169   : > { %9500 = vst [vmem:[#allocation71_spill] sm:$0xff] %v6510_v28  ;;  %v2227_v17 = vadd.f32 %v2226_v3, %v1972_v4  ;;  %v6513_v36 = vadd.f32 %v1683_v59, %v6499_v30  ;;  %v1691_v14 = vadd.f32 %v6510_v28, %v6504_v24  ;;  %v1978_v48 = vmul.f32 %v6510_v28, %v6510_v28  ;;  %v6519_v25 = vpop.f32.mrb[34].mxu1 }
 0x16a   : > { %9501 = vst [vmem:[#allocation72_spill] sm:$0xff] %v6519_v25  ;;  %v1979_v6 = vmul.f32 %v6519_v25, %v6519_v25  ;;  %v6523_v61 = vpop.f32.mrb[35].mxu1 }
 0x16b   : > { %9502 = vst [vmem:[#allocation73_spill] sm:$0xff] %v6523_v61  ;;  %v6525_v47 = vadd.f32 %v2227_v17, %v1973_v38  ;;  %v2235_v51 = vadd.f32 %v1978_v48, %v1977_v7  ;;  %v1692_v3 = vadd.f32 %v1691_v14, %v6519_v25  ;;  %v6528_v4 = vpop.f32.mrb[36].mxu0  ;;  %v1980_v30 = vmul.f32 %v6523_v61, %v6523_v61 }
 0x16c   : > { %9503 = vst [vmem:[#allocation74_spill] sm:$0xff] %v6528_v4  ;;  %v1984_v59 = vmul.f32 %v6528_v4, %v6528_v4  ;;  %v6534_v28 = vpop.f32.mrb[37].mxu0 }
 0x16d   : > { %9504 = vst [vmem:[#allocation75_spill] sm:$0xff] %v6534_v28  ;;  %v2236_v24 = vadd.f32 %v2235_v51, %v1979_v6  ;;  %v6537_v43 = vadd.f32 %v1692_v3, %v6523_v61  ;;  %v1700_v38 = vadd.f32 %v6534_v28, %v6528_v4  ;;  %v1985_v17 = vmul.f32 %v6534_v28, %v6534_v28  ;;  %v6543_v7 = vpop.f32.mrb[36].mxu1 }
 0x16e   : > { %9505 = vst [vmem:[#allocation76_spill] sm:$0xff] %v6543_v7  ;;  %v1986_v14 = vmul.f32 %v6543_v7, %v6543_v7  ;;  %v6547_v48 = vpop.f32.mrb[37].mxu1 }
 0x16f   : > { %9506 = vst [vmem:[#allocation77_spill] sm:$0xff] %v6547_v48  ;;  %v6549_v25 = vadd.f32 %v2236_v24, %v1980_v30  ;;  %v2244_v32 = vadd.f32 %v1985_v17, %v1984_v59  ;;  %v1701_v51 = vadd.f32 %v1700_v38, %v6543_v7  ;;  %v6552_v6 = vpop.f32.mrb[38].mxu0  ;;  %v1987_v28 = vmul.f32 %v6547_v48, %v6547_v48 }
 0x170   : > { %9507 = vst [vmem:[#allocation78_spill] sm:$0xff] %v6552_v6  ;;  %v1991_v3 = vmul.f32 %v6552_v6, %v6552_v6  ;;  %v6558_v4 = vpop.f32.mrb[39].mxu0 }
 0x171   : > { %9508 = vst [vmem:[#allocation79_spill] sm:$0xff] %v6558_v4  ;;  %v2245_v61 = vadd.f32 %v2244_v32, %v1986_v14  ;;  %v6561_v46 = vadd.f32 %v1701_v51, %v6547_v48  ;;  %v1709_v30 = vadd.f32 %v6558_v4, %v6552_v6  ;;  %v1992_v24 = vmul.f32 %v6558_v4, %v6558_v4  ;;  %v6567_v59 = vpop.f32.mrb[38].mxu1 }
 0x172   : > { %9509 = vst [vmem:[#allocation80_spill] sm:$0xff] %v6567_v59  ;;  %v1993_v38 = vmul.f32 %v6567_v59, %v6567_v59  ;;  %v6571_v17 = vpop.f32.mrb[39].mxu1 }
 0x173   : > { %9510 = vst [vmem:[#allocation81_spill] sm:$0xff] %v6571_v17  ;;  %v6573_v7 = vadd.f32 %v2245_v61, %v1987_v28  ;;  %v2253_v40 = vadd.f32 %v1992_v24, %v1991_v3  ;;  %v1710_v32 = vadd.f32 %v1709_v30, %v6567_v59  ;;  %v6576_v14 = vpop.f32.mrb[40].mxu0  ;;  %v1994_v48 = vmul.f32 %v6571_v17, %v6571_v17 }
 0x174   : > { %9511 = vst [vmem:[#allocation82_spill] sm:$0xff] %v6576_v14  ;;  %v1998_v51 = vmul.f32 %v6576_v14, %v6576_v14  ;;  %v6582_v4 = vpop.f32.mrb[41].mxu0 }
 0x175   : > { %9512 = vst [vmem:[#allocation83_spill] sm:$0xff] %v6582_v4  ;;  %v2254_v6 = vadd.f32 %v2253_v40, %v1993_v38  ;;  %v6585_v37 = vadd.f32 %v1710_v32, %v6571_v17  ;;  %v1718_v28 = vadd.f32 %v6582_v4, %v6576_v14  ;;  %v1999_v61 = vmul.f32 %v6582_v4, %v6582_v4  ;;  %v6591_v3 = vpop.f32.mrb[40].mxu1 }
 0x176   : > { %9513 = vst [vmem:[#allocation84_spill] sm:$0xff] %v6591_v3  ;;  %v2000_v30 = vmul.f32 %v6591_v3, %v6591_v3  ;;  %v6595_v24 = vpop.f32.mrb[41].mxu1 }
 0x177   : > { %9514 = vst [vmem:[#allocation85_spill] sm:$0xff] %v6595_v24  ;;  %v6597_v59 = vadd.f32 %v2254_v6, %v1994_v48  ;;  %v2262_v60 = vadd.f32 %v1999_v61, %v1998_v51  ;;  %v1719_v40 = vadd.f32 %v1718_v28, %v6591_v3  ;;  %v6600_v38 = vpop.f32.mrb[42].mxu0  ;;  %v2001_v4 = vmul.f32 %v6595_v24, %v6595_v24 }
 0x178   : > { %9515 = vst [vmem:[#allocation86_spill] sm:$0xff] %v6600_v38  ;;  %v2005_v32 = vmul.f32 %v6600_v38, %v6600_v38  ;;  %v6606_v14 = vpop.f32.mrb[43].mxu0 }
 0x179   : > { %9516 = vst [vmem:[#allocation87_spill] sm:$0xff] %v6606_v14  ;;  %v2263_v17 = vadd.f32 %v2262_v60, %v2000_v30  ;;  %v6609_v29 = vadd.f32 %v1719_v40, %v6595_v24  ;;  %v1727_v48 = vadd.f32 %v6606_v14, %v6600_v38  ;;  %v2006_v6 = vmul.f32 %v6606_v14, %v6606_v14  ;;  %v6615_v51 = vpop.f32.mrb[42].mxu1 }
 0x17a   : > { %9517 = vst [vmem:[#allocation88_spill] sm:$0xff] %v6615_v51  ;;  %v2007_v28 = vmul.f32 %v6615_v51, %v6615_v51  ;;  %v6619_v61 = vpop.f32.mrb[43].mxu1 }
 0x17b   : > { %9518 = vst [vmem:[#allocation89_spill] sm:$0xff] %v6619_v61  ;;  %v6621_v3 = vadd.f32 %v2263_v17, %v2001_v4  ;;  %v2271_v1 = vadd.f32 %v2006_v6, %v2005_v32  ;;  %v1728_v60 = vadd.f32 %v1727_v48, %v6615_v51  ;;  %v6624_v30 = vpop.f32.mrb[44].mxu0  ;;  %v2008_v24 = vmul.f32 %v6619_v61, %v6619_v61 }
 0x17c   : > { %9519 = vst [vmem:[#allocation90_spill] sm:$0xff] %v6624_v30  ;;  %v2012_v40 = vmul.f32 %v6624_v30, %v6624_v30  ;;  %v6630_v14 = vpop.f32.mrb[45].mxu0 }
 0x17d   : > { %9520 = vst [vmem:[#allocation91_spill] sm:$0xff] %v6630_v14  ;;  %v2272_v38 = vadd.f32 %v2271_v1, %v2007_v28  ;;  %v6633_v62 = vadd.f32 %v1728_v60, %v6619_v61  ;;  %v1736_v4 = vadd.f32 %v6630_v14, %v6624_v30  ;;  %v2013_v17 = vmul.f32 %v6630_v14, %v6630_v14  ;;  %v6639_v32 = vpop.f32.mrb[44].mxu1 }
 0x17e   : > { %9521 = vst [vmem:[#allocation92_spill] sm:$0xff] %v6639_v32  ;;  %v2014_v48 = vmul.f32 %v6639_v32, %v6639_v32  ;;  %v6643_v6 = vpop.f32.mrb[45].mxu1 }
 0x17f   : > { %9522 = vst [vmem:[#allocation93_spill] sm:$0xff] %v6643_v6  ;;  %v6645_v51 = vadd.f32 %v2272_v38, %v2008_v24  ;;  %v2280_v52 = vadd.f32 %v2013_v17, %v2012_v40  ;;  %v1737_v1 = vadd.f32 %v1736_v4, %v6639_v32  ;;  %v6648_v28 = vpop.f32.mrb[46].mxu0  ;;  %v2015_v14 = vmul.f32 %v6643_v6, %v6643_v6 }
 0x180   : > { %9523 = vst [vmem:[#allocation94_spill] sm:$0xff] %v6648_v28  ;;  %v2019_v60 = vmul.f32 %v6648_v28, %v6648_v28  ;;  %v6654_v30 = vpop.f32.mrb[47].mxu0 }
 0x181   : > { %9524 = vst [vmem:[#allocation95_spill] sm:$0xff] %v6654_v30  ;;  %v2281_v61 = vadd.f32 %v2280_v52, %v2014_v48  ;;  %v6657_v49 = vadd.f32 %v1737_v1, %v6643_v6  ;;  %v1745_v24 = vadd.f32 %v6654_v30, %v6648_v28  ;;  %v2020_v38 = vmul.f32 %v6654_v30, %v6654_v30  ;;  %v6663_v40 = vpop.f32.mrb[46].mxu1 }
 0x182   : > { %9525 = vst [vmem:[#allocation96_spill] sm:$0xff] %v6663_v40  ;;  %v2021_v4 = vmul.f32 %v6663_v40, %v6663_v40  ;;  %v6667_v17 = vpop.f32.mrb[47].mxu1 }
 0x183   : > { %9526 = vst [vmem:[#allocation97_spill] sm:$0xff] %v6667_v17  ;;  %v6669_v32 = vadd.f32 %v2281_v61, %v2015_v14  ;;  %v2289_v45 = vadd.f32 %v2020_v38, %v2019_v60  ;;  %v1746_v52 = vadd.f32 %v1745_v24, %v6663_v40  ;;  %v6672_v48 = vpop.f32.mrb[48].mxu0  ;;  %v2022_v6 = vmul.f32 %v6667_v17, %v6667_v17 }
 0x184   : > { %9527 = vst [vmem:[#allocation98_spill] sm:$0xff] %v6672_v48  ;;  %v2026_v1 = vmul.f32 %v6672_v48, %v6672_v48  ;;  %v6678_v30 = vpop.f32.mrb[49].mxu0 }
 0x185   : > { %9528 = vst [vmem:[#allocation99_spill] sm:$0xff] %v6678_v30  ;;  %v2290_v28 = vadd.f32 %v2289_v45, %v2021_v4  ;;  %v6681_v34 = vadd.f32 %v1746_v52, %v6667_v17  ;;  %v1754_v14 = vadd.f32 %v6678_v30, %v6672_v48  ;;  %v2027_v61 = vmul.f32 %v6678_v30, %v6678_v30  ;;  %v6687_v60 = vpop.f32.mrb[48].mxu1 }
 0x186   : > { %9529 = vst [vmem:[#allocation100_spill] sm:$0xff] %v6687_v60  ;;  %v2028_v24 = vmul.f32 %v6687_v60, %v6687_v60  ;;  %v6691_v38 = vpop.f32.mrb[49].mxu1 }
 0x187   : > { %9530 = vst [vmem:[#allocation101_spill] sm:$0xff] %v6691_v38  ;;  %v6693_v40 = vadd.f32 %v2290_v28, %v2022_v6  ;;  %v2298_v13 = vadd.f32 %v2027_v61, %v2026_v1  ;;  %v1755_v45 = vadd.f32 %v1754_v14, %v6687_v60  ;;  %v6696_v4 = vpop.f32.mrb[50].mxu0  ;;  %v2029_v30 = vmul.f32 %v6691_v38, %v6691_v38 }
 0x188   : > { %9532 = vst [vmem:[#allocation103_spill] sm:$0xff] %v6696_v4  ;;  %v2033_v52 = vmul.f32 %v6696_v4, %v6696_v4  ;;  %v6702_v48 = vpop.f32.mrb[51].mxu0 }
 0x189   : > { %9531 = vst [vmem:[#allocation102_spill] sm:$0xff] %v6693_v40  ;;  %9533 = vst [vmem:[#allocation104_spill] sm:$0xff] %v6702_v48  ;;  %v2299_v17 = vadd.f32 %v2298_v13, %v2028_v24  ;;  %v6705_v10 = vadd.f32 %v1755_v45, %v6691_v38  ;;  %v1763_v6 = vadd.f32 %v6702_v48, %v6696_v4  ;;  %v6711_v1 = vpop.f32.mrb[50].mxu1 }
 0x18a   : > { %v2034_v28 = vmul.f32 %v6702_v48, %v6702_v48  ;;  %9535 = vst [vmem:[#allocation106_spill] sm:$0xff] %v6711_v1  ;;  %v2035_v14 = vmul.f32 %v6711_v1, %v6711_v1  ;;  %v6715_v61 = vpop.f32.mrb[51].mxu1 }
 0x18b   : > { %9534 = vst [vmem:[#allocation105_spill] sm:$0xff] %v6705_v10  ;;  %9536 = vst [vmem:[#allocation107_spill] sm:$0xff] %v6715_v61  ;;  %v6717_v60 = vadd.f32 %v2299_v17, %v2029_v30  ;;  %v1764_v13 = vadd.f32 %v1763_v6, %v6711_v1  ;;  %v6720_v24 = vpop.f32.mrb[52].mxu0  ;;  %v2036_v38 = vmul.f32 %v6715_v61, %v6715_v61 }
 0x18c   : > { %v2307_v40 = vadd.f32 %v2034_v28, %v2033_v52  ;;  %9538 = vst [vmem:[#allocation109_spill] sm:$0xff] %v6720_v24  ;;  %v2040_v45 = vmul.f32 %v6720_v24, %v6720_v24  ;;  %v6726_v48 = vpop.f32.mrb[53].mxu0 }
 0x18d   : > { %9537 = vst [vmem:[#allocation108_spill] sm:$0xff] %v6717_v60  ;;  %9539 = vst [vmem:[#allocation110_spill] sm:$0xff] %v6726_v48  ;;  %v6729_v10 = vadd.f32 %v1764_v13, %v6715_v61  ;;  %v1772_v30 = vadd.f32 %v6726_v48, %v6720_v24  ;;  %v2041_v17 = vmul.f32 %v6726_v48, %v6726_v48  ;;  %v6735_v52 = vpop.f32.mrb[52].mxu1 }
 0x18e   : > { %v2308_v4 = vadd.f32 %v2307_v40, %v2035_v14  ;;  %9541 = vst [vmem:[#allocation112_spill] sm:$0xff] %v6735_v52  ;;  %v2042_v6 = vmul.f32 %v6735_v52, %v6735_v52  ;;  %v6739_v28 = vpop.f32.mrb[53].mxu1 }
 0x18f   : > { %9540 = vst [vmem:[#allocation111_spill] sm:$0xff] %v6729_v10  ;;  %9542 = vst [vmem:[#allocation113_spill] sm:$0xff] %v6739_v28  ;;  %v2316_v60 = vadd.f32 %v2041_v17, %v2040_v45  ;;  %v1773_v40 = vadd.f32 %v1772_v30, %v6735_v52  ;;  %v6744_v14 = vpop.f32.mrb[54].mxu0  ;;  %v2043_v48 = vmul.f32 %v6739_v28, %v6739_v28 }
 0x190   : > { %v6741_v1 = vadd.f32 %v2308_v4, %v2036_v38  ;;  %9544 = vst [vmem:[#allocation115_spill] sm:$0xff] %v6744_v14  ;;  %v2047_v13 = vmul.f32 %v6744_v14, %v6744_v14  ;;  %v6750_v24 = vpop.f32.mrb[55].mxu0 }
 0x191   : > { %9545 = vst [vmem:[#allocation116_spill] sm:$0xff] %v6750_v24  ;;  %v2317_v61 = vadd.f32 %v2316_v60, %v2042_v6  ;;  %v6753_v10 = vadd.f32 %v1773_v40, %v6739_v28  ;;  %v1781_v38 = vadd.f32 %v6750_v24, %v6744_v14  ;;  %v2048_v4 = vmul.f32 %v6750_v24, %v6750_v24  ;;  %v6759_v45 = vpop.f32.mrb[54].mxu1 }
 0x192   : > { %9543 = vst [vmem:[#allocation114_spill] sm:$0xff] %v6741_v1  ;;  %9547 = vst [vmem:[#allocation118_spill] sm:$0xff] %v6759_v45  ;;  %v2049_v30 = vmul.f32 %v6759_v45, %v6759_v45  ;;  %v6763_v17 = vpop.f32.mrb[55].mxu1 }
 0x193   : > { %9546 = vst [vmem:[#allocation117_spill] sm:$0xff] %v6753_v10  ;;  %9548 = vst [vmem:[#allocation119_spill] sm:$0xff] %v6763_v17  ;;  %v6765_v52 = vadd.f32 %v2317_v61, %v2043_v48  ;;  %v2325_v1 = vadd.f32 %v2048_v4, %v2047_v13  ;;  %v1782_v60 = vadd.f32 %v1781_v38, %v6759_v45  ;;  %v6768_v6 = vpop.f32.mrb[56].mxu0 }
 0x194   : > { %9550 = vst [vmem:[#allocation121_spill] sm:$0xff] %v6768_v6  ;;  %v2054_v40 = vmul.f32 %v6768_v6, %v6768_v6  ;;  %v2050_v28 = vmul.f32 %v6763_v17, %v6763_v17  ;;  %v6774_v24 = vpop.f32.mrb[57].mxu0 }
 0x195   : > { %9549 = vst [vmem:[#allocation120_spill] sm:$0xff] %v6765_v52  ;;  %9551 = vst [vmem:[#allocation122_spill] sm:$0xff] %v6774_v24  ;;  %v2326_v14 = vadd.f32 %v2325_v1, %v2049_v30  ;;  %v6777_v10 = vadd.f32 %v1782_v60, %v6763_v17  ;;  %v1790_v48 = vadd.f32 %v6774_v24, %v6768_v6  ;;  %v6783_v13 = vpop.f32.mrb[56].mxu1 }
 0x196   : > { %v2055_v61 = vmul.f32 %v6774_v24, %v6774_v24  ;;  %9553 = vst [vmem:[#allocation124_spill] sm:$0xff] %v6783_v13  ;;  %v2056_v38 = vmul.f32 %v6783_v13, %v6783_v13  ;;  %v6787_v4 = vpop.f32.mrb[57].mxu1 }
 0x197   : > { %9552 = vst [vmem:[#allocation123_spill] sm:$0xff] %v6777_v10  ;;  %9554 = vst [vmem:[#allocation125_spill] sm:$0xff] %v6787_v4  ;;  %v6789_v45 = vadd.f32 %v2326_v14, %v2050_v28  ;;  %v1791_v1 = vadd.f32 %v1790_v48, %v6783_v13  ;;  %v6792_v30 = vpop.f32.mrb[58].mxu0  ;;  %v2057_v24 = vmul.f32 %v6787_v4, %v6787_v4 }
 0x198   : > { %v2334_v52 = vadd.f32 %v2055_v61, %v2054_v40  ;;  %9556 = vst [vmem:[#allocation127_spill] sm:$0xff] %v6792_v30  ;;  %v2061_v60 = vmul.f32 %v6792_v30, %v6792_v30  ;;  %v6798_v6 = vpop.f32.mrb[59].mxu0 }
 0x199   : > { %9555 = vst [vmem:[#allocation126_spill] sm:$0xff] %v6789_v45  ;;  %9557 = vst [vmem:[#allocation128_spill] sm:$0xff] %v6798_v6  ;;  %v6801_v10 = vadd.f32 %v1791_v1, %v6787_v4  ;;  %v1799_v28 = vadd.f32 %v6798_v6, %v6792_v30  ;;  %v2062_v14 = vmul.f32 %v6798_v6, %v6798_v6  ;;  %v6807_v40 = vpop.f32.mrb[58].mxu1 }
 0x19a   : > { %v2335_v17 = vadd.f32 %v2334_v52, %v2056_v38  ;;  %9559 = vst [vmem:[#allocation130_spill] sm:$0xff] %v6807_v40  ;;  %v2063_v48 = vmul.f32 %v6807_v40, %v6807_v40  ;;  %v6811_v61 = vpop.f32.mrb[59].mxu1 }
 0x19b   : > { %9558 = vst [vmem:[#allocation129_spill] sm:$0xff] %v6801_v10  ;;  %9560 = vst [vmem:[#allocation131_spill] sm:$0xff] %v6811_v61  ;;  %v2343_v45 = vadd.f32 %v2062_v14, %v2061_v60  ;;  %v1800_v52 = vadd.f32 %v1799_v28, %v6807_v40  ;;  %v6816_v38 = vpop.f32.mrb[60].mxu0  ;;  %v2064_v4 = vmul.f32 %v6811_v61, %v6811_v61 }
 0x19c   : > { %v6813_v13 = vadd.f32 %v2335_v17, %v2057_v24  ;;  %9562 = vst [vmem:[#allocation133_spill] sm:$0xff] %v6816_v38  ;;  %v2068_v1 = vmul.f32 %v6816_v38, %v6816_v38  ;;  %v6822_v6 = vpop.f32.mrb[61].mxu0 }
 0x19d   : > { %9563 = vst [vmem:[#allocation134_spill] sm:$0xff] %v6822_v6  ;;  %v2344_v30 = vadd.f32 %v2343_v45, %v2063_v48  ;;  %v6825_v10 = vadd.f32 %v1800_v52, %v6811_v61  ;;  %v1808_v24 = vadd.f32 %v6822_v6, %v6816_v38  ;;  %v2069_v17 = vmul.f32 %v6822_v6, %v6822_v6  ;;  %v6831_v60 = vpop.f32.mrb[60].mxu1 }
 0x19e   : > { %9561 = vst [vmem:[#allocation132_spill] sm:$0xff] %v6813_v13  ;;  %9565 = vst [vmem:[#allocation136_spill] sm:$0xff] %v6831_v60  ;;  %v2070_v28 = vmul.f32 %v6831_v60, %v6831_v60  ;;  %v6835_v14 = vpop.f32.mrb[61].mxu1 }
 0x19f   : > { %9564 = vst [vmem:[#allocation135_spill] sm:$0xff] %v6825_v10  ;;  %9566 = vst [vmem:[#allocation137_spill] sm:$0xff] %v6835_v14  ;;  %v6837_v40 = vadd.f32 %v2344_v30, %v2064_v4  ;;  %v2352_v13 = vadd.f32 %v2069_v17, %v2068_v1  ;;  %v1809_v45 = vadd.f32 %v1808_v24, %v6831_v60  ;;  %v6840_v48 = vpop.f32.mrb[62].mxu0 }
 0x1a0   : > { %9568 = vst [vmem:[#allocation139_spill] sm:$0xff] %v6840_v48  ;;  %v2075_v52 = vmul.f32 %v6840_v48, %v6840_v48  ;;  %v2071_v6 = vmul.f32 %v6835_v14, %v6835_v14  ;;  %v6846_v38 = vpop.f32.mrb[63].mxu0 }
 0x1a1   : > { %9567 = vst [vmem:[#allocation138_spill] sm:$0xff] %v6837_v40  ;;  %9569 = vst [vmem:[#allocation140_spill] sm:$0xff] %v6846_v38  ;;  %v2353_v61 = vadd.f32 %v2352_v13, %v2070_v28  ;;  %v6849_v10 = vadd.f32 %v1809_v45, %v6835_v14  ;;  %v1817_v4 = vadd.f32 %v6846_v38, %v6840_v48  ;;  %v6855_v1 = vpop.f32.mrb[62].mxu1 }
 0x1a2   : > { %v2076_v30 = vmul.f32 %v6846_v38, %v6846_v38  ;;  %9571 = vst [vmem:[#allocation142_spill] sm:$0xff] %v6855_v1  ;;  %v2077_v24 = vmul.f32 %v6855_v1, %v6855_v1  ;;  %v6859_v17 = vpop.f32.mrb[63].mxu1 }
 0x1a3   : > { %9570 = vst [vmem:[#allocation141_spill] sm:$0xff] %v6849_v10  ;;  %9572 = vst [vmem:[#allocation143_spill] sm:$0xff] %v6859_v17  ;;  %v6861_v60 = vadd.f32 %v2353_v61, %v2071_v6  ;;  %v1818_v13 = vadd.f32 %v1817_v4, %v6855_v1  ;;  %v6864_v28 = vpop.f32.mrb[64].mxu0  ;;  %v2078_v6 = vmul.f32 %v6859_v17, %v6859_v17 }
 0x1a4   : > { %v2361_v40 = vadd.f32 %v2076_v30, %v2075_v52  ;;  %9574 = vst [vmem:[#allocation145_spill] sm:$0xff] %v6864_v28  ;;  %v1540_v45 = vadd.f32 %v6092_v31, %v6864_v28  ;;  %v1862_v38 = vmul.f32 %v6864_v28, %v6864_v28  ;;  %v6870_v48 = vpop.f32.mrb[65].mxu0 }
 0x1a5   : > { %9573 = vst [vmem:[#allocation144_spill] sm:$0xff] %v6861_v60  ;;  %9575 = vst [vmem:[#allocation146_spill] sm:$0xff] %v6870_v48  ;;  %v6873_v10 = vadd.f32 %v1818_v13, %v6859_v17  ;;  %v1863_v61 = vmul.f32 %v6870_v48, %v6870_v48  ;;  %v6879_v52 = vpop.f32.mrb[64].mxu1 }
 0x1a6   : > { %v2362_v14 = vadd.f32 %v2361_v40, %v2077_v24  ;;  %9577 = vst [vmem:[#allocation148_spill] sm:$0xff] %v6879_v52  ;;  %v1864_v31 = vmul.f32 %v6879_v52, %v6879_v52  ;;  %v1380_v4 = vpop.f32.mrb[65].mxu1  ;;  %v1541_v30 = vadd.f32 %v1540_v45, %v6870_v48  ;;  %v1543_v40 = vsel %vm1542_vm0, %v6879_v52, 0.0 }
 0x1a7   : > { %9576 = vst [vmem:[#allocation147_spill] sm:$0xff] %v6873_v10  ;;  %v2085_v24 = vadd.f32 %v6106_v8, %v1862_v38  ;;  %v6889_v1 = vpop.f32.mrb[66].mxu0 }
 0x1a8   : > { %v6887_v13 = vadd.f32 %v2362_v14, %v2078_v6  ;;  %9578 = vst [vmem:[#allocation149_spill] sm:$0xff] %v6889_v1  ;;  %v1550_v17 = vadd.f32 %v6120_v15, %v6889_v1  ;;  %v1869_v28 = vmul.f32 %v6889_v1, %v6889_v1  ;;  %v6895_v10 = vpop.f32.mrb[67].mxu0  ;;  %v1544_v4 = vadd.f32 %v1543_v40, %v1541_v30 }
 0x1a9   : > { %9579 = vst [vmem:[#allocation150_spill] sm:$0xff] %v6895_v10  ;;  %v2086_v60 = vadd.f32 %v2085_v24, %v1863_v61  ;;  %v1870_v45 = vmul.f32 %v6895_v10, %v6895_v10  ;;  %v6899_v52 = vpop.f32.mrb[66].mxu1  ;;  %v2087_v8 = vsel %vm1542_vm0, %v1864_v31, 0.0 }
 0x1aa   : > { %9580 = vst [vmem:[#allocation151_spill] sm:$0xff] %v6899_v52  ;;  %1545 = vadd.xlane.f32.xlu0 %v1544_v4  ;;  %v1385_v38 = vpop.f32.mrb[67].mxu1  ;;  %v1871_v15 = vmul.f32 %v6899_v52, %v6899_v52  ;;  %v2094_v6 = vadd.f32 %v6134_v20, %v1869_v28  ;;  %v1551_v1 = vadd.f32 %v1550_v17, %v6895_v10  ;;  %v1552_v61 = vsel %vm1542_vm0, %v6899_v52, 0.0 }
 0x1ab   : > { %v2088_v14 = vadd.f32 %v2087_v8, %v2086_v60  ;;  %v6906_v48 = vpop.f32.mrb[68].mxu0 }
 0x1ac   : > { %v1559_v30 = vadd.f32 %v6148_v54, %v6906_v48  ;;  %v1876_v31 = vmul.f32 %v6906_v48, %v6906_v48  ;;  %v6914_v40 = vpop.f32.mrb[69].mxu0  ;;  %v2095_v60 = vadd.f32 %v2094_v6, %v1870_v45  ;;  %v2096_v24 = vsel %vm1542_vm0, %v1871_v15, 0.0 }
 0x1ad   : > { %v1877_v20 = vmul.f32 %v6914_v40, %v6914_v40  ;;  %v6919_v17 = vpop.f32.mrb[68].mxu1  ;;  %v1553_v28 = vadd.f32 %v1552_v61, %v1551_v1 }
 0x1ae   : > { %9581 = vst [vmem:[#allocation152_spill] sm:$0xff] %v6919_v17  ;;  %v1878_v4 = vmul.f32 %v6919_v17, %v6919_v17  ;;  %2089 = vadd.xlane.f32.xlu0 %v2088_v14  ;;  %v2097_v8 = vadd.f32 %v2096_v24, %v2095_v60  ;;  %v1390_v54 = vpop.f32.mrb[69].mxu1  ;;  %v1560_v38 = vadd.f32 %v1559_v30, %v6914_v40  ;;  %v1561_v52 = vsel %vm1542_vm0, %v6919_v17, 0.0 }
 0x1af   : > { %v6926_v45 = vpop.f32.mrb[70].mxu0  ;;  %v2103_v15 = vadd.f32 %v6162_v11, %v1876_v31 }
 0x1b0   : > { %v1568_v6 = vadd.f32 %v6176_v5, %v6926_v45  ;;  %v1883_v1 = vmul.f32 %v6926_v45, %v6926_v45  ;;  %2098 = vadd.xlane.f32.xlu1 %v2097_v8  ;;  %v6933_v61 = vpop.f32.mrb[71].mxu0  ;;  %v1562_v14 = vadd.f32 %v1561_v52, %v1560_v38  ;;  %v2105_v60 = vsel %vm1542_vm0, %v1878_v4, 0.0 }
 0x1b1   : > { %v1884_v30 = vmul.f32 %v6933_v61, %v6933_v61  ;;  %v6938_v24 = vpop.f32.mrb[70].mxu1  ;;  %v2104_v54 = vadd.f32 %v2103_v15, %v1877_v20 }
 0x1b2   : > { %v1885_v11 = vmul.f32 %v6938_v24, %v6938_v24  ;;  %1554 = vadd.xlane.f32.xlu0 %v1553_v28  ;;  %v1395_v5 = vpop.f32.mrb[71].mxu1  ;;  %v1569_v31 = vadd.f32 %v1568_v6, %v6933_v61  ;;  %v1570_v8 = vsel %vm1542_vm0, %v6938_v24, 0.0  ;;  %v2112_v52 = vadd.f32 %v6190_v12, %v1883_v1 }
 0x1b3   : > { %v6946_v38 = vpop.f32.mrb[72].mxu0  ;;  %v2106_v4 = vadd.f32 %v2105_v60, %v2104_v54 }
 0x1b4   : > { %v1577_v10 = vadd.f32 %v6204_v39, %v6946_v38  ;;  %v1890_v20 = vmul.f32 %v6946_v38, %v6946_v38  ;;  %1563 = vadd.xlane.f32.xlu1 %v1562_v14  ;;  %v6952_v15 = vpop.f32.mrb[73].mxu0  ;;  %v1571_v28 = vadd.f32 %v1570_v8, %v1569_v31  ;;  %v2113_v5 = vadd.f32 %v2112_v52, %v1884_v30 }
 0x1b5   : > { %9582 = vst [vmem:[#allocation153_spill] sm:$0xff] %v6952_v15  ;;  %v1891_v6 = vmul.f32 %v6952_v15, %v6952_v15  ;;  %v6956_v17 = vpop.f32.mrb[72].mxu1  ;;  %v2114_v12 = vsel %vm1542_vm0, %v1885_v11, 0.0 }
 0x1b6   : > { %9583 = vst [vmem:[#allocation154_spill] sm:$0xff] %v6956_v17  ;;  %v1892_v1 = vmul.f32 %v6956_v17, %v6956_v17  ;;  %2107 = vadd.xlane.f32.xlu0 %v2106_v4  ;;  %v1400_v39 = vpop.f32.mrb[73].mxu1  ;;  %v1578_v60 = vadd.f32 %v1577_v10, %v6952_v15  ;;  %v1579_v14 = vsel %vm1542_vm0, %v6956_v17, 0.0  ;;  %v2115_v54 = vadd.f32 %v2114_v12, %v2113_v5 }
 0x1b7   : > { %v6964_v31 = vpop.f32.mrb[74].mxu0  ;;  %v2121_v30 = vadd.f32 %v6218_v53, %v1890_v20 }
 0x1b8   : > { %v1586_v8 = vadd.f32 %v6232_v56, %v6964_v31  ;;  %v1897_v11 = vmul.f32 %v6964_v31, %v6964_v31  ;;  %1572 = vadd.xlane.f32.xlu1 %v1571_v28  ;;  %v6971_v52 = vpop.f32.mrb[75].mxu0  ;;  %v1580_v4 = vadd.f32 %v1579_v14, %v1578_v60  ;;  %v2123_v10 = vsel %vm1542_vm0, %v1892_v1, 0.0 }
 0x1b9   : > { %v1898_v39 = vmul.f32 %v6971_v52, %v6971_v52  ;;  %v6976_v5 = vpop.f32.mrb[74].mxu1  ;;  %v2122_v12 = vadd.f32 %v2121_v30, %v1891_v6 }
 0x1ba   : > { %v1899_v53 = vmul.f32 %v6976_v5, %v6976_v5  ;;  %1581 = vadd.xlane.f32.xlu0 %v1580_v4  ;;  %v1405_v56 = vpop.f32.mrb[75].mxu1  ;;  %v1587_v20 = vadd.f32 %v1586_v8, %v6971_v52  ;;  %v1588_v28 = vsel %vm1542_vm0, %v6976_v5, 0.0  ;;  %v2130_v60 = vadd.f32 %v6246_v27, %v1897_v11 }
 0x1bb   : > { %v6984_v14 = vpop.f32.mrb[76].mxu0  ;;  %v2124_v1 = vadd.f32 %v2123_v10, %v2122_v12 }
 0x1bc   : > { %v1595_v17 = vadd.f32 %v6260_v50, %v6984_v14  ;;  %v1904_v6 = vmul.f32 %v6984_v14, %v6984_v14  ;;  %2116 = vadd.xlane.f32.xlu1 %v2115_v54  ;;  %v6990_v30 = vpop.f32.mrb[77].mxu0  ;;  %v1589_v4 = vadd.f32 %v1588_v28, %v1587_v20  ;;  %v2131_v56 = vadd.f32 %v2130_v60, %v1898_v39 }
 0x1bd   : > { %9584 = vst [vmem:[#allocation155_spill] sm:$0xff] %v6990_v30  ;;  %v1905_v8 = vmul.f32 %v6990_v30, %v6990_v30  ;;  %v6994_v15 = vpop.f32.mrb[76].mxu1  ;;  %v2132_v27 = vsel %vm1542_vm0, %v1899_v53, 0.0 }
 0x1be   : > { %9585 = vst [vmem:[#allocation156_spill] sm:$0xff] %v6994_v15  ;;  %v1906_v11 = vmul.f32 %v6994_v15, %v6994_v15  ;;  %2125 = vadd.xlane.f32.xlu0 %v2124_v1  ;;  %v1410_v50 = vpop.f32.mrb[77].mxu1  ;;  %v1596_v10 = vadd.f32 %v1595_v17, %v6990_v30  ;;  %v1597_v54 = vsel %vm1542_vm0, %v6994_v15, 0.0  ;;  %v2133_v12 = vadd.f32 %v2132_v27, %v2131_v56 }
 0x1bf   : > { %v7002_v20 = vpop.f32.mrb[78].mxu0  ;;  %v2139_v39 = vadd.f32 %v6274_v9, %v1904_v6 }
 0x1c0   : > { %v1604_v28 = vadd.f32 %v6288_v41, %v7002_v20  ;;  %v1911_v53 = vmul.f32 %v7002_v20, %v7002_v20  ;;  %1590 = vadd.xlane.f32.xlu1 %v1589_v4  ;;  %v7009_v60 = vpop.f32.mrb[79].mxu0  ;;  %v1598_v1 = vadd.f32 %v1597_v54, %v1596_v10  ;;  %v2141_v17 = vsel %vm1542_vm0, %v1906_v11, 0.0 }
 0x1c1   : > { %v1912_v50 = vmul.f32 %v7009_v60, %v7009_v60  ;;  %v7014_v56 = vpop.f32.mrb[78].mxu1  ;;  %v2140_v27 = vadd.f32 %v2139_v39, %v1905_v8 }
 0x1c2   : > { %v1913_v9 = vmul.f32 %v7014_v56, %v7014_v56  ;;  %1599 = vadd.xlane.f32.xlu0 %v1598_v1  ;;  %v1415_v41 = vpop.f32.mrb[79].mxu1  ;;  %v1605_v6 = vadd.f32 %v1604_v28, %v7009_v60  ;;  %v1606_v4 = vsel %vm1542_vm0, %v7014_v56, 0.0  ;;  %v2148_v10 = vadd.f32 %v6302_v23, %v1911_v53 }
 0x1c3   : > { %v7022_v54 = vpop.f32.mrb[80].mxu0  ;;  %v2142_v11 = vadd.f32 %v2141_v17, %v2140_v27 }
 0x1c4   : > { %v1613_v15 = vadd.f32 %v6316_v63, %v7022_v54  ;;  %v1918_v8 = vmul.f32 %v7022_v54, %v7022_v54  ;;  %2134 = vadd.xlane.f32.xlu1 %v2133_v12  ;;  %v7028_v39 = vpop.f32.mrb[81].mxu0  ;;  %v1607_v1 = vadd.f32 %v1606_v4, %v1605_v6  ;;  %v2149_v41 = vadd.f32 %v2148_v10, %v1912_v50 }
 0x1c5   : > { %9586 = vst [vmem:[#allocation157_spill] sm:$0xff] %v7028_v39  ;;  %v1919_v28 = vmul.f32 %v7028_v39, %v7028_v39  ;;  %v7032_v30 = vpop.f32.mrb[80].mxu1  ;;  %v2150_v23 = vsel %vm1542_vm0, %v1913_v9, 0.0 }
 0x1c6   : > { %9587 = vst [vmem:[#allocation158_spill] sm:$0xff] %v7032_v30  ;;  %v1920_v53 = vmul.f32 %v7032_v30, %v7032_v30  ;;  %2143 = vadd.xlane.f32.xlu0 %v2142_v11  ;;  %v1420_v63 = vpop.f32.mrb[81].mxu1  ;;  %v1614_v17 = vadd.f32 %v1613_v15, %v7028_v39  ;;  %v1615_v12 = vsel %vm1542_vm0, %v7032_v30, 0.0  ;;  %v2151_v27 = vadd.f32 %v2150_v23, %v2149_v41 }
 0x1c7   : > { %v7040_v6 = vpop.f32.mrb[82].mxu0  ;;  %v2157_v50 = vadd.f32 %v6330_v55, %v1918_v8 }
 0x1c8   : > { %v1622_v4 = vadd.f32 %v6344_v58, %v7040_v6  ;;  %v1925_v9 = vmul.f32 %v7040_v6, %v7040_v6  ;;  %1608 = vadd.xlane.f32.xlu1 %v1607_v1  ;;  %v7047_v10 = vpop.f32.mrb[83].mxu0  ;;  %v1616_v11 = vadd.f32 %v1615_v12, %v1614_v17  ;;  %v2159_v15 = vsel %vm1542_vm0, %v1920_v53, 0.0 }
 0x1c9   : > { %v1926_v63 = vmul.f32 %v7047_v10, %v7047_v10  ;;  %v7052_v41 = vpop.f32.mrb[82].mxu1  ;;  %v2158_v23 = vadd.f32 %v2157_v50, %v1919_v28 }
 0x1ca   : > { %v1927_v55 = vmul.f32 %v7052_v41, %v7052_v41  ;;  %1617 = vadd.xlane.f32.xlu0 %v1616_v11  ;;  %v1425_v58 = vpop.f32.mrb[83].mxu1  ;;  %v1623_v8 = vadd.f32 %v1622_v4, %v7047_v10  ;;  %v1624_v1 = vsel %vm1542_vm0, %v7052_v41, 0.0  ;;  %v2166_v17 = vadd.f32 %v6357_v22, %v1925_v9 }
 0x1cb   : > { %v7060_v12 = vpop.f32.mrb[84].mxu0  ;;  %v2160_v53 = vadd.f32 %v2159_v15, %v2158_v23 }
 0x1cc   : > { %v1631_v30 = vadd.f32 %v6369_v44, %v7060_v12  ;;  %v1932_v28 = vmul.f32 %v7060_v12, %v7060_v12  ;;  %2152 = vadd.xlane.f32.xlu1 %v2151_v27  ;;  %v7066_v50 = vpop.f32.mrb[85].mxu0  ;;  %v1625_v11 = vadd.f32 %v1624_v1, %v1623_v8  ;;  %v2167_v58 = vadd.f32 %v2166_v17, %v1926_v63 }
 0x1cd   : > { %v1933_v4 = vmul.f32 %v7066_v50, %v7066_v50  ;;  %v7070_v39 = vpop.f32.mrb[84].mxu1  ;;  %v2168_v22 = vsel %vm1542_vm0, %v1927_v55, 0.0 }
 0x1ce   : > { %9588 = vst [vmem:[#allocation159_spill] sm:$0xff] %v7070_v39  ;;  %v1934_v9 = vmul.f32 %v7070_v39, %v7070_v39  ;;  %2161 = vadd.xlane.f32.xlu0 %v2160_v53  ;;  %v1430_v44 = vpop.f32.mrb[85].mxu1  ;;  %v1632_v15 = vadd.f32 %v1631_v30, %v7066_v50  ;;  %v1633_v27 = vsel %vm1542_vm0, %v7070_v39, 0.0  ;;  %v2169_v23 = vadd.f32 %v2168_v22, %v2167_v58 }
 0x1cf   : > { %v7078_v8 = vpop.f32.mrb[86].mxu0  ;;  %v2175_v63 = vadd.f32 %v6381_v35, %v1932_v28 }
 0x1d0   : > { %v1640_v1 = vadd.f32 %v6393_v19, %v7078_v8  ;;  %v1939_v55 = vmul.f32 %v7078_v8, %v7078_v8  ;;  %1626 = vadd.xlane.f32.xlu1 %v1625_v11  ;;  %v7085_v17 = vpop.f32.mrb[87].mxu0  ;;  %v1634_v53 = vadd.f32 %v1633_v27, %v1632_v15  ;;  %v2177_v30 = vsel %vm1542_vm0, %v1934_v9, 0.0 }
 0x1d1   : > { %v1940_v44 = vmul.f32 %v7085_v17, %v7085_v17  ;;  %v7090_v58 = vpop.f32.mrb[86].mxu1  ;;  %v2176_v22 = vadd.f32 %v2175_v63, %v1933_v4  ;;  %v9358_v27 = vmov 0  }
 0x1d2   : > { %v1941_v35 = vmul.f32 %v7090_v58, %v7090_v58  ;;  %1635 = vadd.xlane.f32.xlu0 %v1634_v53  ;;  %v1435_v19 = vpop.f32.mrb[87].mxu1  ;;  %v1641_v28 = vadd.f32 %v1640_v1, %v7085_v17  ;;  %v1642_v11 = vsel %vm1542_vm0, %v7090_v58, 0.0  ;;  %v2184_v15 = vadd.f32 %v6405_v16, %v1939_v55  ;;  %4835 = vset.pattern.permute.xlu1 %v9358_v27 }
 0x1d3   : > { %v7099_v9 = vpop.f32.mrb[88].mxu0  ;;  %v2178_v39 = vadd.f32 %v2177_v30, %v2176_v22  ;;  %4834 = vset.pattern.permute.xlu0 %v9358_v27 }
 0x1d4   : > { %9589 = vst [vmem:[#allocation160_spill] sm:$0xff] %v7099_v9  ;;  %v1649_v4 = vadd.f32 %v6417_v0, %v7099_v9  ;;  %v1946_v63 = vmul.f32 %v7099_v9, %v7099_v9  ;;  %2170 = vadd.xlane.f32.xlu1 %v2169_v23  ;;  %v7106_v1 = vpop.f32.mrb[89].mxu0  ;;  %v1643_v53 = vadd.f32 %v1642_v11, %v1641_v28  ;;  %v2186_v30 = vsel %vm1542_vm0, %v1941_v35, 0.0 }
 0x1d5   : > { %9590 = vst [vmem:[#allocation161_spill] sm:$0xff] %v7106_v1  ;;  %v2185_v19 = vadd.f32 %v2184_v15, %v1940_v44  ;;  %v1947_v16 = vmul.f32 %v7106_v1, %v7106_v1  ;;  %v7110_v55 = vpop.f32.mrb[88].mxu1 }
 0x1d6   : > { %9591 = vst [vmem:[#allocation162_spill] sm:$0xff] %v7110_v55  ;;  %v1948_v22 = vmul.f32 %v7110_v55, %v7110_v55  ;;  %2179 = vadd.xlane.f32.xlu0 %v2178_v39  ;;  %v1440_v0 = vpop.f32.mrb[89].mxu1  ;;  %v1650_v27 = vadd.f32 %v1649_v4, %v7106_v1  ;;  %v1651_v23 = vsel %vm1542_vm0, %v7110_v55, 0.0  ;;  %v2193_v44 = vadd.f32 %v6429_v21, %v1946_v63 }
 0x1d7   : > { %v2187_v9 = vadd.f32 %v2186_v30, %v2185_v19  ;;  %v7118_v28 = vpop.f32.mrb[90].mxu0 }
 0x1d8   : > { %v1658_v11 = vadd.f32 %v6441_v57, %v7118_v28  ;;  %v1953_v35 = vmul.f32 %v7118_v28, %v7118_v28  ;;  %1644 = vadd.xlane.f32.xlu1 %v1643_v53  ;;  %v7125_v15 = vpop.f32.mrb[91].mxu0  ;;  %v1652_v39 = vadd.f32 %v1651_v23, %v1650_v27  ;;  %v2195_v4 = vsel %vm1542_vm0, %v1948_v22, 0.0 }
 0x1d9   : > { %v1954_v0 = vmul.f32 %v7125_v15, %v7125_v15  ;;  %v7130_v19 = vpop.f32.mrb[90].mxu1  ;;  %v2194_v30 = vadd.f32 %v2193_v44, %v1947_v16 }
 0x1da   : > { %9592 = vst [vmem:[#allocation163_spill] sm:$0xff] %v7130_v19  ;;  %v1955_v21 = vmul.f32 %v7130_v19, %v7130_v19  ;;  %1653 = vadd.xlane.f32.xlu0 %v1652_v39  ;;  %v1445_v57 = vpop.f32.mrb[91].mxu1  ;;  %v1659_v63 = vadd.f32 %v1658_v11, %v7125_v15  ;;  %v1660_v53 = vsel %vm1542_vm0, %v7130_v19, 0.0  ;;  %v2202_v27 = vadd.f32 %v6453_v2, %v1953_v35 }
 0x1db   : > { %v7138_v23 = vpop.f32.mrb[92].mxu0  ;;  %v2196_v22 = vadd.f32 %v2195_v4, %v2194_v30 }
 0x1dc   : > { %9593 = vst [vmem:[#allocation164_spill] sm:$0xff] %v7138_v23  ;;  %v1667_v55 = vadd.f32 %v6465_v18, %v7138_v23  ;;  %v1960_v16 = vmul.f32 %v7138_v23, %v7138_v23  ;;  %2188 = vadd.xlane.f32.xlu1 %v2187_v9  ;;  %v7144_v44 = vpop.f32.mrb[93].mxu0  ;;  %v1661_v39 = vadd.f32 %v1660_v53, %v1659_v63  ;;  %v2204_v2 = vsel %vm1542_vm0, %v1955_v21, 0.0 }
 0x1dd   : > { %9594 = vst [vmem:[#allocation165_spill] sm:$0xff] %v7144_v44  ;;  %v2203_v57 = vadd.f32 %v2202_v27, %v1954_v0  ;;  %v1961_v11 = vmul.f32 %v7144_v44, %v7144_v44  ;;  %v7148_v1 = vpop.f32.mrb[92].mxu1 }
 0x1de   : > { %9595 = vst [vmem:[#allocation166_spill] sm:$0xff] %v7148_v1  ;;  %v1962_v35 = vmul.f32 %v7148_v1, %v7148_v1  ;;  %2197 = vadd.xlane.f32.xlu0 %v2196_v22  ;;  %v1450_v18 = vpop.f32.mrb[93].mxu1  ;;  %v1668_v4 = vadd.f32 %v1667_v55, %v7144_v44  ;;  %v1669_v9 = vsel %vm1542_vm0, %v7148_v1, 0.0  ;;  %v2211_v0 = vadd.f32 %v6477_v42, %v1960_v16 }
 0x1df   : > { %v2205_v30 = vadd.f32 %v2204_v2, %v2203_v57  ;;  %v7156_v63 = vpop.f32.mrb[94].mxu0 }
 0x1e0   : > { %9596 = vst [vmem:[#allocation167_spill] sm:$0xff] %v7156_v63  ;;  %v1676_v53 = vadd.f32 %v6489_v33, %v7156_v63  ;;  %v1967_v21 = vmul.f32 %v7156_v63, %v7156_v63  ;;  %1662 = vadd.xlane.f32.xlu1 %v1661_v39  ;;  %v7163_v27 = vpop.f32.mrb[95].mxu0  ;;  %v1670_v22 = vadd.f32 %v1669_v9, %v1668_v4  ;;  %v2213_v55 = vsel %vm1542_vm0, %v1962_v35, 0.0 }
 0x1e1   : > { %9597 = vst [vmem:[#allocation168_spill] sm:$0xff] %v7163_v27  ;;  %v1968_v18 = vmul.f32 %v7163_v27, %v7163_v27  ;;  %v7168_v57 = vpop.f32.mrb[94].mxu1  ;;  %v2212_v2 = vadd.f32 %v2211_v0, %v1961_v11 }
 0x1e2   : > { %9598 = vst [vmem:[#allocation169_spill] sm:$0xff] %v7168_v57  ;;  %v1969_v42 = vmul.f32 %v7168_v57, %v7168_v57  ;;  %1671 = vadd.xlane.f32.xlu0 %v1670_v22  ;;  %v1455_v33 = vpop.f32.mrb[95].mxu1  ;;  %v1677_v16 = vadd.f32 %v1676_v53, %v7163_v27  ;;  %v1678_v39 = vsel %vm1542_vm0, %v7168_v57, 0.0  ;;  %v2220_v4 = vadd.f32 %v6501_v26, %v1967_v21 }
 0x1e3   : > { %v7176_v9 = vpop.f32.mrb[96].mxu0  ;;  %v2214_v35 = vadd.f32 %v2213_v55, %v2212_v2 }
 0x1e4   : > { %9599 = vst [vmem:[#allocation170_spill] sm:$0xff] %v7176_v9  ;;  %v1685_v1 = vadd.f32 %v6513_v36, %v7176_v9  ;;  %v1974_v11 = vmul.f32 %v7176_v9, %v7176_v9  ;;  %2206 = vadd.xlane.f32.xlu1 %v2205_v30  ;;  %v7182_v0 = vpop.f32.mrb[97].mxu0  ;;  %v1679_v22 = vadd.f32 %v1678_v39, %v1677_v16  ;;  %v2222_v26 = vsel %vm1542_vm0, %v1969_v42, 0.0 }
 0x1e5   : > { %9600 = vst [vmem:[#allocation171_spill] sm:$0xff] %v7182_v0  ;;  %v2221_v33 = vadd.f32 %v2220_v4, %v1968_v18  ;;  %v1975_v53 = vmul.f32 %v7182_v0, %v7182_v0  ;;  %v7186_v44 = vpop.f32.mrb[96].mxu1 }
 0x1e6   : > { %9601 = vst [vmem:[#allocation172_spill] sm:$0xff] %v7186_v44  ;;  %v1976_v21 = vmul.f32 %v7186_v44, %v7186_v44  ;;  %2215 = vadd.xlane.f32.xlu0 %v2214_v35  ;;  %v1460_v36 = vpop.f32.mrb[97].mxu1  ;;  %v1686_v55 = vadd.f32 %v1685_v1, %v7182_v0  ;;  %v1687_v30 = vsel %vm1542_vm0, %v7186_v44, 0.0  ;;  %v2229_v18 = vadd.f32 %v6525_v47, %v1974_v11 }
 0x1e7   : > { %v2223_v2 = vadd.f32 %v2222_v26, %v2221_v33  ;;  %v7194_v16 = vpop.f32.mrb[98].mxu0 }
 0x1e8   : > { %9602 = vst [vmem:[#allocation173_spill] sm:$0xff] %v7194_v16  ;;  %v1694_v39 = vadd.f32 %v6537_v43, %v7194_v16  ;;  %v1981_v42 = vmul.f32 %v7194_v16, %v7194_v16  ;;  %1680 = vadd.xlane.f32.xlu1 %v1679_v22  ;;  %v7201_v4 = vpop.f32.mrb[99].mxu0  ;;  %v1688_v35 = vadd.f32 %v1687_v30, %v1686_v55  ;;  %v2231_v1 = vsel %vm1542_vm0, %v1976_v21, 0.0 }
 0x1e9   : > { %9603 = vst [vmem:[#allocation174_spill] sm:$0xff] %v7201_v4  ;;  %v1982_v36 = vmul.f32 %v7201_v4, %v7201_v4  ;;  %v7206_v33 = vpop.f32.mrb[98].mxu1  ;;  %v2230_v26 = vadd.f32 %v2229_v18, %v1975_v53 }
 0x1ea   : > { %9604 = vst [vmem:[#allocation175_spill] sm:$0xff] %v7206_v33  ;;  %v1983_v47 = vmul.f32 %v7206_v33, %v7206_v33  ;;  %1689 = vadd.xlane.f32.xlu0 %v1688_v35  ;;  %v1465_v43 = vpop.f32.mrb[99].mxu1  ;;  %v1695_v11 = vadd.f32 %v1694_v39, %v7201_v4  ;;  %v1696_v22 = vsel %vm1542_vm0, %v7206_v33, 0.0  ;;  %v2238_v55 = vadd.f32 %v6549_v25, %v1981_v42 }
 0x1eb   : > { %v7214_v30 = vpop.f32.mrb[100].mxu0  ;;  %v2232_v21 = vadd.f32 %v2231_v1, %v2230_v26 }
 0x1ec   : > { %9605 = vst [vmem:[#allocation176_spill] sm:$0xff] %v7214_v30  ;;  %v1703_v44 = vadd.f32 %v6561_v46, %v7214_v30  ;;  %v1988_v53 = vmul.f32 %v7214_v30, %v7214_v30  ;;  %2224 = vadd.xlane.f32.xlu1 %v2223_v2  ;;  %v7220_v18 = vpop.f32.mrb[101].mxu0  ;;  %v1697_v35 = vadd.f32 %v1696_v22, %v1695_v11  ;;  %v2240_v25 = vsel %vm1542_vm0, %v1983_v47, 0.0 }
 0x1ed   : > { %9606 = vst [vmem:[#allocation177_spill] sm:$0xff] %v7220_v18  ;;  %v2239_v43 = vadd.f32 %v2238_v55, %v1982_v36  ;;  %v1989_v39 = vmul.f32 %v7220_v18, %v7220_v18  ;;  %v7224_v0 = vpop.f32.mrb[100].mxu1 }
 0x1ee   : > { %9607 = vst [vmem:[#allocation178_spill] sm:$0xff] %v7224_v0  ;;  %v1990_v42 = vmul.f32 %v7224_v0, %v7224_v0  ;;  %2233 = vadd.xlane.f32.xlu0 %v2232_v21  ;;  %v1470_v46 = vpop.f32.mrb[101].mxu1  ;;  %v1704_v1 = vadd.f32 %v1703_v44, %v7220_v18  ;;  %v1705_v2 = vsel %vm1542_vm0, %v7224_v0, 0.0  ;;  %v2247_v36 = vadd.f32 %v6573_v7, %v1988_v53 }
 0x1ef   : > { %v2241_v26 = vadd.f32 %v2240_v25, %v2239_v43  ;;  %v7232_v11 = vpop.f32.mrb[102].mxu0 }
 0x1f0   : > { %9608 = vst [vmem:[#allocation179_spill] sm:$0xff] %v7232_v11  ;;  %v1712_v22 = vadd.f32 %v6585_v37, %v7232_v11  ;;  %v1995_v47 = vmul.f32 %v7232_v11, %v7232_v11  ;;  %1698 = vadd.xlane.f32.xlu1 %v1697_v35  ;;  %v7239_v55 = vpop.f32.mrb[103].mxu0  ;;  %v1706_v21 = vadd.f32 %v1705_v2, %v1704_v1  ;;  %v2249_v44 = vsel %vm1542_vm0, %v1990_v42, 0.0 }
 0x1f1   : > { %9609 = vst [vmem:[#allocation180_spill] sm:$0xff] %v7239_v55  ;;  %v1996_v46 = vmul.f32 %v7239_v55, %v7239_v55  ;;  %v7244_v43 = vpop.f32.mrb[102].mxu1  ;;  %v2248_v25 = vadd.f32 %v2247_v36, %v1989_v39 }
 0x1f2   : > { %9610 = vst [vmem:[#allocation181_spill] sm:$0xff] %v7244_v43  ;;  %v1997_v7 = vmul.f32 %v7244_v43, %v7244_v43  ;;  %1707 = vadd.xlane.f32.xlu0 %v1706_v21  ;;  %v1475_v37 = vpop.f32.mrb[103].mxu1  ;;  %v1713_v53 = vadd.f32 %v1712_v22, %v7239_v55  ;;  %v1714_v35 = vsel %vm1542_vm0, %v7244_v43, 0.0  ;;  %v2256_v1 = vadd.f32 %v6597_v59, %v1995_v47 }
 0x1f3   : > { %v7252_v2 = vpop.f32.mrb[104].mxu0  ;;  %v2250_v42 = vadd.f32 %v2249_v44, %v2248_v25 }
 0x1f4   : > { %9611 = vst [vmem:[#allocation182_spill] sm:$0xff] %v7252_v2  ;;  %v1721_v0 = vadd.f32 %v6609_v29, %v7252_v2  ;;  %v2002_v39 = vmul.f32 %v7252_v2, %v7252_v2  ;;  %2242 = vadd.xlane.f32.xlu1 %v2241_v26  ;;  %v7258_v36 = vpop.f32.mrb[105].mxu0  ;;  %v1715_v21 = vadd.f32 %v1714_v35, %v1713_v53  ;;  %v2258_v59 = vsel %vm1542_vm0, %v1997_v7, 0.0 }
 0x1f5   : > { %9612 = vst [vmem:[#allocation183_spill] sm:$0xff] %v7258_v36  ;;  %v2257_v37 = vadd.f32 %v2256_v1, %v1996_v46  ;;  %v2003_v22 = vmul.f32 %v7258_v36, %v7258_v36  ;;  %v7262_v18 = vpop.f32.mrb[104].mxu1 }
 0x1f6   : > { %9613 = vst [vmem:[#allocation184_spill] sm:$0xff] %v7262_v18  ;;  %v2004_v47 = vmul.f32 %v7262_v18, %v7262_v18  ;;  %2251 = vadd.xlane.f32.xlu0 %v2250_v42  ;;  %v1480_v29 = vpop.f32.mrb[105].mxu1  ;;  %v1722_v44 = vadd.f32 %v1721_v0, %v7258_v36  ;;  %v1723_v26 = vsel %vm1542_vm0, %v7262_v18, 0.0  ;;  %v2265_v46 = vadd.f32 %v6621_v3, %v2002_v39 }
 0x1f7   : > { %v2259_v25 = vadd.f32 %v2258_v59, %v2257_v37  ;;  %v7270_v53 = vpop.f32.mrb[106].mxu0 }
 0x1f8   : > { %9614 = vst [vmem:[#allocation185_spill] sm:$0xff] %v7270_v53  ;;  %v1730_v35 = vadd.f32 %v6633_v62, %v7270_v53  ;;  %v2009_v7 = vmul.f32 %v7270_v53, %v7270_v53  ;;  %1716 = vadd.xlane.f32.xlu1 %v1715_v21  ;;  %v7277_v1 = vpop.f32.mrb[107].mxu0  ;;  %v1724_v42 = vadd.f32 %v1723_v26, %v1722_v44  ;;  %v2267_v0 = vsel %vm1542_vm0, %v2004_v47, 0.0 }
 0x1f9   : > { %9615 = vst [vmem:[#allocation186_spill] sm:$0xff] %v7277_v1  ;;  %v2010_v29 = vmul.f32 %v7277_v1, %v7277_v1  ;;  %v7282_v37 = vpop.f32.mrb[106].mxu1  ;;  %v2266_v59 = vadd.f32 %v2265_v46, %v2003_v22 }
 0x1fa   : > { %9616 = vst [vmem:[#allocation187_spill] sm:$0xff] %v7282_v37  ;;  %v2011_v3 = vmul.f32 %v7282_v37, %v7282_v37  ;;  %1725 = vadd.xlane.f32.xlu0 %v1724_v42  ;;  %v1485_v62 = vpop.f32.mrb[107].mxu1  ;;  %v1731_v39 = vadd.f32 %v1730_v35, %v7277_v1  ;;  %v1732_v21 = vsel %vm1542_vm0, %v7282_v37, 0.0  ;;  %v2274_v44 = vadd.f32 %v6645_v51, %v2009_v7 }
 0x1fb   : > { %v7290_v26 = vpop.f32.mrb[108].mxu0  ;;  %v2268_v47 = vadd.f32 %v2267_v0, %v2266_v59 }
 0x1fc   : > { %9617 = vst [vmem:[#allocation188_spill] sm:$0xff] %v7290_v26  ;;  %v1739_v18 = vadd.f32 %v6657_v49, %v7290_v26  ;;  %v2016_v22 = vmul.f32 %v7290_v26, %v7290_v26  ;;  %2260 = vadd.xlane.f32.xlu1 %v2259_v25  ;;  %v7296_v46 = vpop.f32.mrb[109].mxu0  ;;  %v1733_v42 = vadd.f32 %v1732_v21, %v1731_v39  ;;  %v2276_v51 = vsel %vm1542_vm0, %v2011_v3, 0.0 }
 0x1fd   : > { %9618 = vst [vmem:[#allocation189_spill] sm:$0xff] %v7296_v46  ;;  %v2275_v62 = vadd.f32 %v2274_v44, %v2010_v29  ;;  %v2017_v35 = vmul.f32 %v7296_v46, %v7296_v46  ;;  %v7300_v36 = vpop.f32.mrb[108].mxu1 }
 0x1fe   : > { %9619 = vst [vmem:[#allocation190_spill] sm:$0xff] %v7300_v36  ;;  %v2018_v7 = vmul.f32 %v7300_v36, %v7300_v36  ;;  %2269 = vadd.xlane.f32.xlu0 %v2268_v47  ;;  %v1490_v49 = vpop.f32.mrb[109].mxu1  ;;  %v1740_v0 = vadd.f32 %v1739_v18, %v7296_v46  ;;  %v1741_v25 = vsel %vm1542_vm0, %v7300_v36, 0.0  ;;  %v2283_v29 = vadd.f32 %v6669_v32, %v2016_v22  ;;  %v9623_v36 = vld [vmem:[#allocation102_spill] sm:$0xff]  ;;  %v9625_v46 = vld [vmem:[#allocation105_spill] sm:$0xff] }
 0x1ff   : > { %v2277_v59 = vadd.f32 %v2276_v51, %v2275_v62  ;;  %v7308_v39 = vpop.f32.mrb[110].mxu0 }
 0x200   : > { %9620 = vst [vmem:[#allocation191_spill] sm:$0xff] %v7308_v39  ;;  %v1748_v21 = vadd.f32 %v6681_v34, %v7308_v39  ;;  %v2023_v3 = vmul.f32 %v7308_v39, %v7308_v39  ;;  %1734 = vadd.xlane.f32.xlu1 %v1733_v42  ;;  %v7315_v44 = vpop.f32.mrb[111].mxu0  ;;  %v1742_v47 = vadd.f32 %v1741_v25, %v1740_v0  ;;  %v2285_v18 = vsel %vm1542_vm0, %v2018_v7, 0.0 }
 0x201   : > { %9621 = vst [vmem:[#allocation192_spill] sm:$0xff] %v7315_v44  ;;  %v2024_v49 = vmul.f32 %v7315_v44, %v7315_v44  ;;  %v7320_v62 = vpop.f32.mrb[110].mxu1  ;;  %v2284_v51 = vadd.f32 %v2283_v29, %v2017_v35 }
 0x202   : > { %9622 = vst [vmem:[#allocation193_spill] sm:$0xff] %v7320_v62  ;;  %v2025_v32 = vmul.f32 %v7320_v62, %v7320_v62  ;;  %1743 = vadd.xlane.f32.xlu0 %v1742_v47  ;;  %v1495_v34 = vpop.f32.mrb[111].mxu1  ;;  %v1749_v22 = vadd.f32 %v1748_v21, %v7315_v44  ;;  %v1750_v42 = vsel %vm1542_vm0, %v7320_v62, 0.0  ;;  %v2292_v0 = vadd.f32 %v9623_v36, %v2023_v3 }
 0x203   : > { %v7328_v25 = vpop.f32.mrb[112].mxu0  ;;  %v2286_v7 = vadd.f32 %v2285_v18, %v2284_v51 }
 0x204   : > { %9624 = vst [vmem:[#allocation102_spill] sm:$0xff] %v7328_v25  ;;  %v1757_v26 = vadd.f32 %v9625_v46, %v7328_v25  ;;  %v2030_v35 = vmul.f32 %v7328_v25, %v7328_v25  ;;  %2278 = vadd.xlane.f32.xlu1 %v2277_v59  ;;  %v7334_v29 = vpop.f32.mrb[113].mxu0  ;;  %v1751_v47 = vadd.f32 %v1750_v42, %v1749_v22  ;;  %v2294_v36 = vsel %vm1542_vm0, %v2025_v32, 0.0 }
 0x205   : > { %9626 = vst [vmem:[#allocation105_spill] sm:$0xff] %v7334_v29  ;;  %v2293_v34 = vadd.f32 %v2292_v0, %v2024_v49  ;;  %v2031_v21 = vmul.f32 %v7334_v29, %v7334_v29  ;;  %v7338_v62 = vpop.f32.mrb[112].mxu1  ;;  %v9629_v49 = vld [vmem:[#allocation108_spill] sm:$0xff]  ;;  %v9630_v0 = vld [vmem:[#allocation111_spill] sm:$0xff] }
 0x206   : > { %9627 = vst [vmem:[#allocation194_spill] sm:$0xff] %v7338_v62  ;;  %v2032_v3 = vmul.f32 %v7338_v62, %v7338_v62  ;;  %2287 = vadd.xlane.f32.xlu0 %v2286_v7  ;;  %v1500_v46 = vpop.f32.mrb[113].mxu1  ;;  %v1758_v18 = vadd.f32 %v1757_v26, %v7334_v29  ;;  %v1759_v59 = vsel %vm1542_vm0, %v7338_v62, 0.0  ;;  %v2301_v42 = vadd.f32 %v9629_v49, %v2030_v35  ;;  %v9633_v62 = vld [vmem:[#allocation114_spill] sm:$0xff]  ;;  %v9635_v29 = vld [vmem:[#allocation117_spill] sm:$0xff] }
 0x207   : > { %v2295_v51 = vadd.f32 %v2294_v36, %v2293_v34  ;;  %v7346_v22 = vpop.f32.mrb[114].mxu0 }
 0x208   : > { %9628 = vst [vmem:[#allocation195_spill] sm:$0xff] %v7346_v22  ;;  %v1766_v25 = vadd.f32 %v9630_v0, %v7346_v22  ;;  %v2037_v32 = vmul.f32 %v7346_v22, %v7346_v22  ;;  %1752 = vadd.xlane.f32.xlu1 %v1751_v47  ;;  %v7353_v44 = vpop.f32.mrb[115].mxu0  ;;  %v1760_v7 = vadd.f32 %v1759_v59, %v1758_v18  ;;  %v2303_v26 = vsel %vm1542_vm0, %v2032_v3, 0.0 }
 0x209   : > { %9631 = vst [vmem:[#allocation108_spill] sm:$0xff] %v7353_v44  ;;  %v2038_v46 = vmul.f32 %v7353_v44, %v7353_v44  ;;  %v7358_v34 = vpop.f32.mrb[114].mxu1  ;;  %v2302_v36 = vadd.f32 %v2301_v42, %v2031_v21 }
 0x20a   : > { %9632 = vst [vmem:[#allocation111_spill] sm:$0xff] %v7358_v34  ;;  %v2039_v35 = vmul.f32 %v7358_v34, %v7358_v34  ;;  %1761 = vadd.xlane.f32.xlu0 %v1760_v7  ;;  %v1505_v49 = vpop.f32.mrb[115].mxu1  ;;  %v1767_v0 = vadd.f32 %v1766_v25, %v7353_v44  ;;  %v1768_v47 = vsel %vm1542_vm0, %v7358_v34, 0.0  ;;  %v2310_v18 = vadd.f32 %v9633_v62, %v2037_v32 }
 0x20b   : > { %v7366_v59 = vpop.f32.mrb[116].mxu0  ;;  %v2304_v3 = vadd.f32 %v2303_v26, %v2302_v36 }
 0x20c   : > { %9634 = vst [vmem:[#allocation114_spill] sm:$0xff] %v7366_v59  ;;  %v1775_v22 = vadd.f32 %v9635_v29, %v7366_v59  ;;  %v2044_v21 = vmul.f32 %v7366_v59, %v7366_v59  ;;  %2296 = vadd.xlane.f32.xlu1 %v2295_v51  ;;  %v7372_v42 = vpop.f32.mrb[117].mxu0  ;;  %v1769_v7 = vadd.f32 %v1768_v47, %v1767_v0  ;;  %v2312_v62 = vsel %vm1542_vm0, %v2039_v35, 0.0 }
 0x20d   : > { %9636 = vst [vmem:[#allocation117_spill] sm:$0xff] %v7372_v42  ;;  %v2311_v49 = vadd.f32 %v2310_v18, %v2038_v46  ;;  %v2045_v25 = vmul.f32 %v7372_v42, %v7372_v42  ;;  %v7376_v34 = vpop.f32.mrb[116].mxu1  ;;  %v9639_v46 = vld [vmem:[#allocation120_spill] sm:$0xff]  ;;  %v9640_v18 = vld [vmem:[#allocation123_spill] sm:$0xff] }
 0x20e   : > { %9637 = vst [vmem:[#allocation196_spill] sm:$0xff] %v7376_v34  ;;  %v2046_v32 = vmul.f32 %v7376_v34, %v7376_v34  ;;  %2305 = vadd.xlane.f32.xlu0 %v2304_v3  ;;  %v1510_v29 = vpop.f32.mrb[117].mxu1  ;;  %v1776_v26 = vadd.f32 %v1775_v22, %v7372_v42  ;;  %v1777_v51 = vsel %vm1542_vm0, %v7376_v34, 0.0  ;;  %v2319_v47 = vadd.f32 %v9639_v46, %v2044_v21  ;;  %v9643_v34 = vld [vmem:[#allocation126_spill] sm:$0xff]  ;;  %v9645_v42 = vld [vmem:[#allocation129_spill] sm:$0xff] }
 0x20f   : > { %v2313_v36 = vadd.f32 %v2312_v62, %v2311_v49  ;;  %v7384_v0 = vpop.f32.mrb[118].mxu0 }
 0x210   : > { %9638 = vst [vmem:[#allocation197_spill] sm:$0xff] %v7384_v0  ;;  %v1784_v59 = vadd.f32 %v9640_v18, %v7384_v0  ;;  %v2051_v35 = vmul.f32 %v7384_v0, %v7384_v0  ;;  %1770 = vadd.xlane.f32.xlu1 %v1769_v7  ;;  %v7391_v44 = vpop.f32.mrb[119].mxu0  ;;  %v1778_v3 = vadd.f32 %v1777_v51, %v1776_v26  ;;  %v2321_v22 = vsel %vm1542_vm0, %v2046_v32, 0.0 }
 0x211   : > { %9641 = vst [vmem:[#allocation120_spill] sm:$0xff] %v7391_v44  ;;  %v2052_v29 = vmul.f32 %v7391_v44, %v7391_v44  ;;  %v7396_v49 = vpop.f32.mrb[118].mxu1  ;;  %v2320_v62 = vadd.f32 %v2319_v47, %v2045_v25 }
 0x212   : > { %9642 = vst [vmem:[#allocation123_spill] sm:$0xff] %v7396_v49  ;;  %v2053_v21 = vmul.f32 %v7396_v49, %v7396_v49  ;;  %1779 = vadd.xlane.f32.xlu0 %v1778_v3  ;;  %v1515_v46 = vpop.f32.mrb[119].mxu1  ;;  %v1785_v18 = vadd.f32 %v1784_v59, %v7391_v44  ;;  %v1786_v7 = vsel %vm1542_vm0, %v7396_v49, 0.0  ;;  %v2328_v26 = vadd.f32 %v9643_v34, %v2051_v35 }
 0x213   : > { %v7404_v51 = vpop.f32.mrb[120].mxu0  ;;  %v2322_v32 = vadd.f32 %v2321_v22, %v2320_v62 }
 0x214   : > { %9644 = vst [vmem:[#allocation126_spill] sm:$0xff] %v7404_v51  ;;  %v1793_v0 = vadd.f32 %v9645_v42, %v7404_v51  ;;  %v2058_v25 = vmul.f32 %v7404_v51, %v7404_v51  ;;  %2314 = vadd.xlane.f32.xlu1 %v2313_v36  ;;  %v7410_v47 = vpop.f32.mrb[121].mxu0  ;;  %v1787_v3 = vadd.f32 %v1786_v7, %v1785_v18  ;;  %v2330_v34 = vsel %vm1542_vm0, %v2053_v21, 0.0 }
 0x215   : > { %9646 = vst [vmem:[#allocation129_spill] sm:$0xff] %v7410_v47  ;;  %v2329_v46 = vadd.f32 %v2328_v26, %v2052_v29  ;;  %v2059_v59 = vmul.f32 %v7410_v47, %v7410_v47  ;;  %v7414_v49 = vpop.f32.mrb[120].mxu1  ;;  %v9649_v29 = vld [vmem:[#allocation132_spill] sm:$0xff]  ;;  %v9650_v26 = vld [vmem:[#allocation135_spill] sm:$0xff] }
 0x216   : > { %9647 = vst [vmem:[#allocation198_spill] sm:$0xff] %v7414_v49  ;;  %v2060_v35 = vmul.f32 %v7414_v49, %v7414_v49  ;;  %2323 = vadd.xlane.f32.xlu0 %v2322_v32  ;;  %v1520_v42 = vpop.f32.mrb[121].mxu1  ;;  %v1794_v22 = vadd.f32 %v1793_v0, %v7410_v47  ;;  %v1795_v36 = vsel %vm1542_vm0, %v7414_v49, 0.0  ;;  %v2337_v7 = vadd.f32 %v9649_v29, %v2058_v25  ;;  %v9653_v49 = vld [vmem:[#allocation138_spill] sm:$0xff]  ;;  %v9655_v47 = vld [vmem:[#allocation141_spill] sm:$0xff] }
 0x217   : > { %v2331_v62 = vadd.f32 %v2330_v34, %v2329_v46  ;;  %v7422_v18 = vpop.f32.mrb[122].mxu0 }
 0x218   : > { %9648 = vst [vmem:[#allocation199_spill] sm:$0xff] %v7422_v18  ;;  %v1802_v51 = vadd.f32 %v9650_v26, %v7422_v18  ;;  %v2065_v21 = vmul.f32 %v7422_v18, %v7422_v18  ;;  %1788 = vadd.xlane.f32.xlu1 %v1787_v3  ;;  %v7429_v44 = vpop.f32.mrb[123].mxu0  ;;  %v1796_v32 = vadd.f32 %v1795_v36, %v1794_v22  ;;  %v2339_v0 = vsel %vm1542_vm0, %v2060_v35, 0.0 }
 0x219   : > { %9651 = vst [vmem:[#allocation132_spill] sm:$0xff] %v7429_v44  ;;  %v2066_v42 = vmul.f32 %v7429_v44, %v7429_v44  ;;  %v7434_v46 = vpop.f32.mrb[122].mxu1  ;;  %v2338_v34 = vadd.f32 %v2337_v7, %v2059_v59 }
 0x21a   : > { %9652 = vst [vmem:[#allocation135_spill] sm:$0xff] %v7434_v46  ;;  %v2067_v25 = vmul.f32 %v7434_v46, %v7434_v46  ;;  %1797 = vadd.xlane.f32.xlu0 %v1796_v32  ;;  %v1525_v29 = vpop.f32.mrb[123].mxu1  ;;  %v1803_v26 = vadd.f32 %v1802_v51, %v7429_v44  ;;  %v1804_v3 = vsel %vm1542_vm0, %v7434_v46, 0.0  ;;  %v2346_v22 = vadd.f32 %v9653_v49, %v2065_v21 }
 0x21b   : > { %v7442_v36 = vpop.f32.mrb[124].mxu0  ;;  %v2340_v35 = vadd.f32 %v2339_v0, %v2338_v34 }
 0x21c   : > { %9654 = vst [vmem:[#allocation138_spill] sm:$0xff] %v7442_v36  ;;  %v1811_v18 = vadd.f32 %v9655_v47, %v7442_v36  ;;  %v2072_v59 = vmul.f32 %v7442_v36, %v7442_v36  ;;  %2332 = vadd.xlane.f32.xlu1 %v2331_v62  ;;  %v7448_v7 = vpop.f32.mrb[125].mxu0  ;;  %v1805_v32 = vadd.f32 %v1804_v3, %v1803_v26  ;;  %v2348_v49 = vsel %vm1542_vm0, %v2067_v25, 0.0 }
 0x21d   : > { %9656 = vst [vmem:[#allocation141_spill] sm:$0xff] %v7448_v7  ;;  %v2347_v29 = vadd.f32 %v2346_v22, %v2066_v42  ;;  %v2073_v51 = vmul.f32 %v7448_v7, %v7448_v7  ;;  %v7452_v46 = vpop.f32.mrb[124].mxu1  ;;  %v9659_v42 = vld [vmem:[#allocation144_spill] sm:$0xff]  ;;  %v9660_v22 = vld [vmem:[#allocation147_spill] sm:$0xff] }
 0x21e   : > { %9657 = vst [vmem:[#allocation200_spill] sm:$0xff] %v7452_v46  ;;  %v2074_v21 = vmul.f32 %v7452_v46, %v7452_v46  ;;  %2341 = vadd.xlane.f32.xlu0 %v2340_v35  ;;  %v1530_v47 = vpop.f32.mrb[125].mxu1  ;;  %v1812_v0 = vadd.f32 %v1811_v18, %v7448_v7  ;;  %v1813_v62 = vsel %vm1542_vm0, %v7452_v46, 0.0  ;;  %v2355_v3 = vadd.f32 %v9659_v42, %v2072_v59 }
 0x21f   : > { %v2349_v34 = vadd.f32 %v2348_v49, %v2347_v29  ;;  %v7460_v26 = vpop.f32.mrb[126].mxu0 }
 0x220   : > { %9658 = vst [vmem:[#allocation201_spill] sm:$0xff] %v7460_v26  ;;  %v1820_v36 = vadd.f32 %v9660_v22, %v7460_v26  ;;  %v2079_v25 = vmul.f32 %v7460_v26, %v7460_v26  ;;  %1806 = vadd.xlane.f32.xlu1 %v1805_v32  ;;  %v7467_v44 = vpop.f32.mrb[127].mxu0  ;;  %v1814_v35 = vadd.f32 %v1813_v62, %v1812_v0  ;;  %v2357_v18 = vsel %vm1542_vm0, %v2074_v21, 0.0 }
 0x221   : > { %9661 = vst [vmem:[#allocation144_spill] sm:$0xff] %v7467_v44  ;;  %v2080_v47 = vmul.f32 %v7467_v44, %v7467_v44  ;;  %v7472_v29 = vpop.f32.mrb[126].mxu1  ;;  %v2356_v49 = vadd.f32 %v2355_v3, %v2073_v51 }
 0x222   : > { %9662 = vst [vmem:[#allocation147_spill] sm:$0xff] %v7472_v29  ;;  %v1821_v59 = vadd.f32 %v1820_v36, %v7467_v44  ;;  %v2081_v42 = vmul.f32 %v7472_v29, %v7472_v29  ;;  %1815 = vadd.xlane.f32.xlu0 %v1814_v35  ;;  %v1822_v32 = vsel %vm1542_vm0, %v7472_v29, 0.0  ;;  %v2364_v22 = vadd.f32 %v6887_v13, %v2079_v25  ;;  %v1535_v0 = vpop.f32.mrb[127].mxu1 }
 0x223   : > { %v2358_v62 = vadd.f32 %v2357_v18, %v2356_v49 }
 0x224   : > { %2350 = vadd.xlane.f32.xlu1 %v2349_v34  ;;  %v1823_v21 = vadd.f32 %v1822_v32, %v1821_v59  ;;  %v2365_v26 = vadd.f32 %v2364_v22, %v2080_v47  ;;  %v2366_v46 = vsel %vm1542_vm0, %v2081_v42, 0.0 }
 0x226   : > { %2359 = vadd.xlane.f32.xlu0 %v2358_v62  ;;  %v2367_v51 = vadd.f32 %v2366_v46, %v2365_v26 }
 0x228   : > { %1824 = vadd.xlane.f32.xlu1 %v1823_v21 }
 0x22c   : > { %2368 = vadd.xlane.f32.xlu1 %v2367_v51 }
 0x237   : > { %v1546_v36 = vpop.xlane.xlu0 %1545 }
 0x238   : > { %v1826_v3 = vmul.f32 0.0012755102, %v1546_v36 }
 0x23a   : > { %v2402_v35 = vmul.f32 %v1826_v3, %v1826_v3 }
 0x23b   : > { %v2090_v44 = vpop.xlane.xlu0 %2089 }
 0x23c   : > { %v2370_v7 = vmul.f32 0.0012755102, %v2090_v44 }
 0x23d   : > { %v2099_v39 = vpop.xlane.xlu1 %2098 }
 0x23e   : > { %v2434_v29 = vsub.f32 %v2370_v7, %v2402_v35  ;;  %v2371_v49 = vmul.f32 0.0012755102, %v2099_v39 }
 0x23f   : > { %v1555_v13 = vpop.xlane.xlu0 %1554 }
 0x240   : > { %v2466_v25 = vmax.f32 %v2434_v29, 0.0  ;;  %v7481_v18 = vmul.f32 0.0012755102, %v1555_v13 }
 0x241   : > { %v1564_v34 = vpop.xlane.xlu1 %1563 }
 0x242   : > { %v2530_v47 = vadd.f32 1e-05, %v2466_v25  ;;  %v2403_v46 = vmul.f32 %v7481_v18, %v7481_v18  ;;  %v7485_v26 = vmul.f32 0.0012755102, %v1564_v34 }
 0x243   : > { %v2108_v59 = vpop.xlane.xlu0 %2107 }
 0x244   : > { %4842 = vrsqrt.f32 %v2530_v47  ;;  %v2435_v42 = vsub.f32 %v2371_v49, %v2403_v46  ;;  %v2404_v44 = vmul.f32 %v7485_v26, %v7485_v26  ;;  %v2372_v32 = vmul.f32 0.0012755102, %v2108_v59  ;;  %v7504_v59 = vld [vmem:[%s7497_s26] sm:$0xff] }
 0x245   : > { %v1573_v7 = vpop.xlane.xlu1 %1572 }
 0x246   : > { %v2467_v29 = vmax.f32 %v2435_v42, 0.0  ;;  %v2436_v22 = vsub.f32 %v2372_v32, %v2404_v44  ;;  %v7490_v0 = vmul.f32 0.0012755102, %v1573_v7 }
 0x247   : > { %v1582_v62 = vpop.xlane.xlu0 %1581 }
 0x248   : > { %v2531_v39 = vadd.f32 1e-05, %v2467_v29  ;;  %v2468_v21 = vmax.f32 %v2436_v22, 0.0  ;;  %v7492_v51 = vmul.f32 0.0012755102, %v1582_v62  ;;  %v2405_v35 = vmul.f32 %v7490_v0, %v7490_v0 }
 0x249   : > { %v2117_v36 = vpop.xlane.xlu1 %2116 }
 0x24a   : > { %4844 = vrsqrt.f32 %v2531_v39  ;;  %v2373_v13 = vmul.f32 0.0012755102, %v2117_v36  ;;  %v2532_v34 = vadd.f32 1e-05, %v2468_v21  ;;  %v2406_v47 = vmul.f32 %v7492_v51, %v7492_v51 }
 0x24b   : > { %v2126_v25 = vpop.xlane.xlu0 %2125 }
 0x24c   : > { %v2437_v49 = vsub.f32 %v2373_v13, %v2405_v35  ;;  %v2374_v46 = vmul.f32 0.0012755102, %v2126_v25  ;;  %4846 = vrsqrt.f32 %v2532_v34  ;;  %v7512_v35 = vld [vmem:[%s7497_s26 + $0x8] sm:$0xff] }
 0x24d   : > { %v1591_v42 = vpop.xlane.xlu1 %1590 }
 0x24e   : > { %v4843_v44 = vpop.eup %4842  ;;  %v2469_v32 = vmax.f32 %v2437_v49, 0.0  ;;  %v2438_v7 = vsub.f32 %v2374_v46, %v2406_v47  ;;  %v7506_v29 = vmul.f32 0.0012755102, %v1591_v42 }
 0x24f   : > { %v1600_v22 = vpop.xlane.xlu0 %1599  ;;  %v2594_v62 = vmul.f32 %v4843_v44, %v7504_v59 }
 0x250   : > { %v2533_v39 = vadd.f32 1e-05, %v2469_v32  ;;  %v2470_v21 = vmax.f32 %v2438_v7, 0.0  ;;  %v7509_v36 = vmul.f32 0.0012755102, %v1600_v22  ;;  %v2407_v25 = vmul.f32 %v7506_v29, %v7506_v29 }
 0x251   : > { %v2135_v2 = vpop.xlane.xlu1 %2134  ;;  %2820 = vperm.xlu0 %4834, %v2594_v62   ;;  %v2626_v46 = vmul.f32 %v2594_v62, %v1826_v3 }
 0x252   : > { %4848 = vrsqrt.f32 %v2533_v39  ;;  %v2534_v13 = vadd.f32 1e-05, %v2470_v21  ;;  %v2375_v47 = vmul.f32 0.0012755102, %v2135_v2  ;;  %v2408_v34 = vmul.f32 %v7509_v36, %v7509_v36 }
 0x253   : > { %v2144_v49 = vpop.xlane.xlu0 %2143 }
 0x254   : > { %v4845_v42 = vpop.eup %4844  ;;  %4850 = vrsqrt.f32 %v2534_v13  ;;  %v2439_v44 = vsub.f32 %v2375_v47, %v2407_v25  ;;  %v2376_v32 = vmul.f32 0.0012755102, %v2144_v49 }
 0x255   : > { %v2595_v7 = vmul.f32 %v4845_v42, %v7512_v35  ;;  %v1609_v22 = vpop.xlane.xlu1 %1608  ;;  %2690 = vrot.lane.b32.xlu0 %v2626_v46, %s4916_s27 }
 0x256   : > { %v2471_v39 = vmax.f32 %v2439_v44, 0.0  ;;  %v2440_v21 = vsub.f32 %v2376_v32, %v2408_v34  ;;  %v7520_v2 = vmul.f32 0.0012755102, %v1609_v22  ;;  %v4847_v49 = vpop.eup %4846  ;;  %v7528_v34 = vld [vmem:[%s7497_s26 + $0x18] sm:$0xff]  ;;  %v7531_v32 = vld [vmem:[%s7497_s26 + $0x10] sm:$0xff] }
 0x257   : > { %v1618_v3 = vpop.xlane.xlu0 %1617  ;;  %2825 = vperm.xlu1 %4835, %v2595_v7   ;;  %v2627_v25 = vmul.f32 %v2595_v7, %v7481_v18 }
 0x258   : > { %v2535_v62 = vadd.f32 1e-05, %v2471_v39  ;;  %v2472_v13 = vmax.f32 %v2440_v21, 0.0  ;;  %v7522_v37 = vmul.f32 0.0012755102, %v1618_v3  ;;  %v2409_v46 = vmul.f32 %v7520_v2, %v7520_v2  ;;  %v7537_v3 = vld [vmem:[%s7497_s26 + $0x20] sm:$0xff] }
 0x259   : > { %v2153_v47 = vpop.xlane.xlu1 %2152 }
 0x25a   : > { %4852 = vrsqrt.f32 %v2535_v62  ;;  %v2536_v42 = vadd.f32 1e-05, %v2472_v13  ;;  %v2377_v44 = vmul.f32 0.0012755102, %v2153_v47  ;;  %v2410_v18 = vmul.f32 %v7522_v37, %v7522_v37 }
 0x25b   : > { %v2162_v22 = vpop.xlane.xlu0 %2161  ;;  %2692 = vrot.lane.b32.xlu1 %v2627_v25, %s4916_s27  ;;  %v2596_v47 = vmul.f32 %v4847_v49, %v7531_v32 }
 0x25c   : > { %v4849_v39 = vpop.eup %4848  ;;  %4854 = vrsqrt.f32 %v2536_v42  ;;  %v2441_v7 = vsub.f32 %v2377_v44, %v2409_v46  ;;  %v2378_v21 = vmul.f32 0.0012755102, %v2162_v22 }
 0x25d   : > { %v1627_v62 = vpop.xlane.xlu1 %1626  ;;  %v2597_v13 = vmul.f32 %v4849_v39, %v7528_v34  ;;  %v2628_v49 = vmul.f32 %v2596_v47, %v7485_v26 }
 0x25e   : > { %v4851_v1 = vpop.eup %4850  ;;  %v2473_v53 = vmax.f32 %v2441_v7, 0.0  ;;  %v2442_v30 = vsub.f32 %v2378_v21, %v2410_v18  ;;  %v7541_v43 = vmul.f32 0.0012755102, %v1627_v62  ;;  %v7551_v62 = vld [vmem:[%s7497_s26 + $0x28] sm:$0xff] }
 0x25f   : > { %v1636_v25 = vpop.xlane.xlu0 %1635  ;;  %2835 = vperm.xlu0 %4834, %v2597_v13   ;;  %2830 = vperm.xlu1 %4835, %v2596_v47   ;;  %v2598_v42 = vmul.f32 %v4851_v1, %v7537_v3 }
 0x260   : > { %v2537_v46 = vadd.f32 1e-05, %v2473_v53  ;;  %v2474_v44 = vmax.f32 %v2442_v30, 0.0  ;;  %v7544_v22 = vmul.f32 0.0012755102, %v1636_v25  ;;  %v2411_v7 = vmul.f32 %v7541_v43, %v7541_v43 }
 0x261   : > { %v2171_v55 = vpop.xlane.xlu1 %2170  ;;  %v2630_v39 = vmul.f32 %v2598_v42, %v7492_v51  ;;  %v7558_v51 = vld [vmem:[%s7497_s26 + $0x30] sm:$0xff] }
 0x262   : > { %4856 = vrsqrt.f32 %v2537_v46  ;;  %v2538_v18 = vadd.f32 1e-05, %v2474_v44  ;;  %v2379_v21 = vmul.f32 0.0012755102, %v2171_v55  ;;  %v2412_v53 = vmul.f32 %v7544_v22, %v7544_v22 }
 0x263   : > { %v2180_v11 = vpop.xlane.xlu0 %2179  ;;  %2698 = vrot.lane.b32.xlu0 %v2630_v39, %s4916_s27  ;;  %2694 = vrot.lane.b32.xlu1 %v2628_v49, %s4916_s27  ;;  %v2629_v55 = vmul.f32 %v2597_v13, %v7490_v0 }
 0x264   : > { %v4853_v30 = vpop.eup %4852  ;;  %4858 = vrsqrt.f32 %v2538_v18  ;;  %v2443_v1 = vsub.f32 %v2379_v21, %v2411_v7  ;;  %v2380_v26 = vmul.f32 0.0012755102, %v2180_v11 }
 0x265   : > { %v1645_v47 = vpop.xlane.xlu1 %1644  ;;  %v2599_v25 = vmul.f32 %v4853_v30, %v7551_v62 }
 0x266   : > { %v4855_v46 = vpop.eup %4854  ;;  %v2475_v44 = vmax.f32 %v2443_v1, 0.0  ;;  %v2444_v39 = vsub.f32 %v2380_v26, %v2412_v53  ;;  %v7562_v9 = vmul.f32 0.0012755102, %v1645_v47  ;;  %v7572_v26 = vld [vmem:[%s7497_s26 + $0x38] sm:$0xff] }
 0x267   : > { %v1654_v49 = vpop.xlane.xlu0 %1653  ;;  %2845 = vperm.xlu0 %4834, %v2599_v25   ;;  %2696 = vrot.lane.b32.xlu1 %v2629_v55, %s4916_s27  ;;  %v2600_v18 = vmul.f32 %v4855_v46, %v7558_v51 }
 0x268   : > { %v2539_v11 = vadd.f32 1e-05, %v2475_v44  ;;  %v2476_v7 = vmax.f32 %v2444_v39, 0.0  ;;  %v7566_v21 = vmul.f32 0.0012755102, %v1654_v49  ;;  %v2413_v53 = vmul.f32 %v7562_v9, %v7562_v9 }
 0x269   : > { %v2189_v30 = vpop.xlane.xlu1 %2188  ;;  %v2632_v0 = vmul.f32 %v2600_v18, %v7509_v36  ;;  %v7578_v36 = vld [vmem:[%s7497_s26 + $0x40] sm:$0xff] }
 0x26a   : > { %4860 = vrsqrt.f32 %v2539_v11  ;;  %v2540_v13 = vadd.f32 1e-05, %v2476_v7  ;;  %v2381_v1 = vmul.f32 0.0012755102, %v2189_v30  ;;  %v2414_v46 = vmul.f32 %v7566_v21, %v7566_v21 }
 0x26b   : > { %v2198_v47 = vpop.xlane.xlu0 %2197  ;;  %2702 = vrot.lane.b32.xlu0 %v2632_v0, %s4916_s27  ;;  %2840 = vperm.xlu1 %4835, %v2598_v42   ;;  %v2631_v7 = vmul.f32 %v2599_v25, %v7506_v29 }
 0x26c   : > { %v4857_v55 = vpop.eup %4856  ;;  %4862 = vrsqrt.f32 %v2540_v13  ;;  %v2445_v44 = vsub.f32 %v2381_v1, %v2413_v53  ;;  %v2382_v39 = vmul.f32 0.0012755102, %v2198_v47 }
 0x26d   : > { %v1663_v49 = vpop.xlane.xlu1 %1662  ;;  %v2601_v11 = vmul.f32 %v4857_v55, %v7572_v26 }
 0x26e   : > { %v4859_v30 = vpop.eup %4858  ;;  %v2477_v33 = vmax.f32 %v2445_v44, 0.0  ;;  %v2446_v4 = vsub.f32 %v2382_v39, %v2414_v46  ;;  %v7582_v0 = vmul.f32 0.0012755102, %v1663_v49  ;;  %v7592_v39 = vld [vmem:[%s7497_s26 + $0x48] sm:$0xff] }
 0x26f   : > { %v1672_v42 = vpop.xlane.xlu0 %1671  ;;  %2855 = vperm.xlu0 %4834, %v2601_v11   ;;  %2700 = vrot.lane.b32.xlu1 %v2631_v7, %s4916_s27  ;;  %v2602_v13 = vmul.f32 %v4859_v30, %v7578_v36 }
 0x270   : > { %v2541_v53 = vadd.f32 1e-05, %v2477_v33  ;;  %v2478_v1 = vmax.f32 %v2446_v4, 0.0  ;;  %v7586_v47 = vmul.f32 0.0012755102, %v1672_v42  ;;  %v2415_v46 = vmul.f32 %v7582_v0, %v7582_v0 }
 0x271   : > { %v2207_v55 = vpop.xlane.xlu1 %2206  ;;  %v2634_v29 = vmul.f32 %v2602_v13, %v7522_v37  ;;  %v7598_v37 = vld [vmem:[%s7497_s26 + $0x50] sm:$0xff] }
 0x272   : > { %4864 = vrsqrt.f32 %v2541_v53  ;;  %v2542_v25 = vadd.f32 1e-05, %v2478_v1  ;;  %v2383_v44 = vmul.f32 0.0012755102, %v2207_v55  ;;  %v2416_v4 = vmul.f32 %v7586_v47, %v7586_v47 }
 0x273   : > { %v2216_v49 = vpop.xlane.xlu0 %2215  ;;  %2706 = vrot.lane.b32.xlu0 %v2634_v29, %s4916_s27  ;;  %2850 = vperm.xlu1 %4835, %v2600_v18   ;;  %v2633_v1 = vmul.f32 %v2601_v11, %v7520_v2 }
 0x274   : > { %v4861_v33 = vpop.eup %4860  ;;  %4866 = vrsqrt.f32 %v2542_v25  ;;  %v2447_v7 = vsub.f32 %v2383_v44, %v2415_v46  ;;  %v2384_v30 = vmul.f32 0.0012755102, %v2216_v49 }
 0x275   : > { %v1681_v42 = vpop.xlane.xlu1 %1680  ;;  %v2603_v53 = vmul.f32 %v4861_v33, %v7592_v39 }
 0x276   : > { %v4863_v55 = vpop.eup %4862  ;;  %v2479_v16 = vmax.f32 %v2447_v7, 0.0  ;;  %v2448_v23 = vsub.f32 %v2384_v30, %v2416_v4  ;;  %v7602_v29 = vmul.f32 0.0012755102, %v1681_v42  ;;  %v7612_v30 = vld [vmem:[%s7497_s26 + $0x58] sm:$0xff] }
 0x277   : > { %v1690_v18 = vpop.xlane.xlu0 %1689  ;;  %2865 = vperm.xlu0 %4834, %v2603_v53   ;;  %2704 = vrot.lane.b32.xlu1 %v2633_v1, %s4916_s27  ;;  %v2604_v25 = vmul.f32 %v4863_v55, %v7598_v37  ;;  %9663 = vst [vmem:[#allocation202_spill] sm:$0xff] %v7612_v30 }
 0x278   : > { %v2543_v46 = vadd.f32 1e-05, %v2479_v16  ;;  %v2480_v44 = vmax.f32 %v2448_v23, 0.0  ;;  %v7606_v49 = vmul.f32 0.0012755102, %v1690_v18  ;;  %v2417_v4 = vmul.f32 %v7602_v29, %v7602_v29 }
 0x279   : > { %v2225_v33 = vpop.xlane.xlu1 %2224  ;;  %v2636_v2 = vmul.f32 %v2604_v25, %v7544_v22  ;;  %v7618_v22 = vld [vmem:[%s7497_s26 + $0x60] sm:$0xff] }
 0x27a   : > { %4868 = vrsqrt.f32 %v2543_v46  ;;  %v2544_v11 = vadd.f32 1e-05, %v2480_v44  ;;  %v2385_v7 = vmul.f32 0.0012755102, %v2225_v33  ;;  %v2418_v23 = vmul.f32 %v7606_v49, %v7606_v49 }
 0x27b   : > { %v2234_v42 = vpop.xlane.xlu0 %2233  ;;  %2710 = vrot.lane.b32.xlu0 %v2636_v2, %s4916_s27  ;;  %2860 = vperm.xlu1 %4835, %v2602_v13   ;;  %v2635_v44 = vmul.f32 %v2603_v53, %v7541_v43 }
 0x27c   : > { %v4865_v16 = vpop.eup %4864  ;;  %4870 = vrsqrt.f32 %v2544_v11  ;;  %v2449_v1 = vsub.f32 %v2385_v7, %v2417_v4  ;;  %v2386_v55 = vmul.f32 0.0012755102, %v2234_v42 }
 0x27d   : > { %v1699_v18 = vpop.xlane.xlu1 %1698  ;;  %v2605_v46 = vmul.f32 %v4865_v16, %v7612_v30 }
 0x27e   : > { %v4867_v33 = vpop.eup %4866  ;;  %v2481_v57 = vmax.f32 %v2449_v1, 0.0  ;;  %v2450_v27 = vsub.f32 %v2386_v55, %v2418_v23  ;;  %v7622_v2 = vmul.f32 0.0012755102, %v1699_v18  ;;  %v7632_v55 = vld [vmem:[%s7497_s26 + $0x68] sm:$0xff] }
 0x27f   : > { %v1708_v13 = vpop.xlane.xlu0 %1707  ;;  %2875 = vperm.xlu0 %4834, %v2605_v46   ;;  %2708 = vrot.lane.b32.xlu1 %v2635_v44, %s4916_s27  ;;  %v2606_v11 = vmul.f32 %v4867_v33, %v7618_v22  ;;  %9664 = vst [vmem:[#allocation203_spill] sm:$0xff] %v7632_v55 }
 0x280   : > { %v2545_v4 = vadd.f32 1e-05, %v2481_v57  ;;  %v2482_v7 = vmax.f32 %v2450_v27, 0.0  ;;  %v7626_v42 = vmul.f32 0.0012755102, %v1708_v13  ;;  %v2419_v23 = vmul.f32 %v7622_v2, %v7622_v2 }
 0x281   : > { %v2243_v16 = vpop.xlane.xlu1 %2242  ;;  %v2638_v43 = vmul.f32 %v2606_v11, %v7566_v21  ;;  %v7638_v21 = vld [vmem:[%s7497_s26 + $0x70] sm:$0xff] }
 0x282   : > { %4872 = vrsqrt.f32 %v2545_v4  ;;  %v2546_v53 = vadd.f32 1e-05, %v2482_v7  ;;  %v2387_v1 = vmul.f32 0.0012755102, %v2243_v16  ;;  %v2420_v27 = vmul.f32 %v7626_v42, %v7626_v42  ;;  %9665 = vst [vmem:[#allocation204_spill] sm:$0xff] %v7638_v21 }
 0x283   : > { %v2252_v18 = vpop.xlane.xlu0 %2251  ;;  %2714 = vrot.lane.b32.xlu0 %v2638_v43, %s4916_s27  ;;  %2870 = vperm.xlu1 %4835, %v2604_v25   ;;  %v2637_v7 = vmul.f32 %v2605_v46, %v7562_v9 }
 0x284   : > { %v4869_v57 = vpop.eup %4868  ;;  %4874 = vrsqrt.f32 %v2546_v53  ;;  %v2451_v44 = vsub.f32 %v2387_v1, %v2419_v23  ;;  %v2388_v33 = vmul.f32 0.0012755102, %v2252_v18 }
 0x285   : > { %v1717_v13 = vpop.xlane.xlu1 %1716  ;;  %v2607_v4 = vmul.f32 %v4869_v57, %v7632_v55 }
 0x286   : > { %v4871_v16 = vpop.eup %4870  ;;  %v2483_v63 = vmax.f32 %v2451_v44, 0.0  ;;  %v2452_v30 = vsub.f32 %v2388_v33, %v2420_v27  ;;  %v7642_v43 = vmul.f32 0.0012755102, %v1717_v13  ;;  %v7652_v33 = vld [vmem:[%s7497_s26 + $0x78] sm:$0xff] }
 0x287   : > { %v1726_v25 = vpop.xlane.xlu0 %1725  ;;  %2885 = vperm.xlu0 %4834, %v2607_v4   ;;  %2712 = vrot.lane.b32.xlu1 %v2637_v7, %s4916_s27  ;;  %v2608_v53 = vmul.f32 %v4871_v16, %v7638_v21  ;;  %9666 = vst [vmem:[#allocation205_spill] sm:$0xff] %v7652_v33 }
 0x288   : > { %v2547_v23 = vadd.f32 1e-05, %v2483_v63  ;;  %v2484_v1 = vmax.f32 %v2452_v30, 0.0  ;;  %v7646_v18 = vmul.f32 0.0012755102, %v1726_v25  ;;  %v2421_v27 = vmul.f32 %v7642_v43, %v7642_v43 }
 0x289   : > { %v2261_v57 = vpop.xlane.xlu1 %2260  ;;  %v2640_v9 = vmul.f32 %v2608_v53, %v7586_v47  ;;  %v7658_v47 = vld [vmem:[%s7497_s26 + $0x80] sm:$0xff] }
 0x28a   : > { %4876 = vrsqrt.f32 %v2547_v23  ;;  %v2548_v46 = vadd.f32 1e-05, %v2484_v1  ;;  %v2389_v44 = vmul.f32 0.0012755102, %v2261_v57  ;;  %v2422_v30 = vmul.f32 %v7646_v18, %v7646_v18  ;;  %9667 = vst [vmem:[#allocation206_spill] sm:$0xff] %v7658_v47 }
 0x28b   : > { %v2270_v13 = vpop.xlane.xlu0 %2269  ;;  %2718 = vrot.lane.b32.xlu0 %v2640_v9, %s4916_s27  ;;  %2880 = vperm.xlu1 %4835, %v2606_v11   ;;  %v2639_v1 = vmul.f32 %v2607_v4, %v7582_v0 }
 0x28c   : > { %v4873_v63 = vpop.eup %4872  ;;  %4878 = vrsqrt.f32 %v2548_v46  ;;  %v2453_v7 = vsub.f32 %v2389_v44, %v2421_v27  ;;  %v2390_v16 = vmul.f32 0.0012755102, %v2270_v13 }
 0x28d   : > { %v1735_v25 = vpop.xlane.xlu1 %1734  ;;  %v2609_v23 = vmul.f32 %v4873_v63, %v7652_v33 }
 0x28e   : > { %v4875_v57 = vpop.eup %4874  ;;  %v2485_v55 = vmax.f32 %v2453_v7, 0.0  ;;  %v2454_v21 = vsub.f32 %v2390_v16, %v2422_v30  ;;  %v7662_v9 = vmul.f32 0.0012755102, %v1735_v25  ;;  %v7672_v16 = vld [vmem:[%s7497_s26 + $0x88] sm:$0xff] }
 0x28f   : > { %v1744_v11 = vpop.xlane.xlu0 %1743  ;;  %2895 = vperm.xlu0 %4834, %v2609_v23   ;;  %2716 = vrot.lane.b32.xlu1 %v2639_v1, %s4916_s27  ;;  %v2610_v46 = vmul.f32 %v4875_v57, %v7658_v47  ;;  %9668 = vst [vmem:[#allocation207_spill] sm:$0xff] %v7672_v16 }
 0x290   : > { %v2549_v27 = vadd.f32 1e-05, %v2485_v55  ;;  %v2486_v44 = vmax.f32 %v2454_v21, 0.0  ;;  %v7666_v13 = vmul.f32 0.0012755102, %v1744_v11  ;;  %v2423_v30 = vmul.f32 %v7662_v9, %v7662_v9 }
 0x291   : > { %v2279_v63 = vpop.xlane.xlu1 %2278  ;;  %v2642_v0 = vmul.f32 %v2610_v46, %v7606_v49  ;;  %v7678_v49 = vld [vmem:[%s7497_s26 + $0x90] sm:$0xff] }
 0x292   : > { %4880 = vrsqrt.f32 %v2549_v27  ;;  %v2550_v4 = vadd.f32 1e-05, %v2486_v44  ;;  %v2391_v7 = vmul.f32 0.0012755102, %v2279_v63  ;;  %v2424_v21 = vmul.f32 %v7666_v13, %v7666_v13  ;;  %9669 = vst [vmem:[#allocation208_spill] sm:$0xff] %v7678_v49 }
 0x293   : > { %v2288_v25 = vpop.xlane.xlu0 %2287  ;;  %2722 = vrot.lane.b32.xlu0 %v2642_v0, %s4916_s27  ;;  %2890 = vperm.xlu1 %4835, %v2608_v53   ;;  %v2641_v44 = vmul.f32 %v2609_v23, %v7602_v29 }
 0x294   : > { %v4877_v55 = vpop.eup %4876  ;;  %4882 = vrsqrt.f32 %v2550_v4  ;;  %v2455_v1 = vsub.f32 %v2391_v7, %v2423_v30  ;;  %v2392_v57 = vmul.f32 0.0012755102, %v2288_v25 }
 0x295   : > { %v1753_v11 = vpop.xlane.xlu1 %1752  ;;  %v2611_v27 = vmul.f32 %v4877_v55, %v7672_v16 }
 0x296   : > { %v4879_v63 = vpop.eup %4878  ;;  %v2487_v33 = vmax.f32 %v2455_v1, 0.0  ;;  %v2456_v47 = vsub.f32 %v2392_v57, %v2424_v21  ;;  %v7682_v0 = vmul.f32 0.0012755102, %v1753_v11  ;;  %v7692_v57 = vld [vmem:[%s7497_s26 + $0x98] sm:$0xff] }
 0x297   : > { %v1762_v53 = vpop.xlane.xlu0 %1761  ;;  %2905 = vperm.xlu0 %4834, %v2611_v27   ;;  %2720 = vrot.lane.b32.xlu1 %v2641_v44, %s4916_s27  ;;  %v2612_v4 = vmul.f32 %v4879_v63, %v7678_v49  ;;  %9670 = vst [vmem:[#allocation209_spill] sm:$0xff] %v7692_v57 }
 0x298   : > { %v2551_v30 = vadd.f32 1e-05, %v2487_v33  ;;  %v2488_v7 = vmax.f32 %v2456_v47, 0.0  ;;  %v7686_v25 = vmul.f32 0.0012755102, %v1762_v53  ;;  %v2425_v21 = vmul.f32 %v7682_v0, %v7682_v0 }
 0x299   : > { %v2297_v55 = vpop.xlane.xlu1 %2296  ;;  %v2644_v29 = vmul.f32 %v2612_v4, %v7626_v42  ;;  %v7698_v42 = vld [vmem:[%s7497_s26 + $0xa0] sm:$0xff]  ;;  %v2643_v53 = vmul.f32 %v2611_v27, %v7622_v2 }
 0x29a   : > { %4884 = vrsqrt.f32 %v2551_v30  ;;  %v2552_v23 = vadd.f32 1e-05, %v2488_v7  ;;  %v2393_v1 = vmul.f32 0.0012755102, %v2297_v55  ;;  %v2426_v47 = vmul.f32 %v7686_v25, %v7686_v25  ;;  %9671 = vst [vmem:[#allocation210_spill] sm:$0xff] %v7698_v42 }
 0x29b   : > { %v2306_v11 = vpop.xlane.xlu0 %2305  ;;  %2726 = vrot.lane.b32.xlu0 %v2644_v29, %s4916_s27  ;;  %2900 = vperm.xlu1 %4835, %v2610_v46  }
 0x29c   : > { %v4881_v33 = vpop.eup %4880  ;;  %4886 = vrsqrt.f32 %v2552_v23  ;;  %v2457_v44 = vsub.f32 %v2393_v1, %v2425_v21  ;;  %v2394_v63 = vmul.f32 0.0012755102, %v2306_v11 }
 0x29d   : > { %v1771_v30 = vpop.xlane.xlu1 %1770  ;;  %v2613_v7 = vmul.f32 %v4881_v33, %v7692_v57 }
 0x29e   : > { %v4883_v55 = vpop.eup %4882  ;;  %v2489_v16 = vmax.f32 %v2457_v44, 0.0  ;;  %v2458_v49 = vsub.f32 %v2394_v63, %v2426_v47  ;;  %v7702_v29 = vmul.f32 0.0012755102, %v1771_v30  ;;  %v7712_v63 = vld [vmem:[%s7497_s26 + $0xa8] sm:$0xff] }
 0x29f   : > { %v1780_v46 = vpop.xlane.xlu0 %1779  ;;  %2915 = vperm.xlu0 %4834, %v2613_v7   ;;  %2724 = vrot.lane.b32.xlu1 %v2643_v53, %s4916_s27  ;;  %v2614_v23 = vmul.f32 %v4883_v55, %v7698_v42  ;;  %9672 = vst [vmem:[#allocation211_spill] sm:$0xff] %v7712_v63 }
 0x2a0   : > { %v2553_v21 = vadd.f32 1e-05, %v2489_v16  ;;  %v2490_v1 = vmax.f32 %v2458_v49, 0.0  ;;  %v7706_v11 = vmul.f32 0.0012755102, %v1780_v46  ;;  %v2427_v47 = vmul.f32 %v7702_v29, %v7702_v29 }
 0x2a1   : > { %v2315_v2 = vpop.xlane.xlu1 %2314  ;;  %v2646_v27 = vmul.f32 %v2614_v23, %v7646_v18  ;;  %v7718_v18 = vld [vmem:[%s7497_s26 + $0xb0] sm:$0xff] }
 0x2a2   : > { %4888 = vrsqrt.f32 %v2553_v21  ;;  %v2554_v33 = vadd.f32 1e-05, %v2490_v1  ;;  %v2395_v44 = vmul.f32 0.0012755102, %v2315_v2  ;;  %v2428_v49 = vmul.f32 %v7706_v11, %v7706_v11  ;;  %9673 = vst [vmem:[#allocation212_spill] sm:$0xff] %v7718_v18 }
 0x2a3   : > { %v2324_v30 = vpop.xlane.xlu0 %2323  ;;  %2730 = vrot.lane.b32.xlu0 %v2646_v27, %s4916_s27  ;;  %2910 = vperm.xlu1 %4835, %v2612_v4   ;;  %v2645_v1 = vmul.f32 %v2613_v7, %v7642_v43 }
 0x2a4   : > { %v4885_v16 = vpop.eup %4884  ;;  %4890 = vrsqrt.f32 %v2554_v33  ;;  %v2459_v53 = vsub.f32 %v2395_v44, %v2427_v47  ;;  %v2396_v55 = vmul.f32 0.0012755102, %v2324_v30 }
 0x2a5   : > { %v1789_v46 = vpop.xlane.xlu1 %1788  ;;  %v2615_v21 = vmul.f32 %v4885_v16, %v7712_v63 }
 0x2a6   : > { %v4887_v2 = vpop.eup %4886  ;;  %v2491_v57 = vmax.f32 %v2459_v53, 0.0  ;;  %v2460_v42 = vsub.f32 %v2396_v55, %v2428_v49  ;;  %v7722_v27 = vmul.f32 0.0012755102, %v1789_v46  ;;  %v7732_v55 = vld [vmem:[%s7497_s26 + $0xb8] sm:$0xff] }
 0x2a7   : > { %v1798_v4 = vpop.xlane.xlu0 %1797  ;;  %2925 = vperm.xlu0 %4834, %v2615_v21   ;;  %2728 = vrot.lane.b32.xlu1 %v2645_v1, %s4916_s27  ;;  %v2616_v33 = vmul.f32 %v4887_v2, %v7718_v18  ;;  %9674 = vst [vmem:[#allocation213_spill] sm:$0xff] %v7732_v55 }
 0x2a8   : > { %v2555_v47 = vadd.f32 1e-05, %v2491_v57  ;;  %v2492_v44 = vmax.f32 %v2460_v42, 0.0  ;;  %v7726_v30 = vmul.f32 0.0012755102, %v1798_v4  ;;  %v2429_v49 = vmul.f32 %v7722_v27, %v7722_v27 }
 0x2a9   : > { %v2333_v16 = vpop.xlane.xlu1 %2332  ;;  %v2648_v43 = vmul.f32 %v2616_v33, %v7666_v13  ;;  %v7738_v13 = vld [vmem:[%s7497_s26 + $0xc0] sm:$0xff] }
 0x2aa   : > { %4892 = vrsqrt.f32 %v2555_v47  ;;  %v2556_v7 = vadd.f32 1e-05, %v2492_v44  ;;  %v2397_v53 = vmul.f32 0.0012755102, %v2333_v16  ;;  %v2430_v42 = vmul.f32 %v7726_v30, %v7726_v30  ;;  %9675 = vst [vmem:[#allocation214_spill] sm:$0xff] %v7738_v13 }
 0x2ab   : > { %v2342_v46 = vpop.xlane.xlu0 %2341  ;;  %2734 = vrot.lane.b32.xlu0 %v2648_v43, %s4916_s27  ;;  %2920 = vperm.xlu1 %4835, %v2614_v23   ;;  %v2647_v44 = vmul.f32 %v2615_v21, %v7662_v9 }
 0x2ac   : > { %v4889_v57 = vpop.eup %4888  ;;  %4894 = vrsqrt.f32 %v2556_v7  ;;  %v2461_v1 = vsub.f32 %v2397_v53, %v2429_v49  ;;  %v2398_v2 = vmul.f32 0.0012755102, %v2342_v46 }
 0x2ad   : > { %v1807_v4 = vpop.xlane.xlu1 %1806  ;;  %v2617_v47 = vmul.f32 %v4889_v57, %v7732_v55 }
 0x2ae   : > { %v4891_v16 = vpop.eup %4890  ;;  %v2493_v63 = vmax.f32 %v2461_v1, 0.0  ;;  %v2462_v18 = vsub.f32 %v2398_v2, %v2430_v42  ;;  %v7742_v43 = vmul.f32 0.0012755102, %v1807_v4  ;;  %v7750_v1 = vld [vmem:[%s7497_s26 + $0xc8] sm:$0xff] }
 0x2af   : > { %2935 = vperm.xlu0 %4834, %v2617_v47   ;;  %v1816_v23 = vpop.xlane.xlu0 %1815  ;;  %2732 = vrot.lane.b32.xlu1 %v2647_v44, %s4916_s27  ;;  %v2618_v7 = vmul.f32 %v4891_v16, %v7738_v13  ;;  %v7754_v16 = vld [vmem:[%s7497_s26 + $0xd0] sm:$0xff]  ;;  %v7762_v13 = vld [vmem:[%s7497_s26 + $0xd8] sm:$0xff] }
 0x2b0   : > { %v2557_v49 = vadd.f32 1e-05, %v2493_v63  ;;  %v2494_v53 = vmax.f32 %v2462_v18, 0.0  ;;  %v1856_v46 = vmul.f32 0.0012755102, %v1816_v23  ;;  %v2431_v21 = vmul.f32 %v7742_v43, %v7742_v43 }
 0x2b1   : > { %v2351_v19 = vpop.xlane.xlu1 %2350  ;;  %v2650_v57 = vmul.f32 %v2618_v7, %v7686_v25 }
 0x2b2   : > { %4896 = vrsqrt.f32 %v2557_v49  ;;  %v2558_v9 = vadd.f32 1e-05, %v2494_v53  ;;  %v2399_v42 = vmul.f32 0.0012755102, %v2351_v19  ;;  %v2432_v63 = vmul.f32 %v1856_v46, %v1856_v46 }
 0x2b3   : > { %2738 = vrot.lane.b32.xlu0 %v2650_v57, %s4916_s27  ;;  %v2360_v2 = vpop.xlane.xlu0 %2359  ;;  %2930 = vperm.xlu1 %4835, %v2616_v33   ;;  %v2649_v49 = vmul.f32 %v2617_v47, %v7682_v0  ;;  %v7766_v47 = vld [vmem:[%s7497_s26 + $0xe0] sm:$0xff] }
 0x2b4   : > { %v4893_v4 = vpop.eup %4892  ;;  %4898 = vrsqrt.f32 %v2558_v9  ;;  %v2463_v18 = vsub.f32 %v2399_v42, %v2431_v21  ;;  %v2400_v44 = vmul.f32 0.0012755102, %v2360_v2 }
 0x2b5   : > { %v1825_v25 = vpop.xlane.xlu1 %1824  ;;  %v2619_v23 = vmul.f32 %v4893_v4, %v7750_v1 }
 0x2b6   : > { %v4895_v19 = vpop.eup %4894  ;;  %v2495_v53 = vmax.f32 %v2463_v18, 0.0  ;;  %v2464_v55 = vsub.f32 %v2400_v44, %v2432_v63  ;;  %v1857_v4 = vmul.f32 0.0012755102, %v1825_v25 }
 0x2b7   : > { %2945 = vperm.xlu0 %4834, %v2619_v23   ;;  %2736 = vrot.lane.b32.xlu1 %v2649_v49, %s4916_s27  ;;  %v2620_v33 = vmul.f32 %v4895_v19, %v7754_v16  ;;  %v7774_v19 = vld [vmem:[%s7497_s26 + $0xe8] sm:$0xff] }
 0x2b8   : > { %v2559_v57 = vadd.f32 1e-05, %v2495_v53  ;;  %v2496_v9 = vmax.f32 %v2464_v55, 0.0  ;;  %v2433_v44 = vmul.f32 %v1857_v4, %v1857_v4 }
 0x2b9   : > { %v2652_v21 = vmul.f32 %v2620_v33, %v7706_v11  ;;  %v2369_v2 = vpop.xlane.xlu1 %2368  ;;  %v2651_v11 = vmul.f32 %v2619_v23, %v7702_v29 }
 0x2ba   : > { %4900 = vrsqrt.f32 %v2559_v57  ;;  %v2560_v42 = vadd.f32 1e-05, %v2496_v9  ;;  %v2401_v63 = vmul.f32 0.0012755102, %v2369_v2  ;;  %v7778_v57 = vld [vmem:[%s7497_s26 + $0xf0] sm:$0xff] }
 0x2bb   : > { %2742 = vrot.lane.b32.xlu0 %v2652_v21, %s4916_s27  ;;  %2940 = vperm.xlu1 %4835, %v2618_v7  }
 0x2bc   : > { %v4897_v0 = vpop.eup %4896  ;;  %4902 = vrsqrt.f32 %v2560_v42  ;;  %v2465_v49 = vsub.f32 %v2401_v63, %v2433_v44  ;;  %v9676_v63 = vld [vmem:[#allocation2_spill] sm:$0xff] }
 0x2bd   : > { %v2621_v55 = vmul.f32 %v4897_v0, %v7762_v13 }
 0x2be   : > { %v4899_v18 = vpop.eup %4898  ;;  %v2497_v9 = vmax.f32 %v2465_v49, 0.0 }
 0x2bf   : > { %2955 = vperm.xlu0 %4834, %v2621_v55   ;;  %2740 = vrot.lane.b32.xlu1 %v2651_v11, %s4916_s27  ;;  %v2622_v25 = vmul.f32 %v4899_v18, %v7766_v47  ;;  %v2653_v23 = vmul.f32 %v2621_v55, %v7722_v27  ;;  %v9677_v11 = vld [vmem:[#allocation3_spill] sm:$0xff] }
 0x2c1   : > { %v2654_v7 = vmul.f32 %v2622_v25, %v7726_v30  ;;  %v2561_v30 = vadd.f32 1e-05, %v2497_v9 }
 0x2c3   : > { %2746 = vrot.lane.b32.xlu0 %v2654_v7, %s4916_s27  ;;  %2950 = vperm.xlu1 %4835, %v2620_v33   ;;  %v4917_v33 = vmov 1   ;;  %4904 = vrsqrt.f32 %v2561_v30  ;;  %v9681_v7 = vld [vmem:[#allocation145_spill] sm:$0xff] }
 0x2c4   : > { %v4901_v53 = vpop.eup %4900 }
 0x2c5   : > { %v2623_v29 = vmul.f32 %v4901_v53, %v7774_v19 }
 0x2c6   : > { %v4903_v21 = vpop.eup %4902 }
 0x2c7   : > { %2965 = vperm.xlu0 %4834, %v2623_v29   ;;  %2744 = vrot.lane.b32.xlu1 %v2653_v23, %s4916_s27  ;;  %v2624_v42 = vmul.f32 %v4903_v21, %v7778_v57  ;;  %v2655_v0 = vmul.f32 %v2623_v29, %v7742_v43  ;;  %v9683_v43 = vld [vmem:[#allocation146_spill] sm:$0xff]  ;;  %v9685_v29 = vld [vmem:[#allocation148_spill] sm:$0xff] }
 0x2c9   : > { %v2656_v2 = vmul.f32 %v2624_v42, %v1856_v46  ;;  %v9678_v46 = vld [vmem:[#allocation4_spill] sm:$0xff] }
 0x2cb   : > { %2750 = vrot.lane.b32.xlu0 %v2656_v2, %s4916_s27  ;;  %2960 = vperm.xlu1 %4835, %v2622_v25   ;;  %v9679_v25 = vld [vmem:[#allocation5_spill] sm:$0xff] }
 0x2cc   : > { %4838 = vset.pattern.permute.xlu0 %v4917_v33 }
 0x2cf   : > { %2748 = vrot.lane.b32.xlu1 %v2655_v0, %s4916_s27  ;;  %v4905_v0 = vpop.eup %4904 }
 0x2d0   : > { %v2821_v27 = vpop.permute.xlu0 %2820  ;;  %4836 = vset.pattern.permute.xlu1 %v4917_v33 }
 0x2d1   : > { %v7788_v55 = vmul.f32 %v2821_v27, %v9676_v63  ;;  %v7791_v18 = vmul.f32 %v2821_v27, %v9677_v11  ;;  %v7794_v44 = vmul.f32 %v2821_v27, %v9678_v46  ;;  %v7797_v49 = vmul.f32 %v2821_v27, %v9679_v25  ;;  %v7812_v63 = vld [vmem:[%s7497_s26 + $0xf8] sm:$0xff] }
 0x2d2   : > { %v7800_v53 = vmul.f32 %v2821_v27, %v9681_v7  ;;  %v7803_v9 = vmul.f32 %v2821_v27, %v9683_v43  ;;  %v7806_v23 = vmul.f32 %v2821_v27, %v9685_v29  ;;  %v2625_v46 = vmul.f32 %v4905_v0, %v7812_v63 }
 0x2d3   : > { %9680 = vst [vmem:[#allocation2_spill] sm:$0xff] %v7797_v49  ;;  %v9687_v7 = vmov 0   ;;  %v9692_v49 = vld [vmem:[#allocation17_spill] sm:$0xff] }
 0x2d4   : > { %9682 = vst [vmem:[#allocation3_spill] sm:$0xff] %v7800_v53  ;;  %9684 = vst [vmem:[#allocation4_spill] sm:$0xff] %v7803_v9  ;;  %v2691_v21 = vpop.permute.xlu0 %2690  ;;  %v2657_v29 = vmul.f32 %v2625_v46, %v1857_v4 }
 0x2d5   : > { %9686 = vst [vmem:[#allocation5_spill] sm:$0xff] %v7806_v23  ;;  %v2786_v30 = vsub.f32 %v7504_v59, %v2691_v21  ;;  %v9688_v23 = vld [vmem:[#allocation14_spill] sm:$0xff]  ;;  %v9689_v21 = vld [vmem:[#allocation15_spill] sm:$0xff] }
 0x2d6   : > { %v7809_v2 = vpop.permute.xlu1 %2825 }
 0x2d7   : > { %3204 = vperm.xlu1 %4836, %v2786_v30   ;;  %v9690_v30 = vld [vmem:[#allocation16_spill] sm:$0xff] }
 0x2da   : > { %v2693_v11 = vpop.permute.xlu1 %2692 }
 0x2db   : > { %v2787_v25 = vsub.f32 %v7512_v35, %v2693_v11  ;;  %4837 = vset.pattern.permute.xlu1 %v9687_v7 }
 0x2dc   : > { %2970 = vperm.xlu1 %4837, %v2624_v42  }
 0x2dd   : > { %3209 = vperm.xlu0 %4838, %v2787_v25   ;;  %v9698_v25 = vld [vmem:[#allocation11_spill] sm:$0xff] }
 0x2de   : > { %v2836_v27 = vpop.permute.xlu0 %2835  ;;  %v2831_v43 = vpop.permute.xlu1 %2830 }
 0x2df   : > { %v7818_v59 = vmul.f32 %v2836_v27, %v9688_v23  ;;  %v7821_v9 = vmul.f32 %v2836_v27, %v9689_v21  ;;  %v7824_v53 = vmul.f32 %v2836_v27, %v9690_v30  ;;  %v7827_v0 = vmul.f32 %v2836_v27, %v9692_v49  ;;  %v9697_v23 = vld [vmem:[#allocation10_spill] sm:$0xff]  ;;  %v9699_v30 = vld [vmem:[#allocation12_spill] sm:$0xff] }
 0x2e0   : > { %v7830_v35 = vmul.f32 %v2836_v27, %v6926_v45  ;;  %v7833_v42 = vmul.f32 %v2836_v27, %v6933_v61  ;;  %v7836_v4 = vmul.f32 %v2836_v27, %v6938_v24  ;;  %v7839_v11 = vmul.f32 %v2831_v43, %v9697_v23  ;;  %2752 = vrot.lane.b32.xlu1 %v2657_v29, %s4916_s27  ;;  %v9701_v27 = vld [vmem:[#allocation152_spill] sm:$0xff] }
 0x2e1   : > { %9691 = vst [vmem:[#allocation145_spill] sm:$0xff] %v7824_v53  ;;  %9693 = vst [vmem:[#allocation146_spill] sm:$0xff] %v7827_v0  ;;  %v7843_v21 = vmul.f32 %v2831_v43, %v9698_v25  ;;  %v7846_v49 = vmul.f32 %v2831_v43, %v9699_v30  ;;  %v9700_v0 = vld [vmem:[#allocation13_spill] sm:$0xff]  ;;  %v7852_v61 = vmul.f32 %v2831_v43, %v6906_v48  ;;  %4839 = vset.pattern.permute.xlu0 %v9687_v7 }
 0x2e2   : > { %9694 = vst [vmem:[#allocation148_spill] sm:$0xff] %v7830_v35  ;;  %9695 = vst [vmem:[#allocation14_spill] sm:$0xff] %v7833_v42  ;;  %v7849_v45 = vmul.f32 %v2831_v43, %v9700_v0  ;;  %v7856_v24 = vmul.f32 %v2831_v43, %v6914_v40  ;;  %v7859_v23 = vmul.f32 %v2831_v43, %v9701_v27  ;;  %v2699_v29 = vpop.permute.xlu0 %2698  ;;  %2975 = vperm.xlu0 %4839, %v2625_v46   ;;  %v2695_v25 = vpop.permute.xlu1 %2694  ;;  %v9702_v42 = vld [vmem:[#allocation22_spill] sm:$0xff]  ;;  %v9703_v40 = vld [vmem:[#allocation23_spill] sm:$0xff] }
 0x2e3   : > { %9696 = vst [vmem:[#allocation15_spill] sm:$0xff] %v7836_v4  ;;  %4840 = vset.pattern.permute.xlu1 %v4917_v33  ;;  %v2788_v30 = vsub.f32 %v7531_v32, %v2695_v25  ;;  %v2790_v0 = vsub.f32 %v7537_v3, %v2699_v29  ;;  %v9705_v43 = vld [vmem:[#allocation24_spill] sm:$0xff]  ;;  %v9707_v46 = vld [vmem:[#allocation25_spill] sm:$0xff] }
 0x2e5   : > { %3214 = vperm.xlu1 %4840, %v2788_v30  }
 0x2e6   : > { %v2846_v4 = vpop.permute.xlu0 %2845  ;;  %4841 = vset.pattern.permute.xlu0 %v4917_v33  ;;  %v2697_v48 = vpop.permute.xlu1 %2696 }
 0x2e7   : > { %v7864_v7 = vmul.f32 %v2846_v4, %v9702_v42  ;;  %v7867_v35 = vmul.f32 %v2846_v4, %v9703_v40  ;;  %v7870_v27 = vmul.f32 %v2846_v4, %v9705_v43  ;;  %v7873_v53 = vmul.f32 %v2846_v4, %v9707_v46  ;;  %3224 = vperm.xlu0 %4841, %v2790_v0   ;;  %v9712_v40 = vld [vmem:[#allocation18_spill] sm:$0xff]  ;;  %v9713_v0 = vld [vmem:[#allocation19_spill] sm:$0xff] }
 0x2e8   : > { %v7876_v32 = vmul.f32 %v2846_v4, %v6964_v31  ;;  %v7879_v3 = vmul.f32 %v2846_v4, %v6971_v52  ;;  %v7882_v33 = vmul.f32 %v2846_v4, %v6976_v5  ;;  %v2789_v42 = vsub.f32 %v7528_v34, %v2697_v48  ;;  %v9714_v31 = vld [vmem:[#allocation20_spill] sm:$0xff]  ;;  %v9715_v52 = vld [vmem:[#allocation21_spill] sm:$0xff]  ;;  %v9717_v48 = vld [vmem:[#allocation154_spill] sm:$0xff] }
 0x2e9   : > { %9704 = vst [vmem:[#allocation16_spill] sm:$0xff] %v7867_v35  ;;  %9706 = vst [vmem:[#allocation17_spill] sm:$0xff] %v7870_v27  ;;  %v9716_v34 = vld [vmem:[#allocation153_spill] sm:$0xff] }
 0x2ea   : > { %9708 = vst [vmem:[#allocation10_spill] sm:$0xff] %v7873_v53  ;;  %9709 = vst [vmem:[#allocation11_spill] sm:$0xff] %v7876_v32  ;;  %3219 = vperm.xlu1 %4840, %v2789_v42   ;;  %v2703_v29 = vpop.permute.xlu0 %2702  ;;  %v2841_v25 = vpop.permute.xlu1 %2840 }
 0x2eb   : > { %9710 = vst [vmem:[#allocation12_spill] sm:$0xff] %v7879_v3  ;;  %9711 = vst [vmem:[#allocation13_spill] sm:$0xff] %v7882_v33  ;;  %v2792_v30 = vsub.f32 %v7558_v51, %v2703_v29  ;;  %v7887_v43 = vmul.f32 %v2841_v25, %v9712_v40  ;;  %v7890_v46 = vmul.f32 %v2841_v25, %v9713_v0  ;;  %v9718_v40 = vld [vmem:[#allocation30_spill] sm:$0xff] }
 0x2ec   : > { %v7893_v32 = vmul.f32 %v2841_v25, %v9714_v31  ;;  %v7896_v3 = vmul.f32 %v2841_v25, %v9715_v52  ;;  %v7899_v5 = vmul.f32 %v2841_v25, %v6946_v38  ;;  %v7902_v4 = vmul.f32 %v2841_v25, %v9716_v34  ;;  %v9720_v31 = vld [vmem:[#allocation31_spill] sm:$0xff]  ;;  %v9722_v52 = vld [vmem:[#allocation32_spill] sm:$0xff]  ;;  %v9724_v38 = vld [vmem:[#allocation33_spill] sm:$0xff] }
 0x2ed   : > { %v7905_v51 = vmul.f32 %v2841_v25, %v9717_v48  ;;  %3234 = vperm.xlu0 %4841, %v2792_v30  }
 0x2ee   : > { %v2856_v42 = vpop.permute.xlu0 %2855  ;;  %v2701_v29 = vpop.permute.xlu1 %2700 }
 0x2ef   : > { %v7908_v0 = vmul.f32 %v2856_v42, %v9718_v40  ;;  %v7911_v33 = vmul.f32 %v2856_v42, %v9720_v31  ;;  %v7914_v53 = vmul.f32 %v2856_v42, %v9722_v52  ;;  %v7917_v27 = vmul.f32 %v2856_v42, %v9724_v38  ;;  %v9730_v38 = vld [vmem:[#allocation27_spill] sm:$0xff] }
 0x2f0   : > { %v7920_v34 = vmul.f32 %v2856_v42, %v7002_v20  ;;  %v7923_v25 = vmul.f32 %v2856_v42, %v7009_v60  ;;  %v7926_v30 = vmul.f32 %v2856_v42, %v7014_v56  ;;  %v2791_v48 = vsub.f32 %v7551_v62, %v2701_v29  ;;  %v9731_v20 = vld [vmem:[#allocation28_spill] sm:$0xff]  ;;  %v9732_v60 = vld [vmem:[#allocation29_spill] sm:$0xff]  ;;  %v9733_v62 = vld [vmem:[#allocation155_spill] sm:$0xff] }
 0x2f1   : > { %9719 = vst [vmem:[#allocation152_spill] sm:$0xff] %v7908_v0  ;;  %9721 = vst [vmem:[#allocation22_spill] sm:$0xff] %v7911_v33  ;;  %v9734_v29 = vld [vmem:[#allocation156_spill] sm:$0xff] }
 0x2f2   : > { %9723 = vst [vmem:[#allocation23_spill] sm:$0xff] %v7914_v53  ;;  %9725 = vst [vmem:[#allocation24_spill] sm:$0xff] %v7917_v27  ;;  %3229 = vperm.xlu1 %4840, %v2791_v48   ;;  %v2707_v40 = vpop.permute.xlu0 %2706  ;;  %v2851_v31 = vpop.permute.xlu1 %2850  ;;  %v9729_v53 = vld [vmem:[#allocation26_spill] sm:$0xff] }
 0x2f3   : > { %9726 = vst [vmem:[#allocation25_spill] sm:$0xff] %v7920_v34  ;;  %9727 = vst [vmem:[#allocation18_spill] sm:$0xff] %v7923_v25  ;;  %v2794_v52 = vsub.f32 %v7578_v36, %v2707_v40  ;;  %v7931_v33 = vmul.f32 %v2851_v31, %v9729_v53  ;;  %v7934_v27 = vmul.f32 %v2851_v31, %v9730_v38  ;;  %v9735_v40 = vld [vmem:[#allocation38_spill] sm:$0xff] }
 0x2f4   : > { %9728 = vst [vmem:[#allocation19_spill] sm:$0xff] %v7926_v30  ;;  %v7937_v34 = vmul.f32 %v2851_v31, %v9731_v20  ;;  %v7940_v25 = vmul.f32 %v2851_v31, %v9732_v60  ;;  %v7943_v56 = vmul.f32 %v2851_v31, %v6984_v14  ;;  %v7946_v42 = vmul.f32 %v2851_v31, %v9733_v62  ;;  %v9737_v20 = vld [vmem:[#allocation39_spill] sm:$0xff]  ;;  %v9739_v60 = vld [vmem:[#allocation40_spill] sm:$0xff]  ;;  %v9741_v14 = vld [vmem:[#allocation41_spill] sm:$0xff] }
 0x2f5   : > { %v7949_v36 = vmul.f32 %v2851_v31, %v9734_v29  ;;  %3244 = vperm.xlu0 %4841, %v2794_v52  }
 0x2f6   : > { %v2866_v53 = vpop.permute.xlu0 %2865  ;;  %v2705_v48 = vpop.permute.xlu1 %2704 }
 0x2f7   : > { %v7952_v38 = vmul.f32 %v2866_v53, %v9735_v40  ;;  %v7955_v30 = vmul.f32 %v2866_v53, %v9737_v20  ;;  %v7958_v0 = vmul.f32 %v2866_v53, %v9739_v60  ;;  %v7961_v35 = vmul.f32 %v2866_v53, %v9741_v14  ;;  %v9747_v14 = vld [vmem:[#allocation35_spill] sm:$0xff] }
 0x2f8   : > { %v7964_v62 = vmul.f32 %v2866_v53, %v7040_v6  ;;  %v7967_v31 = vmul.f32 %v2866_v53, %v7047_v10  ;;  %v7970_v52 = vmul.f32 %v2866_v53, %v7052_v41  ;;  %v2793_v29 = vsub.f32 %v7572_v26, %v2705_v48  ;;  %v9748_v6 = vld [vmem:[#allocation36_spill] sm:$0xff]  ;;  %v9749_v10 = vld [vmem:[#allocation37_spill] sm:$0xff]  ;;  %v9752_v48 = vld [vmem:[#allocation158_spill] sm:$0xff] }
 0x2f9   : > { %9736 = vst [vmem:[#allocation20_spill] sm:$0xff] %v7952_v38  ;;  %9738 = vst [vmem:[#allocation21_spill] sm:$0xff] %v7955_v30  ;;  %v9751_v26 = vld [vmem:[#allocation157_spill] sm:$0xff] }
 0x2fa   : > { %9740 = vst [vmem:[#allocation153_spill] sm:$0xff] %v7958_v0  ;;  %9742 = vst [vmem:[#allocation154_spill] sm:$0xff] %v7961_v35  ;;  %3239 = vperm.xlu1 %4840, %v2793_v29   ;;  %v2711_v40 = vpop.permute.xlu0 %2710  ;;  %v2861_v20 = vpop.permute.xlu1 %2860  ;;  %v9746_v0 = vld [vmem:[#allocation34_spill] sm:$0xff] }
 0x2fb   : > { %9743 = vst [vmem:[#allocation30_spill] sm:$0xff] %v7964_v62  ;;  %9744 = vst [vmem:[#allocation31_spill] sm:$0xff] %v7967_v31  ;;  %v2796_v60 = vsub.f32 %v7598_v37, %v2711_v40  ;;  %v7975_v30 = vmul.f32 %v2861_v20, %v9746_v0  ;;  %v7978_v35 = vmul.f32 %v2861_v20, %v9747_v14  ;;  %v9753_v40 = vld [vmem:[#allocation46_spill] sm:$0xff] }
 0x2fc   : > { %9745 = vst [vmem:[#allocation32_spill] sm:$0xff] %v7970_v52  ;;  %v7981_v62 = vmul.f32 %v2861_v20, %v9748_v6  ;;  %v7984_v31 = vmul.f32 %v2861_v20, %v9749_v10  ;;  %v7987_v41 = vmul.f32 %v2861_v20, %v7022_v54  ;;  %v7990_v53 = vmul.f32 %v2861_v20, %v9751_v26  ;;  %v9755_v6 = vld [vmem:[#allocation47_spill] sm:$0xff]  ;;  %v9757_v10 = vld [vmem:[#allocation48_spill] sm:$0xff]  ;;  %v9759_v54 = vld [vmem:[#allocation49_spill] sm:$0xff] }
 0x2fd   : > { %v7993_v37 = vmul.f32 %v2861_v20, %v9752_v48  ;;  %3254 = vperm.xlu0 %4841, %v2796_v60  }
 0x2fe   : > { %9750 = vst [vmem:[#allocation33_spill] sm:$0xff] %v7987_v41  ;;  %v2876_v0 = vpop.permute.xlu0 %2875  ;;  %v2709_v29 = vpop.permute.xlu1 %2708 }
 0x2ff   : > { %v7996_v14 = vmul.f32 %v2876_v0, %v9753_v40  ;;  %v7999_v52 = vmul.f32 %v2876_v0, %v9755_v6  ;;  %v8002_v38 = vmul.f32 %v2876_v0, %v9757_v10  ;;  %v8005_v41 = vmul.f32 %v2876_v0, %v9759_v54  ;;  %v9766_v54 = vld [vmem:[#allocation43_spill] sm:$0xff] }
 0x300   : > { %v8008_v26 = vmul.f32 %v2876_v0, %v7078_v8  ;;  %v8011_v20 = vmul.f32 %v2876_v0, %v7085_v17  ;;  %v8014_v60 = vmul.f32 %v2876_v0, %v7090_v58  ;;  %v2795_v48 = vsub.f32 %v7592_v39, %v2709_v29  ;;  %v9768_v8 = vld [vmem:[#allocation44_spill] sm:$0xff]  ;;  %v9770_v17 = vld [vmem:[#allocation45_spill] sm:$0xff]  ;;  %v9774_v0 = vld [vmem:[#allocation159_spill] sm:$0xff] }
 0x301   : > { %9754 = vst [vmem:[#allocation26_spill] sm:$0xff] %v7996_v14  ;;  %9756 = vst [vmem:[#allocation27_spill] sm:$0xff] %v7999_v52 }
 0x302   : > { %9758 = vst [vmem:[#allocation28_spill] sm:$0xff] %v8002_v38  ;;  %9760 = vst [vmem:[#allocation29_spill] sm:$0xff] %v8005_v41  ;;  %3249 = vperm.xlu1 %4840, %v2795_v48   ;;  %v2715_v40 = vpop.permute.xlu0 %2714  ;;  %v2871_v6 = vpop.permute.xlu1 %2870  ;;  %v9764_v38 = vld [vmem:[#allocation42_spill] sm:$0xff] }
 0x303   : > { %9761 = vst [vmem:[#allocation155_spill] sm:$0xff] %v8008_v26  ;;  %9762 = vst [vmem:[#allocation156_spill] sm:$0xff] %v8011_v20  ;;  %v2798_v10 = vsub.f32 %v7618_v22, %v2715_v40  ;;  %v8019_v52 = vmul.f32 %v2871_v6, %v9764_v38  ;;  %v8022_v41 = vmul.f32 %v2871_v6, %v9766_v54  ;;  %v9776_v48 = vld [vmem:[#allocation54_spill] sm:$0xff]  ;;  %v9778_v54 = vld [vmem:[#allocation55_spill] sm:$0xff] }
 0x304   : > { %9763 = vst [vmem:[#allocation38_spill] sm:$0xff] %v8014_v60  ;;  %v8025_v26 = vmul.f32 %v2871_v6, %v9768_v8  ;;  %v8028_v20 = vmul.f32 %v2871_v6, %v9770_v17  ;;  %v8031_v58 = vmul.f32 %v2871_v6, %v7060_v12  ;;  %v8034_v39 = vmul.f32 %v2871_v6, %v7066_v50  ;;  %v9780_v17 = vld [vmem:[#allocation56_spill] sm:$0xff]  ;;  %v9782_v12 = vld [vmem:[#allocation57_spill] sm:$0xff] }
 0x305   : > { %9765 = vst [vmem:[#allocation39_spill] sm:$0xff] %v8019_v52  ;;  %9767 = vst [vmem:[#allocation40_spill] sm:$0xff] %v8022_v41  ;;  %v8037_v22 = vmul.f32 %v2871_v6, %v9774_v0  ;;  %3264 = vperm.xlu0 %4841, %v2798_v10   ;;  %v9786_v10 = vld [vmem:[#allocation163_spill] sm:$0xff] }
 0x306   : > { %9769 = vst [vmem:[#allocation41_spill] sm:$0xff] %v8025_v26  ;;  %9771 = vst [vmem:[#allocation34_spill] sm:$0xff] %v8028_v20  ;;  %v2886_v38 = vpop.permute.xlu0 %2885  ;;  %v2713_v29 = vpop.permute.xlu1 %2712  ;;  %v10048_v20 = vld [vmem:[#allocation150_spill] sm:$0xff] }
 0x307   : > { %9772 = vst [vmem:[#allocation35_spill] sm:$0xff] %v8031_v58  ;;  %9773 = vst [vmem:[#allocation36_spill] sm:$0xff] %v8034_v39  ;;  %v8040_v40 = vmul.f32 %v2886_v38, %v9776_v48  ;;  %v8043_v8 = vmul.f32 %v2886_v38, %v9778_v54  ;;  %v8046_v60 = vmul.f32 %v2886_v38, %v9780_v17  ;;  %v9788_v48 = vld [vmem:[#allocation202_spill] sm:$0xff] }
 0x308   : > { %9775 = vst [vmem:[#allocation37_spill] sm:$0xff] %v8037_v22  ;;  %v8049_v14 = vmul.f32 %v2886_v38, %v9782_v12  ;;  %v8052_v50 = vmul.f32 %v2886_v38, %v7118_v28  ;;  %v8055_v6 = vmul.f32 %v2886_v38, %v7125_v15  ;;  %v8058_v0 = vmul.f32 %v2886_v38, %v9786_v10  ;;  %v9789_v22 = vld [vmem:[#allocation204_spill] sm:$0xff]  ;;  %v9792_v12 = vld [vmem:[#allocation51_spill] sm:$0xff]  ;;  %v9796_v15 = vld [vmem:[#allocation53_spill] sm:$0xff] }
 0x309   : > { %9777 = vst [vmem:[#allocation157_spill] sm:$0xff] %v8040_v40  ;;  %9779 = vst [vmem:[#allocation158_spill] sm:$0xff] %v8043_v8  ;;  %v2797_v40 = vsub.f32 %v9788_v48, %v2713_v29  ;;  %v9794_v28 = vld [vmem:[#allocation52_spill] sm:$0xff]  ;;  %v9800_v29 = vld [vmem:[#allocation161_spill] sm:$0xff] }
 0x30a   : > { %9781 = vst [vmem:[#allocation46_spill] sm:$0xff] %v8046_v60  ;;  %9783 = vst [vmem:[#allocation47_spill] sm:$0xff] %v8049_v14  ;;  %v2719_v54 = vpop.permute.xlu0 %2718  ;;  %v2881_v8 = vpop.permute.xlu1 %2880  ;;  %v9790_v60 = vld [vmem:[#allocation50_spill] sm:$0xff]  ;;  %v9798_v38 = vld [vmem:[#allocation160_spill] sm:$0xff] }
 0x30b   : > { %9784 = vst [vmem:[#allocation48_spill] sm:$0xff] %v8052_v50  ;;  %9785 = vst [vmem:[#allocation49_spill] sm:$0xff] %v8055_v6  ;;  %3259 = vperm.xlu1 %4840, %v2797_v40   ;;  %v2800_v17 = vsub.f32 %v9789_v22, %v2719_v54  ;;  %v8063_v39 = vmul.f32 %v2881_v8, %v9790_v60  ;;  %v8066_v14 = vmul.f32 %v2881_v8, %v9792_v12  ;;  %v9802_v48 = vld [vmem:[#allocation162_spill] sm:$0xff] }
 0x30c   : > { %9787 = vst [vmem:[#allocation42_spill] sm:$0xff] %v8058_v0  ;;  %v8069_v50 = vmul.f32 %v2881_v8, %v9794_v28  ;;  %v8072_v6 = vmul.f32 %v2881_v8, %v9796_v15  ;;  %v8075_v10 = vmul.f32 %v2881_v8, %v9798_v38  ;;  %v8078_v40 = vmul.f32 %v2881_v8, %v9800_v29  ;;  %v9804_v12 = vld [vmem:[#allocation62_spill] sm:$0xff]  ;;  %v9806_v28 = vld [vmem:[#allocation63_spill] sm:$0xff]  ;;  %v9808_v15 = vld [vmem:[#allocation64_spill] sm:$0xff] }
 0x30d   : > { %9791 = vst [vmem:[#allocation43_spill] sm:$0xff] %v8063_v39  ;;  %9793 = vst [vmem:[#allocation44_spill] sm:$0xff] %v8066_v14  ;;  %v8081_v22 = vmul.f32 %v2881_v8, %v9802_v48  ;;  %3274 = vperm.xlu0 %4841, %v2800_v17   ;;  %v9810_v38 = vld [vmem:[#allocation65_spill] sm:$0xff]  ;;  %v9812_v29 = vld [vmem:[#allocation167_spill] sm:$0xff] }
 0x30e   : > { %9795 = vst [vmem:[#allocation45_spill] sm:$0xff] %v8069_v50  ;;  %9797 = vst [vmem:[#allocation159_spill] sm:$0xff] %v8072_v6  ;;  %v2896_v60 = vpop.permute.xlu0 %2895  ;;  %v2717_v54 = vpop.permute.xlu1 %2716  ;;  %v9814_v8 = vld [vmem:[#allocation168_spill] sm:$0xff]  ;;  %v9816_v17 = vld [vmem:[#allocation169_spill] sm:$0xff] }
 0x30f   : > { %9799 = vst [vmem:[#allocation54_spill] sm:$0xff] %v8075_v10  ;;  %9801 = vst [vmem:[#allocation55_spill] sm:$0xff] %v8078_v40  ;;  %v8084_v0 = vmul.f32 %v2896_v60, %v9804_v12  ;;  %v8087_v50 = vmul.f32 %v2896_v60, %v9806_v28  ;;  %v8090_v6 = vmul.f32 %v2896_v60, %v9808_v15  ;;  %v9818_v12 = vld [vmem:[#allocation203_spill] sm:$0xff]  ;;  %v9819_v14 = vld [vmem:[#allocation206_spill] sm:$0xff] }
 0x310   : > { %9803 = vst [vmem:[#allocation56_spill] sm:$0xff] %v8081_v22  ;;  %v8093_v10 = vmul.f32 %v2896_v60, %v9810_v38  ;;  %v8096_v40 = vmul.f32 %v2896_v60, %v9812_v29  ;;  %v8099_v48 = vmul.f32 %v2896_v60, %v9814_v8  ;;  %v8102_v22 = vmul.f32 %v2896_v60, %v9816_v17  ;;  %v9822_v38 = vld [vmem:[#allocation59_spill] sm:$0xff]  ;;  %v9824_v29 = vld [vmem:[#allocation60_spill] sm:$0xff]  ;;  %v9826_v8 = vld [vmem:[#allocation61_spill] sm:$0xff] }
 0x311   : > { %9805 = vst [vmem:[#allocation57_spill] sm:$0xff] %v8084_v0  ;;  %9807 = vst [vmem:[#allocation163_spill] sm:$0xff] %v8087_v50  ;;  %v2799_v0 = vsub.f32 %v9818_v12, %v2717_v54  ;;  %v9828_v60 = vld [vmem:[#allocation164_spill] sm:$0xff]  ;;  %v9832_v12 = vld [vmem:[#allocation166_spill] sm:$0xff] }
 0x312   : > { %9809 = vst [vmem:[#allocation202_spill] sm:$0xff] %v8090_v6  ;;  %9811 = vst [vmem:[#allocation204_spill] sm:$0xff] %v8093_v10  ;;  %v2723_v28 = vpop.permute.xlu0 %2722  ;;  %v2891_v50 = vpop.permute.xlu1 %2890  ;;  %v9820_v6 = vld [vmem:[#allocation58_spill] sm:$0xff] }
 0x313   : > { %9813 = vst [vmem:[#allocation50_spill] sm:$0xff] %v8096_v40  ;;  %9815 = vst [vmem:[#allocation51_spill] sm:$0xff] %v8099_v48  ;;  %3269 = vperm.xlu1 %4840, %v2799_v0   ;;  %v2802_v15 = vsub.f32 %v9819_v14, %v2723_v28  ;;  %v8107_v39 = vmul.f32 %v2891_v50, %v9820_v6  ;;  %v8110_v10 = vmul.f32 %v2891_v50, %v9822_v38  ;;  %v9830_v0 = vld [vmem:[#allocation165_spill] sm:$0xff]  ;;  %v9834_v38 = vld [vmem:[#allocation70_spill] sm:$0xff] }
 0x314   : > { %9817 = vst [vmem:[#allocation52_spill] sm:$0xff] %v8102_v22  ;;  %v8113_v40 = vmul.f32 %v2891_v50, %v9824_v29  ;;  %v8116_v48 = vmul.f32 %v2891_v50, %v9826_v8  ;;  %v8119_v17 = vmul.f32 %v2891_v50, %v9828_v60  ;;  %v8122_v54 = vmul.f32 %v2891_v50, %v9830_v0  ;;  %v9836_v29 = vld [vmem:[#allocation71_spill] sm:$0xff]  ;;  %v9838_v8 = vld [vmem:[#allocation72_spill] sm:$0xff]  ;;  %v9840_v60 = vld [vmem:[#allocation73_spill] sm:$0xff] }
 0x315   : > { %9821 = vst [vmem:[#allocation53_spill] sm:$0xff] %v8107_v39  ;;  %9823 = vst [vmem:[#allocation160_spill] sm:$0xff] %v8110_v10  ;;  %v8125_v14 = vmul.f32 %v2891_v50, %v9832_v12  ;;  %3284 = vperm.xlu0 %4841, %v2802_v15   ;;  %v9842_v0 = vld [vmem:[#allocation173_spill] sm:$0xff]  ;;  %v9844_v50 = vld [vmem:[#allocation174_spill] sm:$0xff] }
 0x316   : > { %9825 = vst [vmem:[#allocation161_spill] sm:$0xff] %v8113_v40  ;;  %9827 = vst [vmem:[#allocation162_spill] sm:$0xff] %v8116_v48  ;;  %v2906_v6 = vpop.permute.xlu0 %2905  ;;  %v2721_v28 = vpop.permute.xlu1 %2720  ;;  %v9846_v15 = vld [vmem:[#allocation175_spill] sm:$0xff]  ;;  %v9849_v10 = vld [vmem:[#allocation208_spill] sm:$0xff] }
 0x317   : > { %9829 = vst [vmem:[#allocation62_spill] sm:$0xff] %v8119_v17  ;;  %9831 = vst [vmem:[#allocation63_spill] sm:$0xff] %v8122_v54  ;;  %v8128_v22 = vmul.f32 %v2906_v6, %v9834_v38  ;;  %v8131_v40 = vmul.f32 %v2906_v6, %v9836_v29  ;;  %v8134_v48 = vmul.f32 %v2906_v6, %v9838_v8  ;;  %v9848_v38 = vld [vmem:[#allocation205_spill] sm:$0xff] }
 0x318   : > { %9833 = vst [vmem:[#allocation64_spill] sm:$0xff] %v8125_v14  ;;  %v8137_v17 = vmul.f32 %v2906_v6, %v9840_v60  ;;  %v8140_v54 = vmul.f32 %v2906_v6, %v9842_v0  ;;  %v8143_v12 = vmul.f32 %v2906_v6, %v9844_v50  ;;  %v8146_v14 = vmul.f32 %v2906_v6, %v9846_v15  ;;  %v9852_v60 = vld [vmem:[#allocation67_spill] sm:$0xff]  ;;  %v9854_v0 = vld [vmem:[#allocation68_spill] sm:$0xff]  ;;  %v9856_v50 = vld [vmem:[#allocation69_spill] sm:$0xff] }
 0x319   : > { %9835 = vst [vmem:[#allocation65_spill] sm:$0xff] %v8128_v22  ;;  %9837 = vst [vmem:[#allocation167_spill] sm:$0xff] %v8131_v40  ;;  %v2801_v22 = vsub.f32 %v9848_v38, %v2721_v28  ;;  %v9858_v6 = vld [vmem:[#allocation170_spill] sm:$0xff]  ;;  %v9862_v38 = vld [vmem:[#allocation172_spill] sm:$0xff] }
 0x31a   : > { %9839 = vst [vmem:[#allocation168_spill] sm:$0xff] %v8134_v48  ;;  %9841 = vst [vmem:[#allocation169_spill] sm:$0xff] %v8137_v17  ;;  %v2727_v29 = vpop.permute.xlu0 %2726  ;;  %v2901_v40 = vpop.permute.xlu1 %2900  ;;  %v9850_v48 = vld [vmem:[#allocation66_spill] sm:$0xff] }
 0x31b   : > { %9843 = vst [vmem:[#allocation203_spill] sm:$0xff] %v8140_v54  ;;  %9845 = vst [vmem:[#allocation206_spill] sm:$0xff] %v8143_v12  ;;  %3279 = vperm.xlu1 %4840, %v2801_v22   ;;  %v2804_v8 = vsub.f32 %v9849_v10, %v2727_v29  ;;  %v8151_v39 = vmul.f32 %v2901_v40, %v9850_v48  ;;  %v8154_v17 = vmul.f32 %v2901_v40, %v9852_v60  ;;  %v9860_v22 = vld [vmem:[#allocation171_spill] sm:$0xff]  ;;  %v9864_v60 = vld [vmem:[#allocation78_spill] sm:$0xff] }
 0x31c   : > { %9847 = vst [vmem:[#allocation58_spill] sm:$0xff] %v8146_v14  ;;  %v8157_v54 = vmul.f32 %v2901_v40, %v9854_v0  ;;  %v8160_v12 = vmul.f32 %v2901_v40, %v9856_v50  ;;  %v8163_v15 = vmul.f32 %v2901_v40, %v9858_v6  ;;  %v8166_v28 = vmul.f32 %v2901_v40, %v9860_v22  ;;  %v9866_v0 = vld [vmem:[#allocation79_spill] sm:$0xff]  ;;  %v9868_v50 = vld [vmem:[#allocation80_spill] sm:$0xff]  ;;  %v9870_v6 = vld [vmem:[#allocation81_spill] sm:$0xff] }
 0x31d   : > { %9851 = vst [vmem:[#allocation59_spill] sm:$0xff] %v8151_v39  ;;  %9853 = vst [vmem:[#allocation60_spill] sm:$0xff] %v8154_v17  ;;  %v8169_v10 = vmul.f32 %v2901_v40, %v9862_v38  ;;  %3294 = vperm.xlu0 %4841, %v2804_v8   ;;  %v9872_v22 = vld [vmem:[#allocation179_spill] sm:$0xff]  ;;  %v9874_v40 = vld [vmem:[#allocation180_spill] sm:$0xff] }
 0x31e   : > { %9855 = vst [vmem:[#allocation61_spill] sm:$0xff] %v8157_v54  ;;  %9857 = vst [vmem:[#allocation164_spill] sm:$0xff] %v8160_v12  ;;  %v2916_v48 = vpop.permute.xlu0 %2915  ;;  %v2725_v29 = vpop.permute.xlu1 %2724  ;;  %v9876_v8 = vld [vmem:[#allocation181_spill] sm:$0xff]  ;;  %v9879_v17 = vld [vmem:[#allocation210_spill] sm:$0xff] }
 0x31f   : > { %9859 = vst [vmem:[#allocation165_spill] sm:$0xff] %v8163_v15  ;;  %9861 = vst [vmem:[#allocation166_spill] sm:$0xff] %v8166_v28  ;;  %v8172_v14 = vmul.f32 %v2916_v48, %v9864_v60  ;;  %v8175_v54 = vmul.f32 %v2916_v48, %v9866_v0  ;;  %v8178_v12 = vmul.f32 %v2916_v48, %v9868_v50  ;;  %v9878_v60 = vld [vmem:[#allocation207_spill] sm:$0xff] }
 0x320   : > { %9863 = vst [vmem:[#allocation70_spill] sm:$0xff] %v8169_v10  ;;  %v8181_v15 = vmul.f32 %v2916_v48, %v9870_v6  ;;  %v8184_v28 = vmul.f32 %v2916_v48, %v9872_v22  ;;  %v8187_v38 = vmul.f32 %v2916_v48, %v9874_v40  ;;  %v8190_v10 = vmul.f32 %v2916_v48, %v9876_v8  ;;  %v9882_v6 = vld [vmem:[#allocation75_spill] sm:$0xff]  ;;  %v9884_v22 = vld [vmem:[#allocation76_spill] sm:$0xff]  ;;  %v9886_v40 = vld [vmem:[#allocation77_spill] sm:$0xff] }
 0x321   : > { %9865 = vst [vmem:[#allocation71_spill] sm:$0xff] %v8172_v14  ;;  %9867 = vst [vmem:[#allocation72_spill] sm:$0xff] %v8175_v54  ;;  %v2803_v14 = vsub.f32 %v9878_v60, %v2725_v29  ;;  %v9888_v48 = vld [vmem:[#allocation176_spill] sm:$0xff]  ;;  %v9892_v60 = vld [vmem:[#allocation178_spill] sm:$0xff] }
 0x322   : > { %9869 = vst [vmem:[#allocation73_spill] sm:$0xff] %v8178_v12  ;;  %9871 = vst [vmem:[#allocation173_spill] sm:$0xff] %v8181_v15  ;;  %v2731_v0 = vpop.permute.xlu0 %2730  ;;  %v2911_v54 = vpop.permute.xlu1 %2910  ;;  %v9880_v12 = vld [vmem:[#allocation74_spill] sm:$0xff] }
 0x323   : > { %9873 = vst [vmem:[#allocation174_spill] sm:$0xff] %v8184_v28  ;;  %9875 = vst [vmem:[#allocation175_spill] sm:$0xff] %v8187_v38  ;;  %3289 = vperm.xlu1 %4840, %v2803_v14   ;;  %v2806_v50 = vsub.f32 %v9879_v17, %v2731_v0  ;;  %v8195_v39 = vmul.f32 %v2911_v54, %v9880_v12  ;;  %v8198_v15 = vmul.f32 %v2911_v54, %v9882_v6  ;;  %v9890_v14 = vld [vmem:[#allocation177_spill] sm:$0xff]  ;;  %v9894_v6 = vld [vmem:[#allocation86_spill] sm:$0xff] }
 0x324   : > { %9877 = vst [vmem:[#allocation205_spill] sm:$0xff] %v8190_v10  ;;  %v8201_v28 = vmul.f32 %v2911_v54, %v9884_v22  ;;  %v8204_v38 = vmul.f32 %v2911_v54, %v9886_v40  ;;  %v8207_v8 = vmul.f32 %v2911_v54, %v9888_v48  ;;  %v8210_v29 = vmul.f32 %v2911_v54, %v9890_v14  ;;  %v9896_v22 = vld [vmem:[#allocation87_spill] sm:$0xff]  ;;  %v9898_v40 = vld [vmem:[#allocation88_spill] sm:$0xff]  ;;  %v9900_v48 = vld [vmem:[#allocation89_spill] sm:$0xff] }
 0x325   : > { %9881 = vst [vmem:[#allocation208_spill] sm:$0xff] %v8195_v39  ;;  %9883 = vst [vmem:[#allocation66_spill] sm:$0xff] %v8198_v15  ;;  %v8213_v17 = vmul.f32 %v2911_v54, %v9892_v60  ;;  %3304 = vperm.xlu0 %4841, %v2806_v50   ;;  %v9902_v14 = vld [vmem:[#allocation185_spill] sm:$0xff]  ;;  %v9904_v54 = vld [vmem:[#allocation186_spill] sm:$0xff] }
 0x326   : > { %9885 = vst [vmem:[#allocation67_spill] sm:$0xff] %v8201_v28  ;;  %9887 = vst [vmem:[#allocation68_spill] sm:$0xff] %v8204_v38  ;;  %v2926_v12 = vpop.permute.xlu0 %2925  ;;  %v2729_v0 = vpop.permute.xlu1 %2728  ;;  %v9906_v50 = vld [vmem:[#allocation187_spill] sm:$0xff]  ;;  %v9909_v15 = vld [vmem:[#allocation212_spill] sm:$0xff] }
 0x327   : > { %9889 = vst [vmem:[#allocation69_spill] sm:$0xff] %v8207_v8  ;;  %9891 = vst [vmem:[#allocation170_spill] sm:$0xff] %v8210_v29  ;;  %v8216_v10 = vmul.f32 %v2926_v12, %v9894_v6  ;;  %v8219_v28 = vmul.f32 %v2926_v12, %v9896_v22  ;;  %v8222_v38 = vmul.f32 %v2926_v12, %v9898_v40  ;;  %v9908_v6 = vld [vmem:[#allocation209_spill] sm:$0xff] }
 0x328   : > { %9893 = vst [vmem:[#allocation171_spill] sm:$0xff] %v8213_v17  ;;  %v8225_v8 = vmul.f32 %v2926_v12, %v9900_v48  ;;  %v8228_v29 = vmul.f32 %v2926_v12, %v9902_v14  ;;  %v8231_v60 = vmul.f32 %v2926_v12, %v9904_v54  ;;  %v8234_v17 = vmul.f32 %v2926_v12, %v9906_v50  ;;  %v9912_v48 = vld [vmem:[#allocation83_spill] sm:$0xff]  ;;  %v9914_v14 = vld [vmem:[#allocation84_spill] sm:$0xff]  ;;  %v9916_v54 = vld [vmem:[#allocation85_spill] sm:$0xff] }
 0x329   : > { %9895 = vst [vmem:[#allocation172_spill] sm:$0xff] %v8216_v10  ;;  %9897 = vst [vmem:[#allocation78_spill] sm:$0xff] %v8219_v28  ;;  %v2805_v10 = vsub.f32 %v9908_v6, %v2729_v0  ;;  %v9918_v12 = vld [vmem:[#allocation182_spill] sm:$0xff]  ;;  %v9922_v6 = vld [vmem:[#allocation184_spill] sm:$0xff] }
 0x32a   : > { %9899 = vst [vmem:[#allocation79_spill] sm:$0xff] %v8222_v38  ;;  %9901 = vst [vmem:[#allocation80_spill] sm:$0xff] %v8225_v8  ;;  %v2735_v22 = vpop.permute.xlu0 %2734  ;;  %v2921_v28 = vpop.permute.xlu1 %2920  ;;  %v9910_v38 = vld [vmem:[#allocation82_spill] sm:$0xff] }
 0x32b   : > { %9903 = vst [vmem:[#allocation81_spill] sm:$0xff] %v8228_v29  ;;  %9905 = vst [vmem:[#allocation179_spill] sm:$0xff] %v8231_v60  ;;  %3299 = vperm.xlu1 %4840, %v2805_v10   ;;  %v2808_v40 = vsub.f32 %v9909_v15, %v2735_v22  ;;  %v8239_v39 = vmul.f32 %v2921_v28, %v9910_v38  ;;  %v8242_v8 = vmul.f32 %v2921_v28, %v9912_v48  ;;  %v9920_v10 = vld [vmem:[#allocation183_spill] sm:$0xff]  ;;  %v9924_v48 = vld [vmem:[#allocation94_spill] sm:$0xff] }
 0x32c   : > { %9907 = vst [vmem:[#allocation180_spill] sm:$0xff] %v8234_v17  ;;  %v8245_v29 = vmul.f32 %v2921_v28, %v9914_v14  ;;  %v8248_v60 = vmul.f32 %v2921_v28, %v9916_v54  ;;  %v8251_v50 = vmul.f32 %v2921_v28, %v9918_v12  ;;  %v8254_v0 = vmul.f32 %v2921_v28, %v9920_v10  ;;  %v9926_v14 = vld [vmem:[#allocation95_spill] sm:$0xff]  ;;  %v9928_v54 = vld [vmem:[#allocation96_spill] sm:$0xff]  ;;  %v9930_v12 = vld [vmem:[#allocation97_spill] sm:$0xff] }
 0x32d   : > { %9911 = vst [vmem:[#allocation181_spill] sm:$0xff] %v8239_v39  ;;  %9913 = vst [vmem:[#allocation207_spill] sm:$0xff] %v8242_v8  ;;  %v8257_v15 = vmul.f32 %v2921_v28, %v9922_v6  ;;  %3314 = vperm.xlu0 %4841, %v2808_v40   ;;  %v9932_v10 = vld [vmem:[#allocation191_spill] sm:$0xff]  ;;  %v9934_v28 = vld [vmem:[#allocation192_spill] sm:$0xff] }
 0x32e   : > { %9915 = vst [vmem:[#allocation210_spill] sm:$0xff] %v8245_v29  ;;  %9917 = vst [vmem:[#allocation74_spill] sm:$0xff] %v8248_v60  ;;  %v2936_v38 = vpop.permute.xlu0 %2935  ;;  %v2733_v22 = vpop.permute.xlu1 %2732  ;;  %v9936_v40 = vld [vmem:[#allocation193_spill] sm:$0xff]  ;;  %v9939_v8 = vld [vmem:[#allocation214_spill] sm:$0xff] }
 0x32f   : > { %9919 = vst [vmem:[#allocation75_spill] sm:$0xff] %v8251_v50  ;;  %9921 = vst [vmem:[#allocation76_spill] sm:$0xff] %v8254_v0  ;;  %v8260_v17 = vmul.f32 %v2936_v38, %v9924_v48  ;;  %v8263_v29 = vmul.f32 %v2936_v38, %v9926_v14  ;;  %v8266_v60 = vmul.f32 %v2936_v38, %v9928_v54  ;;  %v9938_v48 = vld [vmem:[#allocation211_spill] sm:$0xff] }
 0x330   : > { %9923 = vst [vmem:[#allocation77_spill] sm:$0xff] %v8257_v15  ;;  %v8269_v50 = vmul.f32 %v2936_v38, %v9930_v12  ;;  %v8272_v0 = vmul.f32 %v2936_v38, %v9932_v10  ;;  %v8275_v6 = vmul.f32 %v2936_v38, %v9934_v28  ;;  %v8278_v15 = vmul.f32 %v2936_v38, %v9936_v40  ;;  %v9942_v12 = vld [vmem:[#allocation91_spill] sm:$0xff]  ;;  %v9944_v10 = vld [vmem:[#allocation92_spill] sm:$0xff]  ;;  %v9946_v28 = vld [vmem:[#allocation93_spill] sm:$0xff] }
 0x331   : > { %9925 = vst [vmem:[#allocation176_spill] sm:$0xff] %v8260_v17  ;;  %9927 = vst [vmem:[#allocation177_spill] sm:$0xff] %v8263_v29  ;;  %v2807_v17 = vsub.f32 %v9938_v48, %v2733_v22  ;;  %v9948_v38 = vld [vmem:[#allocation188_spill] sm:$0xff]  ;;  %v9952_v48 = vld [vmem:[#allocation190_spill] sm:$0xff] }
 0x332   : > { %9929 = vst [vmem:[#allocation178_spill] sm:$0xff] %v8266_v60  ;;  %9931 = vst [vmem:[#allocation86_spill] sm:$0xff] %v8269_v50  ;;  %v2739_v14 = vpop.permute.xlu0 %2738  ;;  %v2931_v29 = vpop.permute.xlu1 %2930  ;;  %v9940_v60 = vld [vmem:[#allocation90_spill] sm:$0xff] }
 0x333   : > { %9933 = vst [vmem:[#allocation87_spill] sm:$0xff] %v8272_v0  ;;  %9935 = vst [vmem:[#allocation88_spill] sm:$0xff] %v8275_v6  ;;  %3309 = vperm.xlu1 %4840, %v2807_v17   ;;  %v2810_v54 = vsub.f32 %v9939_v8, %v2739_v14  ;;  %v8283_v39 = vmul.f32 %v2931_v29, %v9940_v60  ;;  %v8286_v50 = vmul.f32 %v2931_v29, %v9942_v12  ;;  %v9950_v17 = vld [vmem:[#allocation189_spill] sm:$0xff]  ;;  %v9954_v12 = vld [vmem:[#allocation103_spill] sm:$0xff] }
 0x334   : > { %9937 = vst [vmem:[#allocation89_spill] sm:$0xff] %v8278_v15  ;;  %v8289_v0 = vmul.f32 %v2931_v29, %v9944_v10  ;;  %v8292_v6 = vmul.f32 %v2931_v29, %v9946_v28  ;;  %v8295_v40 = vmul.f32 %v2931_v29, %v9948_v38  ;;  %v8298_v22 = vmul.f32 %v2931_v29, %v9950_v17  ;;  %v9956_v10 = vld [vmem:[#allocation104_spill] sm:$0xff]  ;;  %v9958_v28 = vld [vmem:[#allocation106_spill] sm:$0xff]  ;;  %v9960_v38 = vld [vmem:[#allocation107_spill] sm:$0xff] }
 0x335   : > { %9941 = vst [vmem:[#allocation185_spill] sm:$0xff] %v8283_v39  ;;  %9943 = vst [vmem:[#allocation186_spill] sm:$0xff] %v8286_v50  ;;  %v8301_v8 = vmul.f32 %v2931_v29, %v9952_v48  ;;  %3324 = vperm.xlu0 %4841, %v2810_v54   ;;  %v9962_v17 = vld [vmem:[#allocation195_spill] sm:$0xff]  ;;  %v9964_v29 = vld [vmem:[#allocation108_spill] sm:$0xff] }
 0x336   : > { %9945 = vst [vmem:[#allocation187_spill] sm:$0xff] %v8289_v0  ;;  %9947 = vst [vmem:[#allocation209_spill] sm:$0xff] %v8292_v6  ;;  %v2946_v60 = vpop.permute.xlu0 %2945  ;;  %v2737_v14 = vpop.permute.xlu1 %2736  ;;  %v9966_v54 = vld [vmem:[#allocation111_spill] sm:$0xff] }
 0x337   : > { %9949 = vst [vmem:[#allocation212_spill] sm:$0xff] %v8295_v40  ;;  %9951 = vst [vmem:[#allocation82_spill] sm:$0xff] %v8298_v22  ;;  %v8304_v15 = vmul.f32 %v2946_v60, %v9954_v12  ;;  %v8307_v0 = vmul.f32 %v2946_v60, %v9956_v10  ;;  %v8310_v6 = vmul.f32 %v2946_v60, %v9958_v28  ;;  %v9968_v12 = vld [vmem:[#allocation213_spill] sm:$0xff] }
 0x338   : > { %9953 = vst [vmem:[#allocation83_spill] sm:$0xff] %v8301_v8  ;;  %v8313_v40 = vmul.f32 %v2946_v60, %v9960_v38  ;;  %v8316_v22 = vmul.f32 %v2946_v60, %v9962_v17  ;;  %v8319_v48 = vmul.f32 %v2946_v60, %v9964_v29  ;;  %v8322_v8 = vmul.f32 %v2946_v60, %v9966_v54  ;;  %v9971_v38 = vld [vmem:[#allocation99_spill] sm:$0xff]  ;;  %v9973_v17 = vld [vmem:[#allocation100_spill] sm:$0xff]  ;;  %v9975_v29 = vld [vmem:[#allocation101_spill] sm:$0xff] }
 0x339   : > { %9955 = vst [vmem:[#allocation84_spill] sm:$0xff] %v8304_v15  ;;  %9957 = vst [vmem:[#allocation85_spill] sm:$0xff] %v8307_v0  ;;  %v2809_v15 = vsub.f32 %v9968_v12, %v2737_v14  ;;  %v9977_v60 = vld [vmem:[#allocation102_spill] sm:$0xff] }
 0x33a   : > { %9959 = vst [vmem:[#allocation182_spill] sm:$0xff] %v8310_v6  ;;  %9961 = vst [vmem:[#allocation183_spill] sm:$0xff] %v8313_v40  ;;  %v2743_v10 = vpop.permute.xlu0 %2742  ;;  %v2941_v0 = vpop.permute.xlu1 %2940  ;;  %v9969_v6 = vld [vmem:[#allocation98_spill] sm:$0xff] }
 0x33b   : > { %9963 = vst [vmem:[#allocation184_spill] sm:$0xff] %v8316_v22  ;;  %9965 = vst [vmem:[#allocation94_spill] sm:$0xff] %v8319_v48  ;;  %3319 = vperm.xlu1 %4840, %v2809_v15   ;;  %v2812_v28 = vsub.f32 %v7754_v16, %v2743_v10  ;;  %v8327_v50 = vmul.f32 %v2941_v0, %v9969_v6  ;;  %v8330_v40 = vmul.f32 %v2941_v0, %v9971_v38  ;;  %v9979_v15 = vld [vmem:[#allocation105_spill] sm:$0xff]  ;;  %v9981_v12 = vld [vmem:[#allocation194_spill] sm:$0xff] }
 0x33c   : > { %9967 = vst [vmem:[#allocation95_spill] sm:$0xff] %v8322_v8  ;;  %v8333_v22 = vmul.f32 %v2941_v0, %v9973_v17  ;;  %v8336_v48 = vmul.f32 %v2941_v0, %v9975_v29  ;;  %v8339_v54 = vmul.f32 %v2941_v0, %v9977_v60  ;;  %v8342_v14 = vmul.f32 %v2941_v0, %v9979_v15  ;;  %v9983_v38 = vld [vmem:[#allocation115_spill] sm:$0xff]  ;;  %v9985_v17 = vld [vmem:[#allocation116_spill] sm:$0xff]  ;;  %v9987_v29 = vld [vmem:[#allocation118_spill] sm:$0xff] }
 0x33d   : > { %9970 = vst [vmem:[#allocation96_spill] sm:$0xff] %v8327_v50  ;;  %9972 = vst [vmem:[#allocation97_spill] sm:$0xff] %v8330_v40  ;;  %v8345_v16 = vmul.f32 %v2941_v0, %v9981_v12  ;;  %3334 = vperm.xlu0 %4841, %v2812_v28   ;;  %v9989_v60 = vld [vmem:[#allocation119_spill] sm:$0xff]  ;;  %v9991_v15 = vld [vmem:[#allocation197_spill] sm:$0xff] }
 0x33e   : > { %9974 = vst [vmem:[#allocation191_spill] sm:$0xff] %v8333_v22  ;;  %9976 = vst [vmem:[#allocation192_spill] sm:$0xff] %v8336_v48  ;;  %v2956_v6 = vpop.permute.xlu0 %2955  ;;  %v2741_v10 = vpop.permute.xlu1 %2740  ;;  %v9993_v0 = vld [vmem:[#allocation120_spill] sm:$0xff]  ;;  %v9995_v28 = vld [vmem:[#allocation123_spill] sm:$0xff] }
 0x33f   : > { %9978 = vst [vmem:[#allocation193_spill] sm:$0xff] %v8339_v54  ;;  %9980 = vst [vmem:[#allocation211_spill] sm:$0xff] %v8342_v14  ;;  %v8348_v8 = vmul.f32 %v2956_v6, %v9983_v38  ;;  %v8351_v22 = vmul.f32 %v2956_v6, %v9985_v17  ;;  %v8354_v48 = vmul.f32 %v2956_v6, %v9987_v29  ;;  %v10045_v40 = vld [vmem:[#allocation3_spill] sm:$0xff]  ;;  %v10046_v50 = vld [vmem:[#allocation4_spill] sm:$0xff] }
 0x340   : > { %9982 = vst [vmem:[#allocation214_spill] sm:$0xff] %v8345_v16  ;;  %v8357_v54 = vmul.f32 %v2956_v6, %v9989_v60  ;;  %v8360_v14 = vmul.f32 %v2956_v6, %v9991_v15  ;;  %v8363_v12 = vmul.f32 %v2956_v6, %v9993_v0  ;;  %v8366_v16 = vmul.f32 %v2956_v6, %v9995_v28  ;;  %v9999_v60 = vld [vmem:[#allocation110_spill] sm:$0xff]  ;;  %v10001_v15 = vld [vmem:[#allocation112_spill] sm:$0xff]  ;;  %v10003_v0 = vld [vmem:[#allocation113_spill] sm:$0xff] }
 0x341   : > { %9984 = vst [vmem:[#allocation90_spill] sm:$0xff] %v8348_v8  ;;  %9986 = vst [vmem:[#allocation91_spill] sm:$0xff] %v8351_v22  ;;  %v2811_v38 = vsub.f32 %v7750_v1, %v2741_v10  ;;  %v10005_v6 = vld [vmem:[#allocation114_spill] sm:$0xff]  ;;  %v10007_v1 = vld [vmem:[#allocation117_spill] sm:$0xff] }
 0x342   : > { %9988 = vst [vmem:[#allocation92_spill] sm:$0xff] %v8354_v48  ;;  %9990 = vst [vmem:[#allocation93_spill] sm:$0xff] %v8357_v54  ;;  %v2747_v17 = vpop.permute.xlu0 %2746  ;;  %v2951_v22 = vpop.permute.xlu1 %2950  ;;  %v9997_v48 = vld [vmem:[#allocation109_spill] sm:$0xff] }
 0x343   : > { %9992 = vst [vmem:[#allocation188_spill] sm:$0xff] %v8360_v14  ;;  %9994 = vst [vmem:[#allocation189_spill] sm:$0xff] %v8363_v12  ;;  %3329 = vperm.xlu1 %4840, %v2811_v38   ;;  %v2814_v29 = vsub.f32 %v7766_v47, %v2747_v17  ;;  %v8371_v8 = vmul.f32 %v2951_v22, %v9997_v48  ;;  %v8374_v54 = vmul.f32 %v2951_v22, %v9999_v60  ;;  %v10009_v38 = vld [vmem:[#allocation196_spill] sm:$0xff]  ;;  %v10011_v60 = vld [vmem:[#allocation127_spill] sm:$0xff] }
 0x344   : > { %9996 = vst [vmem:[#allocation190_spill] sm:$0xff] %v8366_v16  ;;  %v8377_v14 = vmul.f32 %v2951_v22, %v10001_v15  ;;  %v8380_v12 = vmul.f32 %v2951_v22, %v10003_v0  ;;  %v8383_v28 = vmul.f32 %v2951_v22, %v10005_v6  ;;  %v8386_v10 = vmul.f32 %v2951_v22, %v10007_v1  ;;  %v10013_v15 = vld [vmem:[#allocation128_spill] sm:$0xff]  ;;  %v10015_v0 = vld [vmem:[#allocation130_spill] sm:$0xff]  ;;  %v10017_v6 = vld [vmem:[#allocation131_spill] sm:$0xff] }
 0x345   : > { %9998 = vst [vmem:[#allocation103_spill] sm:$0xff] %v8371_v8  ;;  %10000 = vst [vmem:[#allocation104_spill] sm:$0xff] %v8374_v54  ;;  %v8389_v47 = vmul.f32 %v2951_v22, %v10009_v38  ;;  %3344 = vperm.xlu0 %4841, %v2814_v29   ;;  %v10019_v1 = vld [vmem:[#allocation199_spill] sm:$0xff]  ;;  %v10021_v22 = vld [vmem:[#allocation132_spill] sm:$0xff] }
 0x346   : > { %10002 = vst [vmem:[#allocation106_spill] sm:$0xff] %v8377_v14  ;;  %10004 = vst [vmem:[#allocation107_spill] sm:$0xff] %v8380_v12  ;;  %v2966_v48 = vpop.permute.xlu0 %2965  ;;  %v2745_v17 = vpop.permute.xlu1 %2744  ;;  %v10023_v38 = vld [vmem:[#allocation135_spill] sm:$0xff] }
 0x347   : > { %10006 = vst [vmem:[#allocation195_spill] sm:$0xff] %v8383_v28  ;;  %10008 = vst [vmem:[#allocation108_spill] sm:$0xff] %v8386_v10  ;;  %v8392_v16 = vmul.f32 %v2966_v48, %v10011_v60  ;;  %v8395_v14 = vmul.f32 %v2966_v48, %v10013_v15  ;;  %v8398_v12 = vmul.f32 %v2966_v48, %v10015_v0 }
 0x348   : > { %10010 = vst [vmem:[#allocation111_spill] sm:$0xff] %v8389_v47  ;;  %v8401_v28 = vmul.f32 %v2966_v48, %v10017_v6  ;;  %v8404_v10 = vmul.f32 %v2966_v48, %v10019_v1  ;;  %v8407_v29 = vmul.f32 %v2966_v48, %v10021_v22  ;;  %v8410_v47 = vmul.f32 %v2966_v48, %v10023_v38  ;;  %v10025_v6 = vld [vmem:[#allocation121_spill] sm:$0xff]  ;;  %v10027_v1 = vld [vmem:[#allocation122_spill] sm:$0xff] }
 0x349   : > { %10012 = vst [vmem:[#allocation213_spill] sm:$0xff] %v8392_v16  ;;  %10014 = vst [vmem:[#allocation98_spill] sm:$0xff] %v8395_v14  ;;  %v2813_v60 = vsub.f32 %v7762_v13, %v2745_v17  ;;  %v10029_v14 = vld [vmem:[#allocation124_spill] sm:$0xff]  ;;  %v10033_v38 = vld [vmem:[#allocation126_spill] sm:$0xff] }
 0x34a   : > { %10016 = vst [vmem:[#allocation99_spill] sm:$0xff] %v8398_v12  ;;  %10018 = vst [vmem:[#allocation100_spill] sm:$0xff] %v8401_v28  ;;  %v2751_v15 = vpop.permute.xlu0 %2750  ;;  %v2961_v0 = vpop.permute.xlu1 %2960  ;;  %v10035_v17 = vld [vmem:[#allocation129_spill] sm:$0xff] }
 0x34b   : > { %10020 = vst [vmem:[#allocation101_spill] sm:$0xff] %v8404_v10  ;;  %10022 = vst [vmem:[#allocation102_spill] sm:$0xff] %v8407_v29  ;;  %3339 = vperm.xlu1 %4840, %v2813_v60   ;;  %v2816_v12 = vsub.f32 %v7778_v57, %v2751_v15  ;;  %v8415_v28 = vmul.f32 %v2961_v0, %v10025_v6  ;;  %v8418_v10 = vmul.f32 %v2961_v0, %v10027_v1  ;;  %v10031_v29 = vld [vmem:[#allocation125_spill] sm:$0xff] }
 0x34c   : > { %10024 = vst [vmem:[#allocation105_spill] sm:$0xff] %v8410_v47  ;;  %v8421_v22 = vmul.f32 %v2961_v0, %v10029_v14  ;;  %v8424_v48 = vmul.f32 %v2961_v0, %v10031_v29  ;;  %v8427_v13 = vmul.f32 %v2961_v0, %v10033_v38  ;;  %v8430_v60 = vmul.f32 %v2961_v0, %v10035_v17  ;;  %v10037_v47 = vld [vmem:[#allocation198_spill] sm:$0xff]  ;;  %v3587_v29 = vld [vmem:[%s8442_s6 + $0x8] sm:$0xff]  ;;  %v10042_v16 = vld [vmem:[#allocation9_spill] sm:$0xff] }
 0x34d   : > { %10026 = vst [vmem:[#allocation194_spill] sm:$0xff] %v8415_v28  ;;  %10028 = vst [vmem:[#allocation115_spill] sm:$0xff] %v8418_v10  ;;  %v8433_v57 = vmul.f32 %v2961_v0, %v10037_v47  ;;  %3354 = vperm.xlu0 %4841, %v2816_v12   ;;  %v3586_v14 = vld [vmem:[%s8442_s6] sm:$0xff]  ;;  %v3589_v0 = vld [vmem:[%s8442_s6 + $0x18] sm:$0xff] }
 0x34e   : > { %10030 = vst [vmem:[#allocation116_spill] sm:$0xff] %v8421_v22  ;;  %10032 = vst [vmem:[#allocation118_spill] sm:$0xff] %v8424_v48  ;;  %v2749_v15 = vpop.permute.xlu1 %2748  ;;  %v10039_v12 = vld [vmem:[#allocation6_spill] sm:$0xff]  ;;  %v10040_v38 = vld [vmem:[#allocation7_spill] sm:$0xff] }
 0x34f   : > { %10034 = vst [vmem:[#allocation119_spill] sm:$0xff] %v8427_v13  ;;  %10036 = vst [vmem:[#allocation197_spill] sm:$0xff] %v8430_v60  ;;  %v2815_v6 = vsub.f32 %v7774_v19, %v2749_v15  ;;  %v2985_v47 = vmul.f32 %v7809_v2, %v10039_v12  ;;  %v3588_v19 = vld [vmem:[%s8442_s6 + $0x10] sm:$0xff]  ;;  %v2986_v17 = vmul.f32 %v7809_v2, %v10040_v38  ;;  %v10043_v60 = vld [vmem:[#allocation149_spill] sm:$0xff] }
 0x350   : > { %10038 = vst [vmem:[#allocation120_spill] sm:$0xff] %v8433_v57  ;;  %v10041_v15 = vld [vmem:[#allocation8_spill] sm:$0xff]  ;;  %v2988_v57 = vmul.f32 %v7809_v2, %v10042_v16  ;;  %v2989_v13 = vmul.f32 %v7809_v2, %v10043_v60  ;;  %v3590_v48 = vld [vmem:[%s8442_s6 + $0x20] sm:$0xff]  ;;  %v3591_v22 = vld [vmem:[%s8442_s6 + $0x28] sm:$0xff]  ;;  %v2990_v60 = vmul.f32 %v7809_v2, %v10048_v20 }
 0x351   : > { %3349 = vperm.xlu1 %4840, %v2815_v6   ;;  %v2987_v6 = vmul.f32 %v7809_v2, %v10041_v15  ;;  %v3592_v12 = vld [vmem:[%s8442_s6 + $0x30] sm:$0xff]  ;;  %v10044_v38 = vld [vmem:[#allocation2_spill] sm:$0xff]  ;;  %v10047_v16 = vld [vmem:[#allocation5_spill] sm:$0xff] }
 0x356   : > { %v3205_v1 = vpop.permute.xlu1 %3204 }
 0x357   : > { %v3362_v10 = vadd.f32 %v3205_v1, %v7788_v55  ;;  %v3363_v28 = vadd.f32 %v3205_v1, %v7791_v18  ;;  %v3364_v54 = vadd.f32 %v3205_v1, %v7794_v44  ;;  %v3365_v8 = vadd.f32 %v3205_v1, %v10044_v38 }
 0x358   : > { %v3366_v15 = vadd.f32 %v3205_v1, %v10045_v40  ;;  %v3367_v39 = vadd.f32 %v3205_v1, %v10046_v50  ;;  %v3368_v58 = vadd.f32 %v3205_v1, %v10047_v16  ;;  %v10049_v40 = vld [vmem:[#allocation151_spill] sm:$0xff]  ;;  %v3598_v1 = vld [vmem:[%s8442_s6 + $0x60] sm:$0xff] }
 0x359   : > { %v3810_v26 = vadd.f32 %v3586_v14, %v3362_v10  ;;  %v3811_v41 = vadd.f32 %v3587_v29, %v3363_v28  ;;  %v3812_v52 = vadd.f32 %v3588_v19, %v3364_v54  ;;  %v3813_v55 = vadd.f32 %v3589_v0, %v3365_v8  ;;  %v3593_v29 = vld [vmem:[%s8442_s6 + $0x38] sm:$0xff] }
 0x35a   : > { %v3814_v18 = vadd.f32 %v3590_v48, %v3366_v15  ;;  %v3815_v44 = vadd.f32 %v3591_v22, %v3367_v39  ;;  %v3816_v50 = vadd.f32 %v3592_v12, %v3368_v58  ;;  %v2991_v20 = vmul.f32 %v7809_v2, %v10049_v40  ;;  %v3594_v58 = vld [vmem:[%s8442_s6 + $0x40] sm:$0xff]  ;;  %v3595_v22 = vld [vmem:[%s8442_s6 + $0x48] sm:$0xff]  ;;  %v3596_v2 = vld [vmem:[%s8442_s6 + $0x50] sm:$0xff] }
 0x35b   : > { %v4034_v28 = vmax.f32 %v3810_v26, 0.0  ;;  %v4035_v54 = vmax.f32 %v3811_v41, 0.0  ;;  %v4036_v8 = vmax.f32 %v3812_v52, 0.0  ;;  %v4037_v10 = vmax.f32 %v3813_v55, 0.0  ;;  %v2971_v14 = vpop.permute.xlu1 %2970  ;;  %v10050_v0 = vld [vmem:[#allocation133_spill] sm:$0xff]  ;;  %v3599_v12 = vld [vmem:[%s8442_s6 + $0x68] sm:$0xff] }
 0x35c   : > { %v4038_v19 = vmax.f32 %v3814_v18, 0.0  ;;  %v4039_v48 = vmax.f32 %v3815_v44, 0.0  ;;  %v4040_v39 = vmax.f32 %v3816_v50, 0.0  ;;  %v3210_v26 = vpop.permute.xlu0 %3209  ;;  %v8484_v41 = vmul.f32 %v2971_v14, %v10050_v0  ;;  %v3597_v52 = vld [vmem:[%s8442_s6 + $0x58] sm:$0xff]  ;;  %v10052_v40 = vld [vmem:[#allocation134_spill] sm:$0xff] }
 0x35d   : > { %4258 = vst [vmem:[%s8475_s9] sm:$0xff] %v4034_v28  ;;  %4259 = vst [vmem:[%s8475_s9 + $0x8] sm:$0xff] %v4035_v54  ;;  %v3369_v38 = vadd.f32 %v3210_v26, %v2985_v47  ;;  %v3370_v15 = vadd.f32 %v3210_v26, %v2986_v17  ;;  %v3371_v16 = vadd.f32 %v3210_v26, %v2987_v6 }
 0x35e   : > { %10051 = vst [vmem:[#allocation123_spill] sm:$0xff] %v8484_v41  ;;  %4260 = vst [vmem:[%s8475_s9 + $0x10] sm:$0xff] %v4036_v8  ;;  %v3372_v55 = vadd.f32 %v3210_v26, %v2988_v57  ;;  %v3373_v18 = vadd.f32 %v3210_v26, %v2989_v13  ;;  %v3374_v44 = vadd.f32 %v3210_v26, %v2990_v60 }
 0x35f   : > { %4261 = vst [vmem:[%s8475_s9 + $0x18] sm:$0xff] %v4037_v10  ;;  %4262 = vst [vmem:[%s8475_s9 + $0x20] sm:$0xff] %v4038_v19  ;;  %v3375_v50 = vadd.f32 %v3210_v26, %v2991_v20  ;;  %v8498_v0 = vmul.f32 %v2971_v14, %v10052_v40  ;;  %v3817_v28 = vadd.f32 %v3593_v29, %v3369_v38  ;;  %v2753_v41 = vpop.permute.xlu1 %2752  ;;  %v10054_v26 = vld [vmem:[#allocation137_spill] sm:$0xff]  ;;  %v10058_v40 = vld [vmem:[#allocation139_spill] sm:$0xff] }
 0x360   : > { %4263 = vst [vmem:[%s8475_s9 + $0x28] sm:$0xff] %v4039_v48  ;;  %4264 = vst.msk [vmem:[%s8475_s9 + $0x30] sm:$0xff] %vm1542_vm0, %v4040_v39  ;;  %v3818_v54 = vadd.f32 %v3594_v58, %v3370_v15  ;;  %v3819_v8 = vadd.f32 %v3595_v22, %v3371_v16  ;;  %v3820_v10 = vadd.f32 %v3596_v2, %v3372_v55  ;;  %v10053_v22 = vld [vmem:[#allocation136_spill] sm:$0xff]  ;;  %v3601_v55 = vld [vmem:[%s8442_s6 + $0x78] sm:$0xff] }
 0x361   : > { %v3821_v47 = vadd.f32 %v3597_v52, %v3373_v18  ;;  %v3822_v57 = vadd.f32 %v3598_v1, %v3374_v44  ;;  %v3823_v17 = vadd.f32 %v3599_v12, %v3375_v50  ;;  %v2817_v13 = vsub.f32 %v7812_v63, %v2753_v41  ;;  %v8501_v29 = vpop.permute.xlu0 %2975  ;;  %v3600_v63 = vld [vmem:[%s8442_s6 + $0x70] sm:$0xff]  ;;  %v10055_v52 = vld [vmem:[#allocation138_spill] sm:$0xff]  ;;  %v10056_v12 = vld [vmem:[#allocation141_spill] sm:$0xff] }
 0x362   : > { %v4041_v6 = vmax.f32 %v3817_v28, 0.0  ;;  %v4042_v60 = vmax.f32 %v3818_v54, 0.0  ;;  %v4043_v20 = vmax.f32 %v3819_v8, 0.0  ;;  %v4044_v19 = vmax.f32 %v3820_v10, 0.0  ;;  %v10057_v15 = vld [vmem:[#allocation200_spill] sm:$0xff]  ;;  %v3602_v18 = vld [vmem:[%s8442_s6 + $0x80] sm:$0xff] }
 0x363   : > { %v4045_v48 = vmax.f32 %v3821_v47, 0.0  ;;  %v4046_v39 = vmax.f32 %v3822_v57, 0.0  ;;  %v4047_v58 = vmax.f32 %v3823_v17, 0.0  ;;  %3359 = vperm.xlu1 %4840, %v2817_v13   ;;  %v8504_v2 = vmul.f32 %v2971_v14, %v10053_v22  ;;  %v3603_v44 = vld [vmem:[%s8442_s6 + $0x88] sm:$0xff]  ;;  %v10059_v54 = vld [vmem:[#allocation140_spill] sm:$0xff]  ;;  %v10060_v10 = vld [vmem:[#allocation142_spill] sm:$0xff] }
 0x364   : > { %4265 = vst [vmem:[%s8475_s9 + $0x38] sm:$0xff] %v4041_v6  ;;  %4266 = vst [vmem:[%s8475_s9 + $0x40] sm:$0xff] %v4042_v60  ;;  %v8512_v41 = vmul.f32 %v2971_v14, %v10054_v26  ;;  %v8515_v1 = vmul.f32 %v2971_v14, %v10055_v52  ;;  %v8518_v38 = vmul.f32 %v2971_v14, %v10056_v12  ;;  %v3215_v50 = vpop.permute.xlu1 %3214  ;;  %v10061_v47 = vld [vmem:[#allocation143_spill] sm:$0xff]  ;;  %v3604_v17 = vld [vmem:[%s8442_s6 + $0x90] sm:$0xff] }
 0x365   : > { %4267 = vst [vmem:[%s8475_s9 + $0x48] sm:$0xff] %v4043_v20  ;;  %4268 = vst [vmem:[%s8475_s9 + $0x50] sm:$0xff] %v4044_v19  ;;  %v8521_v16 = vmul.f32 %v2971_v14, %v10057_v15  ;;  %v8532_v28 = vmul.f32 %v8501_v29, %v10058_v40  ;;  %v8536_v8 = vmul.f32 %v8501_v29, %v10059_v54  ;;  %v3605_v13 = vld [vmem:[%s8442_s6 + $0x98] sm:$0xff]  ;;  %v3606_v6 = vld [vmem:[%s8442_s6 + $0xa0] sm:$0xff] }
 0x366   : > { %4269 = vst [vmem:[%s8475_s9 + $0x58] sm:$0xff] %v4045_v48  ;;  %4270 = vst [vmem:[%s8475_s9 + $0x60] sm:$0xff] %v4046_v39  ;;  %v8540_v14 = vmul.f32 %v8501_v29, %v10060_v10  ;;  %v8544_v57 = vmul.f32 %v8501_v29, %v10061_v47  ;;  %v3376_v60 = vadd.f32 %v3215_v50, %v7839_v11  ;;  %v3225_v26 = vpop.permute.xlu0 %3224  ;;  %v10062_v52 = vld [vmem:[#allocation201_spill] sm:$0xff] }
 0x367   : > { %4271 = vst.msk [vmem:[%s8475_s9 + $0x68] sm:$0xff] %vm1542_vm0, %v4047_v58  ;;  %v3377_v20 = vadd.f32 %v3215_v50, %v7843_v21  ;;  %v3378_v19 = vadd.f32 %v3215_v50, %v7846_v49  ;;  %v3379_v48 = vadd.f32 %v3215_v50, %v7849_v45  ;;  %v3380_v39 = vadd.f32 %v3215_v50, %v7852_v61 }
 0x368   : > { %v3381_v58 = vadd.f32 %v3215_v50, %v7856_v24  ;;  %v3382_v22 = vadd.f32 %v3215_v50, %v7859_v23  ;;  %v8558_v12 = vmul.f32 %v8501_v29, %v10062_v52  ;;  %v3824_v11 = vadd.f32 %v3600_v63, %v3376_v60  ;;  %v3614_v24 = vld [vmem:[%s8442_s6 + $0xe0] sm:$0xff] }
 0x369   : > { %v3825_v15 = vadd.f32 %v3601_v55, %v3377_v20  ;;  %v3826_v21 = vadd.f32 %v3602_v18, %v3378_v19  ;;  %v3827_v40 = vadd.f32 %v3603_v44, %v3379_v48  ;;  %v3828_v49 = vadd.f32 %v3604_v17, %v3380_v39  ;;  %v3615_v55 = vld [vmem:[%s8442_s6 + $0xe8] sm:$0xff]  ;;  %v3616_v18 = vld [vmem:[%s8442_s6 + $0xf0] sm:$0xff]  ;;  %v3220_v44 = vpop.permute.xlu1 %3219  ;;  %v3618_v60 = vld [vmem:[%s8442_s6 + $0x100] sm:$0xff] }
 0x36a   : > { %v3829_v45 = vadd.f32 %v3605_v13, %v3381_v58  ;;  %v3830_v61 = vadd.f32 %v3606_v6, %v3382_v22  ;;  %v3390_v23 = vadd.f32 %v3225_v26, %v7887_v43  ;;  %v4048_v50 = vmax.f32 %v3824_v11, 0.0  ;;  %v3617_v6 = vld [vmem:[%s8442_s6 + $0xf8] sm:$0xff]  ;;  %v3619_v43 = vld [vmem:[%s8442_s6 + $0x108] sm:$0xff]  ;;  %v3620_v19 = vld [vmem:[%s8442_s6 + $0x110] sm:$0xff] }
 0x36b   : > { %v4049_v54 = vmax.f32 %v3825_v15, 0.0  ;;  %v4050_v10 = vmax.f32 %v3826_v21, 0.0  ;;  %v4051_v63 = vmax.f32 %v3827_v40, 0.0  ;;  %v4052_v47 = vmax.f32 %v3828_v49, 0.0 }
 0x36c   : > { %v4053_v17 = vmax.f32 %v3829_v45, 0.0  ;;  %v4054_v13 = vmax.f32 %v3830_v61, 0.0  ;;  %v3391_v20 = vadd.f32 %v3225_v26, %v7890_v46  ;;  %4272 = vst [vmem:[%s8475_s9 + $0x70] sm:$0xff] %v4048_v50  ;;  %v3392_v48 = vadd.f32 %v3225_v26, %v7893_v32  ;;  %v3607_v45 = vld [vmem:[%s8442_s6 + $0xa8] sm:$0xff]  ;;  %v3608_v61 = vld [vmem:[%s8442_s6 + $0xb0] sm:$0xff] }
 0x36d   : > { %4273 = vst [vmem:[%s8475_s9 + $0x78] sm:$0xff] %v4049_v54  ;;  %4274 = vst [vmem:[%s8475_s9 + $0x80] sm:$0xff] %v4050_v10  ;;  %v3393_v39 = vadd.f32 %v3225_v26, %v7896_v3  ;;  %v3394_v58 = vadd.f32 %v3225_v26, %v7899_v5  ;;  %v3395_v22 = vadd.f32 %v3225_v26, %v7902_v4  ;;  %v3610_v54 = vld [vmem:[%s8442_s6 + $0xc0] sm:$0xff]  ;;  %v3611_v10 = vld [vmem:[%s8442_s6 + $0xc8] sm:$0xff] }
 0x36e   : > { %4275 = vst [vmem:[%s8475_s9 + $0x88] sm:$0xff] %v4051_v63  ;;  %4276 = vst [vmem:[%s8475_s9 + $0x90] sm:$0xff] %v4052_v47  ;;  %v3396_v46 = vadd.f32 %v3225_v26, %v7905_v51  ;;  %v3838_v52 = vadd.f32 %v3614_v24, %v3390_v23  ;;  %v3839_v11 = vadd.f32 %v3615_v55, %v3391_v20  ;;  %v3609_v51 = vld [vmem:[%s8442_s6 + $0xb8] sm:$0xff]  ;;  %v3235_v63 = vpop.permute.xlu0 %3234  ;;  %v10066_v20 = vld [vmem:[#allocation14_spill] sm:$0xff] }
 0x36f   : > { %4277 = vst [vmem:[%s8475_s9 + $0x98] sm:$0xff] %v4053_v17  ;;  %4278 = vst.msk [vmem:[%s8475_s9 + $0xa0] sm:$0xff] %vm1542_vm0, %v4054_v13  ;;  %v3383_v15 = vadd.f32 %v3220_v44, %v7818_v59  ;;  %v3840_v32 = vadd.f32 %v3616_v18, %v3392_v48  ;;  %v3841_v3 = vadd.f32 %v3617_v6, %v3393_v39  ;;  %v3612_v18 = vld [vmem:[%s8442_s6 + $0xd0] sm:$0xff]  ;;  %v3613_v47 = vld [vmem:[%s8442_s6 + $0xd8] sm:$0xff] }
 0x370   : > { %v3842_v5 = vadd.f32 %v3618_v60, %v3394_v58  ;;  %v3843_v21 = vadd.f32 %v3619_v43, %v3395_v22  ;;  %v3844_v4 = vadd.f32 %v3620_v19, %v3396_v46  ;;  %v4062_v40 = vmax.f32 %v3838_v52, 0.0  ;;  %v10063_v17 = vld [vmem:[#allocation145_spill] sm:$0xff]  ;;  %v10065_v60 = vld [vmem:[#allocation148_spill] sm:$0xff]  ;;  %v10067_v48 = vld [vmem:[#allocation15_spill] sm:$0xff] }
 0x371   : > { %v4063_v49 = vmax.f32 %v3839_v11, 0.0  ;;  %v3384_v26 = vadd.f32 %v3220_v44, %v7821_v9  ;;  %v4064_v59 = vmax.f32 %v3840_v32, 0.0  ;;  %v4065_v24 = vmax.f32 %v3841_v3, 0.0  ;;  %v10064_v9 = vld [vmem:[#allocation146_spill] sm:$0xff] }
 0x372   : > { %v4066_v23 = vmax.f32 %v3842_v5, 0.0  ;;  %v4067_v50 = vmax.f32 %v3843_v21, 0.0  ;;  %v4068_v55 = vmax.f32 %v3844_v4, 0.0  ;;  %4286 = vst [vmem:[%s8475_s9 + $0xe0] sm:$0xff] %v4062_v40  ;;  %v3385_v13 = vadd.f32 %v3220_v44, %v10063_v17 }
 0x373   : > { %4287 = vst [vmem:[%s8475_s9 + $0xe8] sm:$0xff] %v4063_v49  ;;  %v3386_v6 = vadd.f32 %v3220_v44, %v10064_v9  ;;  %v3387_v43 = vadd.f32 %v3220_v44, %v10065_v60  ;;  %4288 = vst [vmem:[%s8475_s9 + $0xf0] sm:$0xff] %v4064_v59  ;;  %v3388_v19 = vadd.f32 %v3220_v44, %v10066_v20 }
 0x374   : > { %4289 = vst [vmem:[%s8475_s9 + $0xf8] sm:$0xff] %v4065_v24  ;;  %4290 = vst [vmem:[%s8475_s9 + $0x100] sm:$0xff] %v4066_v23  ;;  %v3389_v39 = vadd.f32 %v3220_v44, %v10067_v48  ;;  %v3831_v58 = vadd.f32 %v3607_v45, %v3383_v15  ;;  %v3832_v22 = vadd.f32 %v3608_v61, %v3384_v26  ;;  %v3628_v15 = vld [vmem:[%s8442_s6 + $0x150] sm:$0xff]  ;;  %v3629_v45 = vld [vmem:[%s8442_s6 + $0x158] sm:$0xff]  ;;  %v3230_v26 = vpop.permute.xlu1 %3229 }
 0x375   : > { %4291 = vst [vmem:[%s8475_s9 + $0x108] sm:$0xff] %v4067_v50  ;;  %4292 = vst.msk [vmem:[%s8475_s9 + $0x110] sm:$0xff] %vm1542_vm0, %v4068_v55  ;;  %v3833_v46 = vadd.f32 %v3609_v51, %v3385_v13  ;;  %v3834_v52 = vadd.f32 %v3610_v54, %v3386_v6  ;;  %v3835_v11 = vadd.f32 %v3611_v10, %v3387_v43  ;;  %v3630_v61 = vld [vmem:[%s8442_s6 + $0x160] sm:$0xff]  ;;  %v3631_v51 = vld [vmem:[%s8442_s6 + $0x168] sm:$0xff] }
 0x376   : > { %v3404_v32 = vadd.f32 %v3235_v63, %v7931_v33  ;;  %v3836_v3 = vadd.f32 %v3612_v18, %v3388_v19  ;;  %v3837_v5 = vadd.f32 %v3613_v47, %v3389_v39  ;;  %v4055_v21 = vmax.f32 %v3831_v58, 0.0  ;;  %v3632_v23 = vld [vmem:[%s8442_s6 + $0x170] sm:$0xff]  ;;  %v3633_v50 = vld [vmem:[%s8442_s6 + $0x178] sm:$0xff]  ;;  %v3634_v54 = vld [vmem:[%s8442_s6 + $0x180] sm:$0xff] }
 0x377   : > { %v4056_v44 = vmax.f32 %v3832_v22, 0.0  ;;  %v4057_v4 = vmax.f32 %v3833_v46, 0.0  ;;  %v4058_v40 = vmax.f32 %v3834_v52, 0.0  ;;  %v4059_v49 = vmax.f32 %v3835_v11, 0.0  ;;  %v3622_v19 = vld [vmem:[%s8442_s6 + $0x120] sm:$0xff]  ;;  %v3623_v48 = vld [vmem:[%s8442_s6 + $0x128] sm:$0xff]  ;;  %v3245_v22 = vpop.permute.xlu0 %3244 }
 0x378   : > { %v3405_v33 = vadd.f32 %v3235_v63, %v7934_v27  ;;  %v4060_v59 = vmax.f32 %v3836_v3, 0.0  ;;  %v4061_v24 = vmax.f32 %v3837_v5, 0.0  ;;  %4279 = vst [vmem:[%s8475_s9 + $0xa8] sm:$0xff] %v4055_v21  ;;  %v3406_v10 = vadd.f32 %v3235_v63, %v7937_v34  ;;  %v3624_v39 = vld [vmem:[%s8442_s6 + $0x130] sm:$0xff]  ;;  %v3626_v3 = vld [vmem:[%s8442_s6 + $0x140] sm:$0xff]  ;;  %v3627_v5 = vld [vmem:[%s8442_s6 + $0x148] sm:$0xff] }
 0x379   : > { %4280 = vst [vmem:[%s8475_s9 + $0xb0] sm:$0xff] %v4056_v44  ;;  %v3407_v55 = vadd.f32 %v3235_v63, %v7940_v25  ;;  %4281 = vst [vmem:[%s8475_s9 + $0xb8] sm:$0xff] %v4057_v4  ;;  %v3408_v27 = vadd.f32 %v3235_v63, %v7943_v56  ;;  %v3409_v18 = vadd.f32 %v3235_v63, %v7946_v42  ;;  %v10068_v58 = vld [vmem:[#allocation16_spill] sm:$0xff]  ;;  %v10069_v21 = vld [vmem:[#allocation17_spill] sm:$0xff] }
 0x37a   : > { %4282 = vst [vmem:[%s8475_s9 + $0xc0] sm:$0xff] %v4058_v40  ;;  %4283 = vst [vmem:[%s8475_s9 + $0xc8] sm:$0xff] %v4059_v49  ;;  %v3410_v47 = vadd.f32 %v3235_v63, %v7949_v36  ;;  %v3852_v17 = vadd.f32 %v3628_v15, %v3404_v32  ;;  %v3853_v34 = vadd.f32 %v3629_v45, %v3405_v33  ;;  %v3621_v36 = vld [vmem:[%s8442_s6 + $0x118] sm:$0xff]  ;;  %v10070_v15 = vld [vmem:[#allocation10_spill] sm:$0xff] }
 0x37b   : > { %4284 = vst [vmem:[%s8475_s9 + $0xd0] sm:$0xff] %v4060_v59  ;;  %4285 = vst.msk [vmem:[%s8475_s9 + $0xd8] sm:$0xff] %vm1542_vm0, %v4061_v24  ;;  %v3854_v13 = vadd.f32 %v3630_v61, %v3406_v10  ;;  %v3855_v25 = vadd.f32 %v3631_v51, %v3407_v55  ;;  %v3397_v9 = vadd.f32 %v3230_v26, %v7864_v7  ;;  %v3625_v32 = vld [vmem:[%s8442_s6 + $0x138] sm:$0xff]  ;;  %v10071_v40 = vld [vmem:[#allocation11_spill] sm:$0xff] }
 0x37c   : > { %v3856_v6 = vadd.f32 %v3632_v23, %v3408_v27  ;;  %v3857_v60 = vadd.f32 %v3633_v50, %v3409_v18  ;;  %v3858_v56 = vadd.f32 %v3634_v54, %v3410_v47  ;;  %v4076_v42 = vmax.f32 %v3852_v17, 0.0  ;;  %v10072_v45 = vld [vmem:[#allocation12_spill] sm:$0xff]  ;;  %v10073_v51 = vld [vmem:[#allocation13_spill] sm:$0xff] }
 0x37d   : > { %v4077_v63 = vmax.f32 %v3853_v34, 0.0  ;;  %v4078_v43 = vmax.f32 %v3854_v13, 0.0  ;;  %v4079_v20 = vmax.f32 %v3855_v25, 0.0  ;;  %v3398_v7 = vadd.f32 %v3230_v26, %v10068_v58  ;;  %v3643_v34 = vld [vmem:[%s8442_s6 + $0x1c8] sm:$0xff]  ;;  %v3644_v13 = vld [vmem:[%s8442_s6 + $0x1d0] sm:$0xff]  ;;  %v3645_v25 = vld [vmem:[%s8442_s6 + $0x1d8] sm:$0xff] }
 0x37e   : > { %v4080_v46 = vmax.f32 %v3856_v6, 0.0  ;;  %v4081_v52 = vmax.f32 %v3857_v60, 0.0  ;;  %v4082_v11 = vmax.f32 %v3858_v56, 0.0  ;;  %4300 = vst [vmem:[%s8475_s9 + $0x150] sm:$0xff] %v4076_v42  ;;  %v3399_v44 = vadd.f32 %v3230_v26, %v10069_v21 }
 0x37f   : > { %4301 = vst [vmem:[%s8475_s9 + $0x158] sm:$0xff] %v4077_v63  ;;  %4302 = vst [vmem:[%s8475_s9 + $0x160] sm:$0xff] %v4078_v43  ;;  %v3400_v4 = vadd.f32 %v3230_v26, %v10070_v15  ;;  %v3401_v49 = vadd.f32 %v3230_v26, %v10071_v40  ;;  %v3402_v61 = vadd.f32 %v3230_v26, %v10072_v45  ;;  %v3647_v63 = vld [vmem:[%s8442_s6 + $0x1e8] sm:$0xff]  ;;  %v3648_v43 = vld [vmem:[%s8442_s6 + $0x1f0] sm:$0xff] }
 0x380   : > { %4303 = vst [vmem:[%s8475_s9 + $0x168] sm:$0xff] %v4079_v20  ;;  %v3403_v33 = vadd.f32 %v3230_v26, %v10073_v51  ;;  %4304 = vst [vmem:[%s8475_s9 + $0x170] sm:$0xff] %v4080_v46  ;;  %v3845_v59 = vadd.f32 %v3621_v36, %v3397_v9  ;;  %v3846_v24 = vadd.f32 %v3622_v19, %v3398_v7  ;;  %v3642_v26 = vld [vmem:[%s8442_s6 + $0x1c0] sm:$0xff]  ;;  %v3636_v15 = vld [vmem:[%s8442_s6 + $0x190] sm:$0xff] }
 0x381   : > { %4305 = vst [vmem:[%s8475_s9 + $0x178] sm:$0xff] %v4081_v52  ;;  %4306 = vst.msk [vmem:[%s8475_s9 + $0x180] sm:$0xff] %vm1542_vm0, %v4082_v11  ;;  %v3847_v23 = vadd.f32 %v3623_v48, %v3399_v44  ;;  %v3418_v50 = vadd.f32 %v3245_v22, %v7975_v30  ;;  %v3848_v54 = vadd.f32 %v3624_v39, %v3400_v4  ;;  %v3240_v30 = vpop.permute.xlu1 %3239  ;;  %v3646_v36 = vld [vmem:[%s8442_s6 + $0x1e0] sm:$0xff]  ;;  %v10075_v52 = vld [vmem:[#allocation152_spill] sm:$0xff] }
 0x382   : > { %v3849_v10 = vadd.f32 %v3625_v32, %v3401_v49  ;;  %v3850_v55 = vadd.f32 %v3626_v3, %v3402_v61  ;;  %v3851_v27 = vadd.f32 %v3627_v5, %v3403_v33  ;;  %v4069_v18 = vmax.f32 %v3845_v59, 0.0  ;;  %v3635_v44 = vld [vmem:[%s8442_s6 + $0x188] sm:$0xff]  ;;  %v3638_v51 = vld [vmem:[%s8442_s6 + $0x1a0] sm:$0xff]  ;;  %v3255_v59 = vpop.permute.xlu0 %3254 }
 0x383   : > { %v4070_v47 = vmax.f32 %v3846_v24, 0.0  ;;  %v4071_v17 = vmax.f32 %v3847_v23, 0.0  ;;  %v3419_v9 = vadd.f32 %v3245_v22, %v7978_v35  ;;  %v4072_v6 = vmax.f32 %v3848_v54, 0.0  ;;  %v10074_v35 = vld [vmem:[#allocation33_spill] sm:$0xff]  ;;  %v3639_v33 = vld [vmem:[%s8442_s6 + $0x1a8] sm:$0xff]  ;;  %v3640_v23 = vld [vmem:[%s8442_s6 + $0x1b0] sm:$0xff] }
 0x384   : > { %v4073_v60 = vmax.f32 %v3849_v10, 0.0  ;;  %v4074_v56 = vmax.f32 %v3850_v55, 0.0  ;;  %v4075_v42 = vmax.f32 %v3851_v27, 0.0  ;;  %4293 = vst [vmem:[%s8475_s9 + $0x118] sm:$0xff] %v4069_v18  ;;  %v3420_v20 = vadd.f32 %v3245_v22, %v7981_v62  ;;  %v10077_v54 = vld [vmem:[#allocation23_spill] sm:$0xff]  ;;  %v10078_v55 = vld [vmem:[#allocation24_spill] sm:$0xff] }
 0x385   : > { %4294 = vst [vmem:[%s8475_s9 + $0x120] sm:$0xff] %v4070_v47  ;;  %4295 = vst [vmem:[%s8475_s9 + $0x128] sm:$0xff] %v4071_v17  ;;  %v3421_v19 = vadd.f32 %v3245_v22, %v7984_v31  ;;  %v3422_v48 = vadd.f32 %v3245_v22, %v10074_v35  ;;  %v3423_v39 = vadd.f32 %v3245_v22, %v7990_v53  ;;  %v10080_v47 = vld [vmem:[#allocation18_spill] sm:$0xff] }
 0x386   : > { %4296 = vst [vmem:[%s8475_s9 + $0x130] sm:$0xff] %v4072_v6  ;;  %4297 = vst [vmem:[%s8475_s9 + $0x138] sm:$0xff] %v4073_v60  ;;  %v3424_v58 = vadd.f32 %v3245_v22, %v7993_v37  ;;  %v3866_v7 = vadd.f32 %v3642_v26, %v3418_v50  ;;  %v3867_v46 = vadd.f32 %v3643_v34, %v3419_v9  ;;  %v3637_v37 = vld [vmem:[%s8442_s6 + $0x198] sm:$0xff]  ;;  %v10076_v22 = vld [vmem:[#allocation22_spill] sm:$0xff] }
 0x387   : > { %4298 = vst [vmem:[%s8475_s9 + $0x140] sm:$0xff] %v4074_v56  ;;  %4299 = vst.msk [vmem:[%s8475_s9 + $0x148] sm:$0xff] %vm1542_vm0, %v4075_v42  ;;  %v3411_v62 = vadd.f32 %v3240_v30, %v10075_v52  ;;  %v3868_v31 = vadd.f32 %v3644_v13, %v3420_v20  ;;  %v3869_v11 = vadd.f32 %v3645_v25, %v3421_v19  ;;  %v3641_v50 = vld [vmem:[%s8442_s6 + $0x1b8] sm:$0xff]  ;;  %v10081_v34 = vld [vmem:[#allocation19_spill] sm:$0xff] }
 0x388   : > { %v3870_v32 = vadd.f32 %v3646_v36, %v3422_v48  ;;  %v3871_v53 = vadd.f32 %v3647_v63, %v3423_v39  ;;  %v3872_v3 = vadd.f32 %v3648_v43, %v3424_v58  ;;  %v4090_v5 = vmax.f32 %v3866_v7, 0.0  ;;  %v10079_v26 = vld [vmem:[#allocation25_spill] sm:$0xff]  ;;  %v10082_v42 = vld [vmem:[#allocation39_spill] sm:$0xff]  ;;  %v3656_v19 = vld [vmem:[%s8442_s6 + $0x230] sm:$0xff] }
 0x389   : > { %v4091_v21 = vmax.f32 %v3867_v46, 0.0  ;;  %v3412_v4 = vadd.f32 %v3240_v30, %v10076_v22  ;;  %v4092_v40 = vmax.f32 %v3868_v31, 0.0  ;;  %v4093_v49 = vmax.f32 %v3869_v11, 0.0  ;;  %v3657_v58 = vld [vmem:[%s8442_s6 + $0x238] sm:$0xff]  ;;  %v3658_v7 = vld [vmem:[%s8442_s6 + $0x240] sm:$0xff]  ;;  %v3659_v46 = vld [vmem:[%s8442_s6 + $0x248] sm:$0xff]  ;;  %v3250_v31 = vpop.permute.xlu1 %3249 }
 0x38a   : > { %v4094_v45 = vmax.f32 %v3870_v32, 0.0  ;;  %v4095_v61 = vmax.f32 %v3871_v53, 0.0  ;;  %v4096_v24 = vmax.f32 %v3872_v3, 0.0  ;;  %4314 = vst [vmem:[%s8475_s9 + $0x1c0] sm:$0xff] %v4090_v5  ;;  %v3413_v10 = vadd.f32 %v3240_v30, %v10077_v54  ;;  %v10083_v52 = vld [vmem:[#allocation40_spill] sm:$0xff]  ;;  %v3661_v3 = vld [vmem:[%s8442_s6 + $0x258] sm:$0xff] }
 0x38b   : > { %4315 = vst [vmem:[%s8475_s9 + $0x1c8] sm:$0xff] %v4091_v21  ;;  %v3414_v27 = vadd.f32 %v3240_v30, %v10078_v55  ;;  %v3415_v18 = vadd.f32 %v3240_v30, %v10079_v26  ;;  %4316 = vst [vmem:[%s8475_s9 + $0x1d0] sm:$0xff] %v4092_v40  ;;  %v3416_v17 = vadd.f32 %v3240_v30, %v10080_v47  ;;  %v3660_v53 = vld [vmem:[%s8442_s6 + $0x250] sm:$0xff]  ;;  %v3662_v5 = vld [vmem:[%s8442_s6 + $0x260] sm:$0xff] }
 0x38c   : > { %4317 = vst [vmem:[%s8475_s9 + $0x1d8] sm:$0xff] %v4093_v49  ;;  %4318 = vst [vmem:[%s8475_s9 + $0x1e0] sm:$0xff] %v4094_v45  ;;  %v3417_v13 = vadd.f32 %v3240_v30, %v10081_v34  ;;  %v3859_v25 = vadd.f32 %v3635_v44, %v3411_v62  ;;  %v3860_v9 = vadd.f32 %v3636_v15, %v3412_v4  ;;  %v10084_v21 = vld [vmem:[#allocation41_spill] sm:$0xff]  ;;  %v10085_v15 = vld [vmem:[#allocation34_spill] sm:$0xff] }
 0x38d   : > { %4319 = vst [vmem:[%s8475_s9 + $0x1e8] sm:$0xff] %v4095_v61  ;;  %4320 = vst.msk [vmem:[%s8475_s9 + $0x1f0] sm:$0xff] %vm1542_vm0, %v4096_v24  ;;  %v3861_v6 = vadd.f32 %v3637_v37, %v3413_v10  ;;  %v3862_v60 = vadd.f32 %v3638_v51, %v3414_v27  ;;  %v3863_v56 = vadd.f32 %v3639_v33, %v3415_v18  ;;  %v10086_v22 = vld [vmem:[#allocation35_spill] sm:$0xff]  ;;  %v10087_v40 = vld [vmem:[#allocation36_spill] sm:$0xff] }
 0x38e   : > { %v3432_v36 = vadd.f32 %v3255_v59, %v10082_v42  ;;  %v3864_v63 = vadd.f32 %v3640_v23, %v3416_v17  ;;  %v3865_v43 = vadd.f32 %v3641_v50, %v3417_v13  ;;  %v4083_v20 = vmax.f32 %v3859_v25, 0.0  ;;  %v10088_v45 = vld [vmem:[#allocation37_spill] sm:$0xff]  ;;  %v10089_v50 = vld [vmem:[#allocation20_spill] sm:$0xff]  ;;  %v3650_v34 = vld [vmem:[%s8442_s6 + $0x200] sm:$0xff] }
 0x38f   : > { %v4084_v30 = vmax.f32 %v3860_v9, 0.0  ;;  %v4085_v35 = vmax.f32 %v3861_v6, 0.0  ;;  %v4086_v48 = vmax.f32 %v3862_v60, 0.0  ;;  %v4087_v39 = vmax.f32 %v3863_v56, 0.0  ;;  %v3651_v13 = vld [vmem:[%s8442_s6 + $0x208] sm:$0xff]  ;;  %v3652_v25 = vld [vmem:[%s8442_s6 + $0x210] sm:$0xff]  ;;  %v3265_v60 = vpop.permute.xlu0 %3264 }
 0x390   : > { %v3433_v62 = vadd.f32 %v3255_v59, %v10083_v52  ;;  %v4088_v11 = vmax.f32 %v3864_v63, 0.0  ;;  %v4089_v32 = vmax.f32 %v3865_v43, 0.0  ;;  %4307 = vst [vmem:[%s8475_s9 + $0x188] sm:$0xff] %v4083_v20  ;;  %v3434_v44 = vadd.f32 %v3255_v59, %v10084_v21  ;;  %v10090_v9 = vld [vmem:[#allocation21_spill] sm:$0xff]  ;;  %v3654_v43 = vld [vmem:[%s8442_s6 + $0x220] sm:$0xff]  ;;  %v3655_v20 = vld [vmem:[%s8442_s6 + $0x228] sm:$0xff] }
 0x391   : > { %4308 = vst [vmem:[%s8475_s9 + $0x190] sm:$0xff] %v4084_v30  ;;  %v3435_v37 = vadd.f32 %v3255_v59, %v10085_v15  ;;  %4309 = vst [vmem:[%s8475_s9 + $0x198] sm:$0xff] %v4085_v35  ;;  %v3436_v4 = vadd.f32 %v3255_v59, %v10086_v22  ;;  %v3437_v49 = vadd.f32 %v3255_v59, %v10087_v40  ;;  %v3653_v63 = vld [vmem:[%s8442_s6 + $0x218] sm:$0xff]  ;;  %v10092_v35 = vld [vmem:[#allocation154_spill] sm:$0xff] }
 0x392   : > { %4310 = vst [vmem:[%s8475_s9 + $0x1a0] sm:$0xff] %v4086_v48  ;;  %4311 = vst [vmem:[%s8475_s9 + $0x1a8] sm:$0xff] %v4087_v39  ;;  %v3438_v61 = vadd.f32 %v3255_v59, %v10088_v45  ;;  %v3880_v51 = vadd.f32 %v3656_v19, %v3432_v36  ;;  %v3881_v33 = vadd.f32 %v3657_v58, %v3433_v62  ;;  %v3649_v59 = vld [vmem:[%s8442_s6 + $0x1f8] sm:$0xff]  ;;  %v10093_v39 = vld [vmem:[#allocation30_spill] sm:$0xff] }
 0x393   : > { %4312 = vst [vmem:[%s8475_s9 + $0x1b0] sm:$0xff] %v4088_v11  ;;  %4313 = vst.msk [vmem:[%s8475_s9 + $0x1b8] sm:$0xff] %vm1542_vm0, %v4089_v32  ;;  %v3882_v24 = vadd.f32 %v3658_v7, %v3434_v44  ;;  %v3883_v23 = vadd.f32 %v3659_v46, %v3435_v37  ;;  %v3425_v54 = vadd.f32 %v3250_v31, %v10089_v50  ;;  %v10091_v30 = vld [vmem:[#allocation153_spill] sm:$0xff]  ;;  %v10094_v7 = vld [vmem:[#allocation31_spill] sm:$0xff] }
 0x394   : > { %v3884_v10 = vadd.f32 %v3660_v53, %v3436_v4  ;;  %v3885_v55 = vadd.f32 %v3661_v3, %v3437_v49  ;;  %v3886_v27 = vadd.f32 %v3662_v5, %v3438_v61  ;;  %v4104_v26 = vmax.f32 %v3880_v51, 0.0  ;;  %v10095_v52 = vld [vmem:[#allocation32_spill] sm:$0xff]  ;;  %v10096_v3 = vld [vmem:[#allocation43_spill] sm:$0xff]  ;;  %v3673_v61 = vld [vmem:[%s8442_s6 + $0x2b8] sm:$0xff] }
 0x395   : > { %v4105_v18 = vmax.f32 %v3881_v33, 0.0  ;;  %v4106_v47 = vmax.f32 %v3882_v24, 0.0  ;;  %v4107_v17 = vmax.f32 %v3883_v23, 0.0  ;;  %v3426_v6 = vadd.f32 %v3250_v31, %v10090_v9  ;;  %v3671_v49 = vld [vmem:[%s8442_s6 + $0x2a8] sm:$0xff]  ;;  %v3672_v45 = vld [vmem:[%s8442_s6 + $0x2b0] sm:$0xff]  ;;  %v3260_v24 = vpop.permute.xlu1 %3259 }
 0x396   : > { %v4108_v56 = vmax.f32 %v3884_v10, 0.0  ;;  %v4109_v42 = vmax.f32 %v3885_v55, 0.0  ;;  %v4110_v36 = vmax.f32 %v3886_v27, 0.0  ;;  %4328 = vst [vmem:[%s8475_s9 + $0x230] sm:$0xff] %v4104_v26  ;;  %v3427_v19 = vadd.f32 %v3250_v31, %v10091_v30  ;;  %v10097_v51 = vld [vmem:[#allocation44_spill] sm:$0xff]  ;;  %v3674_v55 = vld [vmem:[%s8442_s6 + $0x2c0] sm:$0xff] }
 0x397   : > { %4329 = vst [vmem:[%s8475_s9 + $0x238] sm:$0xff] %v4105_v18  ;;  %4330 = vst [vmem:[%s8475_s9 + $0x240] sm:$0xff] %v4106_v47  ;;  %v3428_v48 = vadd.f32 %v3250_v31, %v10092_v35  ;;  %v3429_v58 = vadd.f32 %v3250_v31, %v10093_v39  ;;  %v3430_v46 = vadd.f32 %v3250_v31, %v10094_v7  ;;  %v3675_v27 = vld [vmem:[%s8442_s6 + $0x2c8] sm:$0xff]  ;;  %v3676_v26 = vld [vmem:[%s8442_s6 + $0x2d0] sm:$0xff] }
 0x398   : > { %4331 = vst [vmem:[%s8475_s9 + $0x248] sm:$0xff] %v4107_v17  ;;  %v3431_v62 = vadd.f32 %v3250_v31, %v10095_v52  ;;  %4332 = vst [vmem:[%s8475_s9 + $0x250] sm:$0xff] %v4108_v56  ;;  %v3873_v11 = vadd.f32 %v3649_v59, %v3425_v54  ;;  %v3874_v32 = vadd.f32 %v3650_v34, %v3426_v6  ;;  %v3670_v31 = vld [vmem:[%s8442_s6 + $0x2a0] sm:$0xff]  ;;  %v10098_v59 = vld [vmem:[#allocation45_spill] sm:$0xff] }
 0x399   : > { %4333 = vst [vmem:[%s8475_s9 + $0x258] sm:$0xff] %v4109_v42  ;;  %4334 = vst.msk [vmem:[%s8475_s9 + $0x260] sm:$0xff] %vm1542_vm0, %v4110_v36  ;;  %v3875_v53 = vadd.f32 %v3651_v13, %v3427_v19  ;;  %v3446_v5 = vadd.f32 %v3265_v60, %v10096_v3  ;;  %v3876_v21 = vadd.f32 %v3652_v25, %v3428_v48  ;;  %v10099_v47 = vld [vmem:[#allocation159_spill] sm:$0xff]  ;;  %v10100_v34 = vld [vmem:[#allocation54_spill] sm:$0xff] }
 0x39a   : > { %v3877_v44 = vadd.f32 %v3653_v63, %v3429_v58  ;;  %v3878_v15 = vadd.f32 %v3654_v43, %v3430_v46  ;;  %v3879_v37 = vadd.f32 %v3655_v20, %v3431_v62  ;;  %v4097_v22 = vmax.f32 %v3873_v11, 0.0  ;;  %v10101_v25 = vld [vmem:[#allocation55_spill] sm:$0xff]  ;;  %v10102_v6 = vld [vmem:[#allocation56_spill] sm:$0xff]  ;;  %v10103_v63 = vld [vmem:[#allocation26_spill] sm:$0xff] }
 0x39b   : > { %v4098_v4 = vmax.f32 %v3874_v32, 0.0  ;;  %v4099_v40 = vmax.f32 %v3875_v53, 0.0  ;;  %v3447_v33 = vadd.f32 %v3265_v60, %v10097_v51  ;;  %v4100_v23 = vmax.f32 %v3876_v21, 0.0  ;;  %v3663_v7 = vld [vmem:[%s8442_s6 + $0x268] sm:$0xff]  ;;  %v3664_v46 = vld [vmem:[%s8442_s6 + $0x270] sm:$0xff] }
 0x39c   : > { %v4101_v50 = vmax.f32 %v3877_v44, 0.0  ;;  %v4102_v54 = vmax.f32 %v3878_v15, 0.0  ;;  %v4103_v10 = vmax.f32 %v3879_v37, 0.0  ;;  %4321 = vst [vmem:[%s8475_s9 + $0x1f8] sm:$0xff] %v4097_v22  ;;  %v3448_v18 = vadd.f32 %v3265_v60, %v10098_v59  ;;  %v10104_v52 = vld [vmem:[#allocation27_spill] sm:$0xff]  ;;  %v3275_v44 = vpop.permute.xlu0 %3274  ;;  %v3668_v37 = vld [vmem:[%s8442_s6 + $0x290] sm:$0xff] }
 0x39d   : > { %4322 = vst [vmem:[%s8475_s9 + $0x200] sm:$0xff] %v4098_v4  ;;  %4323 = vst [vmem:[%s8475_s9 + $0x208] sm:$0xff] %v4099_v40  ;;  %v3449_v17 = vadd.f32 %v3265_v60, %v10099_v47  ;;  %v3450_v13 = vadd.f32 %v3265_v60, %v10100_v34  ;;  %v3451_v9 = vadd.f32 %v3265_v60, %v10101_v25  ;;  %v3667_v21 = vld [vmem:[%s8442_s6 + $0x288] sm:$0xff]  ;;  %v10105_v22 = vld [vmem:[#allocation28_spill] sm:$0xff] }
 0x39e   : > { %4324 = vst [vmem:[%s8475_s9 + $0x210] sm:$0xff] %v4100_v23  ;;  %4325 = vst [vmem:[%s8475_s9 + $0x218] sm:$0xff] %v4101_v50  ;;  %v3452_v56 = vadd.f32 %v3265_v60, %v10102_v6  ;;  %v3894_v42 = vadd.f32 %v3670_v31, %v3446_v5  ;;  %v3895_v36 = vadd.f32 %v3671_v49, %v3447_v33  ;;  %v3665_v60 = vld [vmem:[%s8442_s6 + $0x278] sm:$0xff]  ;;  %v3666_v5 = vld [vmem:[%s8442_s6 + $0x280] sm:$0xff] }
 0x39f   : > { %4326 = vst [vmem:[%s8475_s9 + $0x220] sm:$0xff] %v4102_v54  ;;  %4327 = vst.msk [vmem:[%s8475_s9 + $0x228] sm:$0xff] %vm1542_vm0, %v4103_v10  ;;  %v3439_v43 = vadd.f32 %v3260_v24, %v10103_v63  ;;  %v3896_v20 = vadd.f32 %v3672_v45, %v3448_v18  ;;  %v3897_v30 = vadd.f32 %v3673_v61, %v3449_v17  ;;  %v3669_v31 = vld [vmem:[%s8442_s6 + $0x298] sm:$0xff]  ;;  %v10107_v45 = vld [vmem:[#allocation155_spill] sm:$0xff] }
 0x3a0   : > { %v3898_v19 = vadd.f32 %v3674_v55, %v3450_v13  ;;  %v3899_v35 = vadd.f32 %v3675_v27, %v3451_v9  ;;  %v3900_v48 = vadd.f32 %v3676_v26, %v3452_v56  ;;  %v4118_v39 = vmax.f32 %v3894_v42, 0.0  ;;  %v10106_v40 = vld [vmem:[#allocation29_spill] sm:$0xff]  ;;  %v10108_v51 = vld [vmem:[#allocation156_spill] sm:$0xff]  ;;  %v10109_v23 = vld [vmem:[#allocation38_spill] sm:$0xff] }
 0x3a1   : > { %v4119_v58 = vmax.f32 %v3895_v36, 0.0  ;;  %v3440_v62 = vadd.f32 %v3260_v24, %v10104_v52  ;;  %v4120_v11 = vmax.f32 %v3896_v20, 0.0  ;;  %v4121_v32 = vmax.f32 %v3897_v30, 0.0  ;;  %v10110_v59 = vld [vmem:[#allocation53_spill] sm:$0xff]  ;;  %v3684_v13 = vld [vmem:[%s8442_s6 + $0x310] sm:$0xff]  ;;  %v3686_v42 = vld [vmem:[%s8442_s6 + $0x320] sm:$0xff]  ;;  %v3270_v20 = vpop.permute.xlu1 %3269 }
 0x3a2   : > { %v4122_v53 = vmax.f32 %v3898_v19, 0.0  ;;  %v4123_v3 = vmax.f32 %v3899_v35, 0.0  ;;  %v4124_v15 = vmax.f32 %v3900_v48, 0.0  ;;  %4342 = vst [vmem:[%s8475_s9 + $0x2a0] sm:$0xff] %v4118_v39  ;;  %v3441_v4 = vadd.f32 %v3260_v24, %v10105_v22  ;;  %v3685_v56 = vld [vmem:[%s8442_s6 + $0x318] sm:$0xff]  ;;  %v3687_v36 = vld [vmem:[%s8442_s6 + $0x328] sm:$0xff] }
 0x3a3   : > { %4343 = vst [vmem:[%s8475_s9 + $0x2a8] sm:$0xff] %v4119_v58  ;;  %v3442_v49 = vadd.f32 %v3260_v24, %v10106_v40  ;;  %v3443_v61 = vadd.f32 %v3260_v24, %v10107_v45  ;;  %4344 = vst [vmem:[%s8475_s9 + $0x2b0] sm:$0xff] %v4120_v11  ;;  %v3444_v33 = vadd.f32 %v3260_v24, %v10108_v51  ;;  %v10111_v63 = vld [vmem:[#allocation160_spill] sm:$0xff]  ;;  %v3689_v48 = vld [vmem:[%s8442_s6 + $0x338] sm:$0xff] }
 0x3a4   : > { %4345 = vst [vmem:[%s8475_s9 + $0x2b8] sm:$0xff] %v4121_v32  ;;  %4346 = vst [vmem:[%s8475_s9 + $0x2c0] sm:$0xff] %v4122_v53  ;;  %v3445_v50 = vadd.f32 %v3260_v24, %v10109_v23  ;;  %v3887_v54 = vadd.f32 %v3663_v7, %v3439_v43  ;;  %v3888_v10 = vadd.f32 %v3664_v46, %v3440_v62  ;;  %v3688_v35 = vld [vmem:[%s8442_s6 + $0x330] sm:$0xff]  ;;  %v3690_v39 = vld [vmem:[%s8442_s6 + $0x340] sm:$0xff] }
 0x3a5   : > { %4347 = vst [vmem:[%s8475_s9 + $0x2c8] sm:$0xff] %v4123_v3  ;;  %4348 = vst.msk [vmem:[%s8475_s9 + $0x2d0] sm:$0xff] %vm1542_vm0, %v4124_v15  ;;  %v3889_v55 = vadd.f32 %v3665_v60, %v3441_v4  ;;  %v3890_v27 = vadd.f32 %v3666_v5, %v3442_v49  ;;  %v3891_v26 = vadd.f32 %v3667_v21, %v3443_v61  ;;  %v10112_v58 = vld [vmem:[#allocation161_spill] sm:$0xff]  ;;  %v10113_v46 = vld [vmem:[#allocation162_spill] sm:$0xff] }
 0x3a6   : > { %v3460_v18 = vadd.f32 %v3275_v44, %v10110_v59  ;;  %v3892_v47 = vadd.f32 %v3668_v37, %v3444_v33  ;;  %v3893_v17 = vadd.f32 %v3669_v31, %v3445_v50  ;;  %v4111_v34 = vmax.f32 %v3887_v54, 0.0  ;;  %v10114_v52 = vld [vmem:[#allocation62_spill] sm:$0xff]  ;;  %v10115_v11 = vld [vmem:[#allocation63_spill] sm:$0xff]  ;;  %v10116_v53 = vld [vmem:[#allocation64_spill] sm:$0xff] }
 0x3a7   : > { %v4112_v24 = vmax.f32 %v3888_v10, 0.0  ;;  %v4113_v25 = vmax.f32 %v3889_v55, 0.0  ;;  %v4114_v9 = vmax.f32 %v3890_v27, 0.0  ;;  %v4115_v6 = vmax.f32 %v3891_v26, 0.0  ;;  %v10117_v31 = vld [vmem:[#allocation157_spill] sm:$0xff]  ;;  %v3678_v23 = vld [vmem:[%s8442_s6 + $0x2e0] sm:$0xff]  ;;  %v3285_v27 = vpop.permute.xlu0 %3284 }
 0x3a8   : > { %v3461_v43 = vadd.f32 %v3275_v44, %v10111_v63  ;;  %v4116_v30 = vmax.f32 %v3892_v47, 0.0  ;;  %v4117_v19 = vmax.f32 %v3893_v17, 0.0  ;;  %4335 = vst [vmem:[%s8475_s9 + $0x268] sm:$0xff] %v4111_v34  ;;  %v3462_v7 = vadd.f32 %v3275_v44, %v10112_v58  ;;  %v3679_v50 = vld [vmem:[%s8442_s6 + $0x2e8] sm:$0xff]  ;;  %v3680_v54 = vld [vmem:[%s8442_s6 + $0x2f0] sm:$0xff]  ;;  %v10118_v10 = vld [vmem:[#allocation158_spill] sm:$0xff] }
 0x3a9   : > { %4336 = vst [vmem:[%s8475_s9 + $0x270] sm:$0xff] %v4112_v24  ;;  %v3463_v60 = vadd.f32 %v3275_v44, %v10113_v46  ;;  %4337 = vst [vmem:[%s8475_s9 + $0x278] sm:$0xff] %v4113_v25  ;;  %v3464_v62 = vadd.f32 %v3275_v44, %v10114_v52  ;;  %v3465_v32 = vadd.f32 %v3275_v44, %v10115_v11  ;;  %v3681_v47 = vld [vmem:[%s8442_s6 + $0x2f8] sm:$0xff]  ;;  %v3682_v17 = vld [vmem:[%s8442_s6 + $0x300] sm:$0xff] }
 0x3aa   : > { %4338 = vst [vmem:[%s8475_s9 + $0x280] sm:$0xff] %v4114_v9  ;;  %4339 = vst [vmem:[%s8475_s9 + $0x288] sm:$0xff] %v4115_v6  ;;  %v3466_v3 = vadd.f32 %v3275_v44, %v10116_v53  ;;  %v3908_v5 = vadd.f32 %v3684_v13, %v3460_v18  ;;  %v3909_v21 = vadd.f32 %v3685_v56, %v3461_v43  ;;  %v3677_v44 = vld [vmem:[%s8442_s6 + $0x2d8] sm:$0xff]  ;;  %v3683_v34 = vld [vmem:[%s8442_s6 + $0x308] sm:$0xff] }
 0x3ab   : > { %4340 = vst [vmem:[%s8475_s9 + $0x290] sm:$0xff] %v4116_v30  ;;  %4341 = vst.msk [vmem:[%s8475_s9 + $0x298] sm:$0xff] %vm1542_vm0, %v4117_v19  ;;  %v3910_v15 = vadd.f32 %v3686_v42, %v3462_v7  ;;  %v3911_v37 = vadd.f32 %v3687_v36, %v3463_v60  ;;  %v3453_v22 = vadd.f32 %v3270_v20, %v10117_v31  ;;  %v10119_v24 = vld [vmem:[#allocation46_spill] sm:$0xff]  ;;  %v10120_v25 = vld [vmem:[#allocation47_spill] sm:$0xff] }
 0x3ac   : > { %v3912_v4 = vadd.f32 %v3688_v35, %v3464_v62  ;;  %v3913_v40 = vadd.f32 %v3689_v48, %v3465_v32  ;;  %v3914_v49 = vadd.f32 %v3690_v39, %v3466_v3  ;;  %v4132_v45 = vmax.f32 %v3908_v5, 0.0  ;;  %v10121_v6 = vld [vmem:[#allocation48_spill] sm:$0xff]  ;;  %v10122_v42 = vld [vmem:[#allocation49_spill] sm:$0xff]  ;;  %v10123_v63 = vld [vmem:[#allocation42_spill] sm:$0xff] }
 0x3ad   : > { %v4133_v61 = vmax.f32 %v3909_v21, 0.0  ;;  %v4134_v51 = vmax.f32 %v3910_v15, 0.0  ;;  %v4135_v33 = vmax.f32 %v3911_v37, 0.0  ;;  %v3454_v55 = vadd.f32 %v3270_v20, %v10118_v10  ;;  %v10124_v48 = vld [vmem:[#allocation59_spill] sm:$0xff]  ;;  %v3700_v53 = vld [vmem:[%s8442_s6 + $0x390] sm:$0xff]  ;;  %v3701_v3 = vld [vmem:[%s8442_s6 + $0x398] sm:$0xff]  ;;  %v3280_v15 = vpop.permute.xlu1 %3279 }
 0x3ae   : > { %v4136_v26 = vmax.f32 %v3912_v4, 0.0  ;;  %v4137_v59 = vmax.f32 %v3913_v40, 0.0  ;;  %v4138_v18 = vmax.f32 %v3914_v49, 0.0  ;;  %4356 = vst [vmem:[%s8475_s9 + $0x310] sm:$0xff] %v4132_v45  ;;  %v3455_v13 = vadd.f32 %v3270_v20, %v10119_v24  ;;  %v3699_v32 = vld [vmem:[%s8442_s6 + $0x388] sm:$0xff]  ;;  %v10125_v5 = vld [vmem:[#allocation60_spill] sm:$0xff] }
 0x3af   : > { %4357 = vst [vmem:[%s8475_s9 + $0x318] sm:$0xff] %v4133_v61  ;;  %4358 = vst [vmem:[%s8475_s9 + $0x320] sm:$0xff] %v4134_v51  ;;  %v3456_v9 = vadd.f32 %v3270_v20, %v10120_v25  ;;  %v3457_v56 = vadd.f32 %v3270_v20, %v10121_v6  ;;  %v3458_v36 = vadd.f32 %v3270_v20, %v10122_v42  ;;  %v3702_v40 = vld [vmem:[%s8442_s6 + $0x3a0] sm:$0xff]  ;;  %v3703_v49 = vld [vmem:[%s8442_s6 + $0x3a8] sm:$0xff] }
 0x3b0   : > { %4359 = vst [vmem:[%s8475_s9 + $0x328] sm:$0xff] %v4135_v33  ;;  %v3459_v43 = vadd.f32 %v3270_v20, %v10123_v63  ;;  %4360 = vst [vmem:[%s8475_s9 + $0x330] sm:$0xff] %v4136_v26  ;;  %v3901_v30 = vadd.f32 %v3677_v44, %v3453_v22  ;;  %v3902_v19 = vadd.f32 %v3678_v23, %v3454_v55  ;;  %v3698_v20 = vld [vmem:[%s8442_s6 + $0x380] sm:$0xff]  ;;  %v3704_v45 = vld [vmem:[%s8442_s6 + $0x3b0] sm:$0xff] }
 0x3b1   : > { %4361 = vst [vmem:[%s8475_s9 + $0x338] sm:$0xff] %v4137_v59  ;;  %4362 = vst.msk [vmem:[%s8475_s9 + $0x340] sm:$0xff] %vm1542_vm0, %v4138_v18  ;;  %v3903_v35 = vadd.f32 %v3679_v50, %v3455_v13  ;;  %v3474_v39 = vadd.f32 %v3285_v27, %v10124_v48  ;;  %v3904_v58 = vadd.f32 %v3680_v54, %v3456_v9  ;;  %v10126_v44 = vld [vmem:[#allocation61_spill] sm:$0xff]  ;;  %v10127_v51 = vld [vmem:[#allocation164_spill] sm:$0xff] }
 0x3b2   : > { %v3905_v7 = vadd.f32 %v3681_v47, %v3457_v56  ;;  %v3906_v46 = vadd.f32 %v3682_v17, %v3458_v36  ;;  %v3907_v60 = vadd.f32 %v3683_v34, %v3459_v43  ;;  %v4125_v52 = vmax.f32 %v3901_v30, 0.0  ;;  %v10128_v23 = vld [vmem:[#allocation165_spill] sm:$0xff]  ;;  %v10129_v54 = vld [vmem:[#allocation166_spill] sm:$0xff]  ;;  %v3691_v42 = vld [vmem:[%s8442_s6 + $0x348] sm:$0xff] }
 0x3b3   : > { %v4126_v62 = vmax.f32 %v3902_v19, 0.0  ;;  %v4127_v11 = vmax.f32 %v3903_v35, 0.0  ;;  %v3475_v21 = vadd.f32 %v3285_v27, %v10125_v5  ;;  %v4128_v37 = vmax.f32 %v3904_v58, 0.0  ;;  %v10130_v55 = vld [vmem:[#allocation70_spill] sm:$0xff]  ;;  %v10131_v47 = vld [vmem:[#allocation57_spill] sm:$0xff]  ;;  %v3692_v36 = vld [vmem:[%s8442_s6 + $0x350] sm:$0xff] }
 0x3b4   : > { %v4129_v31 = vmax.f32 %v3905_v7, 0.0  ;;  %v4130_v22 = vmax.f32 %v3906_v46, 0.0  ;;  %v4131_v4 = vmax.f32 %v3907_v60, 0.0  ;;  %4349 = vst [vmem:[%s8475_s9 + $0x2d8] sm:$0xff] %v4125_v52  ;;  %v3476_v61 = vadd.f32 %v3285_v27, %v10126_v44  ;;  %v10132_v63 = vld [vmem:[#allocation163_spill] sm:$0xff]  ;;  %v3295_v7 = vpop.permute.xlu0 %3294  ;;  %v3696_v60 = vld [vmem:[%s8442_s6 + $0x370] sm:$0xff] }
 0x3b5   : > { %4350 = vst [vmem:[%s8475_s9 + $0x2e0] sm:$0xff] %v4126_v62  ;;  %4351 = vst [vmem:[%s8475_s9 + $0x2e8] sm:$0xff] %v4127_v11  ;;  %v3477_v33 = vadd.f32 %v3285_v27, %v10127_v51  ;;  %v3478_v50 = vadd.f32 %v3285_v27, %v10128_v23  ;;  %v3479_v10 = vadd.f32 %v3285_v27, %v10129_v54  ;;  %v3695_v58 = vld [vmem:[%s8442_s6 + $0x368] sm:$0xff]  ;;  %v10133_v52 = vld [vmem:[#allocation202_spill] sm:$0xff] }
 0x3b6   : > { %4352 = vst [vmem:[%s8475_s9 + $0x2f0] sm:$0xff] %v4128_v37  ;;  %4353 = vst [vmem:[%s8475_s9 + $0x2f8] sm:$0xff] %v4129_v31  ;;  %v3480_v26 = vadd.f32 %v3285_v27, %v10130_v55  ;;  %v3922_v59 = vadd.f32 %v3698_v20, %v3474_v39  ;;  %v3923_v18 = vadd.f32 %v3699_v32, %v3475_v21  ;;  %v3693_v27 = vld [vmem:[%s8442_s6 + $0x358] sm:$0xff]  ;;  %v3694_v39 = vld [vmem:[%s8442_s6 + $0x360] sm:$0xff] }
 0x3b7   : > { %4354 = vst [vmem:[%s8475_s9 + $0x300] sm:$0xff] %v4130_v22  ;;  %4355 = vst.msk [vmem:[%s8475_s9 + $0x308] sm:$0xff] %vm1542_vm0, %v4131_v4  ;;  %v3467_v17 = vadd.f32 %v3280_v15, %v10131_v47  ;;  %v3924_v34 = vadd.f32 %v3700_v53, %v3476_v61  ;;  %v3925_v24 = vadd.f32 %v3701_v3, %v3477_v33  ;;  %v3697_v20 = vld [vmem:[%s8442_s6 + $0x378] sm:$0xff]  ;;  %v10134_v11 = vld [vmem:[#allocation204_spill] sm:$0xff] }
 0x3b8   : > { %v3926_v13 = vadd.f32 %v3702_v40, %v3478_v50  ;;  %v3927_v25 = vadd.f32 %v3703_v49, %v3479_v10  ;;  %v3928_v9 = vadd.f32 %v3704_v45, %v3480_v26  ;;  %v4146_v6 = vmax.f32 %v3922_v59, 0.0  ;;  %v10135_v53 = vld [vmem:[#allocation50_spill] sm:$0xff]  ;;  %v10136_v5 = vld [vmem:[#allocation51_spill] sm:$0xff]  ;;  %v10137_v37 = vld [vmem:[#allocation52_spill] sm:$0xff] }
 0x3b9   : > { %v4147_v56 = vmax.f32 %v3923_v18, 0.0  ;;  %v3468_v43 = vadd.f32 %v3280_v15, %v10132_v63  ;;  %v4148_v30 = vmax.f32 %v3924_v34, 0.0  ;;  %v4149_v19 = vmax.f32 %v3925_v24, 0.0  ;;  %v10138_v44 = vld [vmem:[#allocation208_spill] sm:$0xff]  ;;  %v3713_v26 = vld [vmem:[%s8442_s6 + $0x3f8] sm:$0xff]  ;;  %v3714_v59 = vld [vmem:[%s8442_s6 + $0x400] sm:$0xff]  ;;  %v3290_v34 = vpop.permute.xlu1 %3289 }
 0x3ba   : > { %v4150_v35 = vmax.f32 %v3926_v13, 0.0  ;;  %v4151_v48 = vmax.f32 %v3927_v25, 0.0  ;;  %v4152_v46 = vmax.f32 %v3928_v9, 0.0  ;;  %4370 = vst [vmem:[%s8475_s9 + $0x380] sm:$0xff] %v4146_v6  ;;  %v3469_v62 = vadd.f32 %v3280_v15, %v10133_v52  ;;  %v3712_v50 = vld [vmem:[%s8442_s6 + $0x3f0] sm:$0xff]  ;;  %v3715_v18 = vld [vmem:[%s8442_s6 + $0x408] sm:$0xff] }
 0x3bb   : > { %4371 = vst [vmem:[%s8475_s9 + $0x388] sm:$0xff] %v4147_v56  ;;  %v3470_v32 = vadd.f32 %v3280_v15, %v10134_v11  ;;  %v3471_v3 = vadd.f32 %v3280_v15, %v10135_v53  ;;  %4372 = vst [vmem:[%s8475_s9 + $0x390] sm:$0xff] %v4148_v30  ;;  %v3472_v21 = vadd.f32 %v3280_v15, %v10136_v5  ;;  %v10139_v47 = vld [vmem:[#allocation66_spill] sm:$0xff]  ;;  %v3716_v25 = vld [vmem:[%s8442_s6 + $0x410] sm:$0xff] }
 0x3bc   : > { %4373 = vst [vmem:[%s8475_s9 + $0x398] sm:$0xff] %v4149_v19  ;;  %4374 = vst [vmem:[%s8475_s9 + $0x3a0] sm:$0xff] %v4150_v35  ;;  %v3473_v31 = vadd.f32 %v3280_v15, %v10137_v37  ;;  %v3915_v22 = vadd.f32 %v3691_v42, %v3467_v17  ;;  %v3916_v4 = vadd.f32 %v3692_v36, %v3468_v43  ;;  %v3717_v9 = vld [vmem:[%s8442_s6 + $0x418] sm:$0xff]  ;;  %v3718_v6 = vld [vmem:[%s8442_s6 + $0x420] sm:$0xff] }
 0x3bd   : > { %4375 = vst [vmem:[%s8475_s9 + $0x3a8] sm:$0xff] %v4151_v48  ;;  %4376 = vst.msk [vmem:[%s8475_s9 + $0x3b0] sm:$0xff] %vm1542_vm0, %v4152_v46  ;;  %v3917_v40 = vadd.f32 %v3693_v27, %v3469_v62  ;;  %v3918_v49 = vadd.f32 %v3694_v39, %v3470_v32  ;;  %v3919_v45 = vadd.f32 %v3695_v58, %v3471_v3  ;;  %v10140_v56 = vld [vmem:[#allocation67_spill] sm:$0xff]  ;;  %v10141_v36 = vld [vmem:[#allocation68_spill] sm:$0xff] }
 0x3be   : > { %v3488_v61 = vadd.f32 %v3295_v7, %v10138_v44  ;;  %v3920_v51 = vadd.f32 %v3696_v60, %v3472_v21  ;;  %v3921_v33 = vadd.f32 %v3697_v20, %v3473_v31  ;;  %v4139_v23 = vmax.f32 %v3915_v22, 0.0  ;;  %v10142_v63 = vld [vmem:[#allocation69_spill] sm:$0xff]  ;;  %v10143_v30 = vld [vmem:[#allocation170_spill] sm:$0xff]  ;;  %v10144_v35 = vld [vmem:[#allocation171_spill] sm:$0xff] }
 0x3bf   : > { %v4140_v15 = vmax.f32 %v3916_v4, 0.0  ;;  %v4141_v54 = vmax.f32 %v3917_v40, 0.0  ;;  %v4142_v10 = vmax.f32 %v3918_v49, 0.0  ;;  %v4143_v55 = vmax.f32 %v3919_v45, 0.0  ;;  %v10145_v20 = vld [vmem:[#allocation65_spill] sm:$0xff]  ;;  %v3706_v37 = vld [vmem:[%s8442_s6 + $0x3c0] sm:$0xff]  ;;  %v3305_v49 = vpop.permute.xlu0 %3304 }
 0x3c0   : > { %v3489_v17 = vadd.f32 %v3295_v7, %v10139_v47  ;;  %v4144_v24 = vmax.f32 %v3920_v51, 0.0  ;;  %v4145_v13 = vmax.f32 %v3921_v33, 0.0  ;;  %4363 = vst [vmem:[%s8475_s9 + $0x348] sm:$0xff] %v4139_v23  ;;  %v3490_v42 = vadd.f32 %v3295_v7, %v10140_v56  ;;  %v3707_v31 = vld [vmem:[%s8442_s6 + $0x3c8] sm:$0xff]  ;;  %v3708_v22 = vld [vmem:[%s8442_s6 + $0x3d0] sm:$0xff]  ;;  %v3709_v51 = vld [vmem:[%s8442_s6 + $0x3d8] sm:$0xff] }
 0x3c1   : > { %4364 = vst [vmem:[%s8475_s9 + $0x350] sm:$0xff] %v4140_v15  ;;  %v3491_v27 = vadd.f32 %v3295_v7, %v10141_v36  ;;  %4365 = vst [vmem:[%s8475_s9 + $0x358] sm:$0xff] %v4141_v54  ;;  %v3492_v43 = vadd.f32 %v3295_v7, %v10142_v63  ;;  %v3493_v19 = vadd.f32 %v3295_v7, %v10143_v30  ;;  %v10146_v4 = vld [vmem:[#allocation167_spill] sm:$0xff]  ;;  %v3710_v33 = vld [vmem:[%s8442_s6 + $0x3e0] sm:$0xff] }
 0x3c2   : > { %4366 = vst [vmem:[%s8475_s9 + $0x360] sm:$0xff] %v4142_v10  ;;  %4367 = vst [vmem:[%s8475_s9 + $0x368] sm:$0xff] %v4143_v55  ;;  %v3494_v48 = vadd.f32 %v3295_v7, %v10144_v35  ;;  %v3936_v39 = vadd.f32 %v3712_v50, %v3488_v61  ;;  %v3937_v58 = vadd.f32 %v3713_v26, %v3489_v17  ;;  %v3705_v7 = vld [vmem:[%s8442_s6 + $0x3b8] sm:$0xff]  ;;  %v3711_v23 = vld [vmem:[%s8442_s6 + $0x3e8] sm:$0xff] }
 0x3c3   : > { %4368 = vst [vmem:[%s8475_s9 + $0x370] sm:$0xff] %v4144_v24  ;;  %4369 = vst.msk [vmem:[%s8475_s9 + $0x378] sm:$0xff] %vm1542_vm0, %v4145_v13  ;;  %v3938_v46 = vadd.f32 %v3714_v59, %v3490_v42  ;;  %v3939_v60 = vadd.f32 %v3715_v18, %v3491_v27  ;;  %v3481_v52 = vadd.f32 %v3290_v34, %v10145_v20  ;;  %v10147_v15 = vld [vmem:[#allocation168_spill] sm:$0xff]  ;;  %v10148_v54 = vld [vmem:[#allocation169_spill] sm:$0xff] }
 0x3c4   : > { %v3940_v62 = vadd.f32 %v3716_v25, %v3492_v43  ;;  %v3941_v11 = vadd.f32 %v3717_v9, %v3493_v19  ;;  %v3942_v32 = vadd.f32 %v3718_v6, %v3494_v48  ;;  %v4160_v53 = vmax.f32 %v3936_v39, 0.0  ;;  %v10149_v55 = vld [vmem:[#allocation203_spill] sm:$0xff]  ;;  %v10150_v59 = vld [vmem:[#allocation206_spill] sm:$0xff]  ;;  %v10152_v9 = vld [vmem:[#allocation181_spill] sm:$0xff] }
 0x3c5   : > { %v4161_v3 = vmax.f32 %v3937_v58, 0.0  ;;  %v4162_v5 = vmax.f32 %v3938_v46, 0.0  ;;  %v4163_v21 = vmax.f32 %v3939_v60, 0.0  ;;  %v3482_v40 = vadd.f32 %v3290_v34, %v10146_v4  ;;  %v10151_v47 = vld [vmem:[#allocation58_spill] sm:$0xff]  ;;  %v3727_v19 = vld [vmem:[%s8442_s6 + $0x468] sm:$0xff]  ;;  %v3728_v35 = vld [vmem:[%s8442_s6 + $0x470] sm:$0xff]  ;;  %v3300_v46 = vpop.permute.xlu1 %3299 }
 0x3c6   : > { %v4164_v45 = vmax.f32 %v3940_v62, 0.0  ;;  %v4165_v44 = vmax.f32 %v3941_v11, 0.0  ;;  %v4166_v61 = vmax.f32 %v3942_v32, 0.0  ;;  %4384 = vst [vmem:[%s8475_s9 + $0x3f0] sm:$0xff] %v4160_v53  ;;  %v3483_v50 = vadd.f32 %v3290_v34, %v10147_v15  ;;  %v3729_v48 = vld [vmem:[%s8442_s6 + $0x478] sm:$0xff]  ;;  %v10153_v39 = vld [vmem:[#allocation207_spill] sm:$0xff] }
 0x3c7   : > { %4385 = vst [vmem:[%s8475_s9 + $0x3f8] sm:$0xff] %v4161_v3  ;;  %4386 = vst [vmem:[%s8475_s9 + $0x400] sm:$0xff] %v4162_v5  ;;  %v3484_v10 = vadd.f32 %v3290_v34, %v10148_v54  ;;  %v3485_v26 = vadd.f32 %v3290_v34, %v10149_v55  ;;  %v3486_v18 = vadd.f32 %v3290_v34, %v10150_v59  ;;  %v3730_v11 = vld [vmem:[%s8442_s6 + $0x480] sm:$0xff]  ;;  %v3731_v32 = vld [vmem:[%s8442_s6 + $0x488] sm:$0xff] }
 0x3c8   : > { %4387 = vst [vmem:[%s8475_s9 + $0x408] sm:$0xff] %v4163_v21  ;;  %v3487_v17 = vadd.f32 %v3290_v34, %v10151_v47  ;;  %4388 = vst [vmem:[%s8475_s9 + $0x410] sm:$0xff] %v4164_v45  ;;  %v3929_v24 = vadd.f32 %v3705_v7, %v3481_v52  ;;  %v3930_v13 = vadd.f32 %v3706_v37, %v3482_v40  ;;  %v3726_v34 = vld [vmem:[%s8442_s6 + $0x460] sm:$0xff]  ;;  %v3732_v53 = vld [vmem:[%s8442_s6 + $0x490] sm:$0xff] }
 0x3c9   : > { %4389 = vst [vmem:[%s8475_s9 + $0x418] sm:$0xff] %v4165_v44  ;;  %4390 = vst.msk [vmem:[%s8475_s9 + $0x420] sm:$0xff] %vm1542_vm0, %v4166_v61  ;;  %v3931_v25 = vadd.f32 %v3707_v31, %v3483_v50  ;;  %v3502_v6 = vadd.f32 %v3305_v49, %v10152_v9  ;;  %v3932_v56 = vadd.f32 %v3708_v22, %v3484_v10  ;;  %v10154_v7 = vld [vmem:[#allocation210_spill] sm:$0xff]  ;;  %v10156_v37 = vld [vmem:[#allocation75_spill] sm:$0xff] }
 0x3ca   : > { %v3933_v42 = vadd.f32 %v3709_v51, %v3485_v26  ;;  %v3934_v36 = vadd.f32 %v3710_v33, %v3486_v18  ;;  %v3935_v27 = vadd.f32 %v3711_v23, %v3487_v17  ;;  %v4153_v63 = vmax.f32 %v3929_v24, 0.0  ;;  %v10155_v5 = vld [vmem:[#allocation74_spill] sm:$0xff]  ;;  %v10157_v22 = vld [vmem:[#allocation76_spill] sm:$0xff]  ;;  %v10158_v40 = vld [vmem:[#allocation77_spill] sm:$0xff] }
 0x3cb   : > { %v4154_v43 = vmax.f32 %v3930_v13, 0.0  ;;  %v4155_v30 = vmax.f32 %v3931_v25, 0.0  ;;  %v3503_v58 = vadd.f32 %v3305_v49, %v10153_v39  ;;  %v4156_v60 = vmax.f32 %v3932_v56, 0.0  ;;  %v10159_v51 = vld [vmem:[#allocation71_spill] sm:$0xff]  ;;  %v3720_v18 = vld [vmem:[%s8442_s6 + $0x430] sm:$0xff] }
 0x3cc   : > { %v4157_v20 = vmax.f32 %v3933_v42, 0.0  ;;  %v4158_v52 = vmax.f32 %v3934_v36, 0.0  ;;  %v4159_v62 = vmax.f32 %v3935_v27, 0.0  ;;  %4377 = vst [vmem:[%s8475_s9 + $0x3b8] sm:$0xff] %v4153_v63  ;;  %v3504_v3 = vadd.f32 %v3305_v49, %v10154_v7  ;;  %v3719_v59 = vld [vmem:[%s8442_s6 + $0x428] sm:$0xff]  ;;  %v10160_v47 = vld [vmem:[#allocation72_spill] sm:$0xff]  ;;  %v3315_v42 = vpop.permute.xlu0 %3314 }
 0x3cd   : > { %4378 = vst [vmem:[%s8475_s9 + $0x3c0] sm:$0xff] %v4154_v43  ;;  %4379 = vst [vmem:[%s8475_s9 + $0x3c8] sm:$0xff] %v4155_v30  ;;  %v3505_v21 = vadd.f32 %v3305_v49, %v10155_v5  ;;  %v3506_v31 = vadd.f32 %v3305_v49, %v10156_v37  ;;  %v3507_v4 = vadd.f32 %v3305_v49, %v10157_v22  ;;  %v3723_v56 = vld [vmem:[%s8442_s6 + $0x448] sm:$0xff]  ;;  %v3724_v27 = vld [vmem:[%s8442_s6 + $0x450] sm:$0xff] }
 0x3ce   : > { %4380 = vst [vmem:[%s8475_s9 + $0x3d0] sm:$0xff] %v4156_v60  ;;  %4381 = vst [vmem:[%s8475_s9 + $0x3d8] sm:$0xff] %v4157_v20  ;;  %v3508_v45 = vadd.f32 %v3305_v49, %v10158_v40  ;;  %v3950_v44 = vadd.f32 %v3726_v34, %v3502_v6  ;;  %v3951_v61 = vadd.f32 %v3727_v19, %v3503_v58  ;;  %v3721_v49 = vld [vmem:[%s8442_s6 + $0x438] sm:$0xff]  ;;  %v3722_v6 = vld [vmem:[%s8442_s6 + $0x440] sm:$0xff] }
 0x3cf   : > { %4382 = vst [vmem:[%s8475_s9 + $0x3e0] sm:$0xff] %v4158_v52  ;;  %4383 = vst.msk [vmem:[%s8475_s9 + $0x3e8] sm:$0xff] %vm1542_vm0, %v4159_v62  ;;  %v3495_v33 = vadd.f32 %v3300_v46, %v10159_v51  ;;  %v3952_v23 = vadd.f32 %v3728_v35, %v3504_v3  ;;  %v3953_v15 = vadd.f32 %v3729_v48, %v3505_v21  ;;  %v3725_v34 = vld [vmem:[%s8442_s6 + $0x458] sm:$0xff]  ;;  %v10163_v35 = vld [vmem:[#allocation174_spill] sm:$0xff] }
 0x3d0   : > { %v3954_v50 = vadd.f32 %v3730_v11, %v3506_v31  ;;  %v3955_v54 = vadd.f32 %v3731_v32, %v3507_v4  ;;  %v3956_v10 = vadd.f32 %v3732_v53, %v3508_v45  ;;  %v4174_v55 = vmax.f32 %v3950_v44, 0.0  ;;  %v10161_v63 = vld [vmem:[#allocation73_spill] sm:$0xff]  ;;  %v10164_v39 = vld [vmem:[#allocation175_spill] sm:$0xff]  ;;  %v3740_v31 = vld [vmem:[%s8442_s6 + $0x4d0] sm:$0xff] }
 0x3d1   : > { %v4175_v26 = vmax.f32 %v3951_v61, 0.0  ;;  %v3496_v17 = vadd.f32 %v3300_v46, %v10160_v47  ;;  %v4176_v24 = vmax.f32 %v3952_v23, 0.0  ;;  %v4177_v13 = vmax.f32 %v3953_v15, 0.0  ;;  %v10162_v30 = vld [vmem:[#allocation173_spill] sm:$0xff]  ;;  %v3742_v44 = vld [vmem:[%s8442_s6 + $0x4e0] sm:$0xff]  ;;  %v3743_v61 = vld [vmem:[%s8442_s6 + $0x4e8] sm:$0xff]  ;;  %v3310_v23 = vpop.permute.xlu1 %3309 }
 0x3d2   : > { %v4178_v25 = vmax.f32 %v3954_v50, 0.0  ;;  %v4179_v9 = vmax.f32 %v3955_v54, 0.0  ;;  %v4180_v36 = vmax.f32 %v3956_v10, 0.0  ;;  %4398 = vst [vmem:[%s8475_s9 + $0x460] sm:$0xff] %v4174_v55  ;;  %v3497_v43 = vadd.f32 %v3300_v46, %v10161_v63  ;;  %v10165_v60 = vld [vmem:[#allocation205_spill] sm:$0xff]  ;;  %v10167_v51 = vld [vmem:[#allocation186_spill] sm:$0xff] }
 0x3d3   : > { %4399 = vst [vmem:[%s8475_s9 + $0x468] sm:$0xff] %v4175_v26  ;;  %v3498_v19 = vadd.f32 %v3300_v46, %v10162_v30  ;;  %v3499_v48 = vadd.f32 %v3300_v46, %v10163_v35  ;;  %4400 = vst [vmem:[%s8475_s9 + $0x470] sm:$0xff] %v4176_v24  ;;  %v3500_v58 = vadd.f32 %v3300_v46, %v10164_v39  ;;  %v10166_v7 = vld [vmem:[#allocation185_spill] sm:$0xff]  ;;  %v3744_v54 = vld [vmem:[%s8442_s6 + $0x4f0] sm:$0xff] }
 0x3d4   : > { %4401 = vst [vmem:[%s8475_s9 + $0x478] sm:$0xff] %v4177_v13  ;;  %4402 = vst [vmem:[%s8475_s9 + $0x480] sm:$0xff] %v4178_v25  ;;  %v3501_v20 = vadd.f32 %v3300_v46, %v10165_v60  ;;  %v3943_v52 = vadd.f32 %v3719_v59, %v3495_v33  ;;  %v3944_v62 = vadd.f32 %v3720_v18, %v3496_v17  ;;  %v3741_v45 = vld [vmem:[%s8442_s6 + $0x4d8] sm:$0xff]  ;;  %v3746_v55 = vld [vmem:[%s8442_s6 + $0x500] sm:$0xff] }
 0x3d5   : > { %4403 = vst [vmem:[%s8475_s9 + $0x488] sm:$0xff] %v4179_v9  ;;  %4404 = vst.msk [vmem:[%s8475_s9 + $0x490] sm:$0xff] %vm1542_vm0, %v4180_v36  ;;  %v3945_v11 = vadd.f32 %v3721_v49, %v3497_v43  ;;  %v3946_v32 = vadd.f32 %v3722_v6, %v3498_v19  ;;  %v3947_v53 = vadd.f32 %v3723_v56, %v3499_v48  ;;  %v3745_v10 = vld [vmem:[%s8442_s6 + $0x4f8] sm:$0xff]  ;;  %v10168_v26 = vld [vmem:[#allocation187_spill] sm:$0xff] }
 0x3d6   : > { %v3516_v3 = vadd.f32 %v3315_v42, %v10166_v7  ;;  %v3948_v5 = vadd.f32 %v3724_v27, %v3500_v58  ;;  %v3949_v21 = vadd.f32 %v3725_v34, %v3501_v20  ;;  %v4167_v37 = vmax.f32 %v3943_v52, 0.0  ;;  %v10169_v18 = vld [vmem:[#allocation209_spill] sm:$0xff]  ;;  %v10170_v47 = vld [vmem:[#allocation212_spill] sm:$0xff]  ;;  %v10171_v24 = vld [vmem:[#allocation82_spill] sm:$0xff] }
 0x3d7   : > { %v4168_v46 = vmax.f32 %v3944_v62, 0.0  ;;  %v4169_v22 = vmax.f32 %v3945_v11, 0.0  ;;  %v4170_v4 = vmax.f32 %v3946_v32, 0.0  ;;  %v4171_v40 = vmax.f32 %v3947_v53, 0.0  ;;  %v10172_v25 = vld [vmem:[#allocation83_spill] sm:$0xff]  ;;  %v10173_v34 = vld [vmem:[#allocation172_spill] sm:$0xff]  ;;  %v3325_v32 = vpop.permute.xlu0 %3324 }
 0x3d8   : > { %v3517_v33 = vadd.f32 %v3315_v42, %v10167_v51  ;;  %v4172_v15 = vmax.f32 %v3948_v5, 0.0  ;;  %v4173_v50 = vmax.f32 %v3949_v21, 0.0  ;;  %4391 = vst [vmem:[%s8475_s9 + $0x428] sm:$0xff] %v4167_v37  ;;  %v3518_v59 = vadd.f32 %v3315_v42, %v10168_v26  ;;  %v3734_v60 = vld [vmem:[%s8442_s6 + $0x4a0] sm:$0xff]  ;;  %v3735_v20 = vld [vmem:[%s8442_s6 + $0x4a8] sm:$0xff]  ;;  %v3736_v52 = vld [vmem:[%s8442_s6 + $0x4b0] sm:$0xff] }
 0x3d9   : > { %4392 = vst [vmem:[%s8475_s9 + $0x430] sm:$0xff] %v4168_v46  ;;  %v3519_v49 = vadd.f32 %v3315_v42, %v10169_v18  ;;  %4393 = vst [vmem:[%s8475_s9 + $0x438] sm:$0xff] %v4169_v22  ;;  %v3520_v17 = vadd.f32 %v3315_v42, %v10170_v47  ;;  %v3521_v13 = vadd.f32 %v3315_v42, %v10171_v24  ;;  %v10174_v62 = vld [vmem:[#allocation78_spill] sm:$0xff]  ;;  %v3737_v5 = vld [vmem:[%s8442_s6 + $0x4b8] sm:$0xff] }
 0x3da   : > { %4394 = vst [vmem:[%s8475_s9 + $0x440] sm:$0xff] %v4170_v4  ;;  %4395 = vst [vmem:[%s8475_s9 + $0x448] sm:$0xff] %v4171_v40  ;;  %v3522_v9 = vadd.f32 %v3315_v42, %v10172_v25  ;;  %v3964_v6 = vadd.f32 %v3740_v31, %v3516_v3  ;;  %v3965_v56 = vadd.f32 %v3741_v45, %v3517_v33  ;;  %v3733_v42 = vld [vmem:[%s8442_s6 + $0x498] sm:$0xff]  ;;  %v3738_v21 = vld [vmem:[%s8442_s6 + $0x4c0] sm:$0xff] }
 0x3db   : > { %4396 = vst [vmem:[%s8475_s9 + $0x450] sm:$0xff] %v4172_v15  ;;  %4397 = vst.msk [vmem:[%s8475_s9 + $0x458] sm:$0xff] %vm1542_vm0, %v4173_v50  ;;  %v3966_v36 = vadd.f32 %v3742_v44, %v3518_v59  ;;  %v3967_v27 = vadd.f32 %v3743_v61, %v3519_v49  ;;  %v3509_v63 = vadd.f32 %v3310_v23, %v10173_v34  ;;  %v3739_v37 = vld [vmem:[%s8442_s6 + $0x4c8] sm:$0xff]  ;;  %v10176_v22 = vld [vmem:[#allocation80_spill] sm:$0xff] }
 0x3dc   : > { %v3968_v43 = vadd.f32 %v3744_v54, %v3520_v17  ;;  %v3969_v30 = vadd.f32 %v3745_v10, %v3521_v13  ;;  %v3970_v19 = vadd.f32 %v3746_v55, %v3522_v9  ;;  %v4188_v35 = vmax.f32 %v3964_v6, 0.0  ;;  %v10175_v46 = vld [vmem:[#allocation79_spill] sm:$0xff]  ;;  %v10177_v40 = vld [vmem:[#allocation81_spill] sm:$0xff]  ;;  %v10179_v51 = vld [vmem:[#allocation180_spill] sm:$0xff] }
 0x3dd   : > { %v4189_v48 = vmax.f32 %v3965_v56, 0.0  ;;  %v4190_v39 = vmax.f32 %v3966_v36, 0.0  ;;  %v4191_v58 = vmax.f32 %v3967_v27, 0.0  ;;  %v3510_v11 = vadd.f32 %v3310_v23, %v10174_v62  ;;  %v10178_v44 = vld [vmem:[#allocation179_spill] sm:$0xff]  ;;  %v10180_v10 = vld [vmem:[#allocation96_spill] sm:$0xff]  ;;  %v3757_v9 = vld [vmem:[%s8442_s6 + $0x558] sm:$0xff]  ;;  %v3320_v36 = vpop.permute.xlu1 %3319 }
 0x3de   : > { %v4192_v53 = vmax.f32 %v3968_v43, 0.0  ;;  %v4193_v7 = vmax.f32 %v3969_v30, 0.0  ;;  %v4194_v3 = vmax.f32 %v3970_v19, 0.0  ;;  %4412 = vst [vmem:[%s8475_s9 + $0x4d0] sm:$0xff] %v4188_v35  ;;  %v3511_v31 = vadd.f32 %v3310_v23, %v10175_v46  ;;  %v3755_v13 = vld [vmem:[%s8442_s6 + $0x548] sm:$0xff]  ;;  %v3756_v25 = vld [vmem:[%s8442_s6 + $0x550] sm:$0xff] }
 0x3df   : > { %4413 = vst [vmem:[%s8475_s9 + $0x4d8] sm:$0xff] %v4189_v48  ;;  %4414 = vst [vmem:[%s8475_s9 + $0x4e0] sm:$0xff] %v4190_v39  ;;  %v3512_v4 = vadd.f32 %v3310_v23, %v10176_v22  ;;  %v3513_v45 = vadd.f32 %v3310_v23, %v10177_v40  ;;  %v3514_v61 = vadd.f32 %v3310_v23, %v10178_v44  ;;  %v10181_v6 = vld [vmem:[#allocation97_spill] sm:$0xff]  ;;  %v3758_v30 = vld [vmem:[%s8442_s6 + $0x560] sm:$0xff] }
 0x3e0   : > { %4415 = vst [vmem:[%s8475_s9 + $0x4e8] sm:$0xff] %v4191_v58  ;;  %v3515_v33 = vadd.f32 %v3310_v23, %v10179_v51  ;;  %4416 = vst [vmem:[%s8475_s9 + $0x4f0] sm:$0xff] %v4192_v53  ;;  %v3957_v15 = vadd.f32 %v3733_v42, %v3509_v63  ;;  %v3958_v50 = vadd.f32 %v3734_v60, %v3510_v11  ;;  %v3754_v23 = vld [vmem:[%s8442_s6 + $0x540] sm:$0xff]  ;;  %v3759_v19 = vld [vmem:[%s8442_s6 + $0x568] sm:$0xff] }
 0x3e1   : > { %4417 = vst [vmem:[%s8475_s9 + $0x4f8] sm:$0xff] %v4193_v7  ;;  %4418 = vst.msk [vmem:[%s8475_s9 + $0x500] sm:$0xff] %vm1542_vm0, %v4194_v3  ;;  %v3959_v54 = vadd.f32 %v3735_v20, %v3511_v31  ;;  %v3530_v55 = vadd.f32 %v3325_v32, %v10180_v10  ;;  %v3960_v26 = vadd.f32 %v3736_v52, %v3512_v4  ;;  %v3760_v35 = vld [vmem:[%s8442_s6 + $0x570] sm:$0xff]  ;;  %v10182_v42 = vld [vmem:[#allocation191_spill] sm:$0xff] }
 0x3e2   : > { %v3961_v59 = vadd.f32 %v3737_v5, %v3513_v45  ;;  %v3962_v18 = vadd.f32 %v3738_v21, %v3514_v61  ;;  %v3963_v49 = vadd.f32 %v3739_v37, %v3515_v33  ;;  %v4181_v47 = vmax.f32 %v3957_v15, 0.0  ;;  %v10183_v39 = vld [vmem:[#allocation192_spill] sm:$0xff]  ;;  %v10184_v60 = vld [vmem:[#allocation193_spill] sm:$0xff]  ;;  %v10185_v52 = vld [vmem:[#allocation211_spill] sm:$0xff] }
 0x3e3   : > { %v4182_v17 = vmax.f32 %v3958_v50, 0.0  ;;  %v4183_v24 = vmax.f32 %v3959_v54, 0.0  ;;  %v3531_v56 = vadd.f32 %v3325_v32, %v10181_v6  ;;  %v4184_v27 = vmax.f32 %v3960_v26, 0.0  ;;  %v10186_v11 = vld [vmem:[#allocation214_spill] sm:$0xff]  ;;  %v10187_v5 = vld [vmem:[#allocation176_spill] sm:$0xff]  ;;  %v3747_v44 = vld [vmem:[%s8442_s6 + $0x508] sm:$0xff] }
 0x3e4   : > { %v4185_v34 = vmax.f32 %v3961_v59, 0.0  ;;  %v4186_v63 = vmax.f32 %v3962_v18, 0.0  ;;  %v4187_v43 = vmax.f32 %v3963_v49, 0.0  ;;  %4405 = vst [vmem:[%s8475_s9 + $0x498] sm:$0xff] %v4181_v47  ;;  %v3532_v48 = vadd.f32 %v3325_v32, %v10182_v42  ;;  %v3748_v61 = vld [vmem:[%s8442_s6 + $0x510] sm:$0xff]  ;;  %v10188_v51 = vld [vmem:[#allocation177_spill] sm:$0xff]  ;;  %v3335_v59 = vpop.permute.xlu0 %3334 }
 0x3e5   : > { %4406 = vst [vmem:[%s8475_s9 + $0x4a0] sm:$0xff] %v4182_v17  ;;  %4407 = vst [vmem:[%s8475_s9 + $0x4a8] sm:$0xff] %v4183_v24  ;;  %v3533_v58 = vadd.f32 %v3325_v32, %v10183_v39  ;;  %v3534_v20 = vadd.f32 %v3325_v32, %v10184_v60  ;;  %v3535_v62 = vadd.f32 %v3325_v32, %v10185_v52  ;;  %v3751_v26 = vld [vmem:[%s8442_s6 + $0x528] sm:$0xff]  ;;  %v3752_v49 = vld [vmem:[%s8442_s6 + $0x530] sm:$0xff] }
 0x3e6   : > { %4408 = vst [vmem:[%s8475_s9 + $0x4b0] sm:$0xff] %v4184_v27  ;;  %4409 = vst [vmem:[%s8475_s9 + $0x4b8] sm:$0xff] %v4185_v34  ;;  %v3536_v53 = vadd.f32 %v3325_v32, %v10186_v11  ;;  %v3978_v7 = vadd.f32 %v3754_v23, %v3530_v55  ;;  %v3979_v3 = vadd.f32 %v3755_v13, %v3531_v56  ;;  %v3749_v32 = vld [vmem:[%s8442_s6 + $0x518] sm:$0xff]  ;;  %v3750_v55 = vld [vmem:[%s8442_s6 + $0x520] sm:$0xff] }
 0x3e7   : > { %4410 = vst [vmem:[%s8475_s9 + $0x4c0] sm:$0xff] %v4186_v63  ;;  %4411 = vst.msk [vmem:[%s8475_s9 + $0x4c8] sm:$0xff] %vm1542_vm0, %v4187_v43  ;;  %v3523_v21 = vadd.f32 %v3320_v36, %v10187_v5  ;;  %v3980_v37 = vadd.f32 %v3756_v25, %v3532_v48  ;;  %v3981_v46 = vadd.f32 %v3757_v9, %v3533_v58  ;;  %v3753_v23 = vld [vmem:[%s8442_s6 + $0x538] sm:$0xff]  ;;  %v10189_v47 = vld [vmem:[#allocation178_spill] sm:$0xff] }
 0x3e8   : > { %v3982_v31 = vadd.f32 %v3758_v30, %v3534_v20  ;;  %v3983_v22 = vadd.f32 %v3759_v19, %v3535_v62  ;;  %v3984_v4 = vadd.f32 %v3760_v35, %v3536_v53  ;;  %v4202_v40 = vmax.f32 %v3978_v7, 0.0  ;;  %v10190_v24 = vld [vmem:[#allocation86_spill] sm:$0xff]  ;;  %v10191_v25 = vld [vmem:[#allocation87_spill] sm:$0xff]  ;;  %v10192_v6 = vld [vmem:[#allocation88_spill] sm:$0xff] }
 0x3e9   : > { %v4203_v45 = vmax.f32 %v3979_v3, 0.0  ;;  %v3524_v33 = vadd.f32 %v3320_v36, %v10188_v51  ;;  %v4204_v15 = vmax.f32 %v3980_v37, 0.0  ;;  %v4205_v50 = vmax.f32 %v3981_v46, 0.0  ;;  %v10193_v27 = vld [vmem:[#allocation89_spill] sm:$0xff]  ;;  %v10194_v42 = vld [vmem:[#allocation103_spill] sm:$0xff]  ;;  %v3768_v20 = vld [vmem:[%s8442_s6 + $0x5b0] sm:$0xff]  ;;  %v3330_v37 = vpop.permute.xlu1 %3329 }
 0x3ea   : > { %v4206_v54 = vmax.f32 %v3982_v31, 0.0  ;;  %v4207_v10 = vmax.f32 %v3983_v22, 0.0  ;;  %v4208_v18 = vmax.f32 %v3984_v4, 0.0  ;;  %4426 = vst [vmem:[%s8475_s9 + $0x540] sm:$0xff] %v4202_v40  ;;  %v3525_v17 = vadd.f32 %v3320_v36, %v10189_v47  ;;  %v3769_v53 = vld [vmem:[%s8442_s6 + $0x5b8] sm:$0xff]  ;;  %v3770_v7 = vld [vmem:[%s8442_s6 + $0x5c0] sm:$0xff] }
 0x3eb   : > { %4427 = vst [vmem:[%s8475_s9 + $0x548] sm:$0xff] %v4203_v45  ;;  %v3526_v13 = vadd.f32 %v3320_v36, %v10190_v24  ;;  %v3527_v9 = vadd.f32 %v3320_v36, %v10191_v25  ;;  %4428 = vst [vmem:[%s8475_s9 + $0x550] sm:$0xff] %v4204_v15  ;;  %v3528_v56 = vadd.f32 %v3320_v36, %v10192_v6  ;;  %v3771_v3 = vld [vmem:[%s8442_s6 + $0x5c8] sm:$0xff]  ;;  %v10195_v5 = vld [vmem:[#allocation104_spill] sm:$0xff] }
 0x3ec   : > { %4429 = vst [vmem:[%s8475_s9 + $0x558] sm:$0xff] %v4205_v50  ;;  %4430 = vst [vmem:[%s8475_s9 + $0x560] sm:$0xff] %v4206_v54  ;;  %v3529_v34 = vadd.f32 %v3320_v36, %v10193_v27  ;;  %v3971_v63 = vadd.f32 %v3747_v44, %v3523_v21  ;;  %v3972_v43 = vadd.f32 %v3748_v61, %v3524_v33  ;;  %v3772_v22 = vld [vmem:[%s8442_s6 + $0x5d0] sm:$0xff]  ;;  %v3773_v4 = vld [vmem:[%s8442_s6 + $0x5d8] sm:$0xff] }
 0x3ed   : > { %4431 = vst [vmem:[%s8475_s9 + $0x568] sm:$0xff] %v4207_v10  ;;  %4432 = vst.msk [vmem:[%s8475_s9 + $0x570] sm:$0xff] %vm1542_vm0, %v4208_v18  ;;  %v3973_v30 = vadd.f32 %v3749_v32, %v3525_v17  ;;  %v3974_v19 = vadd.f32 %v3750_v55, %v3526_v13  ;;  %v3975_v35 = vadd.f32 %v3751_v26, %v3527_v9  ;;  %v3774_v40 = vld [vmem:[%s8442_s6 + $0x5e0] sm:$0xff]  ;;  %v10197_v61 = vld [vmem:[#allocation107_spill] sm:$0xff] }
 0x3ee   : > { %v3544_v48 = vadd.f32 %v3335_v59, %v10194_v42  ;;  %v3976_v39 = vadd.f32 %v3752_v49, %v3528_v56  ;;  %v3977_v58 = vadd.f32 %v3753_v23, %v3529_v34  ;;  %v4195_v60 = vmax.f32 %v3971_v63, 0.0  ;;  %v10196_v45 = vld [vmem:[#allocation106_spill] sm:$0xff]  ;;  %v10198_v51 = vld [vmem:[#allocation195_spill] sm:$0xff]  ;;  %v10199_v15 = vld [vmem:[#allocation108_spill] sm:$0xff] }
 0x3ef   : > { %v4196_v36 = vmax.f32 %v3972_v43, 0.0  ;;  %v4197_v52 = vmax.f32 %v3973_v30, 0.0  ;;  %v4198_v62 = vmax.f32 %v3974_v19, 0.0  ;;  %v4199_v11 = vmax.f32 %v3975_v35, 0.0  ;;  %v10200_v54 = vld [vmem:[#allocation111_spill] sm:$0xff]  ;;  %v10201_v23 = vld [vmem:[#allocation84_spill] sm:$0xff]  ;;  %v3345_v19 = vpop.permute.xlu0 %3344 }
 0x3f0   : > { %v3545_v21 = vadd.f32 %v3335_v59, %v10195_v5  ;;  %v4200_v46 = vmax.f32 %v3976_v39, 0.0  ;;  %v4201_v31 = vmax.f32 %v3977_v58, 0.0  ;;  %4419 = vst [vmem:[%s8475_s9 + $0x508] sm:$0xff] %v4195_v60  ;;  %v3546_v44 = vadd.f32 %v3335_v59, %v10196_v45  ;;  %v3762_v27 = vld [vmem:[%s8442_s6 + $0x580] sm:$0xff]  ;;  %v3763_v34 = vld [vmem:[%s8442_s6 + $0x588] sm:$0xff]  ;;  %v3764_v63 = vld [vmem:[%s8442_s6 + $0x590] sm:$0xff] }
 0x3f1   : > { %4420 = vst [vmem:[%s8475_s9 + $0x510] sm:$0xff] %v4196_v36  ;;  %v3547_v32 = vadd.f32 %v3335_v59, %v10197_v61  ;;  %4421 = vst [vmem:[%s8475_s9 + $0x518] sm:$0xff] %v4197_v52  ;;  %v3548_v33 = vadd.f32 %v3335_v59, %v10198_v51  ;;  %v3549_v50 = vadd.f32 %v3335_v59, %v10199_v15  ;;  %v10202_v43 = vld [vmem:[#allocation85_spill] sm:$0xff]  ;;  %v3766_v58 = vld [vmem:[%s8442_s6 + $0x5a0] sm:$0xff] }
 0x3f2   : > { %4422 = vst [vmem:[%s8475_s9 + $0x520] sm:$0xff] %v4198_v62  ;;  %4423 = vst [vmem:[%s8475_s9 + $0x528] sm:$0xff] %v4199_v11  ;;  %v3550_v10 = vadd.f32 %v3335_v59, %v10200_v54  ;;  %v3992_v55 = vadd.f32 %v3768_v20, %v3544_v48  ;;  %v3993_v26 = vadd.f32 %v3769_v53, %v3545_v21  ;;  %v3761_v59 = vld [vmem:[%s8442_s6 + $0x578] sm:$0xff]  ;;  %v3767_v60 = vld [vmem:[%s8442_s6 + $0x5a8] sm:$0xff] }
 0x3f3   : > { %4424 = vst [vmem:[%s8475_s9 + $0x530] sm:$0xff] %v4200_v46  ;;  %4425 = vst.msk [vmem:[%s8475_s9 + $0x538] sm:$0xff] %vm1542_vm0, %v4201_v31  ;;  %v3994_v18 = vadd.f32 %v3770_v7, %v3546_v44  ;;  %v3995_v49 = vadd.f32 %v3771_v3, %v3547_v32  ;;  %v3537_v47 = vadd.f32 %v3330_v37, %v10201_v23  ;;  %v3765_v39 = vld [vmem:[%s8442_s6 + $0x598] sm:$0xff]  ;;  %v10203_v36 = vld [vmem:[#allocation182_spill] sm:$0xff] }
 0x3f4   : > { %v3996_v17 = vadd.f32 %v3772_v22, %v3548_v33  ;;  %v3997_v24 = vadd.f32 %v3773_v4, %v3549_v50  ;;  %v3998_v13 = vadd.f32 %v3774_v40, %v3550_v10  ;;  %v4216_v25 = vmax.f32 %v3992_v55, 0.0  ;;  %v10204_v52 = vld [vmem:[#allocation183_spill] sm:$0xff]  ;;  %v10205_v11 = vld [vmem:[#allocation184_spill] sm:$0xff]  ;;  %v10206_v7 = vld [vmem:[#allocation94_spill] sm:$0xff] }
 0x3f5   : > { %v4217_v9 = vmax.f32 %v3993_v26, 0.0  ;;  %v4218_v6 = vmax.f32 %v3994_v18, 0.0  ;;  %v4219_v56 = vmax.f32 %v3995_v49, 0.0  ;;  %v3538_v30 = vadd.f32 %v3330_v37, %v10202_v43  ;;  %v10207_v5 = vld [vmem:[#allocation95_spill] sm:$0xff]  ;;  %v10208_v4 = vld [vmem:[#allocation194_spill] sm:$0xff]  ;;  %v3784_v54 = vld [vmem:[%s8442_s6 + $0x630] sm:$0xff]  ;;  %v3340_v18 = vpop.permute.xlu1 %3339 }
 0x3f6   : > { %v4220_v35 = vmax.f32 %v3996_v17, 0.0  ;;  %v4221_v42 = vmax.f32 %v3997_v24, 0.0  ;;  %v4222_v48 = vmax.f32 %v3998_v13, 0.0  ;;  %4440 = vst [vmem:[%s8475_s9 + $0x5b0] sm:$0xff] %v4216_v25  ;;  %v3539_v20 = vadd.f32 %v3330_v37, %v10203_v36  ;;  %v3783_v50 = vld [vmem:[%s8442_s6 + $0x628] sm:$0xff]  ;;  %v3785_v10 = vld [vmem:[%s8442_s6 + $0x638] sm:$0xff] }
 0x3f7   : > { %4441 = vst [vmem:[%s8475_s9 + $0x5b8] sm:$0xff] %v4217_v9  ;;  %4442 = vst [vmem:[%s8475_s9 + $0x5c0] sm:$0xff] %v4218_v6  ;;  %v3540_v62 = vadd.f32 %v3330_v37, %v10204_v52  ;;  %v3541_v53 = vadd.f32 %v3330_v37, %v10205_v11  ;;  %v3542_v3 = vadd.f32 %v3330_v37, %v10206_v7  ;;  %v10209_v55 = vld [vmem:[#allocation115_spill] sm:$0xff]  ;;  %v3786_v24 = vld [vmem:[%s8442_s6 + $0x640] sm:$0xff] }
 0x3f8   : > { %4443 = vst [vmem:[%s8475_s9 + $0x5c8] sm:$0xff] %v4219_v56  ;;  %v3543_v21 = vadd.f32 %v3330_v37, %v10207_v5  ;;  %4444 = vst [vmem:[%s8475_s9 + $0x5d0] sm:$0xff] %v4220_v35  ;;  %v3985_v46 = vadd.f32 %v3761_v59, %v3537_v47  ;;  %v3986_v31 = vadd.f32 %v3762_v27, %v3538_v30  ;;  %v3782_v37 = vld [vmem:[%s8442_s6 + $0x620] sm:$0xff]  ;;  %v3787_v13 = vld [vmem:[%s8442_s6 + $0x648] sm:$0xff] }
 0x3f9   : > { %4445 = vst [vmem:[%s8475_s9 + $0x5d8] sm:$0xff] %v4221_v42  ;;  %4446 = vst.msk [vmem:[%s8475_s9 + $0x5e0] sm:$0xff] %vm1542_vm0, %v4222_v48  ;;  %v3987_v22 = vadd.f32 %v3763_v34, %v3539_v20  ;;  %v3558_v40 = vadd.f32 %v3345_v19, %v10208_v4  ;;  %v3988_v45 = vadd.f32 %v3764_v63, %v3540_v62  ;;  %v3788_v25 = vld [vmem:[%s8442_s6 + $0x650] sm:$0xff]  ;;  %v10211_v6 = vld [vmem:[#allocation118_spill] sm:$0xff] }
 0x3fa   : > { %v3989_v44 = vadd.f32 %v3765_v39, %v3541_v53  ;;  %v3990_v61 = vadd.f32 %v3766_v58, %v3542_v3  ;;  %v3991_v32 = vadd.f32 %v3767_v60, %v3543_v21  ;;  %v4209_v51 = vmax.f32 %v3985_v46, 0.0  ;;  %v10210_v59 = vld [vmem:[#allocation116_spill] sm:$0xff]  ;;  %v10212_v27 = vld [vmem:[#allocation119_spill] sm:$0xff]  ;;  %v10213_v63 = vld [vmem:[#allocation197_spill] sm:$0xff] }
 0x3fb   : > { %v4210_v33 = vmax.f32 %v3986_v31, 0.0  ;;  %v4211_v15 = vmax.f32 %v3987_v22, 0.0  ;;  %v3559_v26 = vadd.f32 %v3345_v19, %v10209_v55  ;;  %v4212_v49 = vmax.f32 %v3988_v45, 0.0  ;;  %v10214_v30 = vld [vmem:[#allocation120_spill] sm:$0xff]  ;;  %v10215_v39 = vld [vmem:[#allocation90_spill] sm:$0xff]  ;;  %v3775_v7 = vld [vmem:[%s8442_s6 + $0x5e8] sm:$0xff] }
 0x3fc   : > { %v4213_v23 = vmax.f32 %v3989_v44, 0.0  ;;  %v4214_v47 = vmax.f32 %v3990_v61, 0.0  ;;  %v4215_v17 = vmax.f32 %v3991_v32, 0.0  ;;  %4433 = vst [vmem:[%s8475_s9 + $0x578] sm:$0xff] %v4209_v51  ;;  %v3560_v9 = vadd.f32 %v3345_v19, %v10210_v59  ;;  %v3776_v3 = vld [vmem:[%s8442_s6 + $0x5f0] sm:$0xff]  ;;  %v10216_v5 = vld [vmem:[#allocation91_spill] sm:$0xff]  ;;  %v3355_v44 = vpop.permute.xlu0 %3354 }
 0x3fd   : > { %4434 = vst [vmem:[%s8475_s9 + $0x580] sm:$0xff] %v4210_v33  ;;  %4435 = vst [vmem:[%s8475_s9 + $0x588] sm:$0xff] %v4211_v15  ;;  %v3561_v56 = vadd.f32 %v3345_v19, %v10211_v6  ;;  %v3562_v34 = vadd.f32 %v3345_v19, %v10212_v27  ;;  %v3563_v43 = vadd.f32 %v3345_v19, %v10213_v63  ;;  %v3779_v45 = vld [vmem:[%s8442_s6 + $0x608] sm:$0xff]  ;;  %v3780_v32 = vld [vmem:[%s8442_s6 + $0x610] sm:$0xff] }
 0x3fe   : > { %4436 = vst [vmem:[%s8475_s9 + $0x590] sm:$0xff] %v4212_v49  ;;  %4437 = vst [vmem:[%s8475_s9 + $0x598] sm:$0xff] %v4213_v23  ;;  %v3564_v35 = vadd.f32 %v3345_v19, %v10214_v30  ;;  %v4006_v42 = vadd.f32 %v3782_v37, %v3558_v40  ;;  %v4007_v48 = vadd.f32 %v3783_v50, %v3559_v26  ;;  %v3777_v19 = vld [vmem:[%s8442_s6 + $0x5f8] sm:$0xff]  ;;  %v3778_v40 = vld [vmem:[%s8442_s6 + $0x600] sm:$0xff] }
 0x3ff   : > { %4438 = vst [vmem:[%s8475_s9 + $0x5a0] sm:$0xff] %v4214_v47  ;;  %4439 = vst.msk [vmem:[%s8475_s9 + $0x5a8] sm:$0xff] %vm1542_vm0, %v4215_v17  ;;  %v3551_v58 = vadd.f32 %v3340_v18, %v10215_v39  ;;  %v4008_v60 = vadd.f32 %v3784_v54, %v3560_v9  ;;  %v4009_v36 = vadd.f32 %v3785_v10, %v3561_v56  ;;  %v3781_v37 = vld [vmem:[%s8442_s6 + $0x618] sm:$0xff]  ;;  %v10217_v51 = vld [vmem:[#allocation92_spill] sm:$0xff] }
 0x400   : > { %v4010_v20 = vadd.f32 %v3786_v24, %v3562_v34  ;;  %v4011_v52 = vadd.f32 %v3787_v13, %v3563_v43  ;;  %v4012_v62 = vadd.f32 %v3788_v25, %v3564_v35  ;;  %v4230_v11 = vmax.f32 %v4006_v42, 0.0  ;;  %v10218_v15 = vld [vmem:[#allocation93_spill] sm:$0xff]  ;;  %v10219_v54 = vld [vmem:[#allocation188_spill] sm:$0xff]  ;;  %v10221_v49 = vld [vmem:[#allocation190_spill] sm:$0xff] }
 0x401   : > { %v4231_v53 = vmax.f32 %v4007_v48, 0.0  ;;  %v3552_v21 = vadd.f32 %v3340_v18, %v10216_v5  ;;  %v4232_v46 = vmax.f32 %v4008_v60, 0.0  ;;  %v4233_v31 = vmax.f32 %v4009_v36, 0.0  ;;  %v10220_v55 = vld [vmem:[#allocation189_spill] sm:$0xff]  ;;  %v10222_v59 = vld [vmem:[#allocation123_spill] sm:$0xff]  ;;  %v3796_v34 = vld [vmem:[%s8442_s6 + $0x690] sm:$0xff] }
 0x402   : > { %v4234_v22 = vmax.f32 %v4010_v20, 0.0  ;;  %v4235_v4 = vmax.f32 %v4011_v52, 0.0  ;;  %v4236_v61 = vmax.f32 %v4012_v62, 0.0  ;;  %4454 = vst [vmem:[%s8475_s9 + $0x620] sm:$0xff] %v4230_v11  ;;  %v3553_v33 = vadd.f32 %v3340_v18, %v10217_v51  ;;  %v3797_v35 = vld [vmem:[%s8442_s6 + $0x698] sm:$0xff]  ;;  %v3798_v42 = vld [vmem:[%s8442_s6 + $0x6a0] sm:$0xff] }
 0x403   : > { %4455 = vst [vmem:[%s8475_s9 + $0x628] sm:$0xff] %v4231_v53  ;;  %v3554_v50 = vadd.f32 %v3340_v18, %v10218_v15  ;;  %v3555_v10 = vadd.f32 %v3340_v18, %v10219_v54  ;;  %4456 = vst [vmem:[%s8475_s9 + $0x630] sm:$0xff] %v4232_v46  ;;  %v3556_v26 = vadd.f32 %v3340_v18, %v10220_v55  ;;  %v3799_v48 = vld [vmem:[%s8442_s6 + $0x6a8] sm:$0xff]  ;;  %v3800_v20 = vld [vmem:[%s8442_s6 + $0x6b0] sm:$0xff] }
 0x404   : > { %4457 = vst [vmem:[%s8475_s9 + $0x638] sm:$0xff] %v4233_v31  ;;  %4458 = vst [vmem:[%s8475_s9 + $0x640] sm:$0xff] %v4234_v22  ;;  %v3557_v23 = vadd.f32 %v3340_v18, %v10221_v49  ;;  %v3999_v47 = vadd.f32 %v3775_v7, %v3551_v58  ;;  %v4000_v17 = vadd.f32 %v3776_v3, %v3552_v21  ;;  %v3350_v58 = vpop.permute.xlu1 %3349  ;;  %v3801_v52 = vld [vmem:[%s8442_s6 + $0x6b8] sm:$0xff]  ;;  %v3802_v62 = vld [vmem:[%s8442_s6 + $0x6c0] sm:$0xff] }
 0x405   : > { %4459 = vst [vmem:[%s8475_s9 + $0x648] sm:$0xff] %v4235_v4  ;;  %4460 = vst.msk [vmem:[%s8475_s9 + $0x650] sm:$0xff] %vm1542_vm0, %v4236_v61  ;;  %v4001_v24 = vadd.f32 %v3777_v19, %v3553_v33  ;;  %v4002_v13 = vadd.f32 %v3778_v40, %v3554_v50  ;;  %v4003_v25 = vadd.f32 %v3779_v45, %v3555_v10  ;;  %v10223_v21 = vld [vmem:[#allocation213_spill] sm:$0xff]  ;;  %v3791_v61 = vld [vmem:[%s8442_s6 + $0x668] sm:$0xff] }
 0x406   : > { %v3572_v9 = vadd.f32 %v3355_v44, %v10222_v59  ;;  %v4004_v6 = vadd.f32 %v3780_v32, %v3556_v26  ;;  %v4005_v56 = vadd.f32 %v3781_v37, %v3557_v23  ;;  %v4223_v27 = vmax.f32 %v3999_v47, 0.0  ;;  %v3789_v22 = vld [vmem:[%s8442_s6 + $0x658] sm:$0xff]  ;;  %v3792_v32 = vld [vmem:[%s8442_s6 + $0x670] sm:$0xff]  ;;  %v10224_v37 = vld [vmem:[#allocation98_spill] sm:$0xff] }
 0x407   : > { %v4224_v18 = vmax.f32 %v4000_v17, 0.0  ;;  %v4225_v63 = vmax.f32 %v4001_v24, 0.0  ;;  %v4226_v43 = vmax.f32 %v4002_v13, 0.0  ;;  %v4227_v30 = vmax.f32 %v4003_v25, 0.0  ;;  %v3793_v54 = vld [vmem:[%s8442_s6 + $0x678] sm:$0xff]  ;;  %v3794_v10 = vld [vmem:[%s8442_s6 + $0x680] sm:$0xff] }
 0x408   : > { %v3573_v39 = vadd.f32 %v3355_v44, %v8498_v0  ;;  %v4228_v60 = vmax.f32 %v4004_v6, 0.0  ;;  %v4229_v36 = vmax.f32 %v4005_v56, 0.0  ;;  %4447 = vst [vmem:[%s8475_s9 + $0x5e8] sm:$0xff] %v4223_v27  ;;  %v3574_v11 = vadd.f32 %v3355_v44, %v8504_v2  ;;  %v3795_v55 = vld [vmem:[%s8442_s6 + $0x688] sm:$0xff]  ;;  %v10226_v23 = vld [vmem:[#allocation100_spill] sm:$0xff]  ;;  %v10227_v17 = vld [vmem:[#allocation101_spill] sm:$0xff] }
 0x409   : > { %4448 = vst [vmem:[%s8475_s9 + $0x5f0] sm:$0xff] %v4224_v18  ;;  %v3575_v53 = vadd.f32 %v3355_v44, %v8512_v41  ;;  %4449 = vst [vmem:[%s8475_s9 + $0x5f8] sm:$0xff] %v4225_v63  ;;  %v3576_v0 = vadd.f32 %v3355_v44, %v8515_v1  ;;  %v3577_v7 = vadd.f32 %v3355_v44, %v8518_v38  ;;  %v10225_v26 = vld [vmem:[#allocation99_spill] sm:$0xff]  ;;  %v10228_v13 = vld [vmem:[#allocation102_spill] sm:$0xff] }
 0x40a   : > { %4450 = vst [vmem:[%s8475_s9 + $0x600] sm:$0xff] %v4226_v43  ;;  %4451 = vst [vmem:[%s8475_s9 + $0x608] sm:$0xff] %v4227_v30  ;;  %v3578_v3 = vadd.f32 %v3355_v44, %v8521_v16  ;;  %v4020_v19 = vadd.f32 %v3796_v34, %v3572_v9  ;;  %v4021_v2 = vadd.f32 %v3797_v35, %v3573_v39  ;;  %v3790_v44 = vld [vmem:[%s8442_s6 + $0x660] sm:$0xff]  ;;  %v10229_v59 = vld [vmem:[#allocation105_spill] sm:$0xff] }
 0x40b   : > { %4452 = vst [vmem:[%s8475_s9 + $0x610] sm:$0xff] %v4228_v60  ;;  %4453 = vst.msk [vmem:[%s8475_s9 + $0x618] sm:$0xff] %vm1542_vm0, %v4229_v36  ;;  %v4022_v5 = vadd.f32 %v3798_v42, %v3574_v11  ;;  %v4023_v41 = vadd.f32 %v3799_v48, %v3575_v53  ;;  %v3565_v46 = vadd.f32 %v3350_v58, %v10223_v21  ;;  %v10230_v18 = vld [vmem:[#allocation144_spill] sm:$0xff]  ;;  %v3360_v42 = vpop.permute.xlu1 %3359  ;;  %v10231_v60 = vld [vmem:[#allocation147_spill] sm:$0xff] }
 0x40c   : > { %v4024_v31 = vadd.f32 %v3800_v20, %v3576_v0  ;;  %v4025_v1 = vadd.f32 %v3801_v52, %v3577_v7  ;;  %v4026_v38 = vadd.f32 %v3802_v62, %v3578_v3  ;;  %v4244_v16 = vmax.f32 %v4020_v19, 0.0  ;;  %v3803_v20 = vld [vmem:[%s8442_s6 + $0x6c8] sm:$0xff]  ;;  %v3804_v52 = vld [vmem:[%s8442_s6 + $0x6d0] sm:$0xff]  ;;  %v3805_v7 = vld [vmem:[%s8442_s6 + $0x6d8] sm:$0xff] }
 0x40d   : > { %v4245_v4 = vmax.f32 %v4021_v2, 0.0  ;;  %v4246_v40 = vmax.f32 %v4022_v5, 0.0  ;;  %v4247_v45 = vmax.f32 %v4023_v41, 0.0  ;;  %v3566_v51 = vadd.f32 %v3350_v58, %v10224_v37  ;;  %v3806_v3 = vld [vmem:[%s8442_s6 + $0x6e0] sm:$0xff]  ;;  %v3807_v19 = vld [vmem:[%s8442_s6 + $0x6e8] sm:$0xff]  ;;  %v3808_v2 = vld [vmem:[%s8442_s6 + $0x6f0] sm:$0xff] }
 0x40e   : > { %v4248_v33 = vmax.f32 %v4024_v31, 0.0  ;;  %v4249_v15 = vmax.f32 %v4025_v1, 0.0  ;;  %v4250_v50 = vmax.f32 %v4026_v38, 0.0  ;;  %4468 = vst [vmem:[%s8475_s9 + $0x690] sm:$0xff] %v4244_v16  ;;  %v3567_v49 = vadd.f32 %v3350_v58, %v10225_v26  ;;  %v3809_v5 = vld [vmem:[%s8442_s6 + $0x6f8] sm:$0xff] }
 0x40f   : > { %4469 = vst [vmem:[%s8475_s9 + $0x698] sm:$0xff] %v4245_v4  ;;  %4470 = vst [vmem:[%s8475_s9 + $0x6a0] sm:$0xff] %v4246_v40  ;;  %v3568_v47 = vadd.f32 %v3350_v58, %v10226_v23  ;;  %v3569_v24 = vadd.f32 %v3350_v58, %v10227_v17  ;;  %v3570_v25 = vadd.f32 %v3350_v58, %v10228_v13 }
 0x410   : > { %4471 = vst [vmem:[%s8475_s9 + $0x6a8] sm:$0xff] %v4247_v45  ;;  %v3571_v9 = vadd.f32 %v3350_v58, %v10229_v59  ;;  %4472 = vst [vmem:[%s8475_s9 + $0x6b0] sm:$0xff] %v4248_v33  ;;  %v4013_v6 = vadd.f32 %v3789_v22, %v3565_v46  ;;  %v4014_v56 = vadd.f32 %v3790_v44, %v3566_v51 }
 0x411   : > { %4473 = vst [vmem:[%s8475_s9 + $0x6b8] sm:$0xff] %v4249_v15  ;;  %4474 = vst.msk [vmem:[%s8475_s9 + $0x6c0] sm:$0xff] %vm1542_vm0, %v4250_v50  ;;  %v4015_v27 = vadd.f32 %v3791_v61, %v3567_v49  ;;  %v3200_v34 = vmul.f32 %v8501_v29, %v10230_v18  ;;  %v4016_v63 = vadd.f32 %v3792_v32, %v3568_v47 }
 0x412   : > { %v4017_v43 = vadd.f32 %v3793_v54, %v3569_v24  ;;  %v4018_v30 = vadd.f32 %v3794_v10, %v3570_v25  ;;  %v4019_v35 = vadd.f32 %v3795_v55, %v3571_v9  ;;  %v4237_v48 = vmax.f32 %v4013_v6, 0.0 }
 0x413   : > { %v4238_v39 = vmax.f32 %v4014_v56, 0.0  ;;  %v4239_v58 = vmax.f32 %v4015_v27, 0.0  ;;  %v3201_v36 = vmul.f32 %v8501_v29, %v10231_v60  ;;  %v4240_v62 = vmax.f32 %v4016_v63, 0.0 }
 0x414   : > { %v4241_v11 = vmax.f32 %v4017_v43, 0.0  ;;  %v4242_v53 = vmax.f32 %v4018_v30, 0.0  ;;  %v4243_v0 = vmax.f32 %v4019_v35, 0.0  ;;  %4461 = vst [vmem:[%s8475_s9 + $0x658] sm:$0xff] %v4237_v48  ;;  %v3579_v29 = vadd.f32 %v3360_v42, %v8532_v28 }
 0x415   : > { %4462 = vst [vmem:[%s8475_s9 + $0x660] sm:$0xff] %v4238_v39  ;;  %4463 = vst [vmem:[%s8475_s9 + $0x668] sm:$0xff] %v4239_v58  ;;  %v3580_v41 = vadd.f32 %v3360_v42, %v8536_v8  ;;  %v3581_v21 = vadd.f32 %v3360_v42, %v8540_v14  ;;  %v3582_v46 = vadd.f32 %v3360_v42, %v8544_v57 }
 0x416   : > { %4464 = vst [vmem:[%s8475_s9 + $0x670] sm:$0xff] %v4240_v62  ;;  %4465 = vst [vmem:[%s8475_s9 + $0x678] sm:$0xff] %v4241_v11  ;;  %v3583_v31 = vadd.f32 %v3360_v42, %v8558_v12  ;;  %v3584_v1 = vadd.f32 %v3360_v42, %v3200_v34  ;;  %v3585_v38 = vadd.f32 %v3360_v42, %v3201_v36 }
 0x417   : > { %4466 = vst [vmem:[%s8475_s9 + $0x680] sm:$0xff] %v4242_v53  ;;  %4467 = vst.msk [vmem:[%s8475_s9 + $0x688] sm:$0xff] %vm1542_vm0, %v4243_v0  ;;  %v4027_v16 = vadd.f32 %v3803_v20, %v3579_v29  ;;  %v4028_v28 = vadd.f32 %v3804_v52, %v3580_v41  ;;  %v4029_v8 = vadd.f32 %v3805_v7, %v3581_v21 }
 0x418   : > { %v4030_v14 = vadd.f32 %v3806_v3, %v3582_v46  ;;  %v4031_v57 = vadd.f32 %v3807_v19, %v3583_v31  ;;  %v4032_v22 = vadd.f32 %v3808_v2, %v3584_v1  ;;  %v4033_v4 = vadd.f32 %v3809_v5, %v3585_v38 }
 0x419   : > { %v4251_v40 = vmax.f32 %v4027_v16, 0.0  ;;  %v4252_v45 = vmax.f32 %v4028_v28, 0.0  ;;  %v4253_v44 = vmax.f32 %v4029_v8, 0.0 }
 0x41a   : > { %v4254_v12 = vmax.f32 %v4030_v14, 0.0  ;;  %v4255_v61 = vmax.f32 %v4031_v57, 0.0  ;;  %v4256_v32 = vmax.f32 %v4032_v22, 0.0  ;;  %v4257_v37 = vmax.f32 %v4033_v4, 0.0 }
 0x41b   : > { %4475 = vst [vmem:[%s8475_s9 + $0x6c8] sm:$0xff] %v4251_v40  ;;  %4476 = vst [vmem:[%s8475_s9 + $0x6d0] sm:$0xff] %v4252_v45 }
 0x41c   : > { %4477 = vst [vmem:[%s8475_s9 + $0x6d8] sm:$0xff] %v4253_v44  ;;  %4478 = vst [vmem:[%s8475_s9 + $0x6e0] sm:$0xff] %v4254_v12 }
 0x41d   : > { %4479 = vst [vmem:[%s8475_s9 + $0x6e8] sm:$0xff] %v4255_v61  ;;  %4480 = vst [vmem:[%s8475_s9 + $0x6f0] sm:$0xff] %v4256_v32 }
 0x41e   : > { %4481 = vst.msk [vmem:[%s8475_s9 + $0x6f8] sm:$0xff] %vm1542_vm0, %v4257_v37 }
 0x41f PF: > { %s14_s15 = sadd.s32 1, %s4912_s15  }
 0x420   : > { %p11_p4 = scmp.ge.s32.totalorder %s14_s15, 6  }
 0x422   :  { %13 = sbr.rel (!%p11_p4) target bundleno = 1 (0x1), region = 72 }

</bundles_post_ra>
